<compile_context>
chip_gen: v7x
topology: tpu7x:2x2x1
jax: 0.10.0
libtpu: 0.0.40
codegen_flags: <defaults>
</compile_context>

<pallas_src>
import functools

import jax
import jax.numpy as jnp
import numpy as np
from jax import lax
from jax.experimental import pallas as pl
from jax.experimental.pallas import tpu as pltpu


# ----------------------------------------------------------------------------
# Pallas kernel: one grid step = WB windows = M tokens; attention is computed
# block-diagonally over NG groups of G fused windows (T = G*N tokens each).
# ----------------------------------------------------------------------------
def _window_attention_kernel(x_ref, wqkv_ref, bqkv_ref, bias_ref,
                             wproj_ref, bproj_ref, o_ref,
                             qkv_scr, ctx_scr,
                             *, num_heads, group_windows, shared_bias):
    WB, N, C = x_ref.shape
    H = num_heads
    Dh = C // H
    G = group_windows
    T = G * N
    M = WB * N
    NG = WB // G

    # ---- fused QKV projection (qk scale already folded into the Q columns) --
    x2 = x_ref[...].reshape(M, C)                                     # bf16 (M, C)
    qkv = jnp.dot(x2, wqkv_ref[...], preferred_element_type=jnp.float32)
    qkv_scr[...] = (qkv + bqkv_ref[...]).astype(jnp.bfloat16)         # bf16 once, scratch-backed

    # ---- block-diagonal attention: lane-dense (T, T) scores per head/group --
    for ng in range(NG):                                              # static unroll
        rows = pl.ds(ng * T, T)
        b = 0 if shared_bias else ng
        for h in range(H):                                            # static unroll
            q = qkv_scr[rows, pl.ds(h * Dh, Dh)]                      # (T, Dh) bf16
            k = qkv_scr[rows, pl.ds(C + h * Dh, Dh)]
            v = qkv_scr[rows, pl.ds(2 * C + h * Dh, Dh)]

            # one MXU matmul per head per group: (T, Dh) x (T, Dh)^T -> (T, T)
            s = lax.dot_general(q, k, (((1,), (1,)), ((), ())),
                                preferred_element_type=jnp.float32)
            # fused additive tensor: rel-pos bias + shift mask + cross-window block mask
            s = s + bias_ref[b, h]

            # numerically-stable softmax in f32; reciprocal on the EUP
            s = s - jnp.max(s, axis=-1, keepdims=True)
            p = jnp.exp(s)
            p = p * pl.reciprocal(jnp.sum(p, axis=-1, keepdims=True), approx=True)

            ctx = jnp.dot(p.astype(jnp.bfloat16), v,
                          preferred_element_type=jnp.float32)         # (T, Dh)
            ctx_scr[rows, pl.ds(h * Dh, Dh)] = ctx.astype(jnp.bfloat16)

    # ---- output projection --------------------------------------------------
    y = jnp.dot(ctx_scr[...], wproj_ref[...], preferred_element_type=jnp.float32)
    y = y + bproj_ref[...]
    o_ref[...] = y.reshape(WB, N, C).astype(o_ref.dtype)


# ----------------------------------------------------------------------------
# Host-side helpers.
# ----------------------------------------------------------------------------
def _relative_position_index(window_size):
    Wh, Ww = window_size
    coords = np.stack(np.meshgrid(np.arange(Wh), np.arange(Ww), indexing="ij"))
    coords_flat = coords.reshape(2, -1)
    rel = coords_flat[:, :, None] - coords_flat[:, None, :]
    rel = rel.transpose(1, 2, 0).copy()
    rel[:, :, 0] += Wh - 1
    rel[:, :, 1] += Ww - 1
    rel[:, :, 0] *= 2 * Ww - 1
    return rel.sum(-1)                                                 # (N, N)


def relative_position_bias(params, window_size, num_heads):
    """Precompute (num_heads, N, N) relative-position bias once per model."""
    Wh, Ww = window_size
    N = Wh * Ww
    rel_idx = jnp.asarray(_relative_position_index(window_size).reshape(-1))
    bias = params["rpb_table"][rel_idx].reshape(N, N, num_heads).transpose(2, 0, 1)
    return bias.astype(jnp.float32)


def build_group_bias(rel_pos_bias, mask, group_windows, neg=-1e9):
    """Fold rel-pos bias + optional shift mask + cross-window block mask into
    one additive (nVariants, H, T, T) tensor with T = G*N fused-window tokens."""
    H, N, _ = rel_pos_bias.shape
    G = group_windows
    T = G * N
    win = jnp.arange(T) // N
    same = win[:, None] == win[None, :]                               # (T, T)
    tiled = jnp.tile(rel_pos_bias.astype(jnp.float32), (1, G, G))     # (H, T, T)
    base = jnp.where(same[None], tiled, jnp.float32(neg))
    if mask is None:
        return base[None]                                             # (1, H, T, T)
    nW = mask.shape[0]
    assert nW % G == 0
    variants = []
    for b in range(nW // G):
        mg = jax.scipy.linalg.block_diag(
            *[mask[b * G + g].astype(jnp.float32) for g in range(G)])  # (T, T)
        variants.append(base + mg[None])
    return jnp.stack(variants)                                        # (nW//G, H, T, T)


def init_params(key, dim, window_size, num_heads):
    Wh, Ww = window_size
    k1, k2, k3, k4, k5 = jax.random.split(key, 5)
    table_len = (2 * Wh - 1) * (2 * Ww - 1)
    return {
        # trunc_normal_(std=0.02); plain normal*0.02 is a deterministic stand-in
        "rpb_table": jax.random.normal(k1, (table_len, num_heads), jnp.float32) * 0.02,
        "wqkv": jax.random.normal(k2, (dim, 3 * dim), jnp.float32) * 0.02,
        "bqkv": jax.random.normal(k3, (3 * dim,), jnp.float32) * 0.02,
        "wproj": jax.random.normal(k4, (dim, dim), jnp.float32) * 0.02,
        "bproj": jax.random.normal(k5, (dim,), jnp.float32) * 0.02,
    }


def _choose_window_block(B_, N, nW=None, target_rows=512, min_steps=4):
    """Windows per grid step: M = WB*N ~ 512 rows to amortize per-step pipeline
    overhead, WB divides B_ (and nW when a shift mask is used), and >= min_steps
    grid steps remain so v7x's two TensorCores each get pipelined work."""
    def divides(d):
        return B_ % d == 0 and (nW is None or nW % d == 0)
    divisors = [d for d in range(1, B_ + 1) if divides(d)]
    fitting = [d for d in divisors if d * N <= target_rows] or [1]
    preferred = [d for d in fitting if B_ // d >= min_steps]
    return max(preferred) if preferred else max(fitting)


def _default_group_tokens():
    # v6e / v7x have a 256-wide MXU -> T = 256; v5e (and older) -> T = 128.
    try:
        kind = jax.devices()[0].device_kind.lower()
    except Exception:
        kind = ""
    return 256 if ("v6" in kind or "v7" in kind) else 128


def _choose_group_windows(WB, N, target_tokens):
    """Windows per block-diagonal attention group; prefer a lane-dense T=G*N."""
    divisors = [g for g in range(1, WB + 1) if WB % g == 0]
    fitting = [g for g in divisors if g * N <= max(target_tokens, N)]
    lane_dense = [g for g in fitting if (g * N) % 128 == 0]
    return max(lane_dense or fitting)


# ----------------------------------------------------------------------------
# Wrapper.
# ----------------------------------------------------------------------------
def window_attention(x, params, window_size, num_heads, mask=None, *,
                     rel_pos_bias=None, window_block=None, group_windows=None,
                     out_dtype=None, target_rows=512, group_tokens=None):
    B_, N, C = x.shape
    Wh, Ww = window_size
    assert N == Wh * Ww and C % num_heads == 0
    # TODO(synk): for Swin widths where C is not a multiple of 128 (e.g. C=96),
    # zero-pad C / wqkv / wproj / biases to the next multiple of 128 so the
    # output block stays lane-dense (only C % 128 == 0 is exercised here).
    H = num_heads
    Dh = C // H
    scale = Dh ** (-0.5)
    out_dtype = x.dtype if out_dtype is None else out_dtype

    if rel_pos_bias is None:
        rel_pos_bias = relative_position_bias(params, window_size, num_heads)

    nW = None if mask is None else mask.shape[0]
    WB = (_choose_window_block(B_, N, nW, target_rows=target_rows)
          if window_block is None else window_block)
    assert B_ % WB == 0 and (nW is None or nW % WB == 0)

    if group_tokens is None:
        group_tokens = _default_group_tokens()
    G = (_choose_group_windows(WB, N, group_tokens)
         if group_windows is None else group_windows)
    assert WB % G == 0 and (nW is None or nW % G == 0)
    T = G * N
    M = WB * N
    NG = WB // G

    # Combined additive (variants, H, T, T) tensor: rel-pos bias + shift mask +
    # cross-window block mask (precomputed on the host, selected via index_map).
    group_bias = build_group_bias(rel_pos_bias, mask, G).astype(jnp.float32)
    n_variants = group_bias.shape[0]
    bias_block = 1 if mask is None else NG
    bias_nblocks = n_variants // bias_block

    # Fold the qk scale into the Q columns of W_qkv / b_qkv (one-time, host side).
    scale_vec = jnp.concatenate([jnp.full((C,), scale, jnp.float32),
                                 jnp.ones((2 * C,), jnp.float32)])
    wqkv = (params["wqkv"].astype(jnp.float32) * scale_vec[None, :]).astype(jnp.bfloat16)
    bqkv = (params["bqkv"].astype(jnp.float32) * scale_vec).reshape(1, 3 * C)
    wproj = params["wproj"].astype(jnp.bfloat16)
    bproj = params["bproj"].astype(jnp.float32).reshape(1, C)
    x_lp = x.astype(jnp.bfloat16)

    grid = (B_ // WB,)

    in_specs = [
        pl.BlockSpec((WB, N, C), lambda g: (g, 0, 0)),                      # x windows
        pl.BlockSpec((C, 3 * C), lambda g: (0, 0)),                         # W_qkv (scaled, bf16)
        pl.BlockSpec((1, 3 * C), lambda g: (0, 0)),                         # b_qkv
        pl.BlockSpec((bias_block, H, T, T),
                     lambda g: (g % bias_nblocks, 0, 0, 0)),                # fused bias/mask
        pl.BlockSpec((C, C), lambda g: (0, 0)),                             # W_proj (bf16)
        pl.BlockSpec((1, C), lambda g: (0, 0)),                             # b_proj
    ]
    # TODO(synk): on v7x, single-buffer the grid-invariant weight/bias specs
    # (pipeline_mode=pl.Buffered(1)) once that path is exercised at real widths.

    kernel = functools.partial(_window_attention_kernel, num_heads=H,
                               group_windows=G, shared_bias=(mask is None))

    # VMEM budget: double-buffered I/O + weights + scratch + f32 intermediates,
    # capped with headroom below the physical VMEM of the current chip.
    out_isz = np.dtype(out_dtype).itemsize
    blk_bytes = (2 * WB * N * C * 2                             # x (bf16, 2 bufs)
                 + 2 * WB * N * C * out_isz                     # out (2 bufs)
                 + 2 * bias_block * H * T * T * 4               # fused bias (2 bufs)
                 + 2 * (C * 3 * C * 2 + C * C * 2 + 4 * C * 4)  # weights (2 bufs)
                 + M * 3 * C * 2 + M * C * 2                    # qkv / ctx scratch (bf16)
                 + M * 3 * C * 4 + M * C * 4 + 4 * T * T * 4)   # f32 intermediates headroom
    try:
        vmem_phys = int(pltpu.get_tpu_info().vmem_capacity_bytes)
    except Exception:
        vmem_phys = 64 * 1024 * 1024
    vmem_cap = int(vmem_phys * 0.8)   # ~51 MiB on v7x, ~102 MiB on v5e/v6e
    vmem_limit = int(min(max(2 * blk_bytes, 16 * 1024 * 1024), vmem_cap))

    n_groups = B_ // G
    cost = pl.CostEstimate(
        flops=int(2 * B_ * N * C * 3 * C                       # QKV projection
                  + 4 * n_groups * H * T * T * Dh              # scores + PV
                  + 2 * B_ * N * C * C),                       # output projection
        transcendentals=int(n_groups * H * T * T),
        bytes_accessed=int(x_lp.size * 2 + B_ * N * C * out_isz
                           + wqkv.size * 2 + wproj.size * 2
                           + (bqkv.size + bproj.size) * 4
                           + group_bias.size * 4),
    )

    return pl.pallas_call(
        kernel,
        out_shape=jax.ShapeDtypeStruct((B_, N, C), out_dtype),
        grid_spec=pltpu.PrefetchScalarGridSpec(
            num_scalar_prefetch=0,
            grid=grid,
            in_specs=in_specs,
            out_specs=pl.BlockSpec((WB, N, C), lambda g: (g, 0, 0)),
            scratch_shapes=[pltpu.VMEM((M, 3 * C), jnp.bfloat16),   # qkv scratch
                            pltpu.VMEM((M, C), jnp.bfloat16)],      # ctx scratch
        ),
        compiler_params=pltpu.CompilerParams(
            dimension_semantics=("parallel",),
            vmem_limit_bytes=vmem_limit),
        cost_estimate=cost,
    )(x_lp, wqkv, bqkv, group_bias, wproj, bproj)


# ----------------------------------------------------------------------------
# Pure-JAX reference (mirrors the PyTorch forward) for verification.
# ----------------------------------------------------------------------------
def window_attention_ref(x, params, window_size, num_heads, mask=None):
    B_, N, C = x.shape
    head_dim = C // num_heads
    scale = head_dim ** (-0.5)
    qkv = x @ params["wqkv"] + params["bqkv"]
    qkv = qkv.reshape(B_, N, 3, num_heads, head_dim).transpose(2, 0, 3, 1, 4)
    q, k, v = qkv[0] * scale, qkv[1], qkv[2]
    attn = q @ k.transpose(0, 1, 3, 2)                                  # (B_, H, N, N)

    bias = relative_position_bias(params, window_size, num_heads)
    attn = attn + bias[None]
    if mask is not None:
        nW = mask.shape[0]
        attn = attn.reshape(B_ // nW, nW, num_heads, N, N) + mask[None, :, None]
        attn = attn.reshape(B_, num_heads, N, N)
    attn = jax.nn.softmax(attn, axis=-1)
    out = (attn @ v).transpose(0, 2, 1, 3).reshape(B_, N, C)
    return out @ params["wproj"] + params["bproj"]


if __name__ == "__main__":
    # Swin-style config: 4x4 windows -> N=16 tokens, dim=128 (lane-dense), 4 heads.
    dim, num_heads = 128, 4
    window_size = (4, 4)
    N = window_size[0] * window_size[1]
    batch, n_windows = 4, 16           # e.g. a 16x16 feature map -> 16 windows
    B_ = batch * n_windows             # 64 windows total

    key = jax.random.PRNGKey(0)
    kx, kp, km = jax.random.split(key, 3)
    x = jax.random.normal(kx, (B_, N, dim), jnp.float32)
    params = init_params(kp, dim, window_size, num_heads)
    bias = relative_position_bias(params, window_size, num_heads)  # hoisted once

    # ---- plain (non-shifted) windows: single fused bias variant ------------
    out = window_attention(x, params, window_size, num_heads, mask=None,
                           rel_pos_bias=bias)
    out = jax.block_until_ready(out)
    ref = window_attention_ref(x, params, window_size, num_heads, mask=None)
    np.testing.assert_allclose(np.asarray(out), np.asarray(ref),
                               rtol=2e-2, atol=2e-3)

    # ---- shifted windows: (nW, N, N) additive mask folded into the fused bias
    groups = jax.random.randint(km, (n_windows, N), 0, 2)
    mask = jnp.where(groups[:, :, None] == groups[:, None, :], 0.0, -100.0)
    mask = mask.astype(jnp.float32)
    out_m = window_attention(x, params, window_size, num_heads, mask=mask,
                             rel_pos_bias=bias)
    out_m = jax.block_until_ready(out_m)
    ref_m = window_attention_ref(x, params, window_size, num_heads, mask=mask)
    np.testing.assert_allclose(np.asarray(out_m), np.asarray(ref_m),
                               rtol=2e-2, atol=2e-3)

    print("KERNEL_OK")
</pallas_src>

<mosaic_0001>
module attributes {stable_mosaic.version = 11 : i64} {
  func.func @_window_attention_kernel(%arg0: i32, %arg1: memref<16x16x128xbf16, #tpu.memory_space<vmem>>, %arg2: memref<128x384xbf16, #tpu.memory_space<vmem>>, %arg3: memref<1x384xf32, #tpu.memory_space<vmem>>, %arg4: memref<1x4x128x128xf32, #tpu.memory_space<vmem>>, %arg5: memref<128x128xbf16, #tpu.memory_space<vmem>>, %arg6: memref<1x128xf32, #tpu.memory_space<vmem>>, %arg7: memref<16x16x128xf32, #tpu.memory_space<vmem>>, %arg8: memref<256x384xbf16, #tpu.memory_space<vmem>>, %arg9: memref<256x128xbf16, #tpu.memory_space<vmem>>) attributes {dimension_semantics = [#tpu.dimension_semantics<parallel>], iteration_bounds = array<i64: 4>, scalar_prefetch = 0 : i64, scratch_operands = 2 : i64, tpu.core_type = #tpu.core_type<tc>, window_params = [{transform_indices = @transform_0, window_bounds = array<i64: 16, 16, 128>}, {pipeline_mode = #tpu.pipeline_mode<synchronous>, transform_indices = @transform_1, window_bounds = array<i64: 128, 384>}, {pipeline_mode = #tpu.pipeline_mode<synchronous>, transform_indices = @transform_2, window_bounds = array<i64: 1, 384>}, {transform_indices = @transform_3, window_bounds = array<i64: 1, 4, 128, 128>}, {pipeline_mode = #tpu.pipeline_mode<synchronous>, transform_indices = @transform_4, window_bounds = array<i64: 128, 128>}, {pipeline_mode = #tpu.pipeline_mode<synchronous>, transform_indices = @transform_5, window_bounds = array<i64: 1, 128>}, {transform_indices = @transform_6, window_bounds = array<i64: 16, 16, 128>}]} {
    %c0 = arith.constant 0 : index
    %c0_0 = arith.constant 0 : index
    %c0_1 = arith.constant 0 : index
    %0 = vector.load %arg1[%c0, %c0_0, %c0_1] : memref<16x16x128xbf16, #tpu.memory_space<vmem>>, vector<16x16x128xbf16>
    %1 = vector.shape_cast %0 : vector<16x16x128xbf16> to vector<256x128xbf16>
    %c0_2 = arith.constant 0 : index
    %c0_3 = arith.constant 0 : index
    %2 = vector.load %arg2[%c0_2, %c0_3] : memref<128x384xbf16, #tpu.memory_space<vmem>>, vector<128x384xbf16>
    %cst = arith.constant dense<0.000000e+00> : vector<256x384xf32>
    %3 = tpu.matmul %1, %2, %cst {dimension_numbers = #tpu.dot_dimension_numbers<[1], [0], [0], [1], [0, 0, 1, 1], [], []>} : vector<256x128xbf16>, vector<128x384xbf16>, vector<256x384xf32> -> vector<256x384xf32>
    %c0_4 = arith.constant 0 : index
    %c0_5 = arith.constant 0 : index
    %4 = vector.load %arg3[%c0_4, %c0_5] : memref<1x384xf32, #tpu.memory_space<vmem>>, vector<1x384xf32>
    %5 = vector.broadcast %4 : vector<1x384xf32> to vector<256x384xf32>
    %6 = arith.addf %3, %5 : vector<256x384xf32>
    %7 = arith.truncf %6 : vector<256x384xf32> to vector<256x384xbf16>
    %c0_6 = arith.constant 0 : index
    %c0_7 = arith.constant 0 : index
    %8 = vector.load %arg8[%c0_6, %c0_7] : memref<256x384xbf16, #tpu.memory_space<vmem>>, vector<256x384xbf16>
    tpu.vector_store %arg8[%c0_6, %c0_7], %7 {strides = array<i32>} : memref<256x384xbf16, #tpu.memory_space<vmem>>, vector<256x384xbf16>,
    %c0_8 = arith.constant 0 : index
    %c0_9 = arith.constant 0 : index
    %9 = vector.load %arg8[%c0_8, %c0_9] : memref<256x384xbf16, #tpu.memory_space<vmem>>, vector<128x32xbf16>
    %c0_10 = arith.constant 0 : index
    %c128 = arith.constant 128 : index
    %10 = vector.load %arg8[%c0_10, %c128] : memref<256x384xbf16, #tpu.memory_space<vmem>>, vector<128x32xbf16>
    %c0_11 = arith.constant 0 : index
    %c256 = arith.constant 256 : index
    %11 = vector.load %arg8[%c0_11, %c256] : memref<256x384xbf16, #tpu.memory_space<vmem>>, vector<128x32xbf16>
    %cst_12 = arith.constant dense<0.000000e+00> : vector<128x128xf32>
    %12 = tpu.matmul %9, %10, %cst_12 {dimension_numbers = #tpu.dot_dimension_numbers<[1], [1], [0], [0], [0, 0, 1, 0], [], []>} : vector<128x32xbf16>, vector<128x32xbf16>, vector<128x128xf32> -> vector<128x128xf32>
    %c0_13 = arith.constant 0 : index
    %c0_14 = arith.constant 0 : index
    %c0_15 = arith.constant 0 : index
    %c0_16 = arith.constant 0 : index
    %13 = vector.load %arg4[%c0_13, %c0_14, %c0_15, %c0_16] : memref<1x4x128x128xf32, #tpu.memory_space<vmem>>, vector<1x1x128x128xf32>
    %14 = vector.shape_cast %13 : vector<1x1x128x128xf32> to vector<128x128xf32>
    %15 = arith.addf %12, %14 : vector<128x128xf32>
    %cst_17 = arith.constant dense<0xFF800000> : vector<128xf32>
    %16 = vector.multi_reduction <maximumf>, %15, %cst_17 [1] : vector<128x128xf32> to vector<128xf32>
    %17 = vector.shape_cast %16 : vector<128xf32> to vector<128x1xf32>
    %18 = vector.broadcast %17 : vector<128x1xf32> to vector<128x128xf32>
    %19 = arith.subf %15, %18 : vector<128x128xf32>
    %20 = math.exp %19 : vector<128x128xf32>
    %cst_18 = arith.constant dense<0.000000e+00> : vector<128xf32>
    %21 = vector.multi_reduction <add>, %20, %cst_18 [1] : vector<128x128xf32> to vector<128xf32>
    %22 = vector.shape_cast %21 : vector<128xf32> to vector<128x1xf32>
    %23 = tpu.reciprocal %22 {approx = true} : vector<128x1xf32> -> vector<128x1xf32>
    %24 = vector.broadcast %23 : vector<128x1xf32> to vector<128x128xf32>
    %25 = arith.mulf %20, %24 : vector<128x128xf32>
    %26 = arith.truncf %25 : vector<128x128xf32> to vector<128x128xbf16>
    %cst_19 = arith.constant dense<0.000000e+00> : vector<128x32xf32>
    %27 = tpu.matmul %26, %11, %cst_19 {dimension_numbers = #tpu.dot_dimension_numbers<[1], [0], [0], [1], [0, 0, 1, 1], [], []>} : vector<128x128xbf16>, vector<128x32xbf16>, vector<128x32xf32> -> vector<128x32xf32>
    %28 = arith.truncf %27 : vector<128x32xf32> to vector<128x32xbf16>
    %c0_20 = arith.constant 0 : index
    %c0_21 = arith.constant 0 : index
    %29 = vector.load %arg9[%c0_20, %c0_21] : memref<256x128xbf16, #tpu.memory_space<vmem>>, vector<128x32xbf16>
    tpu.vector_store %arg9[%c0_20, %c0_21], %28 {strides = array<i32>} : memref<256x128xbf16, #tpu.memory_space<vmem>>, vector<128x32xbf16>,
    %c0_22 = arith.constant 0 : index
    %c32 = arith.constant 32 : index
    %30 = vector.load %arg8[%c0_22, %c32] : memref<256x384xbf16, #tpu.memory_space<vmem>>, vector<128x32xbf16>
    %c0_23 = arith.constant 0 : index
    %c160 = arith.constant 160 : index
    %31 = vector.load %arg8[%c0_23, %c160] : memref<256x384xbf16, #tpu.memory_space<vmem>>, vector<128x32xbf16>
    %c0_24 = arith.constant 0 : index
    %c288 = arith.constant 288 : index
    %32 = vector.load %arg8[%c0_24, %c288] : memref<256x384xbf16, #tpu.memory_space<vmem>>, vector<128x32xbf16>
    %cst_25 = arith.constant dense<0.000000e+00> : vector<128x128xf32>
    %33 = tpu.matmul %30, %31, %cst_25 {dimension_numbers = #tpu.dot_dimension_numbers<[1], [1], [0], [0], [0, 0, 1, 0], [], []>} : vector<128x32xbf16>, vector<128x32xbf16>, vector<128x128xf32> -> vector<128x128xf32>
    %c0_26 = arith.constant 0 : index
    %c1 = arith.constant 1 : index
    %c0_27 = arith.constant 0 : index
    %c0_28 = arith.constant 0 : index
    %34 = vector.load %arg4[%c0_26, %c1, %c0_27, %c0_28] : memref<1x4x128x128xf32, #tpu.memory_space<vmem>>, vector<1x1x128x128xf32>
    %35 = vector.shape_cast %34 : vector<1x1x128x128xf32> to vector<128x128xf32>
    %36 = arith.addf %33, %35 : vector<128x128xf32>
    %cst_29 = arith.constant dense<0xFF800000> : vector<128xf32>
    %37 = vector.multi_reduction <maximumf>, %36, %cst_29 [1] : vector<128x128xf32> to vector<128xf32>
    %38 = vector.shape_cast %37 : vector<128xf32> to vector<128x1xf32>
    %39 = vector.broadcast %38 : vector<128x1xf32> to vector<128x128xf32>
    %40 = arith.subf %36, %39 : vector<128x128xf32>
    %41 = math.exp %40 : vector<128x128xf32>
    %cst_30 = arith.constant dense<0.000000e+00> : vector<128xf32>
    %42 = vector.multi_reduction <add>, %41, %cst_30 [1] : vector<128x128xf32> to vector<128xf32>
    %43 = vector.shape_cast %42 : vector<128xf32> to vector<128x1xf32>
    %44 = tpu.reciprocal %43 {approx = true} : vector<128x1xf32> -> vector<128x1xf32>
    %45 = vector.broadcast %44 : vector<128x1xf32> to vector<128x128xf32>
    %46 = arith.mulf %41, %45 : vector<128x128xf32>
    %47 = arith.truncf %46 : vector<128x128xf32> to vector<128x128xbf16>
    %cst_31 = arith.constant dense<0.000000e+00> : vector<128x32xf32>
    %48 = tpu.matmul %47, %32, %cst_31 {dimension_numbers = #tpu.dot_dimension_numbers<[1], [0], [0], [1], [0, 0, 1, 1], [], []>} : vector<128x128xbf16>, vector<128x32xbf16>, vector<128x32xf32> -> vector<128x32xf32>
    %49 = arith.truncf %48 : vector<128x32xf32> to vector<128x32xbf16>
    %c0_32 = arith.constant 0 : index
    %c32_33 = arith.constant 32 : index
    %50 = vector.load %arg9[%c0_32, %c32_33] : memref<256x128xbf16, #tpu.memory_space<vmem>>, vector<128x32xbf16>
    tpu.vector_store %arg9[%c0_32, %c32_33], %49 {strides = array<i32>} : memref<256x128xbf16, #tpu.memory_space<vmem>>, vector<128x32xbf16>,
    %c0_34 = arith.constant 0 : index
    %c64 = arith.constant 64 : index
    %51 = vector.load %arg8[%c0_34, %c64] : memref<256x384xbf16, #tpu.memory_space<vmem>>, vector<128x32xbf16>
    %c0_35 = arith.constant 0 : index
    %c192 = arith.constant 192 : index
    %52 = vector.load %arg8[%c0_35, %c192] : memref<256x384xbf16, #tpu.memory_space<vmem>>, vector<128x32xbf16>
    %c0_36 = arith.constant 0 : index
    %c320 = arith.constant 320 : index
    %53 = vector.load %arg8[%c0_36, %c320] : memref<256x384xbf16, #tpu.memory_space<vmem>>, vector<128x32xbf16>
    %cst_37 = arith.constant dense<0.000000e+00> : vector<128x128xf32>
    %54 = tpu.matmul %51, %52, %cst_37 {dimension_numbers = #tpu.dot_dimension_numbers<[1], [1], [0], [0], [0, 0, 1, 0], [], []>} : vector<128x32xbf16>, vector<128x32xbf16>, vector<128x128xf32> -> vector<128x128xf32>
    %c0_38 = arith.constant 0 : index
    %c2 = arith.constant 2 : index
    %c0_39 = arith.constant 0 : index
    %c0_40 = arith.constant 0 : index
    %55 = vector.load %arg4[%c0_38, %c2, %c0_39, %c0_40] : memref<1x4x128x128xf32, #tpu.memory_space<vmem>>, vector<1x1x128x128xf32>
    %56 = vector.shape_cast %55 : vector<1x1x128x128xf32> to vector<128x128xf32>
    %57 = arith.addf %54, %56 : vector<128x128xf32>
    %cst_41 = arith.constant dense<0xFF800000> : vector<128xf32>
    %58 = vector.multi_reduction <maximumf>, %57, %cst_41 [1] : vector<128x128xf32> to vector<128xf32>
    %59 = vector.shape_cast %58 : vector<128xf32> to vector<128x1xf32>
    %60 = vector.broadcast %59 : vector<128x1xf32> to vector<128x128xf32>
    %61 = arith.subf %57, %60 : vector<128x128xf32>
    %62 = math.exp %61 : vector<128x128xf32>
    %cst_42 = arith.constant dense<0.000000e+00> : vector<128xf32>
    %63 = vector.multi_reduction <add>, %62, %cst_42 [1] : vector<128x128xf32> to vector<128xf32>
    %64 = vector.shape_cast %63 : vector<128xf32> to vector<128x1xf32>
    %65 = tpu.reciprocal %64 {approx = true} : vector<128x1xf32> -> vector<128x1xf32>
    %66 = vector.broadcast %65 : vector<128x1xf32> to vector<128x128xf32>
    %67 = arith.mulf %62, %66 : vector<128x128xf32>
    %68 = arith.truncf %67 : vector<128x128xf32> to vector<128x128xbf16>
    %cst_43 = arith.constant dense<0.000000e+00> : vector<128x32xf32>
    %69 = tpu.matmul %68, %53, %cst_43 {dimension_numbers = #tpu.dot_dimension_numbers<[1], [0], [0], [1], [0, 0, 1, 1], [], []>} : vector<128x128xbf16>, vector<128x32xbf16>, vector<128x32xf32> -> vector<128x32xf32>
    %70 = arith.truncf %69 : vector<128x32xf32> to vector<128x32xbf16>
    %c0_44 = arith.constant 0 : index
    %c64_45 = arith.constant 64 : index
    %71 = vector.load %arg9[%c0_44, %c64_45] : memref<256x128xbf16, #tpu.memory_space<vmem>>, vector<128x32xbf16>
    tpu.vector_store %arg9[%c0_44, %c64_45], %70 {strides = array<i32>} : memref<256x128xbf16, #tpu.memory_space<vmem>>, vector<128x32xbf16>,
    %c0_46 = arith.constant 0 : index
    %c96 = arith.constant 96 : index
    %72 = vector.load %arg8[%c0_46, %c96] : memref<256x384xbf16, #tpu.memory_space<vmem>>, vector<128x32xbf16>
    %c0_47 = arith.constant 0 : index
    %c224 = arith.constant 224 : index
    %73 = vector.load %arg8[%c0_47, %c224] : memref<256x384xbf16, #tpu.memory_space<vmem>>, vector<128x32xbf16>
    %c0_48 = arith.constant 0 : index
    %c352 = arith.constant 352 : index
    %74 = vector.load %arg8[%c0_48, %c352] : memref<256x384xbf16, #tpu.memory_space<vmem>>, vector<128x32xbf16>
    %cst_49 = arith.constant dense<0.000000e+00> : vector<128x128xf32>
    %75 = tpu.matmul %72, %73, %cst_49 {dimension_numbers = #tpu.dot_dimension_numbers<[1], [1], [0], [0], [0, 0, 1, 0], [], []>} : vector<128x32xbf16>, vector<128x32xbf16>, vector<128x128xf32> -> vector<128x128xf32>
    %c0_50 = arith.constant 0 : index
    %c3 = arith.constant 3 : index
    %c0_51 = arith.constant 0 : index
    %c0_52 = arith.constant 0 : index
    %76 = vector.load %arg4[%c0_50, %c3, %c0_51, %c0_52] : memref<1x4x128x128xf32, #tpu.memory_space<vmem>>, vector<1x1x128x128xf32>
    %77 = vector.shape_cast %76 : vector<1x1x128x128xf32> to vector<128x128xf32>
    %78 = arith.addf %75, %77 : vector<128x128xf32>
    %cst_53 = arith.constant dense<0xFF800000> : vector<128xf32>
    %79 = vector.multi_reduction <maximumf>, %78, %cst_53 [1] : vector<128x128xf32> to vector<128xf32>
    %80 = vector.shape_cast %79 : vector<128xf32> to vector<128x1xf32>
    %81 = vector.broadcast %80 : vector<128x1xf32> to vector<128x128xf32>
    %82 = arith.subf %78, %81 : vector<128x128xf32>
    %83 = math.exp %82 : vector<128x128xf32>
    %cst_54 = arith.constant dense<0.000000e+00> : vector<128xf32>
    %84 = vector.multi_reduction <add>, %83, %cst_54 [1] : vector<128x128xf32> to vector<128xf32>
    %85 = vector.shape_cast %84 : vector<128xf32> to vector<128x1xf32>
    %86 = tpu.reciprocal %85 {approx = true} : vector<128x1xf32> -> vector<128x1xf32>
    %87 = vector.broadcast %86 : vector<128x1xf32> to vector<128x128xf32>
    %88 = arith.mulf %83, %87 : vector<128x128xf32>
    %89 = arith.truncf %88 : vector<128x128xf32> to vector<128x128xbf16>
    %cst_55 = arith.constant dense<0.000000e+00> : vector<128x32xf32>
    %90 = tpu.matmul %89, %74, %cst_55 {dimension_numbers = #tpu.dot_dimension_numbers<[1], [0], [0], [1], [0, 0, 1, 1], [], []>} : vector<128x128xbf16>, vector<128x32xbf16>, vector<128x32xf32> -> vector<128x32xf32>
    %91 = arith.truncf %90 : vector<128x32xf32> to vector<128x32xbf16>
    %c0_56 = arith.constant 0 : index
    %c96_57 = arith.constant 96 : index
    %92 = vector.load %arg9[%c0_56, %c96_57] : memref<256x128xbf16, #tpu.memory_space<vmem>>, vector<128x32xbf16>
    tpu.vector_store %arg9[%c0_56, %c96_57], %91 {strides = array<i32>} : memref<256x128xbf16, #tpu.memory_space<vmem>>, vector<128x32xbf16>,
    %c128_58 = arith.constant 128 : index
    %c0_59 = arith.constant 0 : index
    %93 = vector.load %arg8[%c128_58, %c0_59] : memref<256x384xbf16, #tpu.memory_space<vmem>>, vector<128x32xbf16>
    %c128_60 = arith.constant 128 : index
    %c128_61 = arith.constant 128 : index
    %94 = vector.load %arg8[%c128_60, %c128_61] : memref<256x384xbf16, #tpu.memory_space<vmem>>, vector<128x32xbf16>
    %c128_62 = arith.constant 128 : index
    %c256_63 = arith.constant 256 : index
    %95 = vector.load %arg8[%c128_62, %c256_63] : memref<256x384xbf16, #tpu.memory_space<vmem>>, vector<128x32xbf16>
    %cst_64 = arith.constant dense<0.000000e+00> : vector<128x128xf32>
    %96 = tpu.matmul %93, %94, %cst_64 {dimension_numbers = #tpu.dot_dimension_numbers<[1], [1], [0], [0], [0, 0, 1, 0], [], []>} : vector<128x32xbf16>, vector<128x32xbf16>, vector<128x128xf32> -> vector<128x128xf32>
    %c0_65 = arith.constant 0 : index
    %c0_66 = arith.constant 0 : index
    %c0_67 = arith.constant 0 : index
    %c0_68 = arith.constant 0 : index
    %97 = vector.load %arg4[%c0_65, %c0_66, %c0_67, %c0_68] : memref<1x4x128x128xf32, #tpu.memory_space<vmem>>, vector<1x1x128x128xf32>
    %98 = vector.shape_cast %97 : vector<1x1x128x128xf32> to vector<128x128xf32>
    %99 = arith.addf %96, %98 : vector<128x128xf32>
    %cst_69 = arith.constant dense<0xFF800000> : vector<128xf32>
    %100 = vector.multi_reduction <maximumf>, %99, %cst_69 [1] : vector<128x128xf32> to vector<128xf32>
    %101 = vector.shape_cast %100 : vector<128xf32> to vector<128x1xf32>
    %102 = vector.broadcast %101 : vector<128x1xf32> to vector<128x128xf32>
    %103 = arith.subf %99, %102 : vector<128x128xf32>
    %104 = math.exp %103 : vector<128x128xf32>
    %cst_70 = arith.constant dense<0.000000e+00> : vector<128xf32>
    %105 = vector.multi_reduction <add>, %104, %cst_70 [1] : vector<128x128xf32> to vector<128xf32>
    %106 = vector.shape_cast %105 : vector<128xf32> to vector<128x1xf32>
    %107 = tpu.reciprocal %106 {approx = true} : vector<128x1xf32> -> vector<128x1xf32>
    %108 = vector.broadcast %107 : vector<128x1xf32> to vector<128x128xf32>
    %109 = arith.mulf %104, %108 : vector<128x128xf32>
    %110 = arith.truncf %109 : vector<128x128xf32> to vector<128x128xbf16>
    %cst_71 = arith.constant dense<0.000000e+00> : vector<128x32xf32>
    %111 = tpu.matmul %110, %95, %cst_71 {dimension_numbers = #tpu.dot_dimension_numbers<[1], [0], [0], [1], [0, 0, 1, 1], [], []>} : vector<128x128xbf16>, vector<128x32xbf16>, vector<128x32xf32> -> vector<128x32xf32>
    %112 = arith.truncf %111 : vector<128x32xf32> to vector<128x32xbf16>
    %c128_72 = arith.constant 128 : index
    %c0_73 = arith.constant 0 : index
    %113 = vector.load %arg9[%c128_72, %c0_73] : memref<256x128xbf16, #tpu.memory_space<vmem>>, vector<128x32xbf16>
    tpu.vector_store %arg9[%c128_72, %c0_73], %112 {strides = array<i32>} : memref<256x128xbf16, #tpu.memory_space<vmem>>, vector<128x32xbf16>,
    %c128_74 = arith.constant 128 : index
    %c32_75 = arith.constant 32 : index
    %114 = vector.load %arg8[%c128_74, %c32_75] : memref<256x384xbf16, #tpu.memory_space<vmem>>, vector<128x32xbf16>
    %c128_76 = arith.constant 128 : index
    %c160_77 = arith.constant 160 : index
    %115 = vector.load %arg8[%c128_76, %c160_77] : memref<256x384xbf16, #tpu.memory_space<vmem>>, vector<128x32xbf16>
    %c128_78 = arith.constant 128 : index
    %c288_79 = arith.constant 288 : index
    %116 = vector.load %arg8[%c128_78, %c288_79] : memref<256x384xbf16, #tpu.memory_space<vmem>>, vector<128x32xbf16>
    %cst_80 = arith.constant dense<0.000000e+00> : vector<128x128xf32>
    %117 = tpu.matmul %114, %115, %cst_80 {dimension_numbers = #tpu.dot_dimension_numbers<[1], [1], [0], [0], [0, 0, 1, 0], [], []>} : vector<128x32xbf16>, vector<128x32xbf16>, vector<128x128xf32> -> vector<128x128xf32>
    %c0_81 = arith.constant 0 : index
    %c1_82 = arith.constant 1 : index
    %c0_83 = arith.constant 0 : index
    %c0_84 = arith.constant 0 : index
    %118 = vector.load %arg4[%c0_81, %c1_82, %c0_83, %c0_84] : memref<1x4x128x128xf32, #tpu.memory_space<vmem>>, vector<1x1x128x128xf32>
    %119 = vector.shape_cast %118 : vector<1x1x128x128xf32> to vector<128x128xf32>
    %120 = arith.addf %117, %119 : vector<128x128xf32>
    %cst_85 = arith.constant dense<0xFF800000> : vector<128xf32>
    %121 = vector.multi_reduction <maximumf>, %120, %cst_85 [1] : vector<128x128xf32> to vector<128xf32>
    %122 = vector.shape_cast %121 : vector<128xf32> to vector<128x1xf32>
    %123 = vector.broadcast %122 : vector<128x1xf32> to vector<128x128xf32>
    %124 = arith.subf %120, %123 : vector<128x128xf32>
    %125 = math.exp %124 : vector<128x128xf32>
    %cst_86 = arith.constant dense<0.000000e+00> : vector<128xf32>
    %126 = vector.multi_reduction <add>, %125, %cst_86 [1] : vector<128x128xf32> to vector<128xf32>
    %127 = vector.shape_cast %126 : vector<128xf32> to vector<128x1xf32>
    %128 = tpu.reciprocal %127 {approx = true} : vector<128x1xf32> -> vector<128x1xf32>
    %129 = vector.broadcast %128 : vector<128x1xf32> to vector<128x128xf32>
    %130 = arith.mulf %125, %129 : vector<128x128xf32>
    %131 = arith.truncf %130 : vector<128x128xf32> to vector<128x128xbf16>
    %cst_87 = arith.constant dense<0.000000e+00> : vector<128x32xf32>
    %132 = tpu.matmul %131, %116, %cst_87 {dimension_numbers = #tpu.dot_dimension_numbers<[1], [0], [0], [1], [0, 0, 1, 1], [], []>} : vector<128x128xbf16>, vector<128x32xbf16>, vector<128x32xf32> -> vector<128x32xf32>
    %133 = arith.truncf %132 : vector<128x32xf32> to vector<128x32xbf16>
    %c128_88 = arith.constant 128 : index
    %c32_89 = arith.constant 32 : index
    %134 = vector.load %arg9[%c128_88, %c32_89] : memref<256x128xbf16, #tpu.memory_space<vmem>>, vector<128x32xbf16>
    tpu.vector_store %arg9[%c128_88, %c32_89], %133 {strides = array<i32>} : memref<256x128xbf16, #tpu.memory_space<vmem>>, vector<128x32xbf16>,
    %c128_90 = arith.constant 128 : index
    %c64_91 = arith.constant 64 : index
    %135 = vector.load %arg8[%c128_90, %c64_91] : memref<256x384xbf16, #tpu.memory_space<vmem>>, vector<128x32xbf16>
    %c128_92 = arith.constant 128 : index
    %c192_93 = arith.constant 192 : index
    %136 = vector.load %arg8[%c128_92, %c192_93] : memref<256x384xbf16, #tpu.memory_space<vmem>>, vector<128x32xbf16>
    %c128_94 = arith.constant 128 : index
    %c320_95 = arith.constant 320 : index
    %137 = vector.load %arg8[%c128_94, %c320_95] : memref<256x384xbf16, #tpu.memory_space<vmem>>, vector<128x32xbf16>
    %cst_96 = arith.constant dense<0.000000e+00> : vector<128x128xf32>
    %138 = tpu.matmul %135, %136, %cst_96 {dimension_numbers = #tpu.dot_dimension_numbers<[1], [1], [0], [0], [0, 0, 1, 0], [], []>} : vector<128x32xbf16>, vector<128x32xbf16>, vector<128x128xf32> -> vector<128x128xf32>
    %c0_97 = arith.constant 0 : index
    %c2_98 = arith.constant 2 : index
    %c0_99 = arith.constant 0 : index
    %c0_100 = arith.constant 0 : index
    %139 = vector.load %arg4[%c0_97, %c2_98, %c0_99, %c0_100] : memref<1x4x128x128xf32, #tpu.memory_space<vmem>>, vector<1x1x128x128xf32>
    %140 = vector.shape_cast %139 : vector<1x1x128x128xf32> to vector<128x128xf32>
    %141 = arith.addf %138, %140 : vector<128x128xf32>
    %cst_101 = arith.constant dense<0xFF800000> : vector<128xf32>
    %142 = vector.multi_reduction <maximumf>, %141, %cst_101 [1] : vector<128x128xf32> to vector<128xf32>
    %143 = vector.shape_cast %142 : vector<128xf32> to vector<128x1xf32>
    %144 = vector.broadcast %143 : vector<128x1xf32> to vector<128x128xf32>
    %145 = arith.subf %141, %144 : vector<128x128xf32>
    %146 = math.exp %145 : vector<128x128xf32>
    %cst_102 = arith.constant dense<0.000000e+00> : vector<128xf32>
    %147 = vector.multi_reduction <add>, %146, %cst_102 [1] : vector<128x128xf32> to vector<128xf32>
    %148 = vector.shape_cast %147 : vector<128xf32> to vector<128x1xf32>
    %149 = tpu.reciprocal %148 {approx = true} : vector<128x1xf32> -> vector<128x1xf32>
    %150 = vector.broadcast %149 : vector<128x1xf32> to vector<128x128xf32>
    %151 = arith.mulf %146, %150 : vector<128x128xf32>
    %152 = arith.truncf %151 : vector<128x128xf32> to vector<128x128xbf16>
    %cst_103 = arith.constant dense<0.000000e+00> : vector<128x32xf32>
    %153 = tpu.matmul %152, %137, %cst_103 {dimension_numbers = #tpu.dot_dimension_numbers<[1], [0], [0], [1], [0, 0, 1, 1], [], []>} : vector<128x128xbf16>, vector<128x32xbf16>, vector<128x32xf32> -> vector<128x32xf32>
    %154 = arith.truncf %153 : vector<128x32xf32> to vector<128x32xbf16>
    %c128_104 = arith.constant 128 : index
    %c64_105 = arith.constant 64 : index
    %155 = vector.load %arg9[%c128_104, %c64_105] : memref<256x128xbf16, #tpu.memory_space<vmem>>, vector<128x32xbf16>
    tpu.vector_store %arg9[%c128_104, %c64_105], %154 {strides = array<i32>} : memref<256x128xbf16, #tpu.memory_space<vmem>>, vector<128x32xbf16>,
    %c128_106 = arith.constant 128 : index
    %c96_107 = arith.constant 96 : index
    %156 = vector.load %arg8[%c128_106, %c96_107] : memref<256x384xbf16, #tpu.memory_space<vmem>>, vector<128x32xbf16>
    %c128_108 = arith.constant 128 : index
    %c224_109 = arith.constant 224 : index
    %157 = vector.load %arg8[%c128_108, %c224_109] : memref<256x384xbf16, #tpu.memory_space<vmem>>, vector<128x32xbf16>
    %c128_110 = arith.constant 128 : index
    %c352_111 = arith.constant 352 : index
    %158 = vector.load %arg8[%c128_110, %c352_111] : memref<256x384xbf16, #tpu.memory_space<vmem>>, vector<128x32xbf16>
    %cst_112 = arith.constant dense<0.000000e+00> : vector<128x128xf32>
    %159 = tpu.matmul %156, %157, %cst_112 {dimension_numbers = #tpu.dot_dimension_numbers<[1], [1], [0], [0], [0, 0, 1, 0], [], []>} : vector<128x32xbf16>, vector<128x32xbf16>, vector<128x128xf32> -> vector<128x128xf32>
    %c0_113 = arith.constant 0 : index
    %c3_114 = arith.constant 3 : index
    %c0_115 = arith.constant 0 : index
    %c0_116 = arith.constant 0 : index
    %160 = vector.load %arg4[%c0_113, %c3_114, %c0_115, %c0_116] : memref<1x4x128x128xf32, #tpu.memory_space<vmem>>, vector<1x1x128x128xf32>
    %161 = vector.shape_cast %160 : vector<1x1x128x128xf32> to vector<128x128xf32>
    %162 = arith.addf %159, %161 : vector<128x128xf32>
    %cst_117 = arith.constant dense<0xFF800000> : vector<128xf32>
    %163 = vector.multi_reduction <maximumf>, %162, %cst_117 [1] : vector<128x128xf32> to vector<128xf32>
    %164 = vector.shape_cast %163 : vector<128xf32> to vector<128x1xf32>
    %165 = vector.broadcast %164 : vector<128x1xf32> to vector<128x128xf32>
    %166 = arith.subf %162, %165 : vector<128x128xf32>
    %167 = math.exp %166 : vector<128x128xf32>
    %cst_118 = arith.constant dense<0.000000e+00> : vector<128xf32>
    %168 = vector.multi_reduction <add>, %167, %cst_118 [1] : vector<128x128xf32> to vector<128xf32>
    %169 = vector.shape_cast %168 : vector<128xf32> to vector<128x1xf32>
    %170 = tpu.reciprocal %169 {approx = true} : vector<128x1xf32> -> vector<128x1xf32>
    %171 = vector.broadcast %170 : vector<128x1xf32> to vector<128x128xf32>
    %172 = arith.mulf %167, %171 : vector<128x128xf32>
    %173 = arith.truncf %172 : vector<128x128xf32> to vector<128x128xbf16>
    %cst_119 = arith.constant dense<0.000000e+00> : vector<128x32xf32>
    %174 = tpu.matmul %173, %158, %cst_119 {dimension_numbers = #tpu.dot_dimension_numbers<[1], [0], [0], [1], [0, 0, 1, 1], [], []>} : vector<128x128xbf16>, vector<128x32xbf16>, vector<128x32xf32> -> vector<128x32xf32>
    %175 = arith.truncf %174 : vector<128x32xf32> to vector<128x32xbf16>
    %c128_120 = arith.constant 128 : index
    %c96_121 = arith.constant 96 : index
    %176 = vector.load %arg9[%c128_120, %c96_121] : memref<256x128xbf16, #tpu.memory_space<vmem>>, vector<128x32xbf16>
    tpu.vector_store %arg9[%c128_120, %c96_121], %175 {strides = array<i32>} : memref<256x128xbf16, #tpu.memory_space<vmem>>, vector<128x32xbf16>,
    %c0_122 = arith.constant 0 : index
    %c0_123 = arith.constant 0 : index
    %177 = vector.load %arg9[%c0_122, %c0_123] : memref<256x128xbf16, #tpu.memory_space<vmem>>, vector<256x128xbf16>
    %c0_124 = arith.constant 0 : index
    %c0_125 = arith.constant 0 : index
    %178 = vector.load %arg5[%c0_124, %c0_125] : memref<128x128xbf16, #tpu.memory_space<vmem>>, vector<128x128xbf16>
    %cst_126 = arith.constant dense<0.000000e+00> : vector<256x128xf32>
    %179 = tpu.matmul %177, %178, %cst_126 {dimension_numbers = #tpu.dot_dimension_numbers<[1], [0], [0], [1], [0, 0, 1, 1], [], []>} : vector<256x128xbf16>, vector<128x128xbf16>, vector<256x128xf32> -> vector<256x128xf32>
    %c0_127 = arith.constant 0 : index
    %c0_128 = arith.constant 0 : index
    %180 = vector.load %arg6[%c0_127, %c0_128] : memref<1x128xf32, #tpu.memory_space<vmem>>, vector<1x128xf32>
    %181 = vector.broadcast %180 : vector<1x128xf32> to vector<256x128xf32>
    %182 = arith.addf %179, %181 : vector<256x128xf32>
    %183 = vector.shape_cast %182 : vector<256x128xf32> to vector<16x16x128xf32>
    %c0_129 = arith.constant 0 : index
    %c0_130 = arith.constant 0 : index
    %c0_131 = arith.constant 0 : index
    %184 = vector.load %arg7[%c0_129, %c0_130, %c0_131] : memref<16x16x128xf32, #tpu.memory_space<vmem>>, vector<16x16x128xf32>
    tpu.vector_store %arg7[%c0_129, %c0_130, %c0_131], %183 {strides = array<i32>} : memref<16x16x128xf32, #tpu.memory_space<vmem>>, vector<16x16x128xf32>,
    return
  }
  func.func @transform_0(%arg0: i32) -> (i32, i32, i32) {
    %c0_i32 = arith.constant 0 : i32
    %c0_i32_0 = arith.constant 0 : i32
    %c0_i32_1 = arith.constant 0 : i32
    return %arg0, %c0_i32, %c0_i32_0 : i32, i32, i32
  }
  func.func @transform_1(%arg0: i32) -> (i32, i32) {
    %c0_i32 = arith.constant 0 : i32
    %c0_i32_0 = arith.constant 0 : i32
    %c0_i32_1 = arith.constant 0 : i32
    return %c0_i32, %c0_i32_0 : i32, i32
  }
  func.func @transform_2(%arg0: i32) -> (i32, i32) {
    %c0_i32 = arith.constant 0 : i32
    %c0_i32_0 = arith.constant 0 : i32
    %c0_i32_1 = arith.constant 0 : i32
    return %c0_i32, %c0_i32_0 : i32, i32
  }
  func.func @transform_3(%arg0: i32) -> (i32, i32, i32, i32) {
    %c1_i32 = arith.constant 1 : i32
    %c0_i32 = arith.constant 0 : i32
    %0 = arith.cmpi eq, %c1_i32, %c0_i32 : i32
    %c1_i32_0 = arith.constant 1 : i32
    %1 = arith.select %0, %c1_i32_0, %c1_i32 : i32
    %2 = arith.remsi %arg0, %1 : i32
    %c0_i32_1 = arith.constant 0 : i32
    %3 = arith.cmpi ne, %2, %c0_i32_1 : i32
    %c0_i32_2 = arith.constant 0 : i32
    %4 = arith.cmpi slt, %2, %c0_i32_2 : i32
    %c0_i32_3 = arith.constant 0 : i32
    %5 = arith.cmpi slt, %1, %c0_i32_3 : i32
    %6 = arith.xori %4, %5 : i1
    %7 = arith.andi %6, %3 : i1
    %8 = arith.addi %2, %1 : i32
    %9 = arith.select %7, %8, %2 : i32
    %c0_i32_4 = arith.constant 0 : i32
    %c0_i32_5 = arith.constant 0 : i32
    %c0_i32_6 = arith.constant 0 : i32
    %c0_i32_7 = arith.constant 0 : i32
    return %9, %c0_i32_4, %c0_i32_5, %c0_i32_6 : i32, i32, i32, i32
  }
  func.func @transform_4(%arg0: i32) -> (i32, i32) {
    %c0_i32 = arith.constant 0 : i32
    %c0_i32_0 = arith.constant 0 : i32
    %c0_i32_1 = arith.constant 0 : i32
    return %c0_i32, %c0_i32_0 : i32, i32
  }
  func.func @transform_5(%arg0: i32) -> (i32, i32) {
    %c0_i32 = arith.constant 0 : i32
    %c0_i32_0 = arith.constant 0 : i32
    %c0_i32_1 = arith.constant 0 : i32
    return %c0_i32, %c0_i32_0 : i32, i32
  }
  func.func @transform_6(%arg0: i32) -> (i32, i32, i32) {
    %c0_i32 = arith.constant 0 : i32
    %c0_i32_0 = arith.constant 0 : i32
    %c0_i32_1 = arith.constant 0 : i32
    return %arg0, %c0_i32, %c0_i32_0 : i32, i32, i32
  }
}

</mosaic_0001>

<bundles_post_ra>
// kernel: tpu_custom_call.1
= control target key start
LH: loop header
LB: loop body
LE: loop exit
PB: predicated region body
PF: predicated region fallthrough
CT: control target
= control target key end

     0   :  { %11 = vsyncpa [#allocation5], 0  ;;  %s10518_s0 = inlined_call_operand.hbm [shape: bf16[64,16,128], index: 0, kind: input, shape index: {}]   ;;  %s10519_s1 = inlined_call_operand.hbm [shape: bf16[128,384], index: 1, kind: input, shape index: {}]   ;;  %s10520_s2 = inlined_call_operand.vmem [shape: f32[1,384], index: 2, kind: input, shape index: {}]   ;;  %s10521_s3 = inlined_call_operand.hbm [shape: f32[1,4,128,128], index: 3, kind: input, shape index: {}]   ;;  %s10522_s4 = inlined_call_operand.hbm [shape: bf16[128,128], index: 4, kind: input, shape index: {}]   ;;  %s10523_s5 = inlined_call_operand.vmem [shape: f32[1,128], index: 5, kind: input, shape index: {}]   ;;  %s10524_s6 = inlined_call_operand.hbm [shape: f32[64,16,128], index: 6, kind: output, shape index: {}]  }
   0x1   :  { %13 = vsyncpa [#allocation5 + $0x1], 0 }
   0x2   :  { %14 = vsyncpa [#allocation8], 0 }
   0x3   :  { %15 = vsyncpa [#allocation11], 0 }
   0x4   :  { %16 = vsyncpa [#allocation6], 0 }
   0x5   :  { %18 = vsyncpa [#allocation6 + $0x1], 0  ;;  %s7779_s21 = smov 0   ;;  %s7781_s22 = smov 0  }
   0x6   :  { %s7783_s23 = smov 0   ;;  %s7785_s24 = smov 0  }
   0x7 LB: > { %s7800_s25 = sadd.s32 4294967295, %s7725_s24   ;;  %s5749_s26 = sadd.s32 4294967294, %s7725_s24   ;;  %s7725_s24 = sphi %s7785_s24, %s10935_s24   ;;  %s7721_s23 = sphi %s7783_s23, %s10934_s23   ;;  %s7717_s22 = sphi %s7781_s22, %s10933_s22   ;;  %s7713_s21 = sphi %s7779_s21, %s10932_s21  }
   0x8   : > { %p44_p0 = scmp.ne.s32.totalorder %s7717_s22, %s7713_s21  ;;  %p10525_p1 = scmp.eq.s32.totalorder %s7800_s25, 0 }
   0x9   : > { %p179_p3 = scmp.eq.s32.totalorder %s5749_s26, 3  ;;  %p5750_p5 = scmp.ge.s32.totalorder %s7725_s24, 1 }
   0xa   : > { %p7809_p4 = por %p10525_p1, %p44_p0  ;;  %p186_p7 = scmp.lt.s32.totalorder %s7725_s24, 5 }
   0xb   : > { %p7814_p6 = por %p179_p3, %p44_p0  ;;  %s7727_s30 = smov [#allocation7]  }
   0xc   : > { %s10646_s27 = scalar_select %p7809_p4, 1, 0 }
   0xd   : > { %s10647_s28 = scalar_select %p7814_p6, 1, 0 }
   0xe   : > { %p7819_p8 = pnand %p5750_p5, %p186_p7  ;;  %s198_s7 = sshll.u32 %s7727_s30, 4  ;;  %s199_s7 = int_to_ptr.vmem [resolvable:$true] %s198_s7 }
   0xf   : > { %s7728_s9 = smov [#allocation9]   ;;  %s7537_s13 = scalar_lea.hbm %s10519_s1, 3072 }
  0x10   : > { %s10648_s29 = scalar_select %p7819_p8, 1, 0 }
  0x11   : > { %p6896_p9 = pneg %p7819_p8  ;;  %s214_s10 = sshll.u32 %s7728_s9, 4  ;;  %s7831_s10 = int_to_ptr.vmem [resolvable:$true] %s214_s10 }
  0x12   : > { %p7538_p11 = scmp.ne.s32.totalorder %s10519_s1, %s7537_s13  ;;  %p7544_p3 = scmp.lt.u32.totalorder %s7537_s13, %s10519_s1 }
  0x13   : > { %p7827_p10 = pnand %p6896_p9, %p10525_p1 }
  0x15   : > { %p7841_p12 = pneg %p7827_p10 }
  0x17   : > { %p7540_p13 = pnand %p7841_p12, %p7538_p11 }
  0x19   : > { %p7541_p0 = pneg %p7540_p13 }
  0x1b   : > { %p7546_p5 = pnand %p7544_p3, %p7541_p0 }
  0x1d   : > { %7549 = shalt.err (!%p7546_p5)
}
  0x1e   : > { %s7550_s19 = scalar_lea.vmem %s199_s7, 3072  ;;  %p7558_p2 = scmp.lt.s32.totalorder %s199_s7, %s199_s7 }
  0x1f   : > { %p7551_p7 = scmp.ne.s32.totalorder %s199_s7, %s7550_s19  ;;  %p7559_p6 = scmp.lt.s32.totalorder %s7550_s19, %s7550_s19 }
  0x21   : > { %p7553_p9 = pnand %p7551_p7, %p7841_p12  ;;  %p7560_p4 = por %p7559_p6, %p7558_p2 }
  0x23   : > { %p7554_p1 = pneg %p7553_p9 }
  0x25   : > { %p7561_p8 = pnand %p7560_p4, %p7554_p1 }
  0x27   : > { %7564 = shalt.err (!%p7561_p8)
}
  0x28   : > { %s7729_s20 = smov 192   ;;  %s7730_s26 = smov 12  }
  0x29   : > { %6899 = dma.hbm_to_vmem [thread:$0]  (!%p7827_p10), %s10519_s1, 3072, %s199_s7, [#allocation8], %s7729_s20, %s7729_s20, %s7730_s26  }
  0x2a   : > { %s7565_s13 = scalar_lea.hbm %s10521_s3, 8192 }
  0x2b   : > { %p7566_p11 = scmp.ne.s32.totalorder %s10521_s3, %s7565_s13  ;;  %p7572_p4 = scmp.lt.u32.totalorder %s7565_s13, %s10521_s3 }
  0x2d   : > { %p7568_p1 = pnand %p7566_p11, %p7841_p12 }
  0x2f   : > { %p7569_p2 = pneg %p7568_p1 }
  0x31   : > { %p7574_p6 = pnand %p7572_p4, %p7569_p2 }
  0x33   : > { %7577 = shalt.err (!%p7574_p6)
}
  0x34   : > { %s7578_s7 = scalar_lea.vmem %s7831_s10, 8192  ;;  %p7586_p3 = scmp.lt.s32.totalorder %s7831_s10, %s7831_s10 }
  0x35   : > { %p7579_p8 = scmp.ne.s32.totalorder %s7831_s10, %s7578_s7  ;;  %p7587_p5 = scmp.lt.s32.totalorder %s7578_s7, %s7578_s7 }
  0x37   : > { %p7581_p13 = pnand %p7579_p8, %p7841_p12  ;;  %p7588_p7 = por %p7587_p5, %p7586_p3 }
  0x39   : > { %p7582_p0 = pneg %p7581_p13 }
  0x3b   : > { %p7589_p9 = pnand %p7588_p7, %p7582_p0 }
  0x3d   : > { %7592 = shalt.err (!%p7589_p9)
}
  0x3e   : > { %s7731_s19 = smov 128   ;;  %s7732_s20 = smov 8  }
  0x3f   : > { %6902 = dma.hbm_to_vmem [thread:$0]  (!%p7827_p10), %s10521_s3, 8192, %s7831_s10, [#allocation8], %s7731_s19, %s7731_s19, %s7732_s20  }
  0x40   : > { %s7733_s9 = smov [#allocation10]   ;;  %s7593_s14 = scalar_lea.hbm %s10522_s4, 1024 }
  0x41   : > { %s227_s11 = sshll.u32 %s7733_s9, 4  ;;  %p7594_p11 = scmp.ne.s32.totalorder %s10522_s4, %s7593_s14  ;;  %s228_s11 = int_to_ptr.vmem [resolvable:$true] %s227_s11 }
  0x42   : > { %p7600_p4 = scmp.lt.u32.totalorder %s7593_s14, %s10522_s4 }
  0x43   : > { %p7596_p1 = pnand %p7594_p11, %p7841_p12 }
  0x45   : > { %p7597_p2 = pneg %p7596_p1 }
  0x47   : > { %p7602_p6 = pnand %p7600_p4, %p7597_p2 }
  0x49   : > { %7605 = shalt.err (!%p7602_p6)
}
  0x4a   : > { %s7606_s10 = scalar_lea.vmem %s228_s11, 1024  ;;  %p7614_p3 = scmp.lt.s32.totalorder %s228_s11, %s228_s11 }
  0x4b   : > { %p7607_p8 = scmp.ne.s32.totalorder %s228_s11, %s7606_s10  ;;  %p7615_p5 = scmp.lt.s32.totalorder %s7606_s10, %s7606_s10 }
  0x4d   : > { %p7609_p13 = pnand %p7607_p8, %p7841_p12  ;;  %p7616_p7 = por %p7615_p5, %p7614_p3 }
  0x4f   : > { %p7610_p0 = pneg %p7609_p13 }
  0x51   : > { %p7617_p9 = pnand %p7616_p7, %p7610_p0 }
  0x53   : > { %7620 = shalt.err (!%p7617_p9)
}
  0x54   : > { %s7734_s19 = smov 64   ;;  %s7735_s16 = smov 4  }
  0x55   : > { %6905 = dma.hbm_to_vmem [thread:$0]  (!%p7827_p10), %s10522_s4, 1024, %s228_s11, [#allocation11], %s7734_s19, %s7734_s19, %s7735_s16  }
  0x56   : > { %s7902_s30 = sadd.s32 1, %s7725_s24   ;;  %s31_s12 = sadd.s32 1, %s7721_s23 }
  0x57   : > { %s28_s9 = ssub.s32 %s7725_s24, %s7902_s30  ;;  %p38_p11 = scmp.ne.s32.totalorder %s7721_s23, %s7717_s22 }
  0x58   : > { %p29_p12 = scmp.eq.s32.totalorder %s28_s9, 0  ;;  %p39_p1 = scmp.eq.s32.totalorder %s7725_s24, 0 }
  0x59   : > { %p6917_p2 = scmp.lt.s32.totalorder %s7725_s24, 4  ;;  %p10651_p6 = scmp.eq.s32.totalorder %s7800_s25, 3 }
  0x5a   : > { %s7912_s13 = scalar_select %p29_p12, %s7721_s23, %s31_s12  }
  0x5b   : > { %p40_p4 = por %p39_p1, %p38_p11  ;;  %p7916_p8 = por %p10651_p6, %p38_p11 }
  0x5c   : > { %s244_s14 = sand.u32 1, %s7721_s23   ;;  %s5885_s15 = sshll.u32 %s7725_s24, 11 }
  0x5d   : > { %s5755_s11 = sshll.u32 %s244_s14, 7  ;;  %s7925_s7 = scalar_lea.hbm %s10518_s0, %s5885_s15 }
  0x5e   : > { %s248_s10 = scalar_lea.vmem [#allocation4], %s5755_s11  ;;  %p7927_p10 = pnand %p6917_p2, %p40_p4 }
  0x5f   : > { %s256_s20 = sshll.u32 %s248_s10, 4  ;;  %s7933_s9 = scalar_lea.sflag [#allocation5], %s244_s14  ;;  %s7931_s20 = int_to_ptr.vmem [resolvable:$true] %s256_s20 }
  0x60   : > { %s7621_s12 = scalar_lea.hbm %s7925_s7, 2048  ;;  %p7623_p0 = pneg %p7927_p10 }
  0x61   : > { %p7622_p13 = scmp.ne.s32.totalorder %s7925_s7, %s7621_s12  ;;  %s7626_s17 = scalar_lea.hbm %s10518_s0, 8192 }
  0x62   : > { %p7627_p7 = scmp.lt.u32.totalorder %s7925_s7, %s10518_s0  ;;  %p7628_p9 = scmp.lt.u32.totalorder %s7626_s17, %s7621_s12 }
  0x63   : > { %p7624_p3 = pnand %p7623_p0, %p7622_p13  ;;  %p7630_p11 = scmp.lt.u32.totalorder %s7621_s12, %s7925_s7 }
  0x64   : > { %p7629_p12 = por %p7628_p9, %p7627_p7 }
  0x65   : > { %p7625_p5 = pneg %p7624_p3 }
  0x66   : > { %p7631_p1 = por %p7630_p11, %p7629_p12 }
  0x68   : > { %p7632_p2 = pnand %p7631_p1, %p7625_p5 }
  0x6a   : > { %7635 = shalt.err (!%p7632_p2)
}
  0x6b   : > { %s7636_s14 = scalar_lea.vmem %s7931_s20, 2048  ;;  %s7736_s15 = smov [#allocation4]  }
  0x6c   : > { %p7637_p4 = scmp.ne.s32.totalorder %s7931_s20, %s7636_s14  ;;  %s7641_s11 = sshll.u32 %s7736_s15, 4  ;;  %s7642_s11 = int_to_ptr.vmem [resolvable:$false] %s7641_s11 }
  0x6d   : > { %s7643_s18 = scalar_lea.vmem %s7642_s11, 4096  ;;  %p7644_p3 = scmp.lt.s32.totalorder %s7931_s20, %s7642_s11 }
  0x6e   : > { %p7639_p6 = pnand %p7637_p4, %p7623_p0  ;;  %p7645_p7 = scmp.lt.s32.totalorder %s7643_s18, %s7636_s14 }
  0x70   : > { %p7640_p13 = pneg %p7639_p6  ;;  %p7646_p9 = por %p7645_p7, %p7644_p3 }
  0x72   : > { %p7647_p12 = pnand %p7646_p9, %p7640_p13 }
  0x74   : > { %7650 = shalt.err (!%p7647_p12)
}
  0x75   : > { %6909 = dma.hbm_to_vmem [thread:$0]  (!%p7927_p10), %s7925_s7, 2048, %s7931_s20, %s7933_s9, %s7734_s19, %s7734_s19, %s7735_s16  }
  0x76   : > { %p10654_p0 = scmp.ne.s32.totalorder %s10648_s29, 0 }
  0x78   : > { %268 = sbr.rel (%p10654_p0) target bundleno = 5090 (0x13e2), region = 44 }
  0x7f   : > { %s7967_s12 = sand.u32 1, %s7717_s22   ;;  %p10655_p5 = scmp.ne.s32.totalorder %s10646_s27, 0 }
  0x80   : > { %s5760_s17 = sshll.u32 %s7967_s12, 7  ;;  %s271_s10 = scalar_lea.sflag [#allocation5], %s7967_s12 }
  0x81   : > { %s7971_s14 = scalar_lea.vmem [#allocation4], %s5760_s17 }
  0x82   : > { %7696 = dma.done.wait (%p10655_p5), %s271_s10, 2048  }
  0x83   : > { %7698 = vsyncadd (%p10655_p5), %s271_s10, 4294965248  ;;  %p10656_p10 = scmp.eq.s32.totalorder %s7800_s25, 0 }
  0x85   : > { %7700 = dma.done.wait (%p10656_p10), [#allocation8], 11264   ;;  %p10657_p11 = pmov %p10656_p10 }
  0x86   : > { %p10658_p1 = pmov %p10656_p10 }
  0x87   : > { %7702 = vsyncadd (%p10657_p11), [#allocation8], 4294956032 }
  0x88   : > { %7704 = dma.done.wait (%p10658_p1), [#allocation11], 1024   ;;  %p10659_p2 = pmov %p10658_p1 }
  0x89   : > { %v7737_v0 = vmov 0   ;;  %v6969_v1 = vld [vmem:[#allocation7 + $0x4] ss:$12 sps:$4 sm:$0xff]   ;;  %v6971_v2 = vld [vmem:[#allocation7] ss:$12 sps:$4 sm:$0xff]   ;;  %v6996_v30 = vld [vmem:[%s7971_s14 + $0x18] sm:$0xff]   ;;  %v384_v41 = vlaneseq }
  0x8a   : > { %7706 = vsyncadd (%p10659_p2), [#allocation11], 4294966272  ;;  %655 = vmatprep.mubr.bf16.mxu0 %v7737_v0  ;;  %775 = vmatprep.mubr.bf16.mxu1 %v7737_v0  ;;  %v6972_v3 = vld [vmem:[#allocation7 + $0x1c] ss:$12 sps:$4 sm:$0xff]   ;;  %v6974_v4 = vld [vmem:[#allocation7 + $0x18] ss:$12 sps:$4 sm:$0xff]  }
  0x8b   : > { %623 = vmatprep.subr.bf16.mxu0 %v6969_v1  ;;  %6800 = vmatprep.subr.bf16.mxu1 %v6969_v1  ;;  %v6975_v5 = vld [vmem:[#allocation7 + $0x34] ss:$12 sps:$4 sm:$0xff]   ;;  %v6977_v6 = vld [vmem:[#allocation7 + $0x30] ss:$12 sps:$4 sm:$0xff]   ;;  %v6978_v7 = vld [vmem:[#allocation7 + $0x4c] ss:$12 sps:$4 sm:$0xff]  }
  0x8c   : > { %624 = vmatpush1.bf16.msra.mxu0 %v6971_v2  ;;  %6808 = vmatpush1.bf16.msra.mxu1 %v6971_v2  ;;  %v6980_v8 = vld [vmem:[#allocation7 + $0x48] ss:$12 sps:$4 sm:$0xff]   ;;  %v6981_v9 = vld [vmem:[#allocation7 + $0x64] ss:$12 sps:$4 sm:$0xff]   ;;  %v6983_v10 = vld [vmem:[#allocation7 + $0x60] ss:$12 sps:$4 sm:$0xff]  }
  0x8d   : > { %625 = vmatprep.subr.bf16.mxu0 %v6972_v3  ;;  %6801 = vmatprep.subr.bf16.mxu1 %v6972_v3  ;;  %v6984_v11 = vld [vmem:[#allocation7 + $0x7c] ss:$12 sps:$4 sm:$0xff]   ;;  %v6986_v12 = vld [vmem:[#allocation7 + $0x78] ss:$12 sps:$4 sm:$0xff]   ;;  %v6987_v13 = vld [vmem:[#allocation7 + $0x94] ss:$12 sps:$4 sm:$0xff]  }
  0x8e   : > { %v6989_v14 = vld [vmem:[#allocation7 + $0x90] ss:$12 sps:$4 sm:$0xff]   ;;  %v6990_v15 = vld [vmem:[#allocation7 + $0xac] ss:$12 sps:$4 sm:$0xff]   ;;  %v6992_v16 = vld [vmem:[#allocation7 + $0xa8] ss:$12 sps:$4 sm:$0xff]  }
  0x8f   : > { %v7002_v17 = vld [vmem:[#allocation7 + $0x8] ss:$12 sps:$4 sm:$0xff]   ;;  %v6993_v18 = vld [vmem:[%s7971_s14] sm:$0xff]   ;;  %v7006_v24 = vld [vmem:[#allocation7 + $0x50] ss:$12 sps:$4 sm:$0xff]   ;;  %v8025_v42 = vshrl.u32 %v384_v41, 7 }
  0x90   : > { %626 = vmatpush1.bf16.msra.mxu0 %v6974_v4  ;;  %6809 = vmatpush1.bf16.msra.mxu1 %v6974_v4  ;;  %v7989_v19 = vld [vmem:[%s7971_s14 + $0x60] sm:$0xff]   ;;  %v6994_v22 = vld [vmem:[%s7971_s14 + $0x8] sm:$0xff]   ;;  %v6995_v26 = vld [vmem:[%s7971_s14 + $0x10] sm:$0xff]   ;;  %vm1113_vm0 = vcmask 261120   ;;  %s7738_s19 = smov 96   ;;  %s7739_s16 = smov 64  }
  0x91   : > { %627 = vmatprep.subr.bf16.mxu0 %v6975_v5  ;;  %6802 = vmatprep.subr.bf16.mxu1 %v6975_v5  ;;  %v7003_v20 = vld [vmem:[#allocation7 + $0x20] ss:$12 sps:$4 sm:$0xff]   ;;  %v7005_v21 = vld [vmem:[#allocation7 + $0x38] ss:$12 sps:$4 sm:$0xff]   ;;  %v7008_v25 = vld [vmem:[#allocation7 + $0x68] ss:$12 sps:$4 sm:$0xff]  }
  0x92   : > { %v7996_v23 = vld [vmem:[%s7971_s14 + $0x68] sm:$0xff]   ;;  %v7007_v27 = vld [vmem:[%s7971_s14 + $0x70] sm:$0xff]   ;;  %v7011_v29 = vld [vmem:[#allocation7 + $0x98] ss:$12 sps:$4 sm:$0xff]   ;;  %v386_v43 = vsub.s32 0, %v8025_v42  ;;  %v390_v45 = vsub.s32 1, %v8025_v42 }
  0x93   : > { %v7009_v28 = vld [vmem:[#allocation7 + $0x80] ss:$12 sps:$4 sm:$0xff]   ;;  %v7010_v31 = vld [vmem:[%s7971_s14 + $0x78] sm:$0xff]   ;;  %v6999_v35 = vld [vmem:[%s7971_s14 + $0x30] sm:$0xff]   ;;  %s7740_s7 = smov 32   ;;  %vm2079_vm1 = vcmask 523520  }
  0x94   : > { %628 = vmatpush1.bf16.msra.mxu0 %v6977_v6  ;;  %6810 = vmatpush1.bf16.msra.mxu1 %v6977_v6  ;;  %v7012_v32 = vld [vmem:[#allocation7 + $0xb0] ss:$12 sps:$4 sm:$0xff]   ;;  %v6997_v33 = vld [vmem:[%s7971_s14 + $0x20] sm:$0xff]   ;;  %v6998_v34 = vld [vmem:[%s7971_s14 + $0x28] sm:$0xff]   ;;  %vm2643_vm2 = vcmask 785920   ;;  %vm3207_vm3 = vcmask 1048320  }
  0x95   : > { %629 = vmatprep.subr.bf16.mxu0 %v6978_v7  ;;  %6803 = vmatprep.subr.bf16.mxu1 %v6978_v7  ;;  %v7000_v36 = vld [vmem:[%s7971_s14 + $0x38] sm:$0xff]   ;;  %v7013_v37 = vld [vmem:[%s7971_s14 + $0x40] sm:$0xff]   ;;  %v7014_v38 = vld [vmem:[%s7971_s14 + $0x48] sm:$0xff]   ;;  %s5764_s20 = sshll.u32 %s7967_s12, 8  ;;  %s5887_s11 = sshll.u32 %s7800_s25, 12 }
  0x96   : > { %v7015_v39 = vld [vmem:[%s7971_s14 + $0x50] sm:$0xff]   ;;  %v7016_v40 = vld [vmem:[%s7971_s14 + $0x58] sm:$0xff]   ;;  %v8031_v44 = vld [vmem:[%s10520_s2] sm:$0x7]  ;;  %s10390_s15 = scalar_lea.vmem [#allocation12], %s5764_s20  ;;  %s10469_s14 = scalar_lea.hbm %s10524_s6, %s5887_s11 }
  0x97   : > { %v8035_v46 = vrot.slane %v8031_v44, %v386_v43  ;;  %v8038_v48 = vrot.slane %v8031_v44, %v390_v45  ;;  %s5647_s18 = sshll.u32 %s10390_s15, 4  ;;  %s5633_s25 = scalar_lea.sflag [#allocation6], %s7967_s12  ;;  %s10471_s18 = int_to_ptr.vmem [resolvable:$true] %s5647_s18 }
  0x98   : > { %630 = vmatpush1.bf16.msra.mxu0 %v6980_v8  ;;  %6811 = vmatpush1.bf16.msra.mxu1 %v6980_v8  ;;  %s7651_s27 = scalar_lea.vmem %s10471_s18, 4096  ;;  %s7741_s29 = smov [#allocation12]  }
  0x99   : > { %631 = vmatprep.subr.bf16.mxu0 %v6981_v9  ;;  %6804 = vmatprep.subr.bf16.mxu1 %v6981_v9  ;;  %p7652_p4 = scmp.ne.s32.totalorder %s10471_s18, %s7651_s27 }
  0x9b   : > { %p7653_p6 = pnand %p7652_p4, %p7916_p8 }
  0x9c   : > { %632 = vmatpush1.bf16.msra.mxu0 %v6983_v10  ;;  %6812 = vmatpush1.bf16.msra.mxu1 %v6983_v10 }
  0x9d   : > { %633 = vmatprep.subr.bf16.mxu0 %v6984_v11  ;;  %6805 = vmatprep.subr.bf16.mxu1 %v6984_v11  ;;  %p7654_p13 = pneg %p7653_p6 }
  0xa0   : > { %634 = vmatpush1.bf16.msra.mxu0 %v6986_v12  ;;  %6813 = vmatpush1.bf16.msra.mxu1 %v6986_v12 }
  0xa1   : > { %635 = vmatprep.subr.bf16.mxu0 %v6987_v13  ;;  %6806 = vmatprep.subr.bf16.mxu1 %v6987_v13 }
  0xa4   : > { %636 = vmatpush1.bf16.msra.mxu0 %v6989_v14  ;;  %6814 = vmatpush1.bf16.msra.mxu1 %v6989_v14 }
  0xa5   : > { %637 = vmatprep.subr.bf16.mxu0 %v6990_v15  ;;  %6807 = vmatprep.subr.bf16.mxu1 %v6990_v15 }
  0xa8   : > { %638 = vmatpush1.bf16.msra.mxu0 %v6992_v16  ;;  %6815 = vmatpush1.bf16.msra.mxu1 %v6992_v16 }
  0xa9   : > { %6192 = vmatprep.subr.bf16.mxu1 %v7002_v17 }
  0xab   : > { %656 = vmatmul.mubr.bf16.vlgmr.msra.gmra.mrb[0].mxu0 %v6993_v18  ;;  %776 = vmatmul.mubr.bf16.vlgmr.msra.gmra.mrb[0].mxu1 %v7989_v19 }
  0xac   : > { %665 = vmatprep.mubr.bf16.mxu0 %v7737_v0  ;;  %6193 = vmatpush3.bf16.msra.mxu1 %v7002_v17 }
  0xad   : > { %6194 = vmatprep.subr.bf16.mxu1 %v7003_v20  ;;  %785 = vmatprep.mubr.bf16.mxu1 %v7737_v0 }
  0xb0   : > { %6195 = vmatpush3.bf16.msra.mxu1 %v7003_v20 }
  0xb1   : > { %6196 = vmatprep.subr.bf16.mxu1 %v7005_v21 }
  0xb3   : > { %666 = vmatmul.mubr.bf16.gmra.mrb[4].mxu0 %v6994_v22  ;;  %786 = vmatmul.mubr.bf16.gmra.mrb[4].mxu1 %v7996_v23 }
  0xb4   : > { %675 = vmatprep.mubr.bf16.mxu0 %v7737_v0  ;;  %6197 = vmatpush3.bf16.msra.mxu1 %v7005_v21 }
  0xb5   : > { %6198 = vmatprep.subr.bf16.mxu1 %v7006_v24  ;;  %795 = vmatprep.mubr.bf16.mxu1 %v7737_v0 }
  0xb8   : > { %6199 = vmatpush3.bf16.msra.mxu1 %v7006_v24 }
  0xb9   : > { %6200 = vmatprep.subr.bf16.mxu1 %v7008_v25 }
  0xbb   : > { %676 = vmatmul.mubr.bf16.gmra.mrb[8].mxu0 %v6995_v26  ;;  %796 = vmatmul.mubr.bf16.gmra.mrb[8].mxu1 %v7007_v27 }
  0xbc   : > { %685 = vmatprep.mubr.bf16.mxu0 %v7737_v0  ;;  %6201 = vmatpush3.bf16.msra.mxu1 %v7008_v25 }
  0xbd   : > { %6202 = vmatprep.subr.bf16.mxu1 %v7009_v28  ;;  %805 = vmatprep.mubr.bf16.mxu1 %v7737_v0 }
  0xc0   : > { %6203 = vmatpush3.bf16.msra.mxu1 %v7009_v28 }
  0xc1   : > { %6204 = vmatprep.subr.bf16.mxu1 %v7011_v29 }
  0xc3   : > { %686 = vmatmul.mubr.bf16.gmra.mrb[12].mxu0 %v6996_v30  ;;  %806 = vmatmul.mubr.bf16.gmra.mrb[12].mxu1 %v7010_v31 }
  0xc4   : > { %695 = vmatprep.mubr.bf16.mxu0 %v7737_v0  ;;  %6205 = vmatpush3.bf16.msra.mxu1 %v7011_v29 }
  0xc5   : > { %6206 = vmatprep.subr.bf16.mxu1 %v7012_v32  ;;  %6208 = vmatprep.mubr.bf16.mxu1 %v6993_v18 }
  0xc8   : > { %6207 = vmatpush3.bf16.msra.mxu1 %v7012_v32 }
  0xcb   : > { %696 = vmatmul.mubr.bf16.gmra.mrb[16].mxu0 %v6997_v33  ;;  %6209 = vmatmul.mubr.bf16.vlgmr.msra.gmra.mrb[16].mxu1 %v6994_v22 }
  0xcc   : > { %705 = vmatprep.mubr.bf16.mxu0 %v7737_v0  ;;  %6212 = vmatprep.mubr.bf16.mxu1 %v6995_v26 }
  0xd3   : > { %706 = vmatmul.mubr.bf16.gmra.mrb[20].mxu0 %v6998_v34  ;;  %6213 = vmatmul.mubr.bf16.gmra.mrb[20].mxu1 %v6996_v30 }
  0xd4   : > { %715 = vmatprep.mubr.bf16.mxu0 %v7737_v0  ;;  %6216 = vmatprep.mubr.bf16.mxu1 %v6997_v33 }
  0xdb   : > { %716 = vmatmul.mubr.bf16.gmra.mrb[24].mxu0 %v6999_v35  ;;  %6217 = vmatmul.mubr.bf16.gmra.mrb[24].mxu1 %v6998_v34 }
  0xdc   : > { %725 = vmatprep.mubr.bf16.mxu0 %v7737_v0  ;;  %6220 = vmatprep.mubr.bf16.mxu1 %v6999_v35 }
  0xe3   : > { %726 = vmatmul.mubr.bf16.gmra.mrb[28].mxu0 %v7000_v36  ;;  %6221 = vmatmul.mubr.bf16.gmra.mrb[28].mxu1 %v7000_v36 }
  0xe4   : > { %6224 = vmatprep.mubr.bf16.mxu1 %v7013_v37  ;;  %735 = vmatprep.mubr.bf16.mxu0 %v7737_v0 }
  0xeb   : > { %6225 = vmatmul.mubr.bf16.gmra.mrb[32].mxu1 %v7014_v38  ;;  %736 = vmatmul.mubr.bf16.gmra.mrb[32].mxu0 %v7013_v37 }
  0xec   : > { %6228 = vmatprep.mubr.bf16.mxu1 %v7015_v39  ;;  %745 = vmatprep.mubr.bf16.mxu0 %v7737_v0 }
  0xf3   : > { %6229 = vmatmul.mubr.bf16.gmra.mrb[36].mxu1 %v7016_v40  ;;  %746 = vmatmul.mubr.bf16.gmra.mrb[36].mxu0 %v7014_v38 }
  0xf4   : > { %6232 = vmatprep.mubr.bf16.mxu1 %v7989_v19  ;;  %755 = vmatprep.mubr.bf16.mxu0 %v7737_v0 }
  0xfb   : > { %6233 = vmatmul.mubr.bf16.gmra.mrb[40].mxu1 %v7996_v23  ;;  %756 = vmatmul.mubr.bf16.gmra.mrb[40].mxu0 %v7015_v39 }
  0xfc   : > { %6236 = vmatprep.mubr.bf16.mxu1 %v7007_v27  ;;  %765 = vmatprep.mubr.bf16.mxu0 %v7737_v0 }
 0x103   : > { %6237 = vmatmul.mubr.bf16.gmra.mrb[44].mxu1 %v7010_v31  ;;  %766 = vmatmul.mubr.bf16.gmra.mrb[44].mxu0 %v7016_v40 }
 0x17e   : > { %v657_v47 = vpop.f32.mrb[0].mxu0  ;;  %v777_v49 = vpop.f32.mrb[0].mxu1 }
 0x17f   : > { %v659_v50 = vpop.f32.mrb[1].mxu0  ;;  %v778_v51 = vadd.f32 %v777_v49, %v8035_v46  ;;  %v779_v52 = vpop.f32.mrb[1].mxu1  ;;  %v658_v56 = vadd.f32 %v657_v47, %v8035_v46 }
 0x180   : > { %v661_v53 = vpop.f32.mrb[2].mxu0  ;;  %v780_v54 = vadd.f32 %v779_v52, %v8038_v48  ;;  %v781_v55 = vpop.f32.mrb[2].mxu1  ;;  %v660_v61 = vadd.f32 %v659_v50, %v8038_v48 }
 0x181   : > { %v662_v57 = vadd.f32 %v661_v53, %v8035_v46  ;;  %v663_v58 = vpop.f32.mrb[3].mxu0  ;;  %v782_v59 = vadd.f32 %v781_v55, %v8035_v46  ;;  %v783_v60 = vpop.f32.mrb[3].mxu1 }
 0x182   : > { %v664_v62 = vadd.f32 %v663_v58, %v8038_v48  ;;  %v784_v63 = vadd.f32 %v783_v60, %v8038_v48 }
 0x183   : > { %v8048_v0 = vpack.c.bf16 %v662_v57, %v658_v56  ;;  %v8050_v1 = vpack.c.bf16 %v782_v59, %v778_v51  ;;  %v394_v59 = vsub.s32 2, %v8025_v42 }
 0x184   : > { %v8052_v2 = vpack.c.bf16 %v664_v62, %v660_v61  ;;  %v8054_v3 = vpack.c.bf16 %v784_v63, %v780_v54 }
 0x185   : > { %10660 = vst [vmem:[#allocation17_spill] sm:$0xff] %v8048_v0  ;;  %10661 = vst [vmem:[#allocation18_spill] sm:$0xff] %v8050_v1  ;;  %6256 = vmatprep.mubr.msk.bf16.mxu1 %vm1113_vm0, %v8048_v0 }
 0x186   : > { %10662 = vst [vmem:[#allocation19_spill] sm:$0xff] %v8054_v3  ;;  %v667_v4 = vpop.f32.mrb[4].mxu0  ;;  %1597 = vrot.lane.b32.xlu0 %v8052_v2, %s7738_s19  ;;  %6816 = vmatprep.subr.msk.bf16.mxu1 %vm1113_vm0, %v8052_v2  ;;  %v1139_v5 = vsel %vm1113_vm0, %v8052_v2, 0  ;;  %v787_v6 = vpop.f32.mrb[4].mxu1  ;;  %v1549_v3 = vld [vmem:[#allocation9 + $0x80] sm:$0xff] }
 0x187   : > { %v669_v7 = vpop.f32.mrb[5].mxu0  ;;  %6241 = vmatpush3.bf16.xpose.msra.mxu1 %v1139_v5  ;;  %v788_v8 = vadd.f32 %v787_v6, %v8035_v46  ;;  %v789_v9 = vpop.f32.mrb[5].mxu1  ;;  %v668_v13 = vadd.f32 %v667_v4, %v8035_v46 }
 0x188   : > { %v671_v10 = vpop.f32.mrb[6].mxu0  ;;  %v790_v11 = vadd.f32 %v789_v9, %v8038_v48  ;;  %v791_v12 = vpop.f32.mrb[6].mxu1  ;;  %v670_v18 = vadd.f32 %v669_v7, %v8038_v48 }
 0x189   : > { %v672_v14 = vadd.f32 %v671_v10, %v8035_v46  ;;  %v673_v15 = vpop.f32.mrb[7].mxu0  ;;  %v792_v16 = vadd.f32 %v791_v12, %v8035_v46  ;;  %v793_v17 = vpop.f32.mrb[7].mxu1 }
 0x18a   : > { %v674_v19 = vadd.f32 %v673_v15, %v8038_v48  ;;  %v794_v20 = vadd.f32 %v793_v17, %v8038_v48 }
 0x18b   : > { %v8072_v21 = vpack.c.bf16 %v672_v14, %v668_v13  ;;  %v8074_v22 = vpack.c.bf16 %v792_v16, %v788_v8 }
 0x18c   : > { %v8076_v23 = vpack.c.bf16 %v674_v19, %v670_v18  ;;  %v8078_v24 = vpack.c.bf16 %v794_v20, %v790_v11  ;;  %v8126_v11 = vrot.slane %v8031_v44, %v394_v59 }
 0x18d   : > { %10663 = vst [vmem:[#allocation20_spill] sm:$0xff] %v8072_v21  ;;  %10664 = vst [vmem:[#allocation21_spill] sm:$0xff] %v8074_v22  ;;  %v1108_v22 = vld [vmem:[#allocation9 + $0x58] sm:$0xff] }
 0x18e   : > { %10665 = vst [vmem:[#allocation22_spill] sm:$0xff] %v8078_v24  ;;  %v677_v25 = vpop.f32.mrb[8].mxu0  ;;  %1599 = vrot.lane.b32.xlu0 %v8076_v23, %s7738_s19  ;;  %6817 = vmatprep.subr.msk.bf16.mxu1 %vm1113_vm0, %v8076_v23  ;;  %v1142_v26 = vsel %vm1113_vm0, %v8076_v23, 0  ;;  %v797_v27 = vpop.f32.mrb[8].mxu1 }
 0x18f   : > { %v679_v28 = vpop.f32.mrb[9].mxu0  ;;  %6243 = vmatpush3.bf16.xpose.msra.mxu1 %v1142_v26  ;;  %v798_v29 = vadd.f32 %v797_v27, %v8035_v46  ;;  %v799_v30 = vpop.f32.mrb[9].mxu1  ;;  %v678_v34 = vadd.f32 %v677_v25, %v8035_v46 }
 0x190   : > { %v681_v31 = vpop.f32.mrb[10].mxu0  ;;  %v800_v32 = vadd.f32 %v799_v30, %v8038_v48  ;;  %v801_v33 = vpop.f32.mrb[10].mxu1  ;;  %v680_v39 = vadd.f32 %v679_v28, %v8038_v48 }
 0x191   : > { %v682_v35 = vadd.f32 %v681_v31, %v8035_v46  ;;  %v683_v36 = vpop.f32.mrb[11].mxu0  ;;  %v802_v37 = vadd.f32 %v801_v33, %v8035_v46  ;;  %v803_v38 = vpop.f32.mrb[11].mxu1 }
 0x192   : > { %v684_v40 = vadd.f32 %v683_v36, %v8038_v48  ;;  %v804_v41 = vadd.f32 %v803_v38, %v8038_v48 }
 0x193   : > { %v8094_v43 = vpack.c.bf16 %v682_v35, %v678_v34  ;;  %v8096_v45 = vpack.c.bf16 %v802_v37, %v798_v29 }
 0x194   : > { %v8098_v47 = vpack.c.bf16 %v684_v40, %v680_v39  ;;  %v8100_v49 = vpack.c.bf16 %v804_v41, %v800_v32 }
 0x195   : > { %10666 = vst [vmem:[#allocation23_spill] sm:$0xff] %v8094_v43  ;;  %10667 = vst [vmem:[#allocation24_spill] sm:$0xff] %v8096_v45  ;;  %v1105_v45 = vld [vmem:[#allocation9 + $0x40] sm:$0xff] }
 0x196   : > { %10668 = vst [vmem:[#allocation25_spill] sm:$0xff] %v8100_v49  ;;  %v687_v50 = vpop.f32.mrb[12].mxu0  ;;  %1601 = vrot.lane.b32.xlu1 %v8098_v47, %s7738_s19  ;;  %6818 = vmatprep.subr.msk.bf16.mxu1 %vm1113_vm0, %v8098_v47  ;;  %v1145_v51 = vsel %vm1113_vm0, %v8098_v47, 0  ;;  %v807_v52 = vpop.f32.mrb[12].mxu1 }
 0x197   : > { %v689_v53 = vpop.f32.mrb[13].mxu0  ;;  %6245 = vmatpush3.bf16.xpose.msra.mxu1 %v1145_v51  ;;  %v808_v54 = vadd.f32 %v807_v52, %v8035_v46  ;;  %v809_v55 = vpop.f32.mrb[13].mxu1  ;;  %v688_v60 = vadd.f32 %v687_v50, %v8035_v46 }
 0x198   : > { %v691_v56 = vpop.f32.mrb[14].mxu0  ;;  %v810_v57 = vadd.f32 %v809_v55, %v8038_v48  ;;  %v811_v58 = vpop.f32.mrb[14].mxu1  ;;  %v690_v5 = vadd.f32 %v689_v53, %v8038_v48 }
 0x199   : > { %v692_v61 = vadd.f32 %v691_v56, %v8035_v46  ;;  %v693_v62 = vpop.f32.mrb[15].mxu0  ;;  %v812_v63 = vadd.f32 %v811_v58, %v8035_v46  ;;  %v813_v4 = vpop.f32.mrb[15].mxu1 }
 0x19a   : > { %v694_v6 = vadd.f32 %v693_v62, %v8038_v48  ;;  %v814_v7 = vadd.f32 %v813_v4, %v8038_v48 }
 0x19b   : > { %v8117_v8 = vpack.c.bf16 %v692_v61, %v688_v60  ;;  %v8119_v9 = vpack.c.bf16 %v812_v63, %v808_v54 }
 0x19c   : > { %v8121_v10 = vpack.c.bf16 %v694_v6, %v690_v5  ;;  %v8123_v42 = vpack.c.bf16 %v814_v7, %v810_v57 }
 0x19d   : > { %10669 = vst [vmem:[#allocation26_spill] sm:$0xff] %v8117_v8  ;;  %10670 = vst [vmem:[#allocation27_spill] sm:$0xff] %v8119_v9 }
 0x19e   : > { %10671 = vst [vmem:[#allocation28_spill] sm:$0xff] %v8121_v10  ;;  %10672 = vst [vmem:[#allocation29_spill] sm:$0xff] %v8123_v42  ;;  %v697_v12 = vpop.f32.mrb[16].mxu0  ;;  %1603 = vrot.lane.b32.xlu1 %v8121_v10, %s7738_s19  ;;  %6819 = vmatprep.subr.msk.bf16.mxu1 %vm1113_vm0, %v8121_v10  ;;  %v1148_v13 = vsel %vm1113_vm0, %v8121_v10, 0  ;;  %v6210_v14 = vpop.f32.mrb[16].mxu1 }
 0x19f   : > { %v699_v15 = vpop.f32.mrb[17].mxu0  ;;  %6247 = vmatpush3.bf16.xpose.msra.mxu1 %v1148_v13  ;;  %v859_v16 = vadd.f32 %v6210_v14, %v8126_v11  ;;  %v850_v17 = vpop.f32.mrb[17].mxu1  ;;  %v698_v20 = vadd.f32 %v697_v12, %v8035_v46 }
 0x1a0   : > { %v701_v18 = vpop.f32.mrb[18].mxu0  ;;  %v851_v44 = vadd.f32 %v850_v17, %v8126_v11  ;;  %v6211_v19 = vpop.f32.mrb[18].mxu1  ;;  %v700_v29 = vadd.f32 %v699_v15, %v8038_v48 }
 0x1a1   : > { %v702_v25 = vadd.f32 %v701_v18, %v8035_v46  ;;  %v703_v26 = vpop.f32.mrb[19].mxu0  ;;  %v862_v27 = vadd.f32 %v6211_v19, %v8126_v11  ;;  %v853_v28 = vpop.f32.mrb[19].mxu1 }
 0x1a2   : > { %v704_v30 = vadd.f32 %v703_v26, %v8038_v48  ;;  %v854_v31 = vadd.f32 %v853_v28, %v8126_v11 }
 0x1a3   : > { %v8142_v32 = vpack.c.bf16 %v702_v25, %v698_v20  ;;  %v8144_v33 = vpack.c.bf16 %v862_v27, %v859_v16 }
 0x1a4   : > { %v8146_v34 = vpack.c.bf16 %v704_v30, %v700_v29  ;;  %v8148_v35 = vpack.c.bf16 %v854_v31, %v851_v44 }
 0x1a5   : > { %10673 = vst [vmem:[#allocation30_spill] sm:$0xff] %v8142_v32  ;;  %10674 = vst [vmem:[#allocation31_spill] sm:$0xff] %v8144_v33 }
 0x1a6   : > { %10675 = vst [vmem:[#allocation32_spill] sm:$0xff] %v8146_v34  ;;  %10676 = vst [vmem:[#allocation33_spill] sm:$0xff] %v8148_v35  ;;  %v707_v36 = vpop.f32.mrb[20].mxu0  ;;  %1605 = vrot.lane.b32.xlu0 %v8146_v34, %s7738_s19  ;;  %6820 = vmatprep.subr.msk.bf16.mxu1 %vm1113_vm0, %v8146_v34  ;;  %v1151_v37 = vsel %vm1113_vm0, %v8146_v34, 0  ;;  %v6214_v38 = vpop.f32.mrb[20].mxu1 }
 0x1a7   : > { %v709_v39 = vpop.f32.mrb[21].mxu0  ;;  %6249 = vmatpush3.bf16.xpose.msra.mxu1 %v1151_v37  ;;  %v875_v40 = vadd.f32 %v6214_v38, %v8126_v11  ;;  %v866_v41 = vpop.f32.mrb[21].mxu1  ;;  %v708_v53 = vadd.f32 %v707_v36, %v8035_v46 }
 0x1a8   : > { %v711_v50 = vpop.f32.mrb[22].mxu0  ;;  %v867_v51 = vadd.f32 %v866_v41, %v8126_v11  ;;  %v6215_v52 = vpop.f32.mrb[22].mxu1  ;;  %v710_v58 = vadd.f32 %v709_v39, %v8038_v48 }
 0x1a9   : > { %v712_v54 = vadd.f32 %v711_v50, %v8035_v46  ;;  %v713_v55 = vpop.f32.mrb[23].mxu0  ;;  %v878_v56 = vadd.f32 %v6215_v52, %v8126_v11  ;;  %v869_v57 = vpop.f32.mrb[23].mxu1 }
 0x1aa   : > { %v714_v59 = vadd.f32 %v713_v55, %v8038_v48  ;;  %v870_v60 = vadd.f32 %v869_v57, %v8126_v11 }
 0x1ab   : > { %v8164_v61 = vpack.c.bf16 %v712_v54, %v708_v53  ;;  %v8166_v62 = vpack.c.bf16 %v878_v56, %v875_v40 }
 0x1ac   : > { %v8168_v63 = vpack.c.bf16 %v714_v59, %v710_v58  ;;  %v8170_v4 = vpack.c.bf16 %v870_v60, %v867_v51 }
 0x1ad   : > { %10677 = vst [vmem:[#allocation34_spill] sm:$0xff] %v8164_v61  ;;  %10678 = vst [vmem:[#allocation35_spill] sm:$0xff] %v8166_v62 }
 0x1ae   : > { %10679 = vst [vmem:[#allocation36_spill] sm:$0xff] %v8168_v63  ;;  %10680 = vst [vmem:[#allocation37_spill] sm:$0xff] %v8170_v4  ;;  %v717_v5 = vpop.f32.mrb[24].mxu0  ;;  %1607 = vrot.lane.b32.xlu1 %v8168_v63, %s7738_s19  ;;  %6821 = vmatprep.subr.msk.bf16.mxu1 %vm1113_vm0, %v8168_v63  ;;  %v1154_v6 = vsel %vm1113_vm0, %v8168_v63, 0  ;;  %v6218_v7 = vpop.f32.mrb[24].mxu1 }
 0x1af   : > { %v719_v12 = vpop.f32.mrb[25].mxu0  ;;  %6251 = vmatpush3.bf16.xpose.msra.mxu1 %v1154_v6  ;;  %v891_v13 = vadd.f32 %v6218_v7, %v8126_v11  ;;  %v882_v14 = vpop.f32.mrb[25].mxu1  ;;  %v718_v18 = vadd.f32 %v717_v5, %v8035_v46 }
 0x1b0   : > { %v721_v15 = vpop.f32.mrb[26].mxu0  ;;  %v883_v16 = vadd.f32 %v882_v14, %v8126_v11  ;;  %v6219_v17 = vpop.f32.mrb[26].mxu1  ;;  %v720_v26 = vadd.f32 %v719_v12, %v8038_v48 }
 0x1b1   : > { %v722_v44 = vadd.f32 %v721_v15, %v8035_v46  ;;  %v723_v19 = vpop.f32.mrb[27].mxu0  ;;  %v894_v20 = vadd.f32 %v6219_v17, %v8126_v11  ;;  %v885_v25 = vpop.f32.mrb[27].mxu1 }
 0x1b2   : > { %v724_v27 = vadd.f32 %v723_v19, %v8038_v48  ;;  %v886_v28 = vadd.f32 %v885_v25, %v8126_v11 }
 0x1b3   : > { %v8186_v29 = vpack.c.bf16 %v722_v44, %v718_v18  ;;  %v8188_v30 = vpack.c.bf16 %v894_v20, %v891_v13 }
 0x1b4   : > { %v8190_v31 = vpack.c.bf16 %v724_v27, %v720_v26  ;;  %v8192_v36 = vpack.c.bf16 %v886_v28, %v883_v16 }
 0x1b5   : > { %10681 = vst [vmem:[#allocation38_spill] sm:$0xff] %v8186_v29  ;;  %10682 = vst [vmem:[#allocation39_spill] sm:$0xff] %v8188_v30 }
 0x1b6   : > { %10683 = vst [vmem:[#allocation40_spill] sm:$0xff] %v8190_v31  ;;  %10684 = vst [vmem:[#allocation41_spill] sm:$0xff] %v8192_v36  ;;  %v727_v37 = vpop.f32.mrb[28].mxu0  ;;  %1609 = vrot.lane.b32.xlu0 %v8190_v31, %s7738_s19  ;;  %6822 = vmatprep.subr.msk.bf16.mxu1 %vm1113_vm0, %v8190_v31  ;;  %v1157_v38 = vsel %vm1113_vm0, %v8190_v31, 0  ;;  %v6222_v39 = vpop.f32.mrb[28].mxu1 }
 0x1b7   : > { %v729_v40 = vpop.f32.mrb[29].mxu0  ;;  %6253 = vmatpush3.bf16.xpose.msra.mxu1 %v1157_v38  ;;  %v907_v41 = vadd.f32 %v6222_v39, %v8126_v11  ;;  %v898_v50 = vpop.f32.mrb[29].mxu1  ;;  %v728_v53 = vadd.f32 %v727_v37, %v8035_v46 }
 0x1b8   : > { %v731_v51 = vpop.f32.mrb[30].mxu0  ;;  %v6223_v52 = vpop.f32.mrb[30].mxu1  ;;  %v730_v57 = vadd.f32 %v729_v40, %v8038_v48  ;;  %v899_v7 = vadd.f32 %v898_v50, %v8126_v11 }
 0x1b9   : > { %v732_v54 = vadd.f32 %v731_v51, %v8035_v46  ;;  %v733_v55 = vpop.f32.mrb[31].mxu0  ;;  %v910_v56 = vadd.f32 %v6223_v52, %v8126_v11  ;;  %v901_v12 = vpop.f32.mrb[31].mxu1 }
 0x1ba   : > { %v734_v58 = vadd.f32 %v733_v55, %v8038_v48  ;;  %1573 = vrot.lane.b32.xlu0 %v8048_v0, %s7738_s19  ;;  %v902_v13 = vadd.f32 %v901_v12, %v8126_v11 }
 0x1bb   : > { %v8208_v59 = vpack.c.bf16 %v732_v54, %v728_v53  ;;  %v8210_v60 = vpack.c.bf16 %v910_v56, %v907_v41 }
 0x1bc   : > { %v8212_v5 = vpack.c.bf16 %v734_v58, %v730_v57  ;;  %v8270_v14 = vpack.c.bf16 %v902_v13, %v899_v7 }
 0x1bd   : > { %10685 = vst [vmem:[#allocation42_spill] sm:$0xff] %v8208_v59  ;;  %10686 = vst [vmem:[#allocation43_spill] sm:$0xff] %v8210_v60 }
 0x1be   : > { %10687 = vst [vmem:[#allocation44_spill] sm:$0xff] %v8212_v5  ;;  %1611 = vrot.lane.b32.xlu1 %v8212_v5, %s7738_s19  ;;  %6823 = vmatprep.subr.msk.bf16.mxu1 %vm1113_vm0, %v8212_v5  ;;  %v1160_v6 = vsel %vm1113_vm0, %v8212_v5, 0  ;;  %10688 = vst [vmem:[#allocation45_spill] sm:$0xff] %v8270_v14  ;;  %v6226_v15 = vpop.f32.mrb[32].mxu1 }
 0x1bf   : > { %1575 = vrot.lane.b32.xlu0 %v8072_v21, %s7738_s19  ;;  %6255 = vmatpush3.bf16.xpose.msra.mxu1 %v1160_v6  ;;  %v914_v17 = vpop.f32.mrb[33].mxu1  ;;  %v923_v20 = vadd.f32 %v6226_v15, %v8126_v11 }
 0x1c0   : > { %6272 = vmatprep.subr.bf16.mxu1 %v8148_v35  ;;  %v6227_v44 = vpop.f32.mrb[34].mxu1  ;;  %v915_v25 = vadd.f32 %v914_v17, %v8126_v11 }
 0x1c1   : > { %v917_v19 = vpop.f32.mrb[35].mxu1  ;;  %v926_v26 = vadd.f32 %v6227_v44, %v8126_v11 }
 0x1c2   : > { %2161 = vrot.lane.b32.xlu1 %v8052_v2, %s7739_s16  ;;  %v918_v27 = vadd.f32 %v917_v19, %v8126_v11 }
 0x1c3   : > { %2165 = vrot.lane.b32.xlu0 %v8098_v47, %s7739_s16  ;;  %v8322_v28 = vpack.c.bf16 %v926_v26, %v923_v20 }
 0x1c4   : > { %v8324_v37 = vpack.c.bf16 %v918_v27, %v915_v25 }
 0x1c5   : > { %10689 = vst [vmem:[#allocation46_spill] sm:$0xff] %v8322_v28 }
 0x1c6   : > { %2163 = vrot.lane.b32.xlu1 %v8076_v23, %s7739_s16  ;;  %6257 = vmatmul.mubr.msk.bf16.vlgmr.msra.gmra.mrb[48].mxu1 %vm1113_vm0, %v8072_v21  ;;  %10690 = vst [vmem:[#allocation47_spill] sm:$0xff] %v8324_v37  ;;  %v6230_v38 = vpop.f32.mrb[36].mxu1 }
 0x1c7   : > { %2169 = vrot.lane.b32.xlu0 %v8146_v34, %s7739_s16  ;;  %6260 = vmatprep.mubr.msk.bf16.mxu1 %vm1113_vm0, %v8094_v43  ;;  %v930_v40 = vpop.f32.mrb[37].mxu1  ;;  %v939_v52 = vadd.f32 %v6230_v38, %v8126_v11  ;;  %v2121_v34 = vld [vmem:[#allocation9 + $0x140] sm:$0xff] }
 0x1c8   : > { %6273 = vmatpush3.bf16.msra.mxu1 %v8148_v35  ;;  %v6231_v50 = vpop.f32.mrb[38].mxu1  ;;  %v931_v53 = vadd.f32 %v930_v40, %v8126_v11 }
 0x1c9   : > { %6274 = vmatprep.subr.bf16.mxu1 %v8144_v33  ;;  %v933_v51 = vpop.f32.mrb[39].mxu1  ;;  %v942_v54 = vadd.f32 %v6231_v50, %v8126_v11 }
 0x1ca   : > { %2167 = vrot.lane.b32.xlu1 %v8121_v10, %s7739_s16  ;;  %v934_v55 = vadd.f32 %v933_v51, %v8126_v11 }
 0x1cb   : > { %1579 = vrot.lane.b32.xlu0 %v8117_v8, %s7738_s19  ;;  %v8340_v56 = vpack.c.bf16 %v942_v54, %v939_v52 }
 0x1cc   : > { %6275 = vmatpush3.bf16.msra.mxu1 %v8144_v33  ;;  %v8342_v57 = vpack.c.bf16 %v934_v55, %v931_v53 }
 0x1cd   : > { %6276 = vmatprep.subr.bf16.mxu1 %v8170_v4  ;;  %10691 = vst [vmem:[#allocation48_spill] sm:$0xff] %v8340_v56 }
 0x1ce   : > { %1577 = vrot.lane.b32.xlu1 %v8094_v43, %s7738_s19  ;;  %6261 = vmatmul.mubr.msk.bf16.gmra.mrb[52].mxu1 %vm1113_vm0, %v8117_v8  ;;  %10692 = vst [vmem:[#allocation49_spill] sm:$0xff] %v8342_v57  ;;  %v6234_v58 = vpop.f32.mrb[40].mxu1  ;;  %v1559_v57 = vld [vmem:[#allocation9 + $0xd0] sm:$0xff] }
 0x1cf   : > { %1581 = vrot.lane.b32.xlu0 %v8142_v32, %s7738_s19  ;;  %6264 = vmatprep.mubr.msk.bf16.mxu1 %vm1113_vm0, %v8142_v32  ;;  %v946_v7 = vpop.f32.mrb[41].mxu1 }
 0x1d0   : > { %6277 = vmatpush3.bf16.msra.mxu1 %v8170_v4  ;;  %v6235_v13 = vpop.f32.mrb[42].mxu1  ;;  %v947_v17 = vadd.f32 %v946_v7, %v8126_v11 }
 0x1d1   : > { %6278 = vmatprep.subr.bf16.mxu1 %v8166_v62  ;;  %v949_v15 = vpop.f32.mrb[43].mxu1 }
 0x1d2   : > { %2171 = vrot.lane.b32.xlu1 %v8168_v63, %s7739_s16  ;;  %v950_v44 = vadd.f32 %v949_v15, %v8126_v11 }
 0x1d3   : > { %2173 = vrot.lane.b32.xlu0 %v8190_v31, %s7739_s16 }
 0x1d4   : > { %6279 = vmatpush3.bf16.msra.mxu1 %v8166_v62  ;;  %v8356_v20 = vpack.c.bf16 %v950_v44, %v947_v17 }
 0x1d5   : > { %6280 = vmatprep.subr.bf16.mxu1 %v8192_v36 }
 0x1d6   : > { %1583 = vrot.lane.b32.xlu1 %v8164_v61, %s7738_s19  ;;  %6265 = vmatmul.mubr.msk.bf16.gmra.mrb[56].mxu1 %vm1113_vm0, %v8164_v61  ;;  %10694 = vst [vmem:[#allocation51_spill] sm:$0xff] %v8356_v20  ;;  %v6238_v25 = vpop.f32.mrb[44].mxu1 }
 0x1d7   : > { %1587 = vrot.lane.b32.xlu0 %v8208_v59, %s7738_s19  ;;  %6268 = vmatprep.mubr.msk.bf16.mxu1 %vm1113_vm0, %v8186_v29  ;;  %v962_v27 = vpop.f32.mrb[45].mxu1  ;;  %v971_v40 = vadd.f32 %v6238_v25, %v8126_v11 }
 0x1d8   : > { %6281 = vmatpush3.bf16.msra.mxu1 %v8192_v36 }
 0x1d9   : > { %6282 = vmatprep.subr.bf16.mxu1 %v8188_v30 }
 0x1da   : > { %1585 = vrot.lane.b32.xlu1 %v8186_v29, %s7738_s19 }
 0x1db   : > { %2137 = vrot.lane.b32.xlu0 %v8048_v0, %s7739_s16 }
 0x1dc   : > { %6283 = vmatpush3.bf16.msra.mxu1 %v8188_v30 }
 0x1dd   : > { %6284 = vmatprep.subr.bf16.mxu1 %v8270_v14 }
 0x1de   : > { %2175 = vrot.lane.b32.xlu1 %v8212_v5, %s7739_s16  ;;  %6269 = vmatmul.mubr.msk.bf16.gmra.mrb[60].mxu1 %vm1113_vm0, %v8208_v59 }
 0x1df   : > { %2141 = vrot.lane.b32.xlu0 %v8094_v43, %s7739_s16 }
 0x1e0   : > { %6285 = vmatpush3.bf16.msra.mxu1 %v8270_v14 }
 0x1e1   : > { %6286 = vmatprep.subr.bf16.mxu1 %v8210_v60 }
 0x1e2   : > { %2139 = vrot.lane.b32.xlu1 %v8072_v21, %s7739_s16 }
 0x1e3   : > { %2145 = vrot.lane.b32.xlu0 %v8142_v32, %s7739_s16 }
 0x1e4   : > { %6287 = vmatpush3.bf16.msra.mxu1 %v8210_v60 }
 0x1e6   : > { %2143 = vrot.lane.b32.xlu1 %v8117_v8, %s7739_s16  ;;  %v1561_v8 = vld [vmem:[#allocation9 + $0xe0] sm:$0xff] }
 0x1e7   : > { %2149 = vrot.lane.b32.xlu0 %v8186_v29, %s7739_s16 }
 0x1ea   : > { %2147 = vrot.lane.b32.xlu1 %v8164_v61, %s7739_s16 }
 0x1eb   : > { %1920 = vrot.lane.b32.xlu0 %v8144_v33, %s7738_s19 }
 0x1ee   : > { %2151 = vrot.lane.b32.xlu1 %v8208_v59, %s7739_s16 }
 0x1ef   : > { %1922 = vrot.lane.b32.xlu0 %v8170_v4, %s7738_s19 }
 0x1f2   : > { %1918 = vrot.lane.b32.xlu1 %v8148_v35, %s7738_s19 }
 0x1f3   : > { %1926 = vrot.lane.b32.xlu0 %v8192_v36, %s7738_s19 }
 0x1f6   : > { %1924 = vrot.lane.b32.xlu1 %v8166_v62, %s7738_s19 }
 0x1f7   : > { %2482 = vrot.lane.b32.xlu0 %v8148_v35, %s7739_s16 }
 0x1f8   : > { %v1598_v16 = vpop.permute.xlu0 %1597 }
 0x1f9   : > { %6824 = vmatprep.subr.msk.bf16.mxu0 %vm1113_vm0, %v1598_v16  ;;  %v1638_v18 = vsel %vm1113_vm0, %v1598_v16, 0  ;;  %v955_v16 = vadd.f32 %v6234_v58, %v8126_v11 }
 0x1fa   : > { %1928 = vrot.lane.b32.xlu1 %v8188_v30, %s7738_s19  ;;  %6305 = vmatpush3.bf16.xpose.msra.mxu0 %v1638_v18  ;;  %v958_v18 = vadd.f32 %v6235_v13, %v8126_v11 }
 0x1fb   : > { %2486 = vrot.lane.b32.xlu0 %v8170_v4, %s7739_s16 }
 0x1fc   : > { %v8354_v19 = vpack.c.bf16 %v958_v18, %v955_v16 }
 0x1fe   : > { %1932 = vrot.lane.b32.xlu1 %v8210_v60, %s7738_s19  ;;  %10693 = vst [vmem:[#allocation50_spill] sm:$0xff] %v8354_v19 }
 0x1ff   : > { %1930 = vrot.lane.b32.xlu0 %v8270_v14, %s7738_s19 }
 0x200   : > { %v1600_v39 = vpop.permute.xlu0 %1599 }
 0x201   : > { %6825 = vmatprep.subr.msk.bf16.mxu0 %vm1113_vm0, %v1600_v39  ;;  %v1641_v41 = vsel %vm1113_vm0, %v1600_v39, 0  ;;  %v6239_v39 = vpop.f32.mrb[46].mxu1 }
 0x202   : > { %2484 = vrot.lane.b32.xlu1 %v8144_v33, %s7739_s16  ;;  %6307 = vmatpush3.bf16.xpose.msra.mxu0 %v1641_v41  ;;  %v963_v41 = vadd.f32 %v962_v27, %v8126_v11  ;;  %v974_v50 = vadd.f32 %v6239_v39, %v8126_v11  ;;  %v965_v51 = vpop.f32.mrb[47].mxu1  ;;  %v737_v27 = vpop.f32.mrb[32].mxu0 }
 0x203   : > { %2494 = vrot.lane.b32.xlu0 %v8270_v14, %s7739_s16  ;;  %v966_v52 = vadd.f32 %v965_v51, %v8126_v11  ;;  %v738_v39 = vadd.f32 %v737_v27, %v8035_v46 }
 0x204   : > { %v8368_v53 = vpack.c.bf16 %v974_v50, %v971_v40  ;;  %v739_v40 = vpop.f32.mrb[33].mxu0 }
 0x205   : > { %v8370_v54 = vpack.c.bf16 %v966_v52, %v963_v41  ;;  %v740_v41 = vadd.f32 %v739_v40, %v8038_v48  ;;  %v741_v50 = vpop.f32.mrb[34].mxu0 }
 0x206   : > { %2488 = vrot.lane.b32.xlu1 %v8166_v62, %s7739_s16  ;;  %10695 = vst [vmem:[#allocation52_spill] sm:$0xff] %v8368_v53  ;;  %v742_v51 = vadd.f32 %v741_v50, %v8035_v46  ;;  %v743_v52 = vpop.f32.mrb[35].mxu0 }
 0x207   : > { %10696 = vst [vmem:[#allocation53_spill] sm:$0xff] %v8370_v54 }
 0x208   : > { %v1602_v6 = vpop.permute.xlu1 %1601 }
 0x209   : > { %6826 = vmatprep.subr.msk.bf16.mxu0 %vm1113_vm0, %v1602_v6  ;;  %v1644_v12 = vsel %vm1113_vm0, %v1602_v6, 0 }
 0x20a   : > { %2490 = vrot.lane.b32.xlu1 %v8192_v36, %s7739_s16  ;;  %6309 = vmatpush3.bf16.xpose.msra.mxu0 %v1644_v12 }
 0x20e   : > { %2492 = vrot.lane.b32.xlu1 %v8188_v30, %s7739_s16 }
 0x210   : > { %v1604_v26 = vpop.permute.xlu1 %1603 }
 0x211   : > { %6827 = vmatprep.subr.msk.bf16.mxu0 %vm1113_vm0, %v1604_v26  ;;  %v1647_v38 = vsel %vm1113_vm0, %v1604_v26, 0 }
 0x212   : > { %2496 = vrot.lane.b32.xlu1 %v8210_v60, %s7739_s16  ;;  %6311 = vmatpush3.bf16.xpose.msra.mxu0 %v1647_v38  ;;  %v1550_v60 = vld [vmem:[#allocation9 + $0x88] sm:$0xff] }
 0x216   : > { %2725 = vrot.lane.b32.xlu1 %v8052_v2, %s7740_s7 }
 0x218   : > { %v1606_v55 = vpop.permute.xlu0 %1605 }
 0x219   : > { %6828 = vmatprep.subr.msk.bf16.mxu0 %vm1113_vm0, %v1606_v55  ;;  %v1650_v58 = vsel %vm1113_vm0, %v1606_v55, 0 }
 0x21a   : > { %2727 = vrot.lane.b32.xlu1 %v8076_v23, %s7740_s7  ;;  %6313 = vmatpush3.bf16.xpose.msra.mxu0 %v1650_v58  ;;  %v744_v58 = vadd.f32 %v743_v52, %v8038_v48 }
 0x220   : > { %v1608_v6 = vpop.permute.xlu1 %1607 }
 0x221   : > { %6829 = vmatprep.subr.msk.bf16.mxu0 %vm1113_vm0, %v1608_v6  ;;  %v1653_v11 = vsel %vm1113_vm0, %v1608_v6, 0  ;;  %v747_v6 = vpop.f32.mrb[36].mxu0 }
 0x222   : > { %6315 = vmatpush3.bf16.xpose.msra.mxu0 %v1653_v11 }
 0x228   : > { %v1610_v7 = vpop.permute.xlu0 %1609 }
 0x229   : > { %6830 = vmatprep.subr.msk.bf16.mxu0 %vm1113_vm0, %v1610_v7  ;;  %v1656_v2 = vsel %vm1113_vm0, %v1610_v7, 0  ;;  %v8398_v7 = vpack.c.bf16 %v742_v51, %v738_v39 }
 0x22a   : > { %6317 = vmatpush3.bf16.xpose.msra.mxu0 %v1656_v2  ;;  %v748_v2 = vadd.f32 %v747_v6, %v8035_v46 }
 0x22b   : > { %10697 = vst [vmem:[#allocation54_spill] sm:$0xff] %v8398_v7 }
 0x22c   : > { %v1574_v12 = vpop.permute.xlu0 %1573 }
 0x22d   : > { %6320 = vmatprep.mubr.msk.bf16.mxu0 %vm1113_vm0, %v1574_v12  ;;  %v749_v12 = vpop.f32.mrb[37].mxu0 }
 0x230   : > { %v1612_v13 = vpop.permute.xlu1 %1611 }
 0x231   : > { %v1576_v15 = vpop.permute.xlu0 %1575  ;;  %6831 = vmatprep.subr.msk.bf16.mxu0 %vm1113_vm0, %v1612_v13  ;;  %v1659_v23 = vsel %vm1113_vm0, %v1612_v13, 0 }
 0x232   : > { %6319 = vmatpush3.bf16.xpose.msra.mxu0 %v1659_v23  ;;  %v750_v23 = vadd.f32 %v749_v12, %v8038_v48 }
 0x234   : > { %v2162_v16 = vpop.permute.xlu1 %2161 }
 0x235   : > { %v2166_v17 = vpop.permute.xlu0 %2165  ;;  %6832 = vmatprep.subr.msk.bf16.mxu0 %vm1113_vm0, %v2162_v16  ;;  %v2202_v25 = vsel %vm1113_vm0, %v2162_v16, 0  ;;  %v751_v16 = vpop.f32.mrb[38].mxu0 }
 0x236   : > { %v753_v27 = vpop.f32.mrb[39].mxu0 }
 0x237   : > { %v754_v40 = vadd.f32 %v753_v27, %v8038_v48  ;;  %v757_v50 = vpop.f32.mrb[40].mxu0 }
 0x238   : > { %v2164_v18 = vpop.permute.xlu1 %2163 }
 0x239   : > { %v8386_v44 = vpop.permute.xlu0 %2169  ;;  %6321 = vmatmul.mubr.msk.bf16.vlgmr.msra.gmra.mrb[48].mxu0 %vm1113_vm0, %v1576_v15  ;;  %v2205_v13 = vsel %vm1113_vm0, %v2164_v18, 0  ;;  %v8403_v15 = vpack.c.bf16 %v744_v58, %v740_v41  ;;  %v759_v41 = vpop.f32.mrb[41].mxu0  ;;  %v8413_v52 = vpack.c.bf16 %v754_v40, %v750_v23  ;;  %v2208_v23 = vsel %vm1113_vm0, %v2166_v17, 0 }
 0x23a   : > { %6369 = vmatpush3.bf16.xpose.msra.mxu0 %v2202_v25  ;;  %v752_v25 = vadd.f32 %v751_v16, %v8035_v46  ;;  %v761_v58 = vpop.f32.mrb[42].mxu0 }
 0x23b   : > { %6833 = vmatprep.subr.msk.bf16.mxu0 %vm1113_vm0, %v2164_v18  ;;  %10698 = vst [vmem:[#allocation55_spill] sm:$0xff] %v8403_v15  ;;  %v758_v18 = vadd.f32 %v757_v50, %v8035_v46  ;;  %10700 = vst [vmem:[#allocation57_spill] sm:$0xff] %v8413_v52  ;;  %v762_v6 = vadd.f32 %v761_v58, %v8035_v46 }
 0x23c   : > { %v8391_v26 = vpop.permute.xlu1 %2167 }
 0x23d   : > { %v1580_v38 = vpop.permute.xlu0 %1579  ;;  %v8418_v27 = vpack.c.bf16 %v762_v6, %v758_v18 }
 0x23f   : > { %10701 = vst [vmem:[#allocation58_spill] sm:$0xff] %v8418_v27  ;;  %v1109_v27 = vld [vmem:[#allocation9 + $0x60] sm:$0xff] }
 0x240   : > { %v1578_v55 = vpop.permute.xlu1 %1577 }
 0x241   : > { %v1582_v11 = vpop.permute.xlu0 %1581  ;;  %6324 = vmatprep.mubr.msk.bf16.mxu0 %vm1113_vm0, %v1578_v55  ;;  %v760_v55 = vadd.f32 %v759_v41, %v8038_v48 }
 0x242   : > { %6325 = vmatmul.mubr.msk.bf16.gmra.mrb[52].mxu0 %vm1113_vm0, %v1580_v38  ;;  %v8410_v38 = vpack.c.bf16 %v752_v25, %v748_v2 }
 0x243   : > { %6371 = vmatpush3.bf16.xpose.msra.mxu0 %v2205_v13  ;;  %6328 = vmatprep.mubr.msk.bf16.mxu0 %vm1113_vm0, %v1582_v11  ;;  %v763_v11 = vpop.f32.mrb[43].mxu0 }
 0x244   : > { %6834 = vmatprep.subr.msk.bf16.mxu0 %vm1113_vm0, %v2166_v17  ;;  %v2172_v39 = vpop.permute.xlu1 %2171  ;;  %10699 = vst [vmem:[#allocation56_spill] sm:$0xff] %v8410_v38  ;;  %v764_v13 = vadd.f32 %v763_v11, %v8038_v48  ;;  %v767_v16 = vpop.f32.mrb[44].mxu0  ;;  %v1112_v38 = vld [vmem:[#allocation9 + $0x78] sm:$0xff] }
 0x245   : > { %v2174_v51 = vpop.permute.xlu0 %2173  ;;  %v768_v2 = vadd.f32 %v767_v16, %v8035_v46  ;;  %v769_v25 = vpop.f32.mrb[45].mxu0  ;;  %v2214_v16 = vsel %vm1113_vm0, %v8386_v44, 0 }
 0x246   : > { %v8423_v40 = vpack.c.bf16 %v764_v13, %v760_v55  ;;  %v770_v50 = vadd.f32 %v769_v25, %v8038_v48  ;;  %v771_v41 = vpop.f32.mrb[46].mxu0 }
 0x247   : > { %v772_v58 = vadd.f32 %v771_v41, %v8035_v46  ;;  %v773_v9 = vpop.f32.mrb[47].mxu0  ;;  %v2211_v46 = vsel %vm1113_vm0, %v8391_v26, 0 }
 0x248   : > { %v1584_v12 = vpop.permute.xlu1 %1583  ;;  %10702 = vst [vmem:[#allocation59_spill] sm:$0xff] %v8423_v40  ;;  %v774_v6 = vadd.f32 %v773_v9, %v8038_v48 }
 0x249   : > { %v1588_v11 = vpop.permute.xlu0 %1587 }
 0x24a   : > { %6329 = vmatmul.mubr.msk.bf16.gmra.mrb[56].mxu0 %vm1113_vm0, %v1584_v12  ;;  %v8431_v12 = vpack.c.bf16 %v772_v58, %v768_v2  ;;  %v8433_v17 = vpack.c.bf16 %v774_v6, %v770_v50  ;;  %v2220_v50 = vsel %vm1113_vm0, %v2174_v51, 0 }
 0x24b   : > { %6373 = vmatpush3.bf16.xpose.msra.mxu0 %v2208_v23  ;;  %v2217_v23 = vsel %vm1113_vm0, %v2172_v39, 0 }
 0x24c   : > { %6835 = vmatprep.subr.msk.bf16.mxu0 %vm1113_vm0, %v8391_v26  ;;  %v1586_v18 = vpop.permute.xlu1 %1585  ;;  %10703 = vst [vmem:[#allocation60_spill] sm:$0xff] %v8431_v12  ;;  %10704 = vst [vmem:[#allocation61_spill] sm:$0xff] %v8433_v17 }
 0x24d   : > { %6332 = vmatprep.mubr.msk.bf16.mxu0 %vm1113_vm0, %v1586_v18  ;;  %v2138_v13 = vpop.permute.xlu0 %2137 }
 0x250   : > { %v2176_v55 = vpop.permute.xlu1 %2175 }
 0x251   : > { %v2142_v41 = vpop.permute.xlu0 %2141 }
 0x252   : > { %6333 = vmatmul.mubr.msk.bf16.gmra.mrb[60].mxu0 %vm1113_vm0, %v1588_v11 }
 0x253   : > { %6375 = vmatpush3.bf16.xpose.msra.mxu0 %v2211_v46  ;;  %6384 = vmatprep.mubr.msk.bf16.mxu0 %vm1113_vm0, %v2138_v13  ;;  %v1097_v13 = vld [vmem:[#allocation9] sm:$0xff] }
 0x254   : > { %6836 = vmatprep.subr.msk.bf16.mxu0 %vm1113_vm0, %v8386_v44  ;;  %v2140_v48 = vpop.permute.xlu1 %2139  ;;  %v2223_v44 = vsel %vm1113_vm0, %v2176_v55, 0 }
 0x258   : > { %v2144_v9 = vpop.permute.xlu1 %2143 }
 0x25b   : > { %6377 = vmatpush3.bf16.xpose.msra.mxu0 %v2214_v16 }
 0x25c   : > { %6837 = vmatprep.subr.msk.bf16.mxu0 %vm1113_vm0, %v2172_v39  ;;  %v2148_v2 = vpop.permute.xlu1 %2147  ;;  %v2146_v39 = vpop.permute.xlu0 %2145 }
 0x260   : > { %v2152_v25 = vpop.permute.xlu1 %2151  ;;  %v2150_v58 = vpop.permute.xlu0 %2149 }
 0x263   : > { %6379 = vmatpush3.bf16.xpose.msra.mxu0 %v2217_v23  ;;  %v1103_v23 = vld [vmem:[#allocation9 + $0x30] sm:$0xff] }
 0x264   : > { %6838 = vmatprep.subr.msk.bf16.mxu0 %vm1113_vm0, %v2174_v51  ;;  %v8446_v26 = vpop.permute.xlu1 %1918  ;;  %v1099_v51 = vld [vmem:[#allocation9 + $0x10] sm:$0xff] }
 0x265   : > { %6336 = vmatprep.subr.bf16.mxu1 %v8446_v26 }
 0x26b   : > { %6381 = vmatpush3.bf16.xpose.msra.mxu0 %v2220_v50 }
 0x26c   : > { %6839 = vmatprep.subr.msk.bf16.mxu0 %vm1113_vm0, %v2176_v55  ;;  %v1098_v55 = vld [vmem:[#allocation9 + $0x8] sm:$0xff] }
 0x273   : > { %6383 = vmatpush3.bf16.xpose.msra.mxu0 %v2223_v44 }
 0x27a   : > { %6385 = vmatmul.mubr.msk.bf16.vlgmr.msra.gmra.mrb[64].mxu0 %vm1113_vm0, %v2140_v48 }
 0x27b   : > { %6388 = vmatprep.mubr.msk.bf16.mxu0 %vm1113_vm0, %v2142_v41 }
 0x282   : > { %6389 = vmatmul.mubr.msk.bf16.gmra.mrb[68].mxu0 %vm1113_vm0, %v2144_v9 }
 0x283   : > { %6392 = vmatprep.mubr.msk.bf16.mxu0 %vm1113_vm0, %v2146_v39  ;;  %v1101_v39 = vld [vmem:[#allocation9 + $0x20] sm:$0xff] }
 0x28a   : > { %6393 = vmatmul.mubr.msk.bf16.gmra.mrb[72].mxu0 %vm1113_vm0, %v2148_v2  ;;  %v1100_v2 = vld [vmem:[#allocation9 + $0x18] sm:$0xff] }
 0x28b   : > { %6396 = vmatprep.mubr.msk.bf16.mxu0 %vm1113_vm0, %v2150_v58  ;;  %v1104_v58 = vld [vmem:[#allocation9 + $0x38] sm:$0xff] }
 0x292   : > { %6397 = vmatmul.mubr.msk.bf16.gmra.mrb[76].mxu0 %vm1113_vm0, %v2152_v25 }
 0x299   : > { %v6258_v11 = vpop.f32.mrb[48].mxu1 }
 0x29a   : > { %v8459_v18 = vadd.f32 %v6258_v11, %v1099_v51  ;;  %v1196_v6 = vpop.f32.mrb[49].mxu1 }
 0x29b   : > { %v6259_v46 = vpop.f32.mrb[50].mxu1  ;;  %v8464_v16 = vadd.f32 %v1196_v6, %v1097_v13  ;;  %v1102_v13 = vld [vmem:[#allocation9 + $0x28] sm:$0xff] }
 0x29c   : > { %1263 = vmax.xlane.f32.xlu0 %v8459_v18  ;;  %v1199_v48 = vpop.f32.mrb[51].mxu1  ;;  %v8468_v50 = vadd.f32 %v6259_v46, %v1100_v2 }
 0x29d   : > { %v8462_v9 = vadd.f32 %v1199_v48, %v1098_v55  ;;  %v1107_v48 = vld [vmem:[#allocation9 + $0x50] sm:$0xff] }
 0x29f   : > { %1261 = vmax.xlane.f32.xlu1 %v8462_v9 }
 0x2a0   : > { %1259 = vmax.xlane.f32.xlu0 %v8464_v16 }
 0x2a1   : > { %v6262_v25 = vpop.f32.mrb[52].mxu1 }
 0x2a2   : > { %v8470_v44 = vadd.f32 %v6262_v25, %v1103_v23  ;;  %v1212_v41 = vpop.f32.mrb[53].mxu1 }
 0x2a3   : > { %v6263_v51 = vpop.f32.mrb[54].mxu1  ;;  %v8474_v6 = vadd.f32 %v1212_v41, %v1101_v39 }
 0x2a4   : > { %v1215_v11 = vpop.f32.mrb[55].mxu1  ;;  %1271 = vmax.xlane.f32.xlu1 %v8470_v44  ;;  %1265 = vmax.xlane.f32.xlu0 %v8468_v50  ;;  %v8476_v55 = vadd.f32 %v6263_v51, %v1104_v58  ;;  %v1106_v58 = vld [vmem:[#allocation9 + $0x48] sm:$0xff]  ;;  %v1111_v51 = vld [vmem:[#allocation9 + $0x70] sm:$0xff] }
 0x2a5   : > { %v8480_v2 = vadd.f32 %v1215_v11, %v1102_v13 }
 0x2a8   : > { %1267 = vmax.xlane.f32.xlu1 %v8474_v6  ;;  %1273 = vmax.xlane.f32.xlu0 %v8476_v55 }
 0x2a9   : > { %v6266_v46 = vpop.f32.mrb[56].mxu1 }
 0x2aa   : > { %v8482_v23 = vadd.f32 %v6266_v46, %v1107_v48  ;;  %v1228_v25 = vpop.f32.mrb[57].mxu1 }
 0x2ab   : > { %v6267_v1 = vpop.f32.mrb[58].mxu1  ;;  %v8486_v41 = vadd.f32 %v1228_v25, %v1105_v45  ;;  %v1110_v45 = vld [vmem:[#allocation9 + $0x68] sm:$0xff]  ;;  %v8507_v25 = vpop.permute.xlu1 %1924 }
 0x2ac   : > { %v1231_v12 = vpop.f32.mrb[59].mxu1  ;;  %1279 = vmax.xlane.f32.xlu1 %v8482_v23  ;;  %1269 = vmax.xlane.f32.xlu0 %v8480_v2  ;;  %v8488_v39 = vadd.f32 %v6267_v1, %v1108_v22 }
 0x2ad   : > { %v8492_v13 = vadd.f32 %v1231_v12, %v1106_v58 }
 0x2af   : > { %v8509_v58 = vpop.permute.xlu1 %1928 }
 0x2b0   : > { %1275 = vmax.xlane.f32.xlu1 %v8486_v41  ;;  %1281 = vmax.xlane.f32.xlu0 %v8488_v39 }
 0x2b1   : > { %v6270_v11 = vpop.f32.mrb[60].mxu1 }
 0x2b2   : > { %v8494_v48 = vadd.f32 %v6270_v11, %v1111_v51  ;;  %v1244_v46 = vpop.f32.mrb[61].mxu1 }
 0x2b3   : > { %v6271_v7 = vpop.f32.mrb[62].mxu1  ;;  %v8498_v1 = vadd.f32 %v1244_v46, %v1109_v27  ;;  %v8511_v51 = vpop.permute.xlu1 %1932 }
 0x2b4   : > { %v1247_v42 = vpop.f32.mrb[63].mxu1  ;;  %1287 = vmax.xlane.f32.xlu1 %v8494_v48  ;;  %1277 = vmax.xlane.f32.xlu0 %v8492_v13  ;;  %v8500_v22 = vadd.f32 %v6271_v7, %v1112_v38  ;;  %v8515_v27 = vpop.permute.xlu0 %1920  ;;  %v1551_v38 = vld [vmem:[#allocation9 + $0x90] sm:$0xff] }
 0x2b5   : > { %v8504_v12 = vadd.f32 %v1247_v42, %v1110_v45  ;;  %v1552_v42 = vld [vmem:[#allocation9 + $0x98] sm:$0xff] }
 0x2b7   : > { %v8513_v11 = vpop.permute.xlu1 %2484 }
 0x2b8   : > { %1283 = vmax.xlane.f32.xlu1 %v8498_v1  ;;  %1289 = vmax.xlane.f32.xlu0 %v8500_v22  ;;  %10705 = vst [vmem:[#allocation62_spill] sm:$0xff] %v8513_v11  ;;  %v8519_v46 = vpop.permute.xlu0 %1922  ;;  %v2118_v11 = vld [vmem:[#allocation9 + $0x128] sm:$0xff] }
 0x2bb   : > { %v8517_v7 = vpop.permute.xlu1 %2488 }
 0x2bc   : > { %1285 = vmax.xlane.f32.xlu0 %v8504_v12  ;;  %10706 = vst [vmem:[#allocation63_spill] sm:$0xff] %v8517_v7  ;;  %v8528_v14 = vpop.permute.xlu0 %1926 }
 0x2bf   : > { %v8526_v15 = vpop.permute.xlu1 %2490 }
 0x2c0   : > { %10707 = vst [vmem:[#allocation64_spill] sm:$0xff] %v8526_v15  ;;  %v8541_v54 = vpop.permute.xlu0 %2482 }
 0x2c1   : > { %10709 = vst [vmem:[#allocation66_spill] sm:$0xff] %v8541_v54 }
 0x2c4   : > { %v8549_v56 = vpop.permute.xlu0 %2486 }
 0x2c5   : > { %10710 = vst [vmem:[#allocation67_spill] sm:$0xff] %v8549_v56 }
 0x30c   : > { %v6322_v49 = vpop.f32.mrb[48].mxu0 }
 0x30d   : > { %v8521_v45 = vadd.f32 %v6322_v49, %v1551_v38  ;;  %v1695_v24 = vpop.f32.mrb[49].mxu0  ;;  %v1555_v49 = vld [vmem:[#allocation9 + $0xb0] sm:$0xff] }
 0x30e   : > { %v6323_v17 = vpop.f32.mrb[50].mxu0  ;;  %v8530_v30 = vadd.f32 %v1695_v24, %v1549_v3  ;;  %v1553_v3 = vld [vmem:[#allocation9 + $0xa0] sm:$0xff] }
 0x30f   : > { %v8523_v40 = vadd.f32 %v6323_v17, %v1552_v42  ;;  %v1698_v52 = vpop.f32.mrb[51].mxu0  ;;  %1762 = vmax.xlane.f32.xlu1 %v8521_v45  ;;  %v1556_v17 = vld [vmem:[#allocation9 + $0xb8] sm:$0xff]  ;;  %v8537_v42 = vpop.permute.xlu1 %2492 }
 0x310   : > { %v8533_v62 = vadd.f32 %v1698_v52, %v1550_v60  ;;  %10708 = vst [vmem:[#allocation65_spill] sm:$0xff] %v8537_v42  ;;  %v1554_v52 = vld [vmem:[#allocation9 + $0xa8] sm:$0xff] }
 0x311   : > { %1764 = vmax.xlane.f32.xlu0 %v8523_v40 }
 0x313   : > { %1758 = vmax.xlane.f32.xlu1 %v8530_v30 }
 0x315   : > { %v6326_v38 = vpop.f32.mrb[52].mxu0  ;;  %1760 = vmax.xlane.f32.xlu0 %v8533_v62 }
 0x316   : > { %v8539_v36 = vadd.f32 %v6326_v38, %v1555_v49  ;;  %v1711_v53 = vpop.f32.mrb[53].mxu0  ;;  %v8551_v49 = vpop.permute.xlu1 %2496 }
 0x317   : > { %v6327_v24 = vpop.f32.mrb[54].mxu0  ;;  %v8546_v20 = vadd.f32 %v1711_v53, %v1553_v3  ;;  %10711 = vst [vmem:[#allocation68_spill] sm:$0xff] %v8551_v49  ;;  %v8559_v53 = vpop.permute.xlu0 %1930  ;;  %v1557_v3 = vld [vmem:[#allocation9 + $0xc0] sm:$0xff] }
 0x318   : > { %v8543_v19 = vadd.f32 %v6327_v24, %v1556_v17  ;;  %v1714_v60 = vpop.f32.mrb[55].mxu0  ;;  %1770 = vmax.xlane.f32.xlu1 %v8539_v36  ;;  %v1560_v17 = vld [vmem:[#allocation9 + $0xd8] sm:$0xff] }
 0x319   : > { %v8553_v38 = vadd.f32 %v1714_v60, %v1554_v52  ;;  %v1558_v60 = vld [vmem:[#allocation9 + $0xc8] sm:$0xff] }
 0x31a   : > { %1772 = vmax.xlane.f32.xlu0 %v8543_v19  ;;  %v8564_v52 = vpop.permute.xlu1 %2725 }
 0x31b   : > { %10712 = vst [vmem:[#allocation69_spill] sm:$0xff] %v8564_v52  ;;  %v8572_v29 = vpop.permute.xlu0 %2494 }
 0x31c   : > { %1766 = vmax.xlane.f32.xlu1 %v8546_v20  ;;  %10713 = vst [vmem:[#allocation70_spill] sm:$0xff] %v8572_v29 }
 0x31d   : > { %v6330_v28 = vpop.f32.mrb[56].mxu0 }
 0x31e   : > { %v8556_v24 = vadd.f32 %v6330_v28, %v1559_v57  ;;  %v1727_v37 = vpop.f32.mrb[57].mxu0  ;;  %1768 = vmax.xlane.f32.xlu0 %v8553_v38  ;;  %v1563_v28 = vld [vmem:[#allocation9 + $0xf0] sm:$0xff] }
 0x31f   : > { %v6331_v4 = vpop.f32.mrb[58].mxu0  ;;  %v8566_v59 = vadd.f32 %v1727_v37, %v1557_v3  ;;  %v8577_v37 = vpop.permute.xlu1 %2727 }
 0x320   : > { %v8561_v35 = vadd.f32 %v6331_v4, %v1560_v17  ;;  %v1730_v33 = vpop.f32.mrb[59].mxu0  ;;  %1778 = vmax.xlane.f32.xlu1 %v8556_v24  ;;  %v1564_v4 = vld [vmem:[#allocation9 + $0xf8] sm:$0xff]  ;;  %10714 = vst [vmem:[#allocation71_spill] sm:$0xff] %v8577_v37 }
 0x321   : > { %v8569_v57 = vadd.f32 %v1730_v33, %v1558_v60  ;;  %v1562_v33 = vld [vmem:[#allocation9 + $0xe8] sm:$0xff] }
 0x322   : > { %1780 = vmax.xlane.f32.xlu0 %v8561_v35 }
 0x324   : > { %1774 = vmax.xlane.f32.xlu1 %v8566_v59 }
 0x325   : > { %v6334_v61 = vpop.f32.mrb[60].mxu0 }
 0x326   : > { %v8574_v17 = vadd.f32 %v6334_v61, %v1563_v28  ;;  %v1743_v32 = vpop.f32.mrb[61].mxu0  ;;  %1776 = vmax.xlane.f32.xlu0 %v8569_v57 }
 0x327   : > { %v6335_v5 = vpop.f32.mrb[62].mxu0  ;;  %v8582_v21 = vadd.f32 %v1743_v32, %v1561_v8 }
 0x328   : > { %v8579_v3 = vadd.f32 %v6335_v5, %v1564_v4  ;;  %v1746_v43 = vpop.f32.mrb[63].mxu0  ;;  %1786 = vmax.xlane.f32.xlu1 %v8574_v17 }
 0x329   : > { %v1264_v60 = vpop.xlane.xlu0 %1263  ;;  %v8586_v61 = vadd.f32 %v1746_v43, %v1562_v33 }
 0x32a   : > { %v1293_v52 = vsub.f32 %v8459_v18, %v1264_v60  ;;  %1788 = vmax.xlane.f32.xlu0 %v8579_v3 }
 0x32c   : > { %v1311_v28 = vmul.f32 1.442695, %v1293_v52  ;;  %1782 = vmax.xlane.f32.xlu1 %v8582_v21  ;;  %v1262_v0 = vpop.xlane.xlu1 %1261 }
 0x32d   : > { %v1260_v37 = vpop.xlane.xlu0 %1259  ;;  %v1292_v43 = vsub.f32 %v8462_v9, %v1262_v0 }
 0x32e   : > { %7025 = vpow2.f32 %v1311_v28  ;;  %v1291_v5 = vsub.f32 %v8464_v16, %v1260_v37  ;;  %1784 = vmax.xlane.f32.xlu0 %v8586_v61 }
 0x32f   : > { %v1309_v16 = vmul.f32 1.442695, %v1292_v43 }
 0x330   : > { %v1307_v4 = vmul.f32 1.442695, %v1291_v5 }
 0x331   : > { %v1272_v49 = vpop.xlane.xlu1 %1271  ;;  %v1266_v8 = vpop.xlane.xlu0 %1265 }
 0x332   : > { %7027 = vpow2.f32 %v1307_v4  ;;  %v1297_v32 = vsub.f32 %v8470_v44, %v1272_v49  ;;  %v1294_v18 = vsub.f32 %v8468_v50, %v1266_v8 }
 0x334   : > { %v1319_v52 = vmul.f32 1.442695, %v1297_v32  ;;  %v1313_v33 = vmul.f32 1.442695, %v1294_v18 }
 0x335   : > { %v1268_v60 = vpop.xlane.xlu1 %1267  ;;  %v1274_v31 = vpop.xlane.xlu0 %1273 }
 0x336   : > { %7029 = vpow2.f32 %v1319_v52  ;;  %v1295_v28 = vsub.f32 %v8474_v6, %v1268_v60  ;;  %v1298_v37 = vsub.f32 %v8476_v55, %v1274_v31 }
 0x337   : > { %7031 = vpow2.f32 %v1313_v33 }
 0x338   : > { %v8596_v5 = vpop.eup %7025  ;;  %v1315_v4 = vmul.f32 1.442695, %v1295_v28  ;;  %v1321_v9 = vmul.f32 1.442695, %v1298_v37 }
 0x339   : > { %1343 = vadd.xlane.f32.xlu1 %v8596_v5  ;;  %v1280_v44 = vpop.xlane.xlu1 %1279  ;;  %v1270_v50 = vpop.xlane.xlu0 %1269 }
 0x33a   : > { %7033 = vpow2.f32 %v1315_v4  ;;  %v1301_v0 = vsub.f32 %v8482_v23, %v1280_v44  ;;  %v1296_v49 = vsub.f32 %v8480_v2, %v1270_v50  ;;  %v2115_v50 = vld [vmem:[#allocation9 + $0x110] sm:$0xff] }
 0x33b   : > { %7035 = vpow2.f32 %v1309_v16 }
 0x33c   : > { %v8601_v8 = vpop.eup %7027  ;;  %v1327_v6 = vmul.f32 1.442695, %v1301_v0  ;;  %v1317_v18 = vmul.f32 1.442695, %v1296_v49 }
 0x33d   : > { %v1276_v32 = vpop.xlane.xlu1 %1275  ;;  %1339 = vadd.xlane.f32.xlu1 %v8601_v8  ;;  %v1282_v31 = vpop.xlane.xlu0 %1281 }
 0x33e   : > { %7037 = vpow2.f32 %v1327_v6  ;;  %v1299_v55 = vsub.f32 %v8486_v41, %v1276_v32  ;;  %v1302_v43 = vsub.f32 %v8488_v39, %v1282_v31 }
 0x33f   : > { %7039 = vpow2.f32 %v1321_v9 }
 0x340   : > { %v8606_v52 = vpop.eup %7029  ;;  %v1323_v23 = vmul.f32 1.442695, %v1299_v55  ;;  %v1329_v60 = vmul.f32 1.442695, %v1302_v43 }
 0x341   : > { %v8608_v33 = vpop.eup %7031  ;;  %1351 = vadd.xlane.f32.xlu1 %v8606_v52  ;;  %v1278_v2 = vpop.xlane.xlu0 %1277 }
 0x342   : > { %7041 = vpow2.f32 %v1323_v23  ;;  %1345 = vadd.xlane.f32.xlu0 %v8608_v33  ;;  %v1300_v28 = vsub.f32 %v8492_v13, %v1278_v2  ;;  %v1288_v54 = vpop.xlane.xlu1 %1287 }
 0x343   : > { %7043 = vpow2.f32 %v1317_v18  ;;  %v2113_v18 = vld [vmem:[#allocation9 + $0x100] sm:$0xff] }
 0x344   : > { %v8613_v41 = vpop.eup %7033  ;;  %7045 = vpow2.f32 %v1329_v60  ;;  %v1325_v39 = vmul.f32 1.442695, %v1300_v28 }
 0x345   : > { %v8615_v16 = vpop.eup %7035  ;;  %1347 = vadd.xlane.f32.xlu1 %v8613_v41  ;;  %v1290_v44 = vpop.xlane.xlu0 %1289 }
 0x346   : > { %1341 = vadd.xlane.f32.xlu0 %v8615_v16  ;;  %7047 = vpow2.f32 %v1325_v39  ;;  %v1306_v6 = vsub.f32 %v8500_v22, %v1290_v44  ;;  %v2116_v22 = vld [vmem:[#allocation9 + $0x118] sm:$0xff] }
 0x348   : > { %v8619_v37 = vpop.eup %7037  ;;  %v1337_v2 = vmul.f32 1.442695, %v1306_v6  ;;  %v2114_v6 = vld [vmem:[#allocation9 + $0x108] sm:$0xff] }
 0x349   : > { %v8621_v4 = vpop.eup %7039  ;;  %1359 = vadd.xlane.f32.xlu1 %v8619_v37  ;;  %v1286_v55 = vpop.xlane.xlu0 %1285 }
 0x34a   : > { %1353 = vadd.xlane.f32.xlu0 %v8621_v4  ;;  %v1304_v60 = vsub.f32 %v8504_v12, %v1286_v55  ;;  %7049 = vpow2.f32 %v1337_v2 }
 0x34c   : > { %v8625_v13 = vpop.eup %7041 }
 0x34d   : > { %v8627_v0 = vpop.eup %7043  ;;  %v6386_v9 = vpop.f32.mrb[64].mxu0  ;;  %1355 = vadd.xlane.f32.xlu1 %v8625_v13 }
 0x34e   : > { %v2259_v49 = vpop.f32.mrb[65].mxu0  ;;  %1349 = vadd.xlane.f32.xlu0 %v8627_v0  ;;  %v8632_v32 = vadd.f32 %v6386_v9, %v2115_v50  ;;  %v8634_v23 = vpop.eup %7045  ;;  %v1333_v9 = vmul.f32 1.442695, %v1304_v60 }
 0x34f   : > { %v6387_v31 = vpop.f32.mrb[66].mxu0  ;;  %v8639_v28 = vadd.f32 %v2259_v49, %v2113_v18 }
 0x350   : > { %v2262_v43 = vpop.f32.mrb[67].mxu0  ;;  %v8641_v39 = vpop.eup %7047  ;;  %v8645_v42 = vadd.f32 %v6387_v31, %v2116_v22  ;;  %7051 = vpow2.f32 %v1333_v9  ;;  %v2120_v31 = vld [vmem:[#allocation9 + $0x138] sm:$0xff] }
 0x351   : > { %2326 = vmax.xlane.f32.xlu1 %v8632_v32  ;;  %v8648_v12 = vadd.f32 %v2262_v43, %v2114_v6 }
 0x352   : > { %1361 = vadd.xlane.f32.xlu0 %v8634_v23 }
 0x354   : > { %v8651_v56 = vpop.eup %7049 }
 0x355   : > { %v6390_v44 = vpop.f32.mrb[68].mxu0  ;;  %2322 = vmax.xlane.f32.xlu1 %v8639_v28  ;;  %10715 = vst [vmem:[#allocation72_spill] sm:$0xff] %v8651_v56 }
 0x356   : > { %v2275_v50 = vpop.f32.mrb[69].mxu0  ;;  %1357 = vadd.xlane.f32.xlu0 %v8641_v39 }
 0x357   : > { %v6391_v29 = vpop.f32.mrb[70].mxu0 }
 0x358   : > { %v2278_v15 = vpop.f32.mrb[71].mxu0  ;;  %v8659_v9 = vadd.f32 %v6391_v29, %v2120_v31  ;;  %v1305_v29 = vsub.f32 %v8494_v48, %v1288_v54  ;;  %v1284_v31 = vpop.xlane.xlu1 %1283 }
 0x359   : > { %v8662_v10 = vadd.f32 %v2278_v15, %v2118_v11  ;;  %v2122_v15 = vld [vmem:[#allocation9 + $0x148] sm:$0xff] }
 0x35a   : > { %2328 = vmax.xlane.f32.xlu0 %v8645_v42  ;;  %v8654_v2 = vpop.eup %7051  ;;  %10717 = vst [vmem:[#allocation74_spill] sm:$0xff] %v8659_v9  ;;  %v1335_v11 = vmul.f32 1.442695, %v1305_v29  ;;  %v2125_v29 = vld [vmem:[#allocation9 + $0x160] sm:$0xff] }
 0x35b   : > { %10716 = vst [vmem:[#allocation73_spill] sm:$0xff] %v8654_v2  ;;  %10718 = vst [vmem:[#allocation75_spill] sm:$0xff] %v8662_v10 }
 0x35c   : > { %7053 = vpow2.f32 %v1335_v11  ;;  %v2128_v11 = vld [vmem:[#allocation9 + $0x178] sm:$0xff] }
 0x35d   : > { %v6394_v49 = vpop.f32.mrb[72].mxu0 }
 0x35e   : > { %v2291_v55 = vpop.f32.mrb[73].mxu0  ;;  %2324 = vmax.xlane.f32.xlu0 %v8648_v12 }
 0x35f   : > { %v6395_v18 = vpop.f32.mrb[74].mxu0 }
 0x360   : > { %v2294_v7 = vpop.f32.mrb[75].mxu0 }
 0x362   : > { %1369 = vadd.xlane.f32.xlu0 %v8651_v56  ;;  %v2123_v56 = vld [vmem:[#allocation9 + $0x150] sm:$0xff] }
 0x363   : > { %v8665_v63 = vadd.f32 %v6394_v49, %v2123_v56  ;;  %v1303_v56 = vsub.f32 %v8498_v1, %v1284_v31  ;;  %v8676_v49 = vadd.f32 %v2294_v7, %v2122_v15  ;;  %v2117_v7 = vld [vmem:[#allocation9 + $0x120] sm:$0xff] }
 0x365   : > { %v6398_v60 = vpop.f32.mrb[76].mxu0 }
 0x366   : > { %v2307_v22 = vpop.f32.mrb[77].mxu0  ;;  %1365 = vadd.xlane.f32.xlu0 %v8654_v2  ;;  %2729 = vrot.lane.b32.xlu1 %v8098_v47, %s7740_s7  ;;  %v8668_v2 = vadd.f32 %v2291_v55, %v2121_v34  ;;  %v2124_v47 = vld [vmem:[#allocation9 + $0x158] sm:$0xff]  ;;  %v1331_v34 = vmul.f32 1.442695, %v1303_v56  ;;  %v8682_v54 = vpop.eup %7053 }
 0x367   : > { %v6399_v43 = vpop.f32.mrb[78].mxu0  ;;  %v8697_v31 = vadd.f32 %v2307_v22, %v2125_v29 }
 0x368   : > { %v2310_v6 = vpop.f32.mrb[79].mxu0  ;;  %7055 = vpow2.f32 %v1331_v34 }
 0x36a   : > { %2336 = vmax.xlane.f32.xlu0 %v8659_v9  ;;  %v8672_v9 = vadd.f32 %v6395_v18, %v2124_v47  ;;  %v2119_v18 = vld [vmem:[#allocation9 + $0x130] sm:$0xff]  ;;  %v8691_v47 = vadd.f32 %v2275_v50, %v2117_v7 }
 0x36b   : > { %v8688_v1 = vadd.f32 %v6390_v44, %v2119_v18  ;;  %v8702_v18 = vadd.f32 %v6399_v43, %v2128_v11 }
 0x36e   : > { %2332 = vmax.xlane.f32.xlu0 %v8662_v10  ;;  %v2126_v10 = vld [vmem:[#allocation9 + $0x168] sm:$0xff] }
 0x36f   : > { %v8679_v55 = vadd.f32 %v2310_v6, %v2126_v10  ;;  %v2127_v10 = vld [vmem:[#allocation9 + $0x170] sm:$0xff] }
 0x370   : > { %v8694_v6 = vadd.f32 %v6398_v60, %v2127_v10 }
 0x371   : > { %10719 = vst [vmem:[#allocation76_spill] sm:$0xff] %v8679_v55 }
 0x372   : > { %2342 = vmax.xlane.f32.xlu0 %v8665_v63  ;;  %v8685_v48 = vpop.eup %7055 }
 0x376   : > { %2338 = vmax.xlane.f32.xlu0 %v8668_v2 }
 0x37a   : > { %2344 = vmax.xlane.f32.xlu0 %v8672_v9 }
 0x37e   : > { %2340 = vmax.xlane.f32.xlu0 %v8676_v49 }
 0x382   : > { %2348 = vmax.xlane.f32.xlu0 %v8679_v55 }
 0x38a   : > { %1367 = vadd.xlane.f32.xlu1 %v8682_v54 }
 0x38e   : > { %1363 = vadd.xlane.f32.xlu1 %v8685_v48 }
 0x392   : > { %2334 = vmax.xlane.f32.xlu1 %v8688_v1 }
 0x396   : > { %2330 = vmax.xlane.f32.xlu1 %v8691_v47 }
 0x39a   : > { %2350 = vmax.xlane.f32.xlu1 %v8694_v6 }
 0x39c   : > { %v1763_v15 = vpop.xlane.xlu1 %1762 }
 0x39d   : > { %v1792_v44 = vsub.f32 %v8521_v45, %v1763_v15 }
 0x39e   : > { %2346 = vmax.xlane.f32.xlu1 %v8697_v31  ;;  %v1765_v56 = vpop.xlane.xlu0 %1764 }
 0x39f   : > { %v1810_v34 = vmul.f32 1.442695, %v1792_v44  ;;  %v1793_v50 = vsub.f32 %v8523_v40, %v1765_v56 }
 0x3a0   : > { %v1759_v7 = vpop.xlane.xlu1 %1758 }
 0x3a1   : > { %7057 = vpow2.f32 %v1810_v34  ;;  %v1812_v60 = vmul.f32 1.442695, %v1793_v50  ;;  %v1790_v10 = vsub.f32 %v8530_v30, %v1759_v7 }
 0x3a2   : > { %2352 = vmax.xlane.f32.xlu1 %v8702_v18  ;;  %v1761_v22 = vpop.xlane.xlu0 %1760 }
 0x3a3   : > { %v1806_v29 = vmul.f32 1.442695, %v1790_v10  ;;  %v1791_v55 = vsub.f32 %v8533_v62, %v1761_v22  ;;  %7059 = vpow2.f32 %v1812_v60 }
 0x3a5   : > { %7061 = vpow2.f32 %v1806_v29  ;;  %v1808_v45 = vmul.f32 1.442695, %v1791_v55  ;;  %v1771_v15 = vpop.xlane.xlu1 %1770 }
 0x3a6   : > { %v1796_v44 = vsub.f32 %v8539_v36, %v1771_v15 }
 0x3a7   : > { %v1773_v40 = vpop.xlane.xlu0 %1772  ;;  %7063 = vpow2.f32 %v1808_v45 }
 0x3a8   : > { %v1818_v43 = vmul.f32 1.442695, %v1796_v44  ;;  %v1797_v56 = vsub.f32 %v8543_v19, %v1773_v40 }
 0x3a9   : > { %v1767_v11 = vpop.xlane.xlu1 %1766 }
 0x3aa   : > { %v1794_v30 = vsub.f32 %v8546_v20, %v1767_v11  ;;  %7065 = vpow2.f32 %v1818_v43  ;;  %v1820_v36 = vmul.f32 1.442695, %v1797_v56 }
 0x3ab   : > { %v8710_v34 = vpop.eup %7057  ;;  %v1769_v50 = vpop.xlane.xlu0 %1768 }
 0x3ac   : > { %v1814_v7 = vmul.f32 1.442695, %v1794_v30  ;;  %v1795_v62 = vsub.f32 %v8553_v38, %v1769_v50  ;;  %1842 = vadd.xlane.f32.xlu0 %v8710_v34 }
 0x3ad   : > { %v1779_v55 = vpop.xlane.xlu1 %1778  ;;  %v8714_v60 = vpop.eup %7059 }
 0x3ae   : > { %7067 = vpow2.f32 %v1814_v7  ;;  %v1816_v10 = vmul.f32 1.442695, %v1795_v62  ;;  %v1800_v22 = vsub.f32 %v8556_v24, %v1779_v55 }
 0x3af   : > { %v8717_v19 = vpop.eup %7061  ;;  %v1781_v20 = vpop.xlane.xlu0 %1780 }
 0x3b0   : > { %7069 = vpow2.f32 %v1816_v10  ;;  %1838 = vadd.xlane.f32.xlu1 %v8717_v19  ;;  %1844 = vadd.xlane.f32.xlu0 %v8714_v60  ;;  %v1826_v38 = vmul.f32 1.442695, %v1800_v22  ;;  %v1801_v45 = vsub.f32 %v8561_v35, %v1781_v20 }
 0x3b1   : > { %v1775_v29 = vpop.xlane.xlu1 %1774  ;;  %7071 = vpow2.f32 %v1820_v36  ;;  %v8723_v44 = vpop.eup %7063 }
 0x3b2   : > { %v1798_v15 = vsub.f32 %v8566_v59, %v1775_v29  ;;  %7073 = vpow2.f32 %v1826_v38  ;;  %v1828_v56 = vmul.f32 1.442695, %v1801_v45 }
 0x3b3   : > { %v1777_v40 = vpop.xlane.xlu0 %1776 }
 0x3b4   : > { %v1822_v43 = vmul.f32 1.442695, %v1798_v15  ;;  %v1799_v24 = vsub.f32 %v8569_v57, %v1777_v40  ;;  %1840 = vadd.xlane.f32.xlu0 %v8723_v44  ;;  %v8728_v7 = vpop.eup %7065 }
 0x3b5   : > { %v1787_v11 = vpop.xlane.xlu1 %1786 }
 0x3b6   : > { %7075 = vpow2.f32 %v1822_v43  ;;  %v1824_v30 = vmul.f32 1.442695, %v1799_v24  ;;  %v1804_v50 = vsub.f32 %v8574_v17, %v1787_v11 }
 0x3b7   : > { %v1789_v35 = vpop.xlane.xlu0 %1788 }
 0x3b8   : > { %v8730_v62 = vpop.eup %7067  ;;  %7077 = vpow2.f32 %v1824_v30  ;;  %1850 = vadd.xlane.f32.xlu0 %v8728_v7  ;;  %v1834_v59 = vmul.f32 1.442695, %v1804_v50  ;;  %v1805_v36 = vsub.f32 %v8579_v3, %v1789_v35 }
 0x3b9   : > { %v1783_v55 = vpop.xlane.xlu1 %1782  ;;  %1846 = vadd.xlane.f32.xlu1 %v8730_v62  ;;  %7079 = vpow2.f32 %v1828_v56 }
 0x3ba   : > { %v8734_v57 = vpop.eup %7069  ;;  %v1802_v10 = vsub.f32 %v8582_v21, %v1783_v55  ;;  %7081 = vpow2.f32 %v1834_v59  ;;  %v1836_v29 = vmul.f32 1.442695, %v1805_v36 }
 0x3bb   : > { %v1785_v17 = vpop.xlane.xlu0 %1784  ;;  %v8738_v22 = vpop.eup %7071 }
 0x3bc   : > { %v1830_v20 = vmul.f32 1.442695, %v1802_v10  ;;  %v1803_v38 = vsub.f32 %v8586_v61, %v1785_v17  ;;  %1848 = vadd.xlane.f32.xlu0 %v8734_v57  ;;  %v8743_v15 = vpop.eup %7073 }
 0x3bd   : > { %1852 = vadd.xlane.f32.xlu1 %v8738_v22 }
 0x3be   : > { %7083 = vpow2.f32 %v1830_v20  ;;  %v1832_v45 = vmul.f32 1.442695, %v1803_v38 }
 0x3c0   : > { %v8745_v40 = vpop.eup %7075  ;;  %7085 = vpow2.f32 %v1832_v45  ;;  %1858 = vadd.xlane.f32.xlu0 %v8743_v15 }
 0x3c1   : > { %1854 = vadd.xlane.f32.xlu1 %v8745_v40  ;;  %7087 = vpow2.f32 %v1836_v29 }
 0x3c2   : > { %v8749_v21 = vpop.eup %7077 }
 0x3c3   : > { %v8751_v3 = vpop.eup %7079 }
 0x3c4   : > { %10720 = vst [vmem:[#allocation77_spill] sm:$0xff] %v8751_v3  ;;  %1856 = vadd.xlane.f32.xlu0 %v8749_v21  ;;  %v8755_v43 = vpop.eup %7081 }
 0x3c5   : > { %1860 = vadd.xlane.f32.xlu1 %v8751_v3  ;;  %10721 = vst [vmem:[#allocation78_spill] sm:$0xff] %v8755_v43 }
 0x3c6   : > { %v1344_v61 = vpop.xlane.xlu1 %1343 }
 0x3c8   : > { %v8757_v24 = vpop.eup %7083  ;;  %1866 = vadd.xlane.f32.xlu0 %v8755_v43 }
 0x3c9   : > { %10722 = vst [vmem:[#allocation79_spill] sm:$0xff] %v8757_v24  ;;  %1862 = vadd.xlane.f32.xlu1 %v8757_v24 }
 0x3ca   : > { %v8761_v11 = vpop.eup %7085  ;;  %v1340_v56 = vpop.xlane.xlu1 %1339 }
 0x3cb   : > { %10723 = vst [vmem:[#allocation80_spill] sm:$0xff] %v8761_v11  ;;  %v8763_v30 = vpop.eup %7087 }
 0x3cc   : > { %10724 = vst [vmem:[#allocation81_spill] sm:$0xff] %v8763_v30  ;;  %1864 = vadd.xlane.f32.xlu0 %v8761_v11 }
 0x3cd   : > { %1868 = vadd.xlane.f32.xlu1 %v8763_v30 }
 0x3ce   : > { %v1352_v50 = vpop.xlane.xlu1 %1351 }
 0x3cf   : > { %v1346_v35 = vpop.xlane.xlu0 %1345 }
 0x3d0   : > { %7089 = vrcp.f32 %v1346_v35 }
 0x3d1   : > { %7091 = vrcp.f32 %v1340_v56 }
 0x3d2   : > { %v1348_v59 = vpop.xlane.xlu1 %1347  ;;  %7093 = vrcp.f32 %v1344_v61 }
 0x3d3   : > { %v1342_v55 = vpop.xlane.xlu0 %1341 }
 0x3d4   : > { %7095 = vrcp.f32 %v1342_v55 }
 0x3d6   : > { %v1360_v36 = vpop.xlane.xlu1 %1359 }
 0x3d7   : > { %v1354_v10 = vpop.xlane.xlu0 %1353 }
 0x3d8   : > { %7097 = vrcp.f32 %v1354_v10 }
 0x3d9   : > { %7099 = vrcp.f32 %v1348_v59 }
 0x3da   : > { %v1356_v17 = vpop.xlane.xlu1 %1355  ;;  %v7090_v20 = vpop.eup %7089  ;;  %7101 = vrcp.f32 %v1352_v50 }
 0x3db   : > { %v1350_v38 = vpop.xlane.xlu0 %1349  ;;  %v7092_v29 = vpop.eup %7091  ;;  %v1390_v43 = vmul.f32 %v7090_v20, %v8608_v33 }
 0x3dc   : > { %7103 = vrcp.f32 %v1350_v38  ;;  %v7094_v45 = vpop.eup %7093  ;;  %v1387_v55 = vmul.f32 %v7092_v29, %v8601_v8 }
 0x3dd   : > { %v1389_v59 = vmul.f32 %v7094_v45, %v8596_v5  ;;  %7105 = vrcp.f32 %v1360_v36 }
 0x3de   : > { %v7096_v30 = vpop.eup %7095  ;;  %v2327_v35 = vpop.xlane.xlu1 %2326 }
 0x3df   : > { %v2356_v56 = vsub.f32 %v8632_v32, %v2327_v35  ;;  %v1362_v61 = vpop.xlane.xlu0 %1361  ;;  %v1388_v11 = vmul.f32 %v7096_v30, %v8615_v16  ;;  %v1404_v24 = vpack.c.bf16 %v1390_v43, %v1389_v59 }
 0x3e0   : > { %7107 = vrcp.f32 %v1362_v61 }
 0x3e1   : > { %v2374_v10 = vmul.f32 1.442695, %v2356_v56  ;;  %v1403_v50 = vpack.c.bf16 %v1388_v11, %v1387_v55  ;;  %7109 = vrcp.f32 %v1356_v17 }
 0x3e2   : > { %v2323_v38 = vpop.xlane.xlu1 %2322  ;;  %v7098_v3 = vpop.eup %7097 }
 0x3e3   : > { %7111 = vpow2.f32 %v2374_v10  ;;  %v2354_v33 = vsub.f32 %v8639_v28, %v2323_v38  ;;  %6288 = vmatprep.mubr.bf16.mxu1 %v1403_v50  ;;  %v1358_v32 = vpop.xlane.xlu0 %1357  ;;  %v7100_v20 = vpop.eup %7099  ;;  %v1394_v11 = vmul.f32 %v7098_v3, %v8621_v4  ;;  %v10726_v10 = vld [vmem:[#allocation32_spill] sm:$0xff] }
 0x3e4   : > { %7113 = vrcp.f32 %v1358_v32  ;;  %6289 = vmatmul.mubr.bf16.vlgmr.msra.gmra.mrb[64].mxu1 %v1404_v24  ;;  %v7102_v8 = vpop.eup %7101  ;;  %v1391_v30 = vmul.f32 %v7100_v20, %v8613_v41  ;;  %v10727_v50 = vld [vmem:[#allocation36_spill] sm:$0xff] }
 0x3e5   : > { %v2370_v16 = vmul.f32 1.442695, %v2354_v33  ;;  %6337 = vmatpush3.bf16.msra.mxu1 %v8446_v26  ;;  %v1393_v17 = vmul.f32 %v7102_v8, %v8606_v52  ;;  %v10728_v8 = vld [vmem:[#allocation74_spill] sm:$0xff] }
 0x3e6   : > { %v7104_v5 = vpop.eup %7103  ;;  %6338 = vmatprep.subr.bf16.mxu1 %v8515_v27 }
 0x3e7   : > { %7115 = vpow2.f32 %v2370_v16  ;;  %v2329_v43 = vpop.xlane.xlu0 %2328  ;;  %v1392_v28 = vmul.f32 %v7104_v5, %v8627_v0  ;;  %v7106_v29 = vpop.eup %7105  ;;  %v1406_v45 = vpack.c.bf16 %v1394_v11, %v1393_v17 }
 0x3e8   : > { %v2357_v36 = vsub.f32 %v8645_v42, %v2329_v43 }
 0x3e9   : > { %6339 = vmatpush3.bf16.msra.mxu1 %v8515_v27  ;;  %v1405_v24 = vpack.c.bf16 %v1392_v28, %v1391_v30 }
 0x3ea   : > { %v2376_v26 = vmul.f32 1.442695, %v2357_v36  ;;  %6340 = vmatprep.subr.bf16.mxu1 %v8519_v46  ;;  %v7108_v35 = vpop.eup %7107 }
 0x3eb   : > { %6292 = vmatprep.mubr.bf16.mxu1 %v1405_v24  ;;  %v2325_v4 = vpop.xlane.xlu0 %2324  ;;  %v7110_v3 = vpop.eup %7109  ;;  %v1398_v52 = vmul.f32 %v7108_v35, %v8634_v23 }
 0x3ec   : > { %7117 = vpow2.f32 %v2376_v26  ;;  %v2355_v41 = vsub.f32 %v8648_v12, %v2325_v4  ;;  %6293 = vmatmul.mubr.bf16.gmra.mrb[68].mxu1 %v1406_v45  ;;  %v1395_v56 = vmul.f32 %v7110_v3, %v8625_v13  ;;  %v1397_v12 = vmul.f32 %v7106_v29, %v8619_v37  ;;  %v10729_v29 = vld [vmem:[#allocation75_spill] sm:$0xff]  ;;  %v10730_v3 = vld [vmem:[#allocation73_spill] sm:$0xff] }
 0x3ed   : > { %v8783_v0 = vpop.eup %7111  ;;  %6341 = vmatpush3.bf16.msra.mxu1 %v8519_v46 }
 0x3ee   : > { %v7114_v42 = vpop.eup %7113  ;;  %v2372_v27 = vmul.f32 1.442695, %v2355_v41  ;;  %6342 = vmatprep.subr.bf16.mxu1 %v8507_v25  ;;  %2406 = vadd.xlane.f32.xlu0 %v8783_v0  ;;  %v1408_v59 = vpack.c.bf16 %v1398_v52, %v1397_v12 }
 0x3ef   : > { %v1396_v61 = vmul.f32 %v7114_v42, %v8641_v39  ;;  %v10731_v42 = vld [vmem:[#allocation72_spill] sm:$0xff] }
 0x3f0   : > { %7119 = vpow2.f32 %v2372_v27 }
 0x3f1   : > { %v8792_v55 = vpop.eup %7115  ;;  %6343 = vmatpush3.bf16.msra.mxu1 %v8507_v25  ;;  %v1407_v46 = vpack.c.bf16 %v1396_v61, %v1395_v56  ;;  %v1370_v25 = vpop.xlane.xlu0 %1369 }
 0x3f2   : > { %6344 = vmatprep.subr.bf16.mxu1 %v8528_v14  ;;  %2402 = vadd.xlane.f32.xlu1 %v8792_v55 }
 0x3f3   : > { %6296 = vmatprep.mubr.bf16.mxu1 %v1407_v46 }
 0x3f4   : > { %6297 = vmatmul.mubr.bf16.gmra.mrb[72].mxu1 %v1408_v59 }
 0x3f5   : > { %6345 = vmatpush3.bf16.msra.mxu1 %v8528_v14  ;;  %v10725_v14 = vld [vmem:[#allocation66_spill] sm:$0xff]  ;;  %v1366_v23 = vpop.xlane.xlu0 %1365 }
 0x3f6   : > { %v8798_v13 = vpop.eup %7117  ;;  %6346 = vmatprep.subr.bf16.mxu1 %v8509_v58 }
 0x3f7   : > { %2408 = vadd.xlane.f32.xlu1 %v8798_v13 }
 0x3f9   : > { %6347 = vmatpush3.bf16.msra.mxu1 %v8509_v58  ;;  %v2337_v39 = vpop.xlane.xlu0 %2336  ;;  %v8813_v58 = vpop.permute.xlu1 %2729 }
 0x3fa   : > { %v8803_v37 = vpop.eup %7119  ;;  %6348 = vmatprep.subr.bf16.mxu1 %v8559_v53  ;;  %v2361_v16 = vsub.f32 %v10728_v8, %v2337_v39 }
 0x3fb   : > { %2404 = vadd.xlane.f32.xlu0 %v8803_v37 }
 0x3fc   : > { %v2384_v24 = vmul.f32 1.442695, %v2361_v16 }
 0x3fd   : > { %6349 = vmatpush3.bf16.msra.mxu1 %v8559_v53  ;;  %v2333_v38 = vpop.xlane.xlu0 %2332 }
 0x3fe   : > { %6350 = vmatprep.subr.bf16.mxu1 %v8511_v51  ;;  %v2359_v26 = vsub.f32 %v10729_v29, %v2333_v38 }
 0x400   : > { %v2380_v52 = vmul.f32 1.442695, %v2359_v26 }
 0x401   : > { %6351 = vmatpush3.bf16.msra.mxu1 %v8511_v51  ;;  %v2343_v51 = vpop.xlane.xlu0 %2342 }
 0x402   : > { %6400 = vmatprep.subr.bf16.mxu1 %v10725_v14  ;;  %v2364_v56 = vsub.f32 %v8665_v63, %v2343_v51 }
 0x404   : > { %v2390_v46 = vmul.f32 1.442695, %v2364_v56 }
 0x405   : > { %v2339_v43 = vpop.xlane.xlu0 %2338 }
 0x411   : > { %2733 = vrot.lane.b32.xlu0 %v10726_v10, %s7740_s7 }
 0x415   : > { %2735 = vrot.lane.b32.xlu0 %v10727_v50, %s7740_s7 }
 0x417   : > { %v1368_v33 = vpop.xlane.xlu1 %1367 }
 0x418   : > { %7121 = vrcp.f32 %v1368_v33 }
 0x419   : > { %7123 = vrcp.f32 %v1366_v23 }
 0x41a   : > { %7125 = vrcp.f32 %v1370_v25 }
 0x41b   : > { %v1364_v53 = vpop.xlane.xlu1 %1363 }
 0x41c   : > { %7127 = vrcp.f32 %v1364_v53 }
 0x41f   : > { %v2335_v32 = vpop.xlane.xlu1 %2334 }
 0x420   : > { %v2360_v20 = vsub.f32 %v8688_v1, %v2335_v32 }
 0x422   : > { %v2382_v5 = vmul.f32 1.442695, %v2360_v20  ;;  %v7122_v11 = vpop.eup %7121 }
 0x423   : > { %v2331_v30 = vpop.xlane.xlu1 %2330  ;;  %v7124_v28 = vpop.eup %7123  ;;  %v1401_v4 = vmul.f32 %v7122_v11, %v8682_v54  ;;  %v2362_v54 = vsub.f32 %v8668_v2, %v2339_v43 }
 0x424   : > { %7129 = vpow2.f32 %v2382_v5  ;;  %v2358_v36 = vsub.f32 %v8691_v47, %v2331_v30  ;;  %v7126_v17 = vpop.eup %7125  ;;  %v1400_v41 = vmul.f32 %v7124_v28, %v10730_v3  ;;  %v2345_v47 = vpop.xlane.xlu0 %2344 }
 0x425   : > { %v1402_v27 = vmul.f32 %v7126_v17, %v10731_v42  ;;  %v2386_v23 = vmul.f32 1.442695, %v2362_v54  ;;  %v2365_v39 = vsub.f32 %v8672_v9, %v2345_v47 }
 0x426   : > { %v7128_v45 = vpop.eup %7127  ;;  %v2378_v35 = vmul.f32 1.442695, %v2358_v36 }
 0x427   : > { %v1399_v1 = vmul.f32 %v7128_v45, %v8685_v48  ;;  %v1410_v12 = vpack.c.bf16 %v1402_v27, %v1401_v4  ;;  %v2351_v59 = vpop.xlane.xlu1 %2350  ;;  %v2392_v2 = vmul.f32 1.442695, %v2365_v39 }
 0x428   : > { %7131 = vpow2.f32 %v2378_v35  ;;  %v2341_v25 = vpop.xlane.xlu0 %2340  ;;  %v2368_v53 = vsub.f32 %v8694_v6, %v2351_v59 }
 0x429   : > { %7133 = vpow2.f32 %v2384_v24  ;;  %v1409_v61 = vpack.c.bf16 %v1400_v41, %v1399_v1  ;;  %v2363_v38 = vsub.f32 %v8676_v49, %v2341_v25 }
 0x42a   : > { %7135 = vpow2.f32 %v2380_v52  ;;  %v2398_v8 = vmul.f32 1.442695, %v2368_v53 }
 0x42b   : > { %6300 = vmatprep.mubr.bf16.mxu1 %v1409_v61  ;;  %7137 = vpow2.f32 %v2390_v46  ;;  %v2347_v50 = vpop.xlane.xlu1 %2346  ;;  %v2388_v9 = vmul.f32 1.442695, %v2363_v38 }
 0x42c   : > { %6301 = vmatmul.mubr.bf16.gmra.mrb[76].mxu1 %v1410_v12  ;;  %7139 = vpow2.f32 %v2386_v23  ;;  %v8838_v33 = vpop.xlane.xlu0 %2348  ;;  %v2366_v49 = vsub.f32 %v8697_v31, %v2347_v50  ;;  %v10732_v31 = vld [vmem:[#allocation28_spill] sm:$0xff]  ;;  %v10733_v23 = vld [vmem:[#allocation62_spill] sm:$0xff] }
 0x42d   : > { %7141 = vpow2.f32 %v2392_v2  ;;  %v10734_v50 = vld [vmem:[#allocation76_spill] sm:$0xff] }
 0x42e   : > { %v8827_v48 = vpop.eup %7129  ;;  %7143 = vpow2.f32 %v2388_v9  ;;  %v2394_v30 = vmul.f32 1.442695, %v2366_v49  ;;  %v2367_v2 = vsub.f32 %v10734_v50, %v8838_v33  ;;  %v10735_v49 = vld [vmem:[#allocation67_spill] sm:$0xff]  ;;  %v10749_v50 = vld [vmem:[#allocation20_spill] sm:$0xff] }
 0x42f   : > { %2414 = vadd.xlane.f32.xlu1 %v8827_v48  ;;  %v2353_v32 = vpop.xlane.xlu1 %2352  ;;  %7145 = vpow2.f32 %v2398_v8 }
 0x430   : > { %v2369_v43 = vsub.f32 %v8702_v18, %v2353_v32 }
 0x432   : > { %v8831_v63 = vpop.eup %7131  ;;  %v2400_v17 = vmul.f32 1.442695, %v2369_v43 }
 0x433   : > { %v8833_v10 = vpop.eup %7133  ;;  %2410 = vadd.xlane.f32.xlu1 %v8831_v63 }
 0x434   : > { %2416 = vadd.xlane.f32.xlu0 %v8833_v10  ;;  %v8841_v51 = vpop.eup %7135 }
 0x435   : > { %v8844_v16 = vpop.eup %7137 }
 0x436   : > { %v8848_v6 = vpop.eup %7139 }
 0x437   : > { %v8852_v36 = vpop.eup %7141 }
 0x438   : > { %2412 = vadd.xlane.f32.xlu0 %v8841_v51  ;;  %v8857_v18 = vpop.eup %7143 }
 0x439   : > { %v1843_v20 = vpop.xlane.xlu0 %1842  ;;  %v8859_v26 = vpop.eup %7145 }
 0x43c   : > { %2422 = vadd.xlane.f32.xlu0 %v8844_v16 }
 0x43d   : > { %v1839_v5 = vpop.xlane.xlu1 %1838  ;;  %v1845_v11 = vpop.xlane.xlu0 %1844 }
 0x43e   : > { %7147 = vrcp.f32 %v1845_v11  ;;  %v2396_v11 = vmul.f32 1.442695, %v2367_v2  ;;  %v10750_v2 = vld [vmem:[#allocation23_spill] sm:$0xff] }
 0x43f   : > { %7149 = vrcp.f32 %v1839_v5 }
 0x440   : > { %2418 = vadd.xlane.f32.xlu0 %v8848_v6  ;;  %7151 = vrcp.f32 %v1843_v20 }
 0x441   : > { %v1841_v28 = vpop.xlane.xlu0 %1840 }
 0x442   : > { %7153 = vrcp.f32 %v1841_v28 }
 0x443   : > { %7155 = vpow2.f32 %v2394_v30 }
 0x444   : > { %2424 = vadd.xlane.f32.xlu0 %v8852_v36  ;;  %2731 = vrot.lane.b32.xlu1 %v10732_v31, %s7740_s7  ;;  %7157 = vpow2.f32 %v2400_v17 }
 0x445   : > { %v1851_v24 = vpop.xlane.xlu0 %1850 }
 0x446   : > { %v1847_v29 = vpop.xlane.xlu1 %1846 }
 0x447   : > { %7159 = vrcp.f32 %v1847_v29 }
 0x448   : > { %2420 = vadd.xlane.f32.xlu0 %v8857_v18  ;;  %v7148_v45 = vpop.eup %7147  ;;  %7161 = vrcp.f32 %v1851_v24  ;;  %v10737_v24 = vld [vmem:[#allocation77_spill] sm:$0xff] }
 0x449   : > { %v1849_v35 = vpop.xlane.xlu0 %1848  ;;  %v7150_v4 = vpop.eup %7149  ;;  %v1889_v42 = vmul.f32 %v7148_v45, %v8714_v60 }
 0x44a   : > { %7163 = vrcp.f32 %v1849_v35  ;;  %v1853_v1 = vpop.xlane.xlu1 %1852  ;;  %v7152_v3 = vpop.eup %7151  ;;  %v1886_v52 = vmul.f32 %v7150_v4, %v8717_v19  ;;  %v10738_v35 = vld [vmem:[#allocation64_spill] sm:$0xff] }
 0x44b   : > { %7165 = vrcp.f32 %v1853_v1  ;;  %v1888_v47 = vmul.f32 %v7152_v3, %v8710_v34 }
 0x44c   : > { %v7154_v41 = vpop.eup %7153  ;;  %2430 = vadd.xlane.f32.xlu0 %v8859_v26 }
 0x44d   : > { %v1859_v27 = vpop.xlane.xlu0 %1858  ;;  %v1887_v56 = vmul.f32 %v7154_v41, %v8723_v44  ;;  %v8867_v12 = vpop.eup %7155  ;;  %v1903_v54 = vpack.c.bf16 %v1889_v42, %v1888_v47  ;;  %v10740_v42 = vld [vmem:[#allocation79_spill] sm:$0xff] }
 0x44e   : > { %v1855_v61 = vpop.xlane.xlu1 %1854  ;;  %v8870_v59 = vpop.eup %7157 }
 0x44f   : > { %v1902_v46 = vpack.c.bf16 %v1887_v56, %v1886_v52  ;;  %7167 = vrcp.f32 %v1855_v61  ;;  %v10742_v56 = vld [vmem:[#allocation78_spill] sm:$0xff]  ;;  %v10743_v61 = vld [vmem:[#allocation81_spill] sm:$0xff] }
 0x450   : > { %2426 = vadd.xlane.f32.xlu0 %v8867_v12  ;;  %7169 = vrcp.f32 %v1859_v27  ;;  %v10741_v27 = vld [vmem:[#allocation80_spill] sm:$0xff] }
 0x451   : > { %6352 = vmatprep.mubr.bf16.mxu1 %v1902_v46  ;;  %v1857_v60 = vpop.xlane.xlu0 %1856  ;;  %v7160_v25 = vpop.eup %7159 }
 0x452   : > { %7171 = vrcp.f32 %v1857_v60  ;;  %v1861_v19 = vpop.xlane.xlu1 %1860  ;;  %6353 = vmatmul.mubr.bf16.vlgmr.msra.gmra.mrb[80].mxu1 %v1903_v54  ;;  %v7162_v44 = vpop.eup %7161  ;;  %v1890_v53 = vmul.f32 %v7160_v25, %v8730_v62  ;;  %v10744_v25 = vld [vmem:[#allocation70_spill] sm:$0xff] }
 0x453   : > { %7173 = vrcp.f32 %v1861_v19  ;;  %6401 = vmatpush3.bf16.msra.mxu1 %v10725_v14  ;;  %v1892_v20 = vmul.f32 %v7162_v44, %v8728_v7  ;;  %v10745_v44 = vld [vmem:[#allocation40_spill] sm:$0xff] }
 0x454   : > { %v7164_v34 = vpop.eup %7163  ;;  %2432 = vadd.xlane.f32.xlu0 %v8870_v59  ;;  %6402 = vmatprep.subr.bf16.mxu1 %v10733_v23 }
 0x455   : > { %v7166_v39 = vpop.eup %7165  ;;  %v1867_v38 = vpop.xlane.xlu0 %1866  ;;  %v1891_v9 = vmul.f32 %v7164_v34, %v8734_v57  ;;  %v10746_v34 = vld [vmem:[#allocation68_spill] sm:$0xff] }
 0x456   : > { %v1863_v32 = vpop.xlane.xlu1 %1862  ;;  %v1893_v8 = vmul.f32 %v7166_v39, %v8738_v22  ;;  %v10736_v22 = vld [vmem:[#allocation63_spill] sm:$0xff]  ;;  %v10748_v39 = vld [vmem:[#allocation69_spill] sm:$0xff] }
 0x457   : > { %6403 = vmatpush3.bf16.msra.mxu1 %v10733_v23  ;;  %v1904_v14 = vpack.c.bf16 %v1891_v9, %v1890_v53  ;;  %7175 = vrcp.f32 %v1863_v32  ;;  %v10747_v23 = vld [vmem:[#allocation17_spill] sm:$0xff]  ;;  %v10752_v53 = vld [vmem:[#allocation26_spill] sm:$0xff] }
 0x458   : > { %6404 = vmatprep.subr.bf16.mxu1 %v10735_v49  ;;  %v1905_v5 = vpack.c.bf16 %v1893_v8, %v1892_v20  ;;  %7177 = vrcp.f32 %v1867_v38  ;;  %v10751_v38 = vld [vmem:[#allocation44_spill] sm:$0xff]  ;;  %v10753_v9 = vld [vmem:[#allocation30_spill] sm:$0xff] }
 0x459   : > { %6356 = vmatprep.mubr.bf16.mxu1 %v1904_v14  ;;  %v1865_v33 = vpop.xlane.xlu0 %1864  ;;  %v7168_v43 = vpop.eup %7167  ;;  %v10754_v32 = vld [vmem:[#allocation34_spill] sm:$0xff] }
 0x45a   : > { %7179 = vrcp.f32 %v1865_v33  ;;  %v1869_v62 = vpop.xlane.xlu1 %1868  ;;  %6357 = vmatmul.mubr.bf16.gmra.mrb[84].mxu1 %v1905_v5  ;;  %v7170_v57 = vpop.eup %7169  ;;  %v1894_v28 = vmul.f32 %v7168_v43, %v8745_v40  ;;  %v10739_v40 = vld [vmem:[#allocation65_spill] sm:$0xff]  ;;  %v10755_v8 = vld [vmem:[#allocation38_spill] sm:$0xff] }
 0x45b   : > { %7181 = vrcp.f32 %v1869_v62  ;;  %6405 = vmatpush3.bf16.msra.mxu1 %v10735_v49  ;;  %v1896_v31 = vmul.f32 %v7170_v57, %v8743_v15  ;;  %v10756_v14 = vld [vmem:[#allocation42_spill] sm:$0xff]  ;;  %v10758_v33 = vld [vmem:[#allocation33_spill] sm:$0xff] }
 0x45c   : > { %v7172_v7 = vpop.eup %7171  ;;  %6406 = vmatprep.subr.bf16.mxu1 %v10736_v22  ;;  %7183 = vpow2.f32 %v2396_v11  ;;  %v10757_v11 = vld [vmem:[#allocation31_spill] sm:$0xff]  ;;  %v10759_v62 = vld [vmem:[#allocation37_spill] sm:$0xff] }
 0x45d   : > { %v7174_v30 = vpop.eup %7173  ;;  %v1895_v17 = vmul.f32 %v7172_v7, %v8749_v21 }
 0x45e   : > { %v1897_v29 = vmul.f32 %v7174_v30, %v10737_v24 }
 0x45f   : > { %6407 = vmatpush3.bf16.msra.mxu1 %v10736_v22  ;;  %v1906_v45 = vpack.c.bf16 %v1895_v17, %v1894_v28 }
 0x460   : > { %6408 = vmatprep.subr.bf16.mxu1 %v10738_v35  ;;  %v1907_v4 = vpack.c.bf16 %v1897_v29, %v1896_v31 }
 0x461   : > { %6360 = vmatprep.mubr.bf16.mxu1 %v1906_v45  ;;  %v7176_v1 = vpop.eup %7175 }
 0x462   : > { %6361 = vmatmul.mubr.bf16.gmra.mrb[88].mxu1 %v1907_v4  ;;  %v7178_v3 = vpop.eup %7177  ;;  %v1898_v15 = vmul.f32 %v7176_v1, %v10740_v42  ;;  %v10760_v4 = vld [vmem:[#allocation71_spill] sm:$0xff] }
 0x463   : > { %6409 = vmatpush3.bf16.msra.mxu1 %v10738_v35  ;;  %v1900_v47 = vmul.f32 %v7178_v3, %v10742_v56  ;;  %v2766_v35 = vsel %vm1113_vm0, %v10748_v39, 0 }
 0x464   : > { %v7180_v41 = vpop.eup %7179  ;;  %6410 = vmatprep.subr.bf16.mxu1 %v10739_v40 }
 0x465   : > { %v7182_v21 = vpop.eup %7181  ;;  %v1899_v52 = vmul.f32 %v7180_v41, %v10741_v27 }
 0x466   : > { %v1901_v46 = vmul.f32 %v7182_v21, %v10743_v61  ;;  %v8897_v54 = vpop.eup %7183 }
 0x467   : > { %6411 = vmatpush3.bf16.msra.mxu1 %v10739_v40  ;;  %v1908_v60 = vpack.c.bf16 %v1899_v52, %v1898_v15 }
 0x468   : > { %6412 = vmatprep.subr.bf16.mxu1 %v10744_v25  ;;  %2428 = vadd.xlane.f32.xlu1 %v8897_v54  ;;  %v1909_v19 = vpack.c.bf16 %v1901_v46, %v1900_v47 }
 0x469   : > { %6364 = vmatprep.mubr.bf16.mxu1 %v1908_v60 }
 0x46a   : > { %2737 = vrot.lane.b32.xlu0 %v10745_v44, %s7740_s7  ;;  %6365 = vmatmul.mubr.bf16.gmra.mrb[92].mxu1 %v1909_v19 }
 0x46b   : > { %6413 = vmatpush3.bf16.msra.mxu1 %v10744_v25 }
 0x46c   : > { %6414 = vmatprep.subr.bf16.mxu1 %v10746_v34 }
 0x46e   : > { %2701 = vrot.lane.b32.xlu0 %v10747_v23, %s7740_s7 }
 0x46f   : > { %6415 = vmatpush3.bf16.msra.mxu1 %v10746_v34 }
 0x470   : > { %6840 = vmatprep.subr.msk.bf16.mxu1 %vm1113_vm0, %v10748_v39 }
 0x472   : > { %2703 = vrot.lane.b32.xlu0 %v10749_v50, %s7740_s7 }
 0x476   : > { %2705 = vrot.lane.b32.xlu0 %v10750_v2, %s7740_s7 }
 0x479   : > { %2739 = vrot.lane.b32.xlu1 %v10751_v38, %s7740_s7 }
 0x47a   : > { %2707 = vrot.lane.b32.xlu0 %v10752_v53, %s7740_s7 }
 0x47b   : > { %v2407_v49 = vpop.xlane.xlu0 %2406 }
 0x47d   : > { %2709 = vrot.lane.b32.xlu1 %v10753_v9, %s7740_s7 }
 0x47e   : > { %2711 = vrot.lane.b32.xlu0 %v10754_v32, %s7740_s7 }
 0x47f   : > { %v2403_v20 = vpop.xlane.xlu1 %2402 }
 0x481   : > { %2713 = vrot.lane.b32.xlu1 %v10755_v8, %s7740_s7 }
 0x482   : > { %2715 = vrot.lane.b32.xlu0 %v10756_v14, %s7740_s7 }
 0x484   : > { %v2409_v5 = vpop.xlane.xlu1 %2408 }
 0x485   : > { %3048 = vrot.lane.b32.xlu1 %v10757_v11, %s7740_s7  ;;  %7185 = vrcp.f32 %v2409_v5 }
 0x486   : > { %3046 = vrot.lane.b32.xlu0 %v10758_v33, %s7740_s7  ;;  %7187 = vrcp.f32 %v2403_v20 }
 0x487   : > { %7189 = vrcp.f32 %v2407_v49 }
 0x488   : > { %v2405_v43 = vpop.xlane.xlu0 %2404 }
 0x489   : > { %7191 = vrcp.f32 %v2405_v43 }
 0x48a   : > { %3050 = vrot.lane.b32.xlu0 %v10759_v62, %s7740_s7 }
 0x48f   : > { %v7186_v57 = vpop.eup %7185 }
 0x490   : > { %v7188_v7 = vpop.eup %7187  ;;  %v2453_v28 = vmul.f32 %v7186_v57, %v8798_v13  ;;  %v2769_v13 = vsel %vm1113_vm0, %v10760_v4, 0 }
 0x491   : > { %v7190_v22 = vpop.eup %7189  ;;  %v2450_v17 = vmul.f32 %v7188_v7, %v8792_v55  ;;  %v2734_v55 = vpop.permute.xlu0 %2733 }
 0x492   : > { %v2452_v24 = vmul.f32 %v7190_v22, %v8783_v0  ;;  %v2772_v0 = vsel %vm1113_vm0, %v8813_v58, 0  ;;  %v2778_v20 = vsel %vm1113_vm0, %v2734_v55, 0 }
 0x493   : > { %v7192_v30 = vpop.eup %7191 }
 0x494   : > { %v2451_v31 = vmul.f32 %v7192_v30, %v8803_v37  ;;  %v2467_v45 = vpack.c.bf16 %v2453_v28, %v2452_v24 }
 0x495   : > { %v2736_v15 = vpop.permute.xlu0 %2735 }
 0x496   : > { %v2466_v29 = vpack.c.bf16 %v2451_v31, %v2450_v17  ;;  %v2781_v30 = vsel %vm1113_vm0, %v2736_v15, 0 }
 0x498   : > { %6416 = vmatprep.mubr.bf16.mxu1 %v2466_v29 }
 0x499   : > { %6417 = vmatmul.mubr.bf16.vlgmr.msra.gmra.mrb[96].mxu1 %v2467_v45 }
 0x49a   : > { %6433 = vmatpush3.bf16.xpose.msra.mxu1 %v2766_v35 }
 0x49b   : > { %6841 = vmatprep.subr.msk.bf16.mxu1 %vm1113_vm0, %v10760_v4 }
 0x4a2   : > { %6435 = vmatpush3.bf16.xpose.msra.mxu1 %v2769_v13 }
 0x4a3   : > { %6842 = vmatprep.subr.msk.bf16.mxu1 %vm1113_vm0, %v8813_v58 }
 0x4aa   : > { %6437 = vmatpush3.bf16.xpose.msra.mxu1 %v2772_v0 }
 0x4b7   : > { %v6290_v37 = vpop.f32.mrb[64].mxu1 }
 0x4b8   : > { %v1445_v1 = vpop.f32.mrb[65].mxu1 }
 0x4b9   : > { %v6291_v3 = vpop.f32.mrb[66].mxu1 }
 0x4ba   : > { %v1509_v41 = vpack.c.bf16 %v6291_v3, %v6290_v37  ;;  %v1448_v40 = vpop.f32.mrb[67].mxu1 }
 0x4bb   : > { %v1508_v21 = vpack.c.bf16 %v1448_v40, %v1445_v1  ;;  %v10761_v40 = vld [vmem:[#allocation47_spill] sm:$0xff] }
 0x4bc   : > { %1517 = vst.msk [vmem:[#allocation3 + $0x8] sm:$0xff] %vm1113_vm0, %v1509_v41  ;;  %v2415_v42 = vpop.xlane.xlu1 %2414 }
 0x4bd   : > { %1516 = vst.msk [vmem:[#allocation3] sm:$0xff] %vm1113_vm0, %v1508_v21 }
 0x4bf   : > { %v6294_v27 = vpop.f32.mrb[68].mxu1 }
 0x4c0   : > { %v1461_v52 = vpop.f32.mrb[69].mxu1  ;;  %v2411_v56 = vpop.xlane.xlu1 %2410 }
 0x4c1   : > { %v6295_v47 = vpop.f32.mrb[70].mxu1  ;;  %v2417_v61 = vpop.xlane.xlu0 %2416 }
 0x4c2   : > { %v1511_v58 = vpack.c.bf16 %v6295_v47, %v6294_v27  ;;  %v1464_v46 = vpop.f32.mrb[71].mxu1  ;;  %7193 = vrcp.f32 %v2417_v61 }
 0x4c3   : > { %v1510_v60 = vpack.c.bf16 %v1464_v46, %v1461_v52  ;;  %7195 = vrcp.f32 %v2411_v56 }
 0x4c4   : > { %1519 = vst.msk [vmem:[#allocation3 + $0x18] sm:$0xff] %vm1113_vm0, %v1511_v58  ;;  %v2732_v25 = vpop.permute.xlu1 %2731  ;;  %7197 = vrcp.f32 %v2415_v42 }
 0x4c5   : > { %1518 = vst.msk [vmem:[#allocation3 + $0x10] sm:$0xff] %vm1113_vm0, %v1510_v60  ;;  %v2413_v19 = vpop.xlane.xlu0 %2412  ;;  %6843 = vmatprep.subr.msk.bf16.mxu1 %vm1113_vm0, %v2732_v25  ;;  %v2775_v44 = vsel %vm1113_vm0, %v2732_v25, 0 }
 0x4c6   : > { %7199 = vrcp.f32 %v2413_v19  ;;  %6439 = vmatpush3.bf16.xpose.msra.mxu1 %v2775_v44 }
 0x4c7   : > { %v6298_v34 = vpop.f32.mrb[72].mxu1  ;;  %6844 = vmatprep.subr.msk.bf16.mxu1 %vm1113_vm0, %v2734_v55 }
 0x4c8   : > { %v1477_v23 = vpop.f32.mrb[73].mxu1 }
 0x4c9   : > { %v6299_v39 = vpop.f32.mrb[74].mxu1  ;;  %v2423_v50 = vpop.xlane.xlu0 %2422 }
 0x4ca   : > { %v1513_v2 = vpack.c.bf16 %v6299_v39, %v6298_v34  ;;  %v1480_v38 = vpop.f32.mrb[75].mxu1 }
 0x4cb   : > { %v1512_v53 = vpack.c.bf16 %v1480_v38, %v1477_v23 }
 0x4cc   : > { %1521 = vst.msk [vmem:[#allocation3 + $0x28] sm:$0xff] %vm1113_vm0, %v1513_v2  ;;  %v7194_v9 = vpop.eup %7193 }
 0x4cd   : > { %1520 = vst.msk [vmem:[#allocation3 + $0x20] sm:$0xff] %vm1113_vm0, %v1512_v53  ;;  %v2419_v32 = vpop.xlane.xlu0 %2418  ;;  %v7196_v8 = vpop.eup %7195  ;;  %v2457_v5 = vmul.f32 %v7194_v9, %v8833_v10  ;;  %v10764_v53 = vld [vmem:[#allocation48_spill] sm:$0xff]  ;;  %v10765_v9 = vld [vmem:[#allocation51_spill] sm:$0xff] }
 0x4ce   : > { %6441 = vmatpush3.bf16.xpose.msra.mxu1 %v2778_v20  ;;  %v7198_v14 = vpop.eup %7197  ;;  %v2454_v33 = vmul.f32 %v7196_v8, %v8831_v63  ;;  %v10767_v20 = vld [vmem:[#allocation53_spill] sm:$0xff] }
 0x4cf   : > { %6845 = vmatprep.subr.msk.bf16.mxu1 %vm1113_vm0, %v2736_v15  ;;  %v2456_v62 = vmul.f32 %v7198_v14, %v8827_v48 }
 0x4d0   : > { %v7200_v49 = vpop.eup %7199 }
 0x4d1   : > { %v2425_v11 = vpop.xlane.xlu0 %2424  ;;  %v2455_v43 = vmul.f32 %v7200_v49, %v8841_v51  ;;  %v2469_v7 = vpack.c.bf16 %v2457_v5, %v2456_v62  ;;  %v2681_v5 = vld [vmem:[#allocation9 + $0x1a0] sm:$0xff] }
 0x4d2   : > { %7201 = vrcp.f32 %v2425_v11  ;;  %v10769_v11 = vld [vmem:[#allocation52_spill] sm:$0xff] }
 0x4d3   : > { %v2468_v57 = vpack.c.bf16 %v2455_v43, %v2454_v33  ;;  %7203 = vrcp.f32 %v2419_v32  ;;  %v10766_v32 = vld [vmem:[#allocation50_spill] sm:$0xff]  ;;  %v10797_v43 = vld [vmem:[#allocation41_spill] sm:$0xff] }
 0x4d4   : > { %7205 = vrcp.f32 %v2423_v50 }
 0x4d5   : > { %6420 = vmatprep.mubr.bf16.mxu1 %v2468_v57  ;;  %v2421_v22 = vpop.xlane.xlu0 %2420 }
 0x4d6   : > { %7207 = vrcp.f32 %v2421_v22  ;;  %6421 = vmatmul.mubr.bf16.gmra.mrb[100].mxu1 %v2469_v7 }
 0x4d7   : > { %6443 = vmatpush3.bf16.xpose.msra.mxu1 %v2781_v30 }
 0x4d9   : > { %v2431_v10 = vpop.xlane.xlu0 %2430 }
 0x4dc   : > { %v7202_v28 = vpop.eup %7201 }
 0x4dd   : > { %v2427_v17 = vpop.xlane.xlu0 %2426  ;;  %v7204_v63 = vpop.eup %7203  ;;  %v2461_v48 = vmul.f32 %v7202_v28, %v8852_v36 }
 0x4de   : > { %v7206_v31 = vpop.eup %7205  ;;  %v2458_v29 = vmul.f32 %v7204_v63, %v8848_v6 }
 0x4df   : > { %v2460_v35 = vmul.f32 %v7206_v31, %v8844_v16 }
 0x4e0   : > { %v7208_v51 = vpop.eup %7207 }
 0x4e1   : > { %v2433_v24 = vpop.xlane.xlu0 %2432  ;;  %v2459_v45 = vmul.f32 %v7208_v51, %v8857_v18  ;;  %v2471_v13 = vpack.c.bf16 %v2461_v48, %v2460_v35 }
 0x4e2   : > { %7209 = vrcp.f32 %v2433_v24 }
 0x4e3   : > { %v2470_v4 = vpack.c.bf16 %v2459_v45, %v2458_v29  ;;  %7211 = vrcp.f32 %v2427_v17 }
 0x4e4   : > { %7213 = vrcp.f32 %v2431_v10  ;;  %v2684_v10 = vld [vmem:[#allocation9 + $0x1b8] sm:$0xff] }
 0x4e5   : > { %6424 = vmatprep.mubr.bf16.mxu1 %v2470_v4  ;;  %v2738_v0 = vpop.permute.xlu0 %2737 }
 0x4e6   : > { %6425 = vmatmul.mubr.bf16.gmra.mrb[104].mxu1 %v2471_v13  ;;  %6846 = vmatprep.subr.msk.bf16.mxu1 %vm1113_vm0, %v2738_v0  ;;  %v2784_v55 = vsel %vm1113_vm0, %v2738_v0, 0 }
 0x4e7   : > { %6445 = vmatpush3.bf16.xpose.msra.mxu1 %v2784_v55 }
 0x4e9   : > { %v2702_v37 = vpop.permute.xlu0 %2701 }
 0x4ec   : > { %v7210_v21 = vpop.eup %7209 }
 0x4ed   : > { %v2704_v1 = vpop.permute.xlu0 %2703  ;;  %v7212_v27 = vpop.eup %7211  ;;  %v2465_v58 = vmul.f32 %v7210_v21, %v8870_v59 }
 0x4ee   : > { %v7214_v52 = vpop.eup %7213  ;;  %v2462_v25 = vmul.f32 %v7212_v27, %v8867_v12 }
 0x4ef   : > { %v2464_v39 = vmul.f32 %v7214_v52, %v8859_v26  ;;  %v10762_v26 = vld [vmem:[#allocation46_spill] sm:$0xff] }
 0x4f1   : > { %v2706_v36 = vpop.permute.xlu0 %2705  ;;  %v2473_v38 = vpack.c.bf16 %v2465_v58, %v2464_v39 }
 0x4f5   : > { %v2708_v6 = vpop.permute.xlu0 %2707  ;;  %v2429_v18 = vpop.xlane.xlu1 %2428 }
 0x4f6   : > { %7215 = vrcp.f32 %v2429_v18 }
 0x4f9   : > { %v2712_v16 = vpop.permute.xlu0 %2711  ;;  %v2740_v3 = vpop.permute.xlu1 %2739 }
 0x4fa   : > { %6847 = vmatprep.subr.msk.bf16.mxu1 %vm1113_vm0, %v2740_v3  ;;  %v2787_v41 = vsel %vm1113_vm0, %v2740_v3, 0 }
 0x4fb   : > { %6447 = vmatpush3.bf16.xpose.msra.mxu1 %v2787_v41 }
 0x4fc   : > { %6528 = vmatprep.subr.bf16.mxu1 %v10761_v40 }
 0x4fd   : > { %v2716_v42 = vpop.permute.xlu0 %2715  ;;  %v2710_v15 = vpop.permute.xlu1 %2709 }
 0x4ff   : > { %v6302_v56 = vpop.f32.mrb[76].mxu1 }
 0x500   : > { %v7216_v47 = vpop.eup %7215  ;;  %v1493_v61 = vpop.f32.mrb[77].mxu1 }
 0x501   : > { %v3047_v46 = vpop.permute.xlu0 %3046  ;;  %v6303_v60 = vpop.f32.mrb[78].mxu1  ;;  %v2463_v19 = vmul.f32 %v7216_v47, %v8897_v54  ;;  %v10763_v54 = vld [vmem:[#allocation49_spill] sm:$0xff] }
 0x502   : > { %v1515_v44 = vpack.c.bf16 %v6303_v60, %v6302_v56  ;;  %v2714_v34 = vpop.permute.xlu1 %2713  ;;  %6464 = vmatprep.subr.bf16.mxu0 %v3047_v46  ;;  %v1496_v23 = vpop.f32.mrb[79].mxu1 }
 0x503   : > { %v1514_v50 = vpack.c.bf16 %v1496_v23, %v1493_v61  ;;  %6465 = vmatpush3.bf16.msra.mxu0 %v3047_v46  ;;  %v2472_v2 = vpack.c.bf16 %v2463_v19, %v2462_v25  ;;  %v2677_v23 = vld [vmem:[#allocation9 + $0x180] sm:$0xff]  ;;  %v2678_v61 = vld [vmem:[#allocation9 + $0x188] sm:$0xff] }
 0x504   : > { %1523 = vst.msk [vmem:[#allocation3 + $0x38] sm:$0xff] %vm1113_vm0, %v1515_v44  ;;  %v10798_v44 = vld [vmem:[#allocation35_spill] sm:$0xff] }
 0x505   : > { %1522 = vst.msk [vmem:[#allocation3 + $0x30] sm:$0xff] %vm1113_vm0, %v1514_v50  ;;  %6428 = vmatprep.mubr.bf16.mxu1 %v2472_v2  ;;  %v3051_v12 = vpop.permute.xlu0 %3050 }
 0x506   : > { %v3049_v59 = vpop.permute.xlu1 %3048  ;;  %6429 = vmatmul.mubr.bf16.gmra.mrb[108].mxu1 %v2473_v38 }
 0x507   : > { %6466 = vmatprep.subr.bf16.mxu0 %v3049_v59  ;;  %6448 = vmatprep.mubr.msk.bf16.mxu1 %vm1113_vm0, %v2702_v37 }
 0x508   : > { %6467 = vmatpush3.bf16.msra.mxu0 %v3049_v59 }
 0x509   : > { %6468 = vmatprep.subr.bf16.mxu0 %v3051_v12 }
 0x50c   : > { %6469 = vmatpush3.bf16.msra.mxu0 %v3051_v12  ;;  %v2680_v12 = vld [vmem:[#allocation9 + $0x198] sm:$0xff] }
 0x50e   : > { %6449 = vmatmul.mubr.msk.bf16.vlgmr.msra.gmra.mrb[112].mxu1 %vm1113_vm0, %v2704_v1 }
 0x50f   : > { %6529 = vmatpush3.bf16.msra.mxu1 %v10761_v40  ;;  %6452 = vmatprep.mubr.msk.bf16.mxu1 %vm1113_vm0, %v2706_v36 }
 0x510   : > { %6530 = vmatprep.subr.bf16.mxu1 %v10762_v26 }
 0x513   : > { %6531 = vmatpush3.bf16.msra.mxu1 %v10762_v26 }
 0x514   : > { %6532 = vmatprep.subr.bf16.mxu1 %v10763_v54 }
 0x516   : > { %6453 = vmatmul.mubr.msk.bf16.gmra.mrb[116].mxu1 %vm1113_vm0, %v2708_v6 }
 0x517   : > { %6533 = vmatpush3.bf16.msra.mxu1 %v10763_v54  ;;  %6456 = vmatprep.mubr.msk.bf16.mxu1 %vm1113_vm0, %v2710_v15 }
 0x518   : > { %6534 = vmatprep.subr.bf16.mxu1 %v10764_v53 }
 0x51b   : > { %6535 = vmatpush3.bf16.msra.mxu1 %v10764_v53 }
 0x51c   : > { %6536 = vmatprep.subr.bf16.mxu1 %v10765_v9 }
 0x51e   : > { %6457 = vmatmul.mubr.msk.bf16.gmra.mrb[120].mxu1 %vm1113_vm0, %v2712_v16 }
 0x51f   : > { %6537 = vmatpush3.bf16.msra.mxu1 %v10765_v9  ;;  %6460 = vmatprep.mubr.msk.bf16.mxu1 %vm1113_vm0, %v2714_v34  ;;  %v2679_v34 = vld [vmem:[#allocation9 + $0x190] sm:$0xff] }
 0x520   : > { %6538 = vmatprep.subr.bf16.mxu1 %v10766_v32 }
 0x523   : > { %6539 = vmatpush3.bf16.msra.mxu1 %v10766_v32 }
 0x524   : > { %6540 = vmatprep.subr.bf16.mxu1 %v10767_v20 }
 0x525   : > { %v8997_v8 = vpop.f32.mrb[80].mxu1 }
 0x526   : > { %v8999_v14 = vpop.f32.mrb[81].mxu1  ;;  %6461 = vmatmul.mubr.msk.bf16.gmra.mrb[124].mxu1 %vm1113_vm0, %v2716_v42  ;;  %v2683_v42 = vld [vmem:[#allocation9 + $0x1b0] sm:$0xff] }
 0x527   : > { %10768 = vst [vmem:[#allocation66_spill] sm:$0xff] %v8999_v14  ;;  %6541 = vmatpush3.bf16.msra.mxu1 %v10767_v20  ;;  %v9003_v49 = vpop.f32.mrb[82].mxu1  ;;  %v3241_v14 = vld [vmem:[#allocation9 + $0x8] sm:$0xff] }
 0x528   : > { %6542 = vmatprep.subr.bf16.mxu1 %v10769_v11  ;;  %v9008_v33 = vpop.f32.mrb[83].mxu1 }
 0x529   : > { %10770 = vst [vmem:[#allocation32_spill] sm:$0xff] %v9008_v33 }
 0x52b   : > { %6543 = vmatpush3.bf16.msra.mxu1 %v10769_v11 }
 0x52d   : > { %v9013_v62 = vpop.f32.mrb[84].mxu1 }
 0x52e   : > { %10771 = vst [vmem:[#allocation36_spill] sm:$0xff] %v9013_v62  ;;  %v9015_v57 = vpop.f32.mrb[85].mxu1 }
 0x52f   : > { %10772 = vst [vmem:[#allocation74_spill] sm:$0xff] %v9015_v57  ;;  %v9017_v7 = vpop.f32.mrb[86].mxu1 }
 0x530   : > { %10773 = vst [vmem:[#allocation75_spill] sm:$0xff] %v9017_v7  ;;  %v9021_v30 = vpop.f32.mrb[87].mxu1 }
 0x531   : > { %10774 = vst [vmem:[#allocation73_spill] sm:$0xff] %v9021_v30 }
 0x535   : > { %v9025_v28 = vpop.f32.mrb[88].mxu1 }
 0x536   : > { %10775 = vst [vmem:[#allocation72_spill] sm:$0xff] %v9025_v28  ;;  %v9027_v17 = vpop.f32.mrb[89].mxu1 }
 0x537   : > { %10776 = vst [vmem:[#allocation28_spill] sm:$0xff] %v9027_v17  ;;  %v9029_v63 = vpop.f32.mrb[90].mxu1 }
 0x538   : > { %10777 = vst [vmem:[#allocation62_spill] sm:$0xff] %v9029_v63  ;;  %v9033_v51 = vpop.f32.mrb[91].mxu1 }
 0x539   : > { %10778 = vst [vmem:[#allocation76_spill] sm:$0xff] %v9033_v51  ;;  %v3253_v51 = vld [vmem:[#allocation9 + $0x68] sm:$0xff] }
 0x53d   : > { %v9037_v24 = vpop.f32.mrb[92].mxu1 }
 0x53e   : > { %10779 = vst [vmem:[#allocation67_spill] sm:$0xff] %v9037_v24  ;;  %v9039_v29 = vpop.f32.mrb[93].mxu1 }
 0x53f   : > { %10780 = vst [vmem:[#allocation63_spill] sm:$0xff] %v9039_v29  ;;  %v9041_v45 = vpop.f32.mrb[94].mxu1 }
 0x540   : > { %10781 = vst [vmem:[#allocation77_spill] sm:$0xff] %v9041_v45  ;;  %v9045_v4 = vpop.f32.mrb[95].mxu1 }
 0x541   : > { %10782 = vst [vmem:[#allocation64_spill] sm:$0xff] %v9045_v4  ;;  %v3252_v4 = vld [vmem:[#allocation9 + $0x60] sm:$0xff] }
 0x56c   : > { %v9049_v0 = vpop.f32.mrb[96].mxu1 }
 0x56d   : > { %10783 = vst [vmem:[#allocation65_spill] sm:$0xff] %v9049_v0  ;;  %v9051_v55 = vpop.f32.mrb[97].mxu1 }
 0x56e   : > { %v9053_v37 = vpop.f32.mrb[98].mxu1 }
 0x56f   : > { %10784 = vst [vmem:[#allocation79_spill] sm:$0xff] %v9053_v37  ;;  %v9057_v36 = vpop.f32.mrb[99].mxu1 }
 0x5a9   : > { %v9061_v18 = vpop.f32.mrb[100].mxu1 }
 0x5aa   : > { %10785 = vst [vmem:[#allocation80_spill] sm:$0xff] %v9061_v18  ;;  %v9063_v16 = vpop.f32.mrb[101].mxu1 }
 0x5ab   : > { %10786 = vst [vmem:[#allocation78_spill] sm:$0xff] %v9063_v16  ;;  %v9065_v3 = vpop.f32.mrb[102].mxu1 }
 0x5ac   : > { %10787 = vst [vmem:[#allocation81_spill] sm:$0xff] %v9065_v3  ;;  %v9069_v21 = vpop.f32.mrb[103].mxu1 }
 0x5ad   : > { %10788 = vst [vmem:[#allocation70_spill] sm:$0xff] %v9069_v21 }
 0x5b9   : > { %v9073_v15 = vpop.f32.mrb[104].mxu1 }
 0x5ba   : > { %10789 = vst [vmem:[#allocation40_spill] sm:$0xff] %v9073_v15  ;;  %v9075_v27 = vpop.f32.mrb[105].mxu1 }
 0x5bb   : > { %10790 = vst [vmem:[#allocation68_spill] sm:$0xff] %v9075_v27  ;;  %v9077_v52 = vpop.f32.mrb[106].mxu1 }
 0x5bc   : > { %10791 = vst [vmem:[#allocation17_spill] sm:$0xff] %v9077_v52  ;;  %v9081_v47 = vpop.f32.mrb[107].mxu1 }
 0x5bd   : > { %10792 = vst [vmem:[#allocation69_spill] sm:$0xff] %v9081_v47  ;;  %v3249_v47 = vld [vmem:[#allocation9 + $0x48] sm:$0xff] }
 0x5d9   : > { %v9085_v58 = vpop.f32.mrb[108].mxu1 }
 0x5da   : > { %10793 = vst [vmem:[#allocation20_spill] sm:$0xff] %v9085_v58  ;;  %v9087_v46 = vpop.f32.mrb[109].mxu1 }
 0x5db   : > { %10794 = vst [vmem:[#allocation23_spill] sm:$0xff] %v9087_v46  ;;  %v9089_v60 = vpop.f32.mrb[110].mxu1 }
 0x5dc   : > { %10795 = vst [vmem:[#allocation44_spill] sm:$0xff] %v9089_v60  ;;  %v9093_v19 = vpop.f32.mrb[111].mxu1  ;;  %v2682_v60 = vld [vmem:[#allocation9 + $0x1a8] sm:$0xff] }
 0x5dd   : > { %10796 = vst [vmem:[#allocation26_spill] sm:$0xff] %v9093_v19  ;;  %v3254_v19 = vld [vmem:[#allocation9 + $0x70] sm:$0xff] }
 0x5e1   : > { %v6450_v39 = vpop.f32.mrb[112].mxu1 }
 0x5e2   : > { %v9097_v50 = vadd.f32 %v6450_v39, %v2679_v34  ;;  %v2823_v2 = vpop.f32.mrb[113].mxu1 }
 0x5e3   : > { %v9099_v38 = vadd.f32 %v2823_v2, %v2677_v23  ;;  %v6451_v59 = vpop.f32.mrb[114].mxu1 }
 0x5e4   : > { %2890 = vmax.xlane.f32.xlu0 %v9097_v50  ;;  %v2826_v35 = vpop.f32.mrb[115].mxu1  ;;  %v9103_v25 = vadd.f32 %v6451_v59, %v2680_v12 }
 0x5e5   : > { %2886 = vmax.xlane.f32.xlu1 %v9099_v38  ;;  %v9110_v48 = vadd.f32 %v2826_v35, %v2678_v61  ;;  %v2687_v35 = vld [vmem:[#allocation9 + $0x1d0] sm:$0xff]  ;;  %v2688_v61 = vld [vmem:[#allocation9 + $0x1d8] sm:$0xff] }
 0x5e9   : > { %2892 = vmax.xlane.f32.xlu1 %v9103_v25  ;;  %v6454_v56 = vpop.f32.mrb[116].mxu1 }
 0x5ea   : > { %v2839_v31 = vpop.f32.mrb[117].mxu1  ;;  %v9113_v6 = vadd.f32 %v6454_v56, %v2683_v42  ;;  %v2685_v56 = vld [vmem:[#allocation9 + $0x1c0] sm:$0xff] }
 0x5eb   : > { %v6455_v41 = vpop.f32.mrb[118].mxu1 }
 0x5ec   : > { %v2842_v22 = vpop.f32.mrb[119].mxu1  ;;  %v9115_v58 = vadd.f32 %v6455_v41, %v2684_v10  ;;  %v2686_v41 = vld [vmem:[#allocation9 + $0x1c8] sm:$0xff] }
 0x5f1   : > { %v6458_v34 = vpop.f32.mrb[120].mxu1 }
 0x5f2   : > { %v2855_v39 = vpop.f32.mrb[121].mxu1  ;;  %v9125_v42 = vadd.f32 %v6458_v34, %v2687_v35  ;;  %v2689_v35 = vld [vmem:[#allocation9 + $0x1e0] sm:$0xff] }
 0x5f3   : > { %v6459_v1 = vpop.f32.mrb[122].mxu1 }
 0x5f4   : > { %v2858_v23 = vpop.f32.mrb[123].mxu1  ;;  %v9127_v10 = vadd.f32 %v6459_v1, %v2688_v61  ;;  %v2690_v61 = vld [vmem:[#allocation9 + $0x1e8] sm:$0xff] }
 0x5f9   : > { %v6462_v2 = vpop.f32.mrb[124].mxu1 }
 0x5fa   : > { %3054 = vrot.lane.b32.xlu0 %v10797_v43, %s7740_s7  ;;  %3052 = vrot.lane.b32.xlu1 %v10798_v44, %s7740_s7  ;;  %v2871_v13 = vpop.f32.mrb[125].mxu1  ;;  %v9119_v43 = vadd.f32 %v2839_v31, %v2681_v5  ;;  %v9121_v44 = vadd.f32 %v2842_v22, %v2682_v60  ;;  %v9131_v5 = vadd.f32 %v2855_v39, %v2685_v56  ;;  %v2691_v31 = vld [vmem:[#allocation9 + $0x1f0] sm:$0xff]  ;;  %v2692_v60 = vld [vmem:[#allocation9 + $0x1f8] sm:$0xff] }
 0x5fb   : > { %v6463_v59 = vpop.f32.mrb[126].mxu1  ;;  %v9133_v22 = vadd.f32 %v2858_v23, %v2686_v41  ;;  %v9137_v34 = vadd.f32 %v6462_v2, %v2691_v31  ;;  %v9143_v39 = vadd.f32 %v2871_v13, %v2689_v35  ;;  %v10799_v56 = vld [vmem:[#allocation39_spill] sm:$0xff] }
 0x5fc   : > { %v2874_v12 = vpop.f32.mrb[127].mxu1  ;;  %v9139_v1 = vadd.f32 %v6463_v59, %v2692_v60 }
 0x5fd   : > { %v9145_v23 = vadd.f32 %v2874_v12, %v2690_v61 }
 0x619   : > { %2888 = vmax.xlane.f32.xlu0 %v9110_v48 }
 0x61d   : > { %2898 = vmax.xlane.f32.xlu0 %v9113_v6 }
 0x61e   : > { %2900 = vmax.xlane.f32.xlu1 %v9115_v58 }
 0x621   : > { %2894 = vmax.xlane.f32.xlu0 %v9119_v43 }
 0x622   : > { %2896 = vmax.xlane.f32.xlu1 %v9121_v44 }
 0x625   : > { %2906 = vmax.xlane.f32.xlu0 %v9125_v42 }
 0x626   : > { %2908 = vmax.xlane.f32.xlu1 %v9127_v10 }
 0x629   : > { %2902 = vmax.xlane.f32.xlu0 %v9131_v5 }
 0x62a   : > { %2904 = vmax.xlane.f32.xlu1 %v9133_v22 }
 0x62d   : > { %2914 = vmax.xlane.f32.xlu0 %v9137_v34 }
 0x62e   : > { %2916 = vmax.xlane.f32.xlu1 %v9139_v1 }
 0x631   : > { %2910 = vmax.xlane.f32.xlu0 %v9143_v39 }
 0x632   : > { %2912 = vmax.xlane.f32.xlu1 %v9145_v23 }
 0x647   : > { %3056 = vrot.lane.b32.xlu0 %v10799_v56, %s7740_s7 }
 0x671   : > { %v2891_v2 = vpop.xlane.xlu0 %2890 }
 0x672   : > { %v2920_v59 = vsub.f32 %v9097_v50, %v2891_v2  ;;  %v2887_v41 = vpop.xlane.xlu1 %2886 }
 0x673   : > { %v2918_v31 = vsub.f32 %v9099_v38, %v2887_v41 }
 0x674   : > { %v2938_v60 = vmul.f32 1.442695, %v2920_v59 }
 0x675   : > { %v2934_v24 = vmul.f32 1.442695, %v2918_v31  ;;  %v3055_v45 = vpop.permute.xlu0 %3054 }
 0x676   : > { %7217 = vpow2.f32 %v2938_v60  ;;  %v2893_v13 = vpop.xlane.xlu1 %2892 }
 0x677   : > { %v2921_v12 = vsub.f32 %v9103_v25, %v2893_v13  ;;  %7219 = vpow2.f32 %v2934_v24  ;;  %v10800_v24 = vld [vmem:[#allocation45_spill] sm:$0xff] }
 0x679   : > { %v2940_v35 = vmul.f32 1.442695, %v2921_v12 }
 0x67a   : > { %v3053_v61 = vpop.permute.xlu1 %3052 }
 0x67b   : > { %6470 = vmatprep.subr.bf16.mxu0 %v3053_v61  ;;  %7221 = vpow2.f32 %v2940_v35 }
 0x67c   : > { %6471 = vmatpush3.bf16.msra.mxu0 %v3053_v61 }
 0x67d   : > { %6472 = vmatprep.subr.bf16.mxu0 %v3055_v45 }
 0x680   : > { %v9154_v56 = vpop.eup %7217  ;;  %6473 = vmatpush3.bf16.msra.mxu0 %v3055_v45 }
 0x681   : > { %2970 = vadd.xlane.f32.xlu1 %v9154_v56  ;;  %v9157_v50 = vpop.eup %7219 }
 0x685   : > { %2966 = vadd.xlane.f32.xlu1 %v9157_v50  ;;  %v9160_v38 = vpop.eup %7221 }
 0x689   : > { %2972 = vadd.xlane.f32.xlu1 %v9160_v38 }
 0x69a   : > { %3058 = vrot.lane.b32.xlu1 %v10800_v24, %s7740_s7 }
 0x6a6   : > { %v2889_v25 = vpop.xlane.xlu0 %2888 }
 0x6a7   : > { %v2919_v2 = vsub.f32 %v9110_v48, %v2889_v25 }
 0x6a9   : > { %v2936_v59 = vmul.f32 1.442695, %v2919_v2 }
 0x6aa   : > { %v2899_v41 = vpop.xlane.xlu0 %2898 }
 0x6ab   : > { %7223 = vpow2.f32 %v2936_v59  ;;  %v2901_v45 = vpop.xlane.xlu1 %2900 }
 0x6ac   : > { %v2925_v60 = vsub.f32 %v9115_v58, %v2901_v45 }
 0x6ae   : > { %v2895_v31 = vpop.xlane.xlu0 %2894  ;;  %v2948_v15 = vmul.f32 1.442695, %v2925_v60 }
 0x6af   : > { %v2922_v13 = vsub.f32 %v9119_v43, %v2895_v31  ;;  %v2897_v12 = vpop.xlane.xlu1 %2896 }
 0x6b1   : > { %v2942_v35 = vmul.f32 1.442695, %v2922_v13 }
 0x6b2   : > { %v2907_v61 = vpop.xlane.xlu0 %2906 }
 0x6b3   : > { %7225 = vpow2.f32 %v2942_v35  ;;  %v2909_v52 = vpop.xlane.xlu1 %2908 }
 0x6b4   : > { %7227 = vpow2.f32 %v2948_v15  ;;  %v2929_v25 = vsub.f32 %v9127_v10, %v2909_v52 }
 0x6b5   : > { %v9168_v28 = vpop.eup %7223 }
 0x6b6   : > { %2968 = vadd.xlane.f32.xlu0 %v9168_v28  ;;  %v2903_v48 = vpop.xlane.xlu0 %2902  ;;  %v2956_v45 = vmul.f32 1.442695, %v2929_v25 }
 0x6b7   : > { %v2905_v24 = vpop.xlane.xlu1 %2904 }
 0x6b8   : > { %v2927_v2 = vsub.f32 %v9133_v22, %v2905_v24 }
 0x6ba   : > { %v2952_v58 = vmul.f32 1.442695, %v2927_v2  ;;  %v2915_v59 = vpop.xlane.xlu0 %2914 }
 0x6bb   : > { %v2917_v43 = vpop.xlane.xlu1 %2916 }
 0x6bc   : > { %7229 = vpow2.f32 %v2952_v58  ;;  %v2933_v35 = vsub.f32 %v9139_v1, %v2917_v43  ;;  %v10801_v1 = vld [vmem:[#allocation43_spill] sm:$0xff]  ;;  %v2923_v58 = vsub.f32 %v9121_v44, %v2897_v12  ;;  %v2924_v43 = vsub.f32 %v9113_v6, %v2899_v41 }
 0x6bd   : > { %v9173_v31 = vpop.eup %7225  ;;  %7231 = vpow2.f32 %v2956_v45  ;;  %v2932_v6 = vsub.f32 %v9137_v34, %v2915_v59  ;;  %v10802_v59 = vld [vmem:[#allocation55_spill] sm:$0xff] }
 0x6be   : > { %2974 = vadd.xlane.f32.xlu1 %v9173_v31  ;;  %v2911_v60 = vpop.xlane.xlu0 %2910  ;;  %v9178_v63 = vpop.eup %7227  ;;  %v2964_v22 = vmul.f32 1.442695, %v2933_v35  ;;  %v2944_v45 = vmul.f32 1.442695, %v2923_v58  ;;  %v2926_v35 = vsub.f32 %v9131_v5, %v2903_v48 }
 0x6bf   : > { %v2913_v13 = vpop.xlane.xlu1 %2912  ;;  %v2962_v5 = vmul.f32 1.442695, %v2932_v6 }
 0x6c0   : > { %v2931_v15 = vsub.f32 %v9145_v23, %v2913_v13  ;;  %v2946_v13 = vmul.f32 1.442695, %v2924_v43 }
 0x6c2   : > { %v2960_v52 = vmul.f32 1.442695, %v2931_v15  ;;  %2980 = vadd.xlane.f32.xlu1 %v9178_v63  ;;  %v3057_v10 = vpop.permute.xlu0 %3056  ;;  %v2928_v15 = vsub.f32 %v9125_v42, %v2907_v61 }
 0x6c3   : > { %6474 = vmatprep.subr.bf16.mxu0 %v3057_v10 }
 0x6c4   : > { %7233 = vpow2.f32 %v2960_v52  ;;  %6475 = vmatpush3.bf16.msra.mxu0 %v3057_v10  ;;  %v2950_v52 = vmul.f32 1.442695, %v2926_v35  ;;  %v2954_v10 = vmul.f32 1.442695, %v2928_v15 }
 0x6c5   : > { %7235 = vpow2.f32 %v2964_v22  ;;  %v2930_v22 = vsub.f32 %v9143_v39, %v2911_v60 }
 0x6c6   : > { %v9181_v24 = vpop.eup %7229  ;;  %7237 = vpow2.f32 %v2944_v45 }
 0x6c7   : > { %2984 = vadd.xlane.f32.xlu1 %v9181_v24  ;;  %v9184_v25 = vpop.eup %7231  ;;  %7239 = vpow2.f32 %v2946_v13  ;;  %v2958_v44 = vmul.f32 1.442695, %v2930_v22 }
 0x6c8   : > { %7241 = vpow2.f32 %v2950_v52 }
 0x6c9   : > { %7243 = vpow2.f32 %v2954_v10 }
 0x6ca   : > { %7245 = vpow2.f32 %v2958_v44 }
 0x6cb   : > { %2988 = vadd.xlane.f32.xlu1 %v9184_v25  ;;  %7247 = vpow2.f32 %v2962_v5 }
 0x6cc   : > { %3060 = vrot.lane.b32.xlu0 %v10801_v1, %s7740_s7 }
 0x6ce   : > { %v9189_v23 = vpop.eup %7233 }
 0x6cf   : > { %2992 = vadd.xlane.f32.xlu1 %v9189_v23  ;;  %v9192_v2 = vpop.eup %7235 }
 0x6d0   : > { %v9200_v1 = vpop.eup %7237 }
 0x6d1   : > { %v9204_v41 = vpop.eup %7239 }
 0x6d2   : > { %v9207_v42 = vpop.eup %7241 }
 0x6d3   : > { %2996 = vadd.xlane.f32.xlu1 %v9192_v2  ;;  %v9210_v39 = vpop.eup %7243 }
 0x6d4   : > { %v9213_v12 = vpop.eup %7245 }
 0x6d5   : > { %v9216_v34 = vpop.eup %7247 }
 0x6eb   : > { %2976 = vadd.xlane.f32.xlu0 %v9200_v1 }
 0x6ef   : > { %2978 = vadd.xlane.f32.xlu0 %v9204_v41 }
 0x6f3   : > { %2982 = vadd.xlane.f32.xlu0 %v9207_v42 }
 0x6f7   : > { %2986 = vadd.xlane.f32.xlu0 %v9210_v39 }
 0x6fb   : > { %2990 = vadd.xlane.f32.xlu0 %v9213_v12 }
 0x6ff   : > { %2994 = vadd.xlane.f32.xlu0 %v9216_v34 }
 0x70e   : > { %v2971_v61 = vpop.xlane.xlu1 %2970 }
 0x712   : > { %v2967_v48 = vpop.xlane.xlu1 %2966 }
 0x715   : > { %3738 = vrot.lane.b32.xlu0 %v10802_v59, %s7738_s19 }
 0x716   : > { %v2973_v60 = vpop.xlane.xlu1 %2972 }
 0x717   : > { %7249 = vrcp.f32 %v2973_v60  ;;  %v10803_v60 = vld [vmem:[#allocation57_spill] sm:$0xff] }
 0x718   : > { %7251 = vrcp.f32 %v2967_v48  ;;  %v3281_v48 = vsel %vm1113_vm0, %v10802_v59, 0 }
 0x719   : > { %7253 = vrcp.f32 %v2971_v61 }
 0x71a   : > { %v3059_v58 = vpop.permute.xlu1 %3058 }
 0x71b   : > { %6476 = vmatprep.subr.bf16.mxu0 %v3059_v58 }
 0x71c   : > { %6477 = vmatpush3.bf16.msra.mxu0 %v3059_v58 }
 0x721   : > { %v7250_v13 = vpop.eup %7249 }
 0x722   : > { %v7252_v35 = vpop.eup %7251  ;;  %v3017_v10 = vmul.f32 %v7250_v13, %v9160_v38  ;;  %v3284_v38 = vsel %vm1113_vm0, %v10803_v60, 0 }
 0x723   : > { %v7254_v15 = vpop.eup %7253  ;;  %v3014_v22 = vmul.f32 %v7252_v35, %v9157_v50  ;;  %v10804_v50 = vld [vmem:[#allocation59_spill] sm:$0xff] }
 0x724   : > { %v3016_v44 = vmul.f32 %v7254_v15, %v9154_v56  ;;  %v10805_v56 = vld [vmem:[#allocation61_spill] sm:$0xff] }
 0x726   : > { %v3031_v61 = vpack.c.bf16 %v3017_v10, %v3016_v44 }
 0x743   : > { %v2969_v43 = vpop.xlane.xlu0 %2968 }
 0x744   : > { %7255 = vrcp.f32 %v2969_v43  ;;  %v3290_v43 = vsel %vm1113_vm0, %v10805_v56, 0 }
 0x747   : > { %v3061_v45 = vpop.permute.xlu0 %3060 }
 0x748   : > { %6478 = vmatprep.subr.bf16.mxu0 %v3061_v45 }
 0x749   : > { %6479 = vmatpush3.bf16.msra.mxu0 %v3061_v45  ;;  %v10806_v45 = vld [vmem:[#allocation19_spill] sm:$0xff] }
 0x74a   : > { %6848 = vmatprep.subr.msk.bf16.mxu0 %vm1113_vm0, %v10802_v59  ;;  %v3293_v35 = vsel %vm1113_vm0, %v10806_v45, 0 }
 0x74b   : > { %v2975_v58 = vpop.xlane.xlu1 %2974 }
 0x74c   : > { %7257 = vrcp.f32 %v2975_v58 }
 0x74e   : > { %v7256_v52 = vpop.eup %7255 }
 0x74f   : > { %v3015_v6 = vmul.f32 %v7256_v52, %v9168_v28  ;;  %v3287_v28 = vsel %vm1113_vm0, %v10804_v50, 0  ;;  %v2981_v13 = vpop.xlane.xlu1 %2980  ;;  %v10807_v52 = vld [vmem:[#allocation22_spill] sm:$0xff] }
 0x751   : > { %v3030_v5 = vpack.c.bf16 %v3015_v6, %v3014_v22  ;;  %v3296_v6 = vsel %vm1113_vm0, %v10807_v52, 0 }
 0x753   : > { %6480 = vmatprep.mubr.bf16.mxu0 %v3030_v5  ;;  %v10808_v5 = vld [vmem:[#allocation25_spill] sm:$0xff] }
 0x754   : > { %6481 = vmatmul.mubr.bf16.vlgmr.msra.gmra.mrb[80].mxu0 %v3031_v61  ;;  %v2985_v15 = vpop.xlane.xlu1 %2984  ;;  %v3299_v58 = vsel %vm1113_vm0, %v10808_v5, 0 }
 0x755   : > { %6497 = vmatpush3.bf16.xpose.msra.mxu0 %v3281_v48 }
 0x756   : > { %6849 = vmatprep.subr.msk.bf16.mxu0 %vm1113_vm0, %v10803_v60  ;;  %v7258_v48 = vpop.eup %7257 }
 0x758   : > { %v2989_v22 = vpop.xlane.xlu1 %2988 }
 0x75d   : > { %6499 = vmatpush3.bf16.xpose.msra.mxu0 %v3284_v38  ;;  %v2993_v38 = vpop.xlane.xlu1 %2992 }
 0x75e   : > { %6850 = vmatprep.subr.msk.bf16.mxu0 %vm1113_vm0, %v10804_v50 }
 0x765   : > { %6501 = vmatpush3.bf16.xpose.msra.mxu0 %v3287_v28 }
 0x766   : > { %6851 = vmatprep.subr.msk.bf16.mxu0 %vm1113_vm0, %v10805_v56 }
 0x76d   : > { %6503 = vmatpush3.bf16.xpose.msra.mxu0 %v3290_v43 }
 0x76e   : > { %6852 = vmatprep.subr.msk.bf16.mxu0 %vm1113_vm0, %v10806_v45 }
 0x775   : > { %6505 = vmatpush3.bf16.xpose.msra.mxu0 %v3293_v35 }
 0x776   : > { %6853 = vmatprep.subr.msk.bf16.mxu0 %vm1113_vm0, %v10807_v52 }
 0x778   : > { %v2977_v10 = vpop.xlane.xlu0 %2976 }
 0x779   : > { %7259 = vrcp.f32 %v2977_v10 }
 0x77a   : > { %7261 = vrcp.f32 %v2981_v13  ;;  %v3018_v13 = vmul.f32 %v7258_v48, %v9173_v31 }
 0x77c   : > { %v2979_v44 = vpop.xlane.xlu0 %2978 }
 0x77d   : > { %6507 = vmatpush3.bf16.xpose.msra.mxu0 %v3296_v6  ;;  %7263 = vrcp.f32 %v2979_v44  ;;  %v10809_v6 = vld [vmem:[#allocation29_spill] sm:$0xff] }
 0x77e   : > { %6854 = vmatprep.subr.msk.bf16.mxu0 %vm1113_vm0, %v10808_v5  ;;  %7265 = vrcp.f32 %v2985_v15  ;;  %v3302_v48 = vsel %vm1113_vm0, %v10809_v6, 0 }
 0x780   : > { %v2983_v61 = vpop.xlane.xlu0 %2982 }
 0x781   : > { %7267 = vrcp.f32 %v2983_v61  ;;  %v2997_v61 = vpop.xlane.xlu1 %2996 }
 0x782   : > { %7269 = vrcp.f32 %v2989_v22 }
 0x783   : > { %v7260_v28 = vpop.eup %7259 }
 0x784   : > { %v2987_v43 = vpop.xlane.xlu0 %2986  ;;  %v3019_v35 = vmul.f32 %v7260_v28, %v9200_v1  ;;  %v7262_v10 = vpop.eup %7261 }
 0x785   : > { %6509 = vmatpush3.bf16.xpose.msra.mxu0 %v3299_v58  ;;  %7271 = vrcp.f32 %v2987_v43  ;;  %v3021_v3 = vmul.f32 %v7262_v10, %v9178_v63 }
 0x786   : > { %6855 = vmatprep.subr.msk.bf16.mxu0 %vm1113_vm0, %v10809_v6  ;;  %v3032_v15 = vpack.c.bf16 %v3019_v35, %v3018_v13  ;;  %7273 = vrcp.f32 %v2993_v38 }
 0x787   : > { %v7264_v44 = vpop.eup %7263 }
 0x788   : > { %6484 = vmatprep.mubr.bf16.mxu0 %v3032_v15  ;;  %v2991_v22 = vpop.xlane.xlu0 %2990  ;;  %v3020_v18 = vmul.f32 %v7264_v44, %v9204_v41  ;;  %v7266_v62 = vpop.eup %7265 }
 0x789   : > { %7275 = vrcp.f32 %v2991_v22  ;;  %v3023_v38 = vmul.f32 %v7266_v62, %v9181_v24 }
 0x78a   : > { %v3033_v31 = vpack.c.bf16 %v3021_v3, %v3020_v18  ;;  %7277 = vrcp.f32 %v2997_v61 }
 0x78b   : > { %v7268_v1 = vpop.eup %7267 }
 0x78c   : > { %6485 = vmatmul.mubr.bf16.gmra.mrb[84].mxu0 %v3033_v31  ;;  %v2995_v28 = vpop.xlane.xlu0 %2994  ;;  %v3022_v58 = vmul.f32 %v7268_v1, %v9207_v42  ;;  %v7270_v43 = vpop.eup %7269  ;;  %v10810_v31 = vld [vmem:[#allocation54_spill] sm:$0xff]  ;;  %v10811_v1 = vld [vmem:[#allocation56_spill] sm:$0xff] }
 0x78d   : > { %6511 = vmatpush3.bf16.xpose.msra.mxu0 %v3302_v48  ;;  %7279 = vrcp.f32 %v2995_v28  ;;  %v3025_v3 = vmul.f32 %v7270_v43, %v9184_v25  ;;  %v10812_v48 = vld [vmem:[#allocation58_spill] sm:$0xff]  ;;  %v10817_v28 = vld [vmem:[#allocation27_spill] sm:$0xff] }
 0x78e   : > { %v3034_v41 = vpack.c.bf16 %v3023_v38, %v3022_v58 }
 0x78f   : > { %v7272_v13 = vpop.eup %7271 }
 0x790   : > { %6488 = vmatprep.mubr.bf16.mxu0 %v3034_v41  ;;  %v9263_v63 = vpop.permute.xlu0 %3738  ;;  %v3024_v18 = vmul.f32 %v7272_v13, %v9210_v39  ;;  %v7274_v35 = vpop.eup %7273 }
 0x791   : > { %6856 = vmatprep.subr.msk.bf16.mxu1 %vm1113_vm0, %v9263_v63  ;;  %v3027_v24 = vmul.f32 %v7274_v35, %v9189_v23  ;;  %v10813_v23 = vld [vmem:[#allocation60_spill] sm:$0xff] }
 0x792   : > { %v3035_v10 = vpack.c.bf16 %v3025_v3, %v3024_v18 }
 0x793   : > { %v7276_v42 = vpop.eup %7275 }
 0x794   : > { %6489 = vmatmul.mubr.bf16.gmra.mrb[88].mxu0 %v3035_v10  ;;  %v3026_v62 = vmul.f32 %v7276_v42, %v9213_v12  ;;  %v7278_v15 = vpop.eup %7277  ;;  %v10814_v12 = vld [vmem:[#allocation18_spill] sm:$0xff] }
 0x795   : > { %v3029_v39 = vmul.f32 %v7278_v15, %v9192_v2  ;;  %v10816_v2 = vld [vmem:[#allocation24_spill] sm:$0xff] }
 0x796   : > { %v3036_v44 = vpack.c.bf16 %v3027_v24, %v3026_v62 }
 0x797   : > { %v7280_v61 = vpop.eup %7279 }
 0x798   : > { %6492 = vmatprep.mubr.bf16.mxu0 %v3036_v44  ;;  %v3028_v22 = vmul.f32 %v7280_v61, %v9216_v34  ;;  %v10815_v34 = vld [vmem:[#allocation21_spill] sm:$0xff] }
 0x79a   : > { %v3037_v25 = vpack.c.bf16 %v3029_v39, %v3028_v22  ;;  %v3242_v22 = vld [vmem:[#allocation9 + $0x10] sm:$0xff] }
 0x79c   : > { %6493 = vmatmul.mubr.bf16.gmra.mrb[92].mxu0 %v3037_v25 }
 0x79d   : > { %6512 = vmatprep.mubr.msk.bf16.mxu0 %vm1113_vm0, %v10810_v31 }
 0x7a4   : > { %6513 = vmatmul.mubr.msk.bf16.vlgmr.msra.gmra.mrb[96].mxu0 %vm1113_vm0, %v10811_v1 }
 0x7a5   : > { %6516 = vmatprep.mubr.msk.bf16.mxu0 %vm1113_vm0, %v10812_v48 }
 0x7ac   : > { %6517 = vmatmul.mubr.msk.bf16.gmra.mrb[100].mxu0 %vm1113_vm0, %v10813_v23 }
 0x7ad   : > { %6520 = vmatprep.mubr.msk.bf16.mxu0 %vm1113_vm0, %v10814_v12 }
 0x7b4   : > { %6521 = vmatmul.mubr.msk.bf16.gmra.mrb[104].mxu0 %vm1113_vm0, %v10815_v34 }
 0x7b5   : > { %6524 = vmatprep.mubr.msk.bf16.mxu0 %vm1113_vm0, %v10816_v2 }
 0x7bc   : > { %6525 = vmatmul.mubr.msk.bf16.gmra.mrb[108].mxu0 %vm1113_vm0, %v10817_v28 }
 0x827   : > { %v9289_v58 = vpop.f32.mrb[80].mxu0 }
 0x828   : > { %10818 = vst [vmem:[#allocation30_spill] sm:$0xff] %v9289_v58  ;;  %v9291_v38 = vpop.f32.mrb[81].mxu0  ;;  %v3240_v58 = vld [vmem:[#allocation9] sm:$0xff] }
 0x829   : > { %10819 = vst [vmem:[#allocation34_spill] sm:$0xff] %v9291_v38  ;;  %v9293_v43 = vpop.f32.mrb[82].mxu0 }
 0x82a   : > { %10820 = vst [vmem:[#allocation38_spill] sm:$0xff] %v9293_v43  ;;  %v9297_v13 = vpop.f32.mrb[83].mxu0 }
 0x82b   : > { %10821 = vst [vmem:[#allocation42_spill] sm:$0xff] %v9297_v13 }
 0x85f   : > { %v9301_v3 = vpop.f32.mrb[84].mxu0 }
 0x860   : > { %10822 = vst [vmem:[#allocation31_spill] sm:$0xff] %v9301_v3  ;;  %v9303_v35 = vpop.f32.mrb[85].mxu0 }
 0x861   : > { %10823 = vst [vmem:[#allocation33_spill] sm:$0xff] %v9303_v35  ;;  %v9305_v10 = vpop.f32.mrb[86].mxu0 }
 0x862   : > { %10824 = vst [vmem:[#allocation37_spill] sm:$0xff] %v9305_v10  ;;  %v9309_v62 = vpop.f32.mrb[87].mxu0 }
 0x863   : > { %10825 = vst [vmem:[#allocation71_spill] sm:$0xff] %v9309_v62 }
 0x867   : > { %v9313_v15 = vpop.f32.mrb[88].mxu0 }
 0x868   : > { %10826 = vst [vmem:[#allocation47_spill] sm:$0xff] %v9313_v15  ;;  %v9315_v44 = vpop.f32.mrb[89].mxu0 }
 0x869   : > { %10827 = vst [vmem:[#allocation46_spill] sm:$0xff] %v9315_v44  ;;  %v9317_v61 = vpop.f32.mrb[90].mxu0 }
 0x86a   : > { %10828 = vst [vmem:[#allocation49_spill] sm:$0xff] %v9317_v61  ;;  %v9321_v39 = vpop.f32.mrb[91].mxu0  ;;  %v3243_v61 = vld [vmem:[#allocation9 + $0x18] sm:$0xff] }
 0x86b   : > { %10829 = vst [vmem:[#allocation48_spill] sm:$0xff] %v9321_v39  ;;  %v3251_v39 = vld [vmem:[#allocation9 + $0x58] sm:$0xff] }
 0x86f   : > { %v9325_v42 = vpop.f32.mrb[92].mxu0 }
 0x870   : > { %10830 = vst [vmem:[#allocation51_spill] sm:$0xff] %v9325_v42  ;;  %v9327_v41 = vpop.f32.mrb[93].mxu0  ;;  %v3246_v42 = vld [vmem:[#allocation9 + $0x30] sm:$0xff] }
 0x871   : > { %10831 = vst [vmem:[#allocation50_spill] sm:$0xff] %v9327_v41  ;;  %v9329_v18 = vpop.f32.mrb[94].mxu0 }
 0x872   : > { %10832 = vst [vmem:[#allocation53_spill] sm:$0xff] %v9329_v18  ;;  %v9333_v3 = vpop.f32.mrb[95].mxu0 }
 0x873   : > { %10833 = vst [vmem:[#allocation52_spill] sm:$0xff] %v9333_v3  ;;  %v3248_v3 = vld [vmem:[#allocation9 + $0x40] sm:$0xff] }
 0x877   : > { %v6514_v15 = vpop.f32.mrb[96].mxu0 }
 0x878   : > { %v9337_v7 = vadd.f32 %v6514_v15, %v3242_v22  ;;  %v3338_v25 = vpop.f32.mrb[97].mxu0 }
 0x879   : > { %v6515_v43 = vpop.f32.mrb[98].mxu0  ;;  %v9342_v24 = vadd.f32 %v3338_v25, %v3240_v58  ;;  %v3250_v25 = vld [vmem:[#allocation9 + $0x50] sm:$0xff] }
 0x87a   : > { %v9339_v0 = vadd.f32 %v6515_v43, %v3243_v61  ;;  %3405 = vmax.xlane.f32.xlu0 %v9337_v7  ;;  %v3341_v37 = vpop.f32.mrb[99].mxu0  ;;  %v3244_v43 = vld [vmem:[#allocation9 + $0x20] sm:$0xff] }
 0x87b   : > { %v9345_v10 = vadd.f32 %v3341_v37, %v3241_v14 }
 0x87c   : > { %3407 = vmax.xlane.f32.xlu1 %v9339_v0 }
 0x87e   : > { %3401 = vmax.xlane.f32.xlu0 %v9342_v24 }
 0x87f   : > { %v6518_v15 = vpop.f32.mrb[100].mxu0 }
 0x880   : > { %v9348_v22 = vadd.f32 %v6518_v15, %v3246_v42  ;;  %v3354_v18 = vpop.f32.mrb[101].mxu0  ;;  %3403 = vmax.xlane.f32.xlu1 %v9345_v10 }
 0x881   : > { %v6519_v61 = vpop.f32.mrb[102].mxu0  ;;  %v9352_v58 = vadd.f32 %v3354_v18, %v3244_v43 }
 0x882   : > { %v3357_v33 = vpop.f32.mrb[103].mxu0  ;;  %3413 = vmax.xlane.f32.xlu0 %v9348_v22 }
 0x886   : > { %3409 = vmax.xlane.f32.xlu0 %v9352_v58 }
 0x887   : > { %v6522_v14 = vpop.f32.mrb[104].mxu0 }
 0x888   : > { %v9355_v37 = vadd.f32 %v6522_v14, %v3250_v25  ;;  %v3370_v41 = vpop.f32.mrb[105].mxu0 }
 0x889   : > { %v6523_v42 = vpop.f32.mrb[106].mxu0  ;;  %v9358_v46 = vadd.f32 %v3370_v41, %v3248_v3  ;;  %v3247_v41 = vld [vmem:[#allocation9 + $0x38] sm:$0xff] }
 0x88a   : > { %v3373_v15 = vpop.f32.mrb[107].mxu0  ;;  %3421 = vmax.xlane.f32.xlu0 %v9355_v37  ;;  %v3366_v3 = vadd.f32 %v6519_v61, %v3247_v41  ;;  %v9371_v27 = vadd.f32 %v6523_v42, %v3251_v39 }
 0x88b   : > { %v9374_v17 = vadd.f32 %v3373_v15, %v3249_v47 }
 0x88e   : > { %3417 = vmax.xlane.f32.xlu0 %v9358_v46 }
 0x88f   : > { %v6526_v29 = vpop.f32.mrb[108].mxu0 }
 0x890   : > { %v9361_v18 = vadd.f32 %v6526_v29, %v3254_v19  ;;  %v3386_v43 = vpop.f32.mrb[109].mxu0  ;;  %v3245_v29 = vld [vmem:[#allocation9 + $0x28] sm:$0xff] }
 0x891   : > { %v6527_v44 = vpop.f32.mrb[110].mxu0  ;;  %3740 = vrot.lane.b32.xlu1 %v10803_v60, %s7738_s19  ;;  %v9366_v14 = vadd.f32 %v3386_v43, %v3252_v4  ;;  %v3358_v19 = vadd.f32 %v3357_v33, %v3245_v29  ;;  %v3255_v4 = vld [vmem:[#allocation9 + $0x78] sm:$0xff] }
 0x892   : > { %v3389_v25 = vpop.f32.mrb[111].mxu0  ;;  %3429 = vmax.xlane.f32.xlu0 %v9361_v18  ;;  %v9377_v43 = vadd.f32 %v6527_v44, %v3255_v4 }
 0x893   : > { %v9380_v61 = vadd.f32 %v3389_v25, %v3253_v51 }
 0x896   : > { %3425 = vmax.xlane.f32.xlu0 %v9366_v14 }
 0x8ac   : > { %3742 = vrot.lane.b32.xlu0 %v10804_v50, %s7738_s19 }
 0x8b5   : > { %3415 = vmax.xlane.f32.xlu1 %v3366_v3 }
 0x8b9   : > { %3411 = vmax.xlane.f32.xlu1 %v3358_v19 }
 0x8bd   : > { %3423 = vmax.xlane.f32.xlu1 %v9371_v27 }
 0x8c1   : > { %3419 = vmax.xlane.f32.xlu1 %v9374_v17 }
 0x8c5   : > { %3431 = vmax.xlane.f32.xlu1 %v9377_v43 }
 0x8c9   : > { %3427 = vmax.xlane.f32.xlu1 %v9380_v61 }
 0x907   : > { %v3406_v33 = vpop.xlane.xlu0 %3405 }
 0x908   : > { %v3435_v39 = vsub.f32 %v9337_v7, %v3406_v33 }
 0x909   : > { %v3408_v42 = vpop.xlane.xlu1 %3407 }
 0x90a   : > { %v3453_v41 = vmul.f32 1.442695, %v3435_v39  ;;  %v3436_v47 = vsub.f32 %v9339_v0, %v3408_v42 }
 0x90b   : > { %v3402_v15 = vpop.xlane.xlu0 %3401 }
 0x90c   : > { %7281 = vpow2.f32 %v3453_v41  ;;  %v3455_v29 = vmul.f32 1.442695, %v3436_v47  ;;  %v3433_v44 = vsub.f32 %v9342_v24, %v3402_v15 }
 0x90d   : > { %v3404_v4 = vpop.xlane.xlu1 %3403 }
 0x90e   : > { %7283 = vpow2.f32 %v3455_v29  ;;  %v3449_v35 = vmul.f32 1.442695, %v3433_v44  ;;  %v3434_v51 = vsub.f32 %v9345_v10, %v3404_v4 }
 0x90f   : > { %v3414_v10 = vpop.xlane.xlu0 %3413 }
 0x910   : > { %7285 = vpow2.f32 %v3449_v35  ;;  %v3451_v25 = vmul.f32 1.442695, %v3434_v51  ;;  %v3439_v42 = vsub.f32 %v9348_v22, %v3414_v10 }
 0x911   : > { %v9404_v41 = vpop.permute.xlu1 %3740 }
 0x912   : > { %7287 = vpow2.f32 %v3451_v25  ;;  %v3461_v15 = vmul.f32 1.442695, %v3439_v42 }
 0x913   : > { %v3410_v35 = vpop.xlane.xlu0 %3409 }
 0x914   : > { %v3437_v47 = vsub.f32 %v9352_v58, %v3410_v35  ;;  %7289 = vpow2.f32 %v3461_v15 }
 0x916   : > { %v9387_v62 = vpop.eup %7281  ;;  %v3457_v4 = vmul.f32 1.442695, %v3437_v47 }
 0x917   : > { %3485 = vadd.xlane.f32.xlu0 %v9387_v62  ;;  %v3422_v33 = vpop.xlane.xlu0 %3421 }
 0x918   : > { %v9390_v7 = vpop.eup %7283  ;;  %v3443_v25 = vsub.f32 %v9355_v37, %v3422_v33  ;;  %7291 = vpow2.f32 %v3457_v4 }
 0x919   : > { %3487 = vadd.xlane.f32.xlu1 %v9390_v7 }
 0x91a   : > { %v9393_v0 = vpop.eup %7285  ;;  %v3469_v10 = vmul.f32 1.442695, %v3443_v25 }
 0x91b   : > { %3481 = vadd.xlane.f32.xlu0 %v9393_v0  ;;  %v3418_v39 = vpop.xlane.xlu0 %3417 }
 0x91c   : > { %v9396_v24 = vpop.eup %7287  ;;  %v3441_v13 = vsub.f32 %v9358_v46, %v3418_v39 }
 0x91d   : > { %3483 = vadd.xlane.f32.xlu1 %v9396_v24 }
 0x91e   : > { %v9412_v47 = vpop.eup %7289 }
 0x91f   : > { %v3430_v29 = vpop.xlane.xlu0 %3429 }
 0x920   : > { %v3447_v57 = vsub.f32 %v9361_v18, %v3430_v29 }
 0x922   : > { %v3477_v35 = vmul.f32 1.442695, %v3447_v57 }
 0x923   : > { %v3426_v38 = vpop.xlane.xlu0 %3425 }
 0x924   : > { %v3445_v42 = vsub.f32 %v9366_v14, %v3426_v38 }
 0x92e   : > { %3744 = vrot.lane.b32.xlu1 %v10805_v56, %s7738_s19 }
 0x931   : > { %3746 = vrot.lane.b32.xlu0 %v10806_v45, %s7738_s19 }
 0x942   : > { %v3416_v44 = vpop.xlane.xlu1 %3415 }
 0x943   : > { %v3440_v51 = vsub.f32 %v3366_v3, %v3416_v44  ;;  %v3465_v3 = vmul.f32 1.442695, %v3441_v13 }
 0x945   : > { %v3463_v16 = vmul.f32 1.442695, %v3440_v51 }
 0x946   : > { %v3412_v21 = vpop.xlane.xlu1 %3411 }
 0x947   : > { %v3438_v30 = vsub.f32 %v3358_v19, %v3412_v21  ;;  %7293 = vpow2.f32 %v3463_v16  ;;  %v3473_v21 = vmul.f32 1.442695, %v3445_v42 }
 0x949   : > { %v3459_v22 = vmul.f32 1.442695, %v3438_v30  ;;  %v9415_v30 = vpop.eup %7291 }
 0x94a   : > { %v3424_v58 = vpop.xlane.xlu1 %3423 }
 0x94b   : > { %7295 = vpow2.f32 %v3459_v22  ;;  %v3444_v37 = vsub.f32 %v9371_v27, %v3424_v58  ;;  %v3743_v22 = vpop.permute.xlu0 %3742 }
 0x94c   : > { %7297 = vpow2.f32 %v3469_v10 }
 0x94d   : > { %7299 = vpow2.f32 %v3477_v35  ;;  %v3471_v16 = vmul.f32 1.442695, %v3444_v37 }
 0x94e   : > { %v3420_v33 = vpop.xlane.xlu1 %3419  ;;  %7301 = vpow2.f32 %v3465_v3 }
 0x94f   : > { %7303 = vpow2.f32 %v3473_v21  ;;  %v3442_v57 = vsub.f32 %v9374_v17, %v3420_v33 }
 0x950   : > { %3493 = vadd.xlane.f32.xlu0 %v9412_v47  ;;  %7305 = vpow2.f32 %v3471_v16 }
 0x951   : > { %v9420_v27 = vpop.eup %7293  ;;  %v3467_v19 = vmul.f32 1.442695, %v3442_v57 }
 0x952   : > { %v3432_v46 = vpop.xlane.xlu1 %3431  ;;  %3489 = vadd.xlane.f32.xlu1 %v9415_v30 }
 0x953   : > { %v3448_v38 = vsub.f32 %v9377_v43, %v3432_v46 }
 0x955   : > { %v9422_v13 = vpop.eup %7295  ;;  %v3479_v18 = vmul.f32 1.442695, %v3448_v38 }
 0x956   : > { %v3428_v14 = vpop.xlane.xlu1 %3427  ;;  %3491 = vadd.xlane.f32.xlu0 %v9422_v13  ;;  %3495 = vadd.xlane.f32.xlu1 %v9420_v27  ;;  %v9427_v15 = vpop.eup %7297 }
 0x957   : > { %7307 = vpow2.f32 %v3479_v18  ;;  %v3446_v39 = vsub.f32 %v9380_v61, %v3428_v14  ;;  %v9429_v17 = vpop.eup %7299 }
 0x958   : > { %7309 = vpow2.f32 %v3467_v19  ;;  %v9433_v29 = vpop.eup %7301  ;;  %v3779_v19 = vsel %vm1113_vm0, %v9263_v63, 0 }
 0x959   : > { %v3475_v43 = vmul.f32 1.442695, %v3446_v39  ;;  %v9435_v44 = vpop.eup %7303 }
 0x95a   : > { %3501 = vadd.xlane.f32.xlu1 %v9427_v15  ;;  %3509 = vadd.xlane.f32.xlu0 %v9429_v17  ;;  %v9439_v61 = vpop.eup %7305 }
 0x95b   : > { %7311 = vpow2.f32 %v3475_v43 }
 0x95e   : > { %3497 = vadd.xlane.f32.xlu1 %v9433_v29  ;;  %3505 = vadd.xlane.f32.xlu0 %v9435_v44 }
 0x961   : > { %v9441_v4 = vpop.eup %7307 }
 0x962   : > { %3503 = vadd.xlane.f32.xlu1 %v9439_v61  ;;  %3511 = vadd.xlane.f32.xlu0 %v9441_v4  ;;  %v9445_v51 = vpop.eup %7309 }
 0x965   : > { %v9448_v25 = vpop.eup %7311 }
 0x966   : > { %3499 = vadd.xlane.f32.xlu1 %v9445_v51 }
 0x96a   : > { %3507 = vadd.xlane.f32.xlu1 %v9448_v25 }
 0x978   : > { %3750 = vrot.lane.b32.xlu0 %v10808_v5, %s7738_s19 }
 0x97b   : > { %3748 = vrot.lane.b32.xlu1 %v10807_v52, %s7738_s19 }
 0x97c   : > { %3752 = vrot.lane.b32.xlu0 %v10809_v6, %s7738_s19 }
 0x97f   : > { %3714 = vrot.lane.b32.xlu1 %v10810_v31, %s7738_s19 }
 0x980   : > { %3716 = vrot.lane.b32.xlu0 %v10811_v1, %s7738_s19 }
 0x983   : > { %3718 = vrot.lane.b32.xlu1 %v10812_v48, %s7738_s19 }
 0x984   : > { %3720 = vrot.lane.b32.xlu0 %v10813_v23, %s7738_s19 }
 0x987   : > { %3722 = vrot.lane.b32.xlu1 %v10814_v12, %s7738_s19 }
 0x988   : > { %3724 = vrot.lane.b32.xlu0 %v10815_v34, %s7738_s19 }
 0x98b   : > { %3726 = vrot.lane.b32.xlu1 %v10816_v2, %s7738_s19 }
 0x98c   : > { %3728 = vrot.lane.b32.xlu0 %v10817_v28, %s7738_s19 }
 0x98f   : > { %4061 = vrot.lane.b32.xlu1 %v10762_v26, %s7738_s19 }
 0x990   : > { %4059 = vrot.lane.b32.xlu0 %v10761_v40, %s7738_s19 }
 0x993   : > { %4065 = vrot.lane.b32.xlu1 %v10764_v53, %s7738_s19 }
 0x994   : > { %4063 = vrot.lane.b32.xlu0 %v10763_v54, %s7738_s19 }
 0x997   : > { %4071 = vrot.lane.b32.xlu1 %v10767_v20, %s7738_s19 }
 0x998   : > { %4067 = vrot.lane.b32.xlu0 %v10765_v9, %s7738_s19 }
 0x99c   : > { %4069 = vrot.lane.b32.xlu0 %v10766_v32, %s7738_s19 }
 0x9a0   : > { %4073 = vrot.lane.b32.xlu0 %v10769_v11, %s7738_s19 }
 0x9a4   : > { %v3486_v10 = vpop.xlane.xlu0 %3485 }
 0x9a6   : > { %v3488_v58 = vpop.xlane.xlu1 %3487 }
 0x9a7   : > { %7313 = vrcp.f32 %v3488_v58 }
 0x9a8   : > { %v3482_v35 = vpop.xlane.xlu0 %3481 }
 0x9a9   : > { %7315 = vrcp.f32 %v3482_v35 }
 0x9aa   : > { %7317 = vrcp.f32 %v3486_v10  ;;  %v3484_v42 = vpop.xlane.xlu1 %3483 }
 0x9ab   : > { %7319 = vrcp.f32 %v3484_v42 }
 0x9ac   : > { %v3747_v39 = vpop.permute.xlu0 %3746 }
 0x9ad   : > { %v3791_v63 = vsel %vm1113_vm0, %v3747_v39, 0 }
 0x9b1   : > { %v7314_v3 = vpop.eup %7313 }
 0x9b2   : > { %v3532_v16 = vmul.f32 %v7314_v3, %v9390_v7  ;;  %v3782_v7 = vsel %vm1113_vm0, %v9404_v41, 0 }
 0x9b3   : > { %v7316_v37 = vpop.eup %7315 }
 0x9b4   : > { %v7318_v33 = vpop.eup %7317  ;;  %v3529_v46 = vmul.f32 %v7316_v37, %v9393_v0  ;;  %v3785_v0 = vsel %vm1113_vm0, %v3743_v22, 0 }
 0x9b5   : > { %v7320_v21 = vpop.eup %7319  ;;  %v3531_v38 = vmul.f32 %v7318_v33, %v9387_v62  ;;  %v3745_v62 = vpop.permute.xlu1 %3744 }
 0x9b6   : > { %v3530_v57 = vmul.f32 %v7320_v21, %v9396_v24  ;;  %v3788_v24 = vsel %vm1113_vm0, %v3745_v62, 0 }
 0x9b7   : > { %v3546_v14 = vpack.c.bf16 %v3532_v16, %v3531_v38 }
 0x9b8   : > { %v3545_v18 = vpack.c.bf16 %v3530_v57, %v3529_v46 }
 0x9ba   : > { %6544 = vmatprep.mubr.bf16.mxu1 %v3545_v18 }
 0x9bb   : > { %6545 = vmatmul.mubr.bf16.vlgmr.msra.gmra.mrb[128].mxu1 %v3546_v14 }
 0x9bc   : > { %6561 = vmatpush3.bf16.xpose.msra.mxu1 %v3779_v19 }
 0x9bd   : > { %6857 = vmatprep.subr.msk.bf16.mxu1 %vm1113_vm0, %v9404_v41 }
 0x9c4   : > { %6563 = vmatpush3.bf16.xpose.msra.mxu1 %v3782_v7 }
 0x9c5   : > { %6858 = vmatprep.subr.msk.bf16.mxu1 %vm1113_vm0, %v3743_v22 }
 0x9cc   : > { %6565 = vmatpush3.bf16.xpose.msra.mxu1 %v3785_v0 }
 0x9cd   : > { %6859 = vmatprep.subr.msk.bf16.mxu1 %vm1113_vm0, %v3745_v62 }
 0x9d4   : > { %6567 = vmatpush3.bf16.xpose.msra.mxu1 %v3788_v24 }
 0x9d5   : > { %6860 = vmatprep.subr.msk.bf16.mxu1 %vm1113_vm0, %v3747_v39 }
 0x9dc   : > { %6569 = vmatpush3.bf16.xpose.msra.mxu1 %v3791_v63 }
 0x9dd   : > { %v3494_v43 = vpop.xlane.xlu0 %3493 }
 0x9de   : > { %7321 = vrcp.f32 %v3494_v43 }
 0x9df   : > { %v3490_v41 = vpop.xlane.xlu1 %3489 }
 0x9e0   : > { %7323 = vrcp.f32 %v3490_v41 }
 0x9e3   : > { %v3496_v10 = vpop.xlane.xlu1 %3495  ;;  %v3492_v58 = vpop.xlane.xlu0 %3491 }
 0x9e4   : > { %7325 = vrcp.f32 %v3496_v10 }
 0x9e5   : > { %7327 = vrcp.f32 %v3492_v58 }
 0x9e7   : > { %v3502_v22 = vpop.xlane.xlu1 %3501  ;;  %v3510_v35 = vpop.xlane.xlu0 %3509 }
 0x9e8   : > { %v7322_v37 = vpop.eup %7321 }
 0x9e9   : > { %v3535_v38 = vmul.f32 %v7322_v37, %v9412_v47 }
 0x9ea   : > { %v7324_v33 = vpop.eup %7323 }
 0x9eb   : > { %v3498_v42 = vpop.xlane.xlu1 %3497  ;;  %v3506_v3 = vpop.xlane.xlu0 %3505  ;;  %v3533_v14 = vmul.f32 %v7324_v33, %v9415_v30 }
 0x9ee   : > { %v7326_v21 = vpop.eup %7325 }
 0x9ef   : > { %v7328_v16 = vpop.eup %7327  ;;  %v3504_v46 = vpop.xlane.xlu1 %3503  ;;  %v3536_v18 = vmul.f32 %v7326_v21, %v9420_v27 }
 0x9f0   : > { %v3512_v57 = vpop.xlane.xlu0 %3511  ;;  %v3534_v19 = vmul.f32 %v7328_v16, %v9422_v13  ;;  %7329 = vrcp.f32 %v3504_v46 }
 0x9f1   : > { %v3548_v7 = vpack.c.bf16 %v3536_v18, %v3535_v38  ;;  %7331 = vrcp.f32 %v3498_v42 }
 0x9f2   : > { %v3547_v0 = vpack.c.bf16 %v3534_v19, %v3533_v14  ;;  %7333 = vrcp.f32 %v3502_v22 }
 0x9f3   : > { %v3500_v62 = vpop.xlane.xlu1 %3499 }
 0x9f4   : > { %v3751_v24 = vpop.permute.xlu0 %3750  ;;  %7335 = vrcp.f32 %v3500_v62  ;;  %6548 = vmatprep.mubr.bf16.mxu1 %v3547_v0 }
 0x9f5   : > { %6549 = vmatmul.mubr.bf16.gmra.mrb[132].mxu1 %v3548_v7  ;;  %7337 = vrcp.f32 %v3506_v3  ;;  %v3797_v19 = vsel %vm1113_vm0, %v3751_v24, 0 }
 0x9f7   : > { %v3508_v39 = vpop.xlane.xlu1 %3507 }
 0x9f8   : > { %v3753_v63 = vpop.permute.xlu0 %3752  ;;  %7339 = vrcp.f32 %v3508_v39 }
 0x9f9   : > { %7341 = vrcp.f32 %v3512_v57 }
 0x9fa   : > { %v7330_v47 = vpop.eup %7329  ;;  %7343 = vrcp.f32 %v3510_v35 }
 0x9fb   : > { %v3749_v30 = vpop.permute.xlu1 %3748  ;;  %v7332_v13 = vpop.eup %7331  ;;  %v3540_v58 = vmul.f32 %v7330_v47, %v9439_v61 }
 0x9fc   : > { %v3717_v27 = vpop.permute.xlu0 %3716  ;;  %6861 = vmatprep.subr.msk.bf16.mxu1 %vm1113_vm0, %v3749_v30  ;;  %v3794_v43 = vsel %vm1113_vm0, %v3749_v30, 0  ;;  %v7334_v41 = vpop.eup %7333  ;;  %v3537_v3 = vmul.f32 %v7332_v13, %v9433_v29 }
 0x9fd   : > { %6571 = vmatpush3.bf16.xpose.msra.mxu1 %v3794_v43  ;;  %v3539_v33 = vmul.f32 %v7334_v41, %v9427_v15 }
 0x9fe   : > { %v7336_v10 = vpop.eup %7335  ;;  %6862 = vmatprep.subr.msk.bf16.mxu1 %vm1113_vm0, %v3751_v24 }
 0x9ff   : > { %v3715_v22 = vpop.permute.xlu1 %3714  ;;  %v3538_v35 = vmul.f32 %v7336_v10, %v9445_v51  ;;  %v7338_v37 = vpop.eup %7337  ;;  %v3550_v46 = vpack.c.bf16 %v3540_v58, %v3539_v33 }
 0xa00   : > { %v3721_v42 = vpop.permute.xlu0 %3720  ;;  %v3541_v14 = vmul.f32 %v7338_v37, %v9435_v44 }
 0xa01   : > { %v3549_v21 = vpack.c.bf16 %v3538_v35, %v3537_v3 }
 0xa02   : > { %v7340_v16 = vpop.eup %7339 }
 0xa03   : > { %v7342_v57 = vpop.eup %7341  ;;  %v3719_v38 = vpop.permute.xlu1 %3718  ;;  %6552 = vmatprep.mubr.bf16.mxu1 %v3549_v21  ;;  %v3542_v61 = vmul.f32 %v7340_v16, %v9448_v25  ;;  %v3800_v25 = vsel %vm1113_vm0, %v3753_v63, 0 }
 0xa04   : > { %v3725_v18 = vpop.permute.xlu0 %3724  ;;  %6553 = vmatmul.mubr.bf16.gmra.mrb[136].mxu1 %v3550_v46  ;;  %v7344_v29 = vpop.eup %7343  ;;  %v3544_v15 = vmul.f32 %v7342_v57, %v9441_v4 }
 0xa05   : > { %6573 = vmatpush3.bf16.xpose.msra.mxu1 %v3797_v19  ;;  %v3551_v51 = vpack.c.bf16 %v3542_v61, %v3541_v14  ;;  %v3543_v62 = vmul.f32 %v7344_v29, %v9429_v17 }
 0xa06   : > { %6863 = vmatprep.subr.msk.bf16.mxu1 %vm1113_vm0, %v3753_v63 }
 0xa07   : > { %v3723_v7 = vpop.permute.xlu1 %3722  ;;  %6556 = vmatprep.mubr.bf16.mxu1 %v3551_v51  ;;  %v3552_v39 = vpack.c.bf16 %v3544_v15, %v3543_v62  ;;  %v3692_v62 = vld [vmem:[#allocation9 + $0x90] sm:$0xff] }
 0xa08   : > { %v3729_v0 = vpop.permute.xlu0 %3728 }
 0xa0b   : > { %v3727_v47 = vpop.permute.xlu1 %3726 }
 0xa0c   : > { %v4060_v44 = vpop.permute.xlu0 %4059  ;;  %6557 = vmatmul.mubr.bf16.gmra.mrb[140].mxu1 %v3552_v39  ;;  %v3690_v39 = vld [vmem:[#allocation9 + $0x80] sm:$0xff] }
 0xa0d   : > { %6592 = vmatprep.subr.bf16.mxu0 %v4060_v44  ;;  %6575 = vmatpush3.bf16.xpose.msra.mxu1 %v3800_v25 }
 0xa0e   : > { %6576 = vmatprep.mubr.msk.bf16.mxu1 %vm1113_vm0, %v3715_v22  ;;  %6593 = vmatpush3.bf16.msra.mxu0 %v4060_v44 }
 0xa0f   : > { %v4062_v24 = vpop.permute.xlu1 %4061 }
 0xa10   : > { %6594 = vmatprep.subr.bf16.mxu0 %v4062_v24  ;;  %v4064_v30 = vpop.permute.xlu0 %4063 }
 0xa12   : > { %6595 = vmatpush3.bf16.msra.mxu0 %v4062_v24 }
 0xa13   : > { %6596 = vmatprep.subr.bf16.mxu0 %v4064_v30  ;;  %v4066_v17 = vpop.permute.xlu1 %4065 }
 0xa14   : > { %6577 = vmatmul.mubr.msk.bf16.vlgmr.msra.gmra.mrb[144].mxu1 %vm1113_vm0, %v3717_v27  ;;  %v4068_v4 = vpop.permute.xlu0 %4067 }
 0xa15   : > { %6580 = vmatprep.mubr.msk.bf16.mxu1 %vm1113_vm0, %v3719_v38 }
 0xa16   : > { %6597 = vmatpush3.bf16.msra.mxu0 %v4064_v30 }
 0xa17   : > { %6598 = vmatprep.subr.bf16.mxu0 %v4066_v17  ;;  %v4072_v13 = vpop.permute.xlu1 %4071 }
 0xa18   : > { %v4070_v63 = vpop.permute.xlu0 %4069 }
 0xa1a   : > { %6599 = vmatpush3.bf16.msra.mxu0 %v4066_v17  ;;  %v3693_v17 = vld [vmem:[#allocation9 + $0x98] sm:$0xff] }
 0xa1b   : > { %6600 = vmatprep.subr.bf16.mxu0 %v4068_v4 }
 0xa1c   : > { %6581 = vmatmul.mubr.msk.bf16.gmra.mrb[148].mxu1 %vm1113_vm0, %v3721_v42  ;;  %v4074_v27 = vpop.permute.xlu0 %4073 }
 0xa1d   : > { %6584 = vmatprep.mubr.msk.bf16.mxu1 %vm1113_vm0, %v3723_v7 }
 0xa1e   : > { %6601 = vmatpush3.bf16.msra.mxu0 %v4068_v4 }
 0xa1f   : > { %6602 = vmatprep.subr.bf16.mxu0 %v4070_v63 }
 0xa22   : > { %6603 = vmatpush3.bf16.msra.mxu0 %v4070_v63 }
 0xa23   : > { %6604 = vmatprep.subr.bf16.mxu0 %v4072_v13 }
 0xa24   : > { %6585 = vmatmul.mubr.msk.bf16.gmra.mrb[152].mxu1 %vm1113_vm0, %v3725_v18 }
 0xa25   : > { %6588 = vmatprep.mubr.msk.bf16.mxu1 %vm1113_vm0, %v3727_v47 }
 0xa26   : > { %6605 = vmatpush3.bf16.msra.mxu0 %v4072_v13 }
 0xa27   : > { %6606 = vmatprep.subr.bf16.mxu0 %v4074_v27 }
 0xa2a   : > { %6607 = vmatpush3.bf16.msra.mxu0 %v4074_v27 }
 0xa2c   : > { %6589 = vmatmul.mubr.msk.bf16.gmra.mrb[156].mxu1 %vm1113_vm0, %v3729_v0 }
 0xa8e   : > { %v6546_v43 = vpop.f32.mrb[128].mxu1 }
 0xa8f   : > { %v3587_v41 = vpop.f32.mrb[129].mxu1 }
 0xa90   : > { %v6547_v10 = vpop.f32.mrb[130].mxu1 }
 0xa91   : > { %v3651_v58 = vpack.c.bf16 %v6547_v10, %v6546_v43  ;;  %v3590_v22 = vpop.f32.mrb[131].mxu1 }
 0xa92   : > { %v3650_v42 = vpack.c.bf16 %v3590_v22, %v3587_v41 }
 0xa93   : > { %3659 = vst.msk [vmem:[#allocation3 + $0x48] sm:$0xff] %vm1113_vm0, %v3651_v58 }
 0xa94   : > { %3658 = vst.msk [vmem:[#allocation3 + $0x40] sm:$0xff] %vm1113_vm0, %v3650_v42 }
 0xac8   : > { %v6550_v3 = vpop.f32.mrb[132].mxu1 }
 0xac9   : > { %v3603_v35 = vpop.f32.mrb[133].mxu1 }
 0xaca   : > { %v6551_v37 = vpop.f32.mrb[134].mxu1 }
 0xacb   : > { %v3653_v33 = vpack.c.bf16 %v6551_v37, %v6550_v3  ;;  %v3606_v21 = vpop.f32.mrb[135].mxu1 }
 0xacc   : > { %v3652_v16 = vpack.c.bf16 %v3606_v21, %v3603_v35  ;;  %v3691_v21 = vld [vmem:[#allocation9 + $0x88] sm:$0xff] }
 0xacd   : > { %3661 = vst.msk [vmem:[#allocation3 + $0x58] sm:$0xff] %vm1113_vm0, %v3653_v33 }
 0xace   : > { %3660 = vst.msk [vmem:[#allocation3 + $0x50] sm:$0xff] %vm1113_vm0, %v3652_v16 }
 0xad7   : > { %v6554_v46 = vpop.f32.mrb[136].mxu1 }
 0xad8   : > { %v3619_v57 = vpop.f32.mrb[137].mxu1 }
 0xad9   : > { %v6555_v38 = vpop.f32.mrb[138].mxu1 }
 0xada   : > { %v3655_v18 = vpack.c.bf16 %v6555_v38, %v6554_v46  ;;  %v3622_v14 = vpop.f32.mrb[139].mxu1  ;;  %v3696_v46 = vld [vmem:[#allocation9 + $0xb0] sm:$0xff] }
 0xadb   : > { %v3654_v61 = vpack.c.bf16 %v3622_v14, %v3619_v57  ;;  %v3697_v57 = vld [vmem:[#allocation9 + $0xb8] sm:$0xff] }
 0xadc   : > { %3663 = vst.msk [vmem:[#allocation3 + $0x68] sm:$0xff] %vm1113_vm0, %v3655_v18  ;;  %v3694_v18 = vld [vmem:[#allocation9 + $0xa0] sm:$0xff] }
 0xadd   : > { %3662 = vst.msk [vmem:[#allocation3 + $0x60] sm:$0xff] %vm1113_vm0, %v3654_v61  ;;  %v3695_v61 = vld [vmem:[#allocation9 + $0xa8] sm:$0xff] }
 0xadf   : > { %v6558_v19 = vpop.f32.mrb[140].mxu1 }
 0xae0   : > { %v3635_v29 = vpop.f32.mrb[141].mxu1 }
 0xae1   : > { %v6559_v51 = vpop.f32.mrb[142].mxu1 }
 0xae2   : > { %v3657_v15 = vpack.c.bf16 %v6559_v51, %v6558_v19  ;;  %v3638_v7 = vpop.f32.mrb[143].mxu1  ;;  %v3700_v51 = vld [vmem:[#allocation9 + $0xd0] sm:$0xff] }
 0xae3   : > { %v3656_v0 = vpack.c.bf16 %v3638_v7, %v3635_v29 }
 0xae4   : > { %3665 = vst.msk [vmem:[#allocation3 + $0x78] sm:$0xff] %vm1113_vm0, %v3657_v15  ;;  %v3701_v15 = vld [vmem:[#allocation9 + $0xd8] sm:$0xff] }
 0xae5   : > { %3664 = vst.msk [vmem:[#allocation3 + $0x70] sm:$0xff] %vm1113_vm0, %v3656_v0  ;;  %v3698_v0 = vld [vmem:[#allocation9 + $0xc0] sm:$0xff] }
 0xae7   : > { %v6578_v47 = vpop.f32.mrb[144].mxu1 }
 0xae8   : > { %v9539_v44 = vadd.f32 %v6578_v47, %v3692_v62  ;;  %v3836_v25 = vpop.f32.mrb[145].mxu1 }
 0xae9   : > { %v9541_v24 = vadd.f32 %v3836_v25, %v3690_v39  ;;  %v6579_v30 = vpop.f32.mrb[146].mxu1  ;;  %v3699_v39 = vld [vmem:[#allocation9 + $0xc8] sm:$0xff] }
 0xaea   : > { %3903 = vmax.xlane.f32.xlu0 %v9539_v44  ;;  %v3839_v4 = vpop.f32.mrb[147].mxu1  ;;  %v9545_v63 = vadd.f32 %v6579_v30, %v3693_v17  ;;  %v3704_v30 = vld [vmem:[#allocation9 + $0xf0] sm:$0xff]  ;;  %v3705_v17 = vld [vmem:[#allocation9 + $0xf8] sm:$0xff] }
 0xaeb   : > { %3899 = vmax.xlane.f32.xlu1 %v9541_v24  ;;  %v9552_v16 = vadd.f32 %v3839_v4, %v3691_v21 }
 0xaef   : > { %3905 = vmax.xlane.f32.xlu1 %v9545_v63  ;;  %v6582_v13 = vpop.f32.mrb[148].mxu1 }
 0xaf0   : > { %v3852_v27 = vpop.f32.mrb[149].mxu1  ;;  %v9555_v38 = vadd.f32 %v6582_v13, %v3696_v46  ;;  %v3702_v13 = vld [vmem:[#allocation9 + $0xe0] sm:$0xff] }
 0xaf1   : > { %v6583_v43 = vpop.f32.mrb[150].mxu1  ;;  %v3853_v19 = vadd.f32 %v3852_v27, %v3694_v18 }
 0xaf2   : > { %v3855_v41 = vpop.f32.mrb[151].mxu1  ;;  %v9557_v14 = vadd.f32 %v6583_v43, %v3697_v57  ;;  %v3703_v43 = vld [vmem:[#allocation9 + $0xe8] sm:$0xff] }
 0xaf3   : > { %v9561_v29 = vadd.f32 %v3855_v41, %v3695_v61 }
 0xaf7   : > { %v6586_v10 = vpop.f32.mrb[152].mxu1 }
 0xaf8   : > { %v3868_v58 = vpop.f32.mrb[153].mxu1  ;;  %v9564_v7 = vadd.f32 %v6586_v10, %v3700_v51 }
 0xaf9   : > { %v6587_v22 = vpop.f32.mrb[154].mxu1  ;;  %v9570_v47 = vadd.f32 %v3868_v58, %v3698_v0 }
 0xafa   : > { %v3871_v42 = vpop.f32.mrb[155].mxu1  ;;  %v9566_v62 = vadd.f32 %v6587_v22, %v3701_v15 }
 0xafb   : > { %v9572_v25 = vadd.f32 %v3871_v42, %v3699_v39 }
 0xaff   : > { %v6590_v3 = vpop.f32.mrb[156].mxu1 }
 0xb00   : > { %4302 = vrot.lane.b32.xlu0 %v10803_v60, %s7739_s16  ;;  %4300 = vrot.lane.b32.xlu1 %v10802_v59, %s7739_s16  ;;  %v3884_v35 = vpop.f32.mrb[157].mxu1  ;;  %v9576_v4 = vadd.f32 %v6590_v3, %v3704_v30 }
 0xb01   : > { %v6591_v37 = vpop.f32.mrb[158].mxu1  ;;  %v9582_v41 = vadd.f32 %v3884_v35, %v3702_v13 }
 0xb02   : > { %v3887_v33 = vpop.f32.mrb[159].mxu1  ;;  %v9578_v27 = vadd.f32 %v6591_v37, %v3705_v17 }
 0xb03   : > { %v9584_v10 = vadd.f32 %v3887_v33, %v3703_v43 }
 0xb1f   : > { %3901 = vmax.xlane.f32.xlu0 %v9552_v16 }
 0xb23   : > { %3911 = vmax.xlane.f32.xlu0 %v9555_v38 }
 0xb24   : > { %3913 = vmax.xlane.f32.xlu1 %v9557_v14 }
 0xb27   : > { %3907 = vmax.xlane.f32.xlu0 %v3853_v19 }
 0xb28   : > { %3909 = vmax.xlane.f32.xlu1 %v9561_v29 }
 0xb2b   : > { %3919 = vmax.xlane.f32.xlu0 %v9564_v7 }
 0xb2c   : > { %3921 = vmax.xlane.f32.xlu1 %v9566_v62 }
 0xb2f   : > { %3915 = vmax.xlane.f32.xlu0 %v9570_v47 }
 0xb30   : > { %3917 = vmax.xlane.f32.xlu1 %v9572_v25 }
 0xb33   : > { %3927 = vmax.xlane.f32.xlu0 %v9576_v4 }
 0xb34   : > { %3929 = vmax.xlane.f32.xlu1 %v9578_v27 }
 0xb37   : > { %3923 = vmax.xlane.f32.xlu0 %v9582_v41 }
 0xb38   : > { %3925 = vmax.xlane.f32.xlu1 %v9584_v10 }
 0xb4d   : > { %4304 = vrot.lane.b32.xlu0 %v10804_v50, %s7739_s16 }
 0xb77   : > { %v3904_v58 = vpop.xlane.xlu0 %3903 }
 0xb78   : > { %v3933_v22 = vsub.f32 %v9539_v44, %v3904_v58  ;;  %v3900_v42 = vpop.xlane.xlu1 %3899 }
 0xb79   : > { %v3931_v3 = vsub.f32 %v9541_v24, %v3900_v42 }
 0xb7a   : > { %v3951_v37 = vmul.f32 1.442695, %v3933_v22 }
 0xb7b   : > { %v3947_v21 = vmul.f32 1.442695, %v3931_v3 }
 0xb7c   : > { %7345 = vpow2.f32 %v3951_v37  ;;  %v3906_v35 = vpop.xlane.xlu1 %3905 }
 0xb7d   : > { %v3934_v33 = vsub.f32 %v9545_v63, %v3906_v35  ;;  %7347 = vpow2.f32 %v3947_v21  ;;  %v9608_v63 = vpop.permute.xlu0 %4302 }
 0xb7f   : > { %v3953_v46 = vmul.f32 1.442695, %v3934_v33 }
 0xb80   : > { %v9593_v57 = vpop.permute.xlu1 %4300 }
 0xb81   : > { %6864 = vmatprep.subr.msk.bf16.mxu0 %vm1113_vm0, %v9593_v57  ;;  %7349 = vpow2.f32 %v3953_v46 }
 0xb86   : > { %v9597_v18 = vpop.eup %7345 }
 0xb87   : > { %3983 = vadd.xlane.f32.xlu1 %v9597_v18  ;;  %v9600_v44 = vpop.eup %7347 }
 0xb8b   : > { %3979 = vadd.xlane.f32.xlu1 %v9600_v44  ;;  %v9603_v24 = vpop.eup %7349 }
 0xb8f   : > { %3985 = vadd.xlane.f32.xlu1 %v9603_v24 }
 0xba0   : > { %4306 = vrot.lane.b32.xlu1 %v10805_v56, %s7739_s16 }
 0xbac   : > { %v3902_v61 = vpop.xlane.xlu0 %3901 }
 0xbad   : > { %v3932_v51 = vsub.f32 %v9552_v16, %v3902_v61 }
 0xbaf   : > { %v3949_v15 = vmul.f32 1.442695, %v3932_v51 }
 0xbb0   : > { %v3912_v0 = vpop.xlane.xlu0 %3911 }
 0xbb1   : > { %7351 = vpow2.f32 %v3949_v15  ;;  %v3914_v39 = vpop.xlane.xlu1 %3913 }
 0xbb2   : > { %v3938_v17 = vsub.f32 %v9557_v14, %v3914_v39 }
 0xbb4   : > { %v3908_v30 = vpop.xlane.xlu0 %3907  ;;  %v3961_v42 = vmul.f32 1.442695, %v3938_v17 }
 0xbb5   : > { %v3935_v13 = vsub.f32 %v3853_v19, %v3908_v30  ;;  %v3910_v43 = vpop.xlane.xlu1 %3909 }
 0xbb7   : > { %v3955_v58 = vmul.f32 1.442695, %v3935_v13 }
 0xbb8   : > { %v3920_v22 = vpop.xlane.xlu0 %3919 }
 0xbb9   : > { %7353 = vpow2.f32 %v3955_v58  ;;  %v3941_v3 = vsub.f32 %v9564_v7, %v3920_v22  ;;  %v3922_v37 = vpop.xlane.xlu1 %3921 }
 0xbba   : > { %7355 = vpow2.f32 %v3961_v42  ;;  %v3942_v14 = vsub.f32 %v9566_v62, %v3922_v37  ;;  %v3937_v42 = vsub.f32 %v9555_v38, %v3912_v0 }
 0xbbb   : > { %v9613_v21 = vpop.eup %7351  ;;  %v3967_v35 = vmul.f32 1.442695, %v3941_v3 }
 0xbbc   : > { %3981 = vadd.xlane.f32.xlu0 %v9613_v21  ;;  %v3916_v16 = vpop.xlane.xlu0 %3915  ;;  %v3969_v7 = vmul.f32 1.442695, %v3942_v14  ;;  %v3959_v37 = vmul.f32 1.442695, %v3937_v42 }
 0xbbd   : > { %v3939_v33 = vsub.f32 %v9570_v47, %v3916_v16  ;;  %v3918_v46 = vpop.xlane.xlu1 %3917  ;;  %7357 = vpow2.f32 %v3967_v35  ;;  %v3936_v16 = vsub.f32 %v9561_v29, %v3910_v43 }
 0xbbe   : > { %v3940_v15 = vsub.f32 %v9572_v25, %v3918_v46 }
 0xbbf   : > { %v3963_v19 = vmul.f32 1.442695, %v3939_v33  ;;  %v3957_v35 = vmul.f32 1.442695, %v3936_v16 }
 0xbc0   : > { %v3965_v47 = vmul.f32 1.442695, %v3940_v15  ;;  %v3928_v3 = vpop.xlane.xlu0 %3927 }
 0xbc1   : > { %v3930_v61 = vpop.xlane.xlu1 %3929  ;;  %7359 = vpow2.f32 %v3963_v19  ;;  %v3945_v33 = vsub.f32 %v9576_v4, %v3928_v3 }
 0xbc2   : > { %7361 = vpow2.f32 %v3969_v7  ;;  %v3946_v7 = vsub.f32 %v9578_v27, %v3930_v61 }
 0xbc3   : > { %v9618_v51 = vpop.eup %7353  ;;  %7363 = vpow2.f32 %v3965_v47  ;;  %v3975_v14 = vmul.f32 1.442695, %v3945_v33 }
 0xbc4   : > { %3987 = vadd.xlane.f32.xlu1 %v9618_v51  ;;  %v9622_v30 = vpop.eup %7355  ;;  %v3924_v46 = vpop.xlane.xlu0 %3923  ;;  %v3977_v29 = vmul.f32 1.442695, %v3946_v7 }
 0xbc5   : > { %v3926_v39 = vpop.xlane.xlu1 %3925  ;;  %v3943_v19 = vsub.f32 %v9582_v41, %v3924_v46 }
 0xbc6   : > { %v3944_v17 = vsub.f32 %v9584_v10, %v3926_v39 }
 0xbc7   : > { %v9626_v62 = vpop.eup %7357  ;;  %v3971_v38 = vmul.f32 1.442695, %v3943_v19 }
 0xbc8   : > { %3993 = vadd.xlane.f32.xlu1 %v9622_v30  ;;  %v3973_v13 = vmul.f32 1.442695, %v3944_v17  ;;  %v4305_v47 = vpop.permute.xlu0 %4304 }
 0xbca   : > { %7365 = vpow2.f32 %v3973_v13 }
 0xbcb   : > { %v9629_v58 = vpop.eup %7359  ;;  %7367 = vpow2.f32 %v3959_v37 }
 0xbcc   : > { %3999 = vadd.xlane.f32.xlu1 %v9626_v62  ;;  %v9634_v25 = vpop.eup %7361  ;;  %7369 = vpow2.f32 %v3957_v35 }
 0xbcd   : > { %v9637_v22 = vpop.eup %7363  ;;  %7371 = vpow2.f32 %v3975_v14 }
 0xbce   : > { %7373 = vpow2.f32 %v3971_v38 }
 0xbcf   : > { %7375 = vpow2.f32 %v3977_v29 }
 0xbd0   : > { %3995 = vadd.xlane.f32.xlu1 %v9629_v58 }
 0xbd2   : > { %4308 = vrot.lane.b32.xlu0 %v10806_v45, %s7739_s16 }
 0xbd4   : > { %4001 = vadd.xlane.f32.xlu1 %v9634_v25  ;;  %v9640_v10 = vpop.eup %7365 }
 0xbd5   : > { %v9650_v0 = vpop.eup %7367 }
 0xbd6   : > { %v9655_v4 = vpop.eup %7369 }
 0xbd7   : > { %v9660_v41 = vpop.eup %7371 }
 0xbd8   : > { %3997 = vadd.xlane.f32.xlu1 %v9637_v22  ;;  %v9665_v27 = vpop.eup %7373 }
 0xbd9   : > { %v9670_v43 = vpop.eup %7375 }
 0xbdc   : > { %4005 = vadd.xlane.f32.xlu1 %v9640_v10 }
 0xbed   : > { %4310 = vrot.lane.b32.xlu1 %v10807_v52, %s7739_s16 }
 0xbf1   : > { %3991 = vadd.xlane.f32.xlu0 %v9650_v0  ;;  %4276 = vrot.lane.b32.xlu1 %v10810_v31, %s7739_s16 }
 0xbf5   : > { %3989 = vadd.xlane.f32.xlu0 %v9655_v4  ;;  %4280 = vrot.lane.b32.xlu1 %v10812_v48, %s7739_s16 }
 0xbf9   : > { %4284 = vrot.lane.b32.xlu1 %v10814_v12, %s7739_s16  ;;  %4007 = vadd.xlane.f32.xlu0 %v9660_v41 }
 0xbfd   : > { %4288 = vrot.lane.b32.xlu1 %v10816_v2, %s7739_s16  ;;  %4003 = vadd.xlane.f32.xlu0 %v9665_v27 }
 0xc01   : > { %4623 = vrot.lane.b32.xlu1 %v10762_v26, %s7739_s16  ;;  %4009 = vadd.xlane.f32.xlu0 %v9670_v43 }
 0xc05   : > { %4627 = vrot.lane.b32.xlu1 %v10764_v53, %s7739_s16 }
 0xc09   : > { %4633 = vrot.lane.b32.xlu1 %v10767_v20, %s7739_s16 }
 0xc14   : > { %v3984_v61 = vpop.xlane.xlu1 %3983 }
 0xc17   : > { %4312 = vrot.lane.b32.xlu0 %v10808_v5, %s7739_s16 }
 0xc18   : > { %v3980_v15 = vpop.xlane.xlu1 %3979 }
 0xc1b   : > { %4314 = vrot.lane.b32.xlu0 %v10809_v6, %s7739_s16 }
 0xc1c   : > { %v3986_v39 = vpop.xlane.xlu1 %3985 }
 0xc1d   : > { %7377 = vrcp.f32 %v3986_v39 }
 0xc1e   : > { %7379 = vrcp.f32 %v3980_v15 }
 0xc1f   : > { %4278 = vrot.lane.b32.xlu0 %v10811_v1, %s7739_s16  ;;  %7381 = vrcp.f32 %v3984_v61  ;;  %v4341_v61 = vsel %vm1113_vm0, %v9593_v57, 0 }
 0xc20   : > { %v4307_v13 = vpop.permute.xlu1 %4306 }
 0xc21   : > { %v4350_v57 = vsel %vm1113_vm0, %v4307_v13, 0 }
 0xc23   : > { %4282 = vrot.lane.b32.xlu0 %v10813_v23, %s7739_s16 }
 0xc27   : > { %4286 = vrot.lane.b32.xlu0 %v10815_v34, %s7739_s16  ;;  %v7378_v42 = vpop.eup %7377 }
 0xc28   : > { %v7380_v37 = vpop.eup %7379  ;;  %v4030_v33 = vmul.f32 %v7378_v42, %v9603_v24 }
 0xc29   : > { %v7382_v16 = vpop.eup %7381  ;;  %v4027_v46 = vmul.f32 %v7380_v37, %v9600_v44  ;;  %v4344_v44 = vsel %vm1113_vm0, %v9608_v63, 0 }
 0xc2a   : > { %v4029_v19 = vmul.f32 %v7382_v16, %v9597_v18 }
 0xc2b   : > { %4290 = vrot.lane.b32.xlu0 %v10817_v28, %s7739_s16 }
 0xc2c   : > { %v4044_v29 = vpack.c.bf16 %v4030_v33, %v4029_v19 }
 0xc2f   : > { %4621 = vrot.lane.b32.xlu0 %v10761_v40, %s7739_s16 }
 0xc33   : > { %4625 = vrot.lane.b32.xlu0 %v10763_v54, %s7739_s16 }
 0xc37   : > { %4629 = vrot.lane.b32.xlu0 %v10765_v9, %s7739_s16 }
 0xc3b   : > { %4631 = vrot.lane.b32.xlu0 %v10766_v32, %s7739_s16 }
 0xc3f   : > { %4635 = vrot.lane.b32.xlu0 %v10769_v11, %s7739_s16 }
 0xc49   : > { %v3982_v17 = vpop.xlane.xlu0 %3981 }
 0xc4a   : > { %7383 = vrcp.f32 %v3982_v17 }
 0xc4d   : > { %v4309_v17 = vpop.permute.xlu0 %4308 }
 0xc51   : > { %v3988_v3 = vpop.xlane.xlu1 %3987 }
 0xc52   : > { %7385 = vrcp.f32 %v3988_v3 }
 0xc54   : > { %v7384_v35 = vpop.eup %7383 }
 0xc55   : > { %v4028_v14 = vmul.f32 %v7384_v35, %v9613_v21  ;;  %v3994_v7 = vpop.xlane.xlu1 %3993  ;;  %v4347_v21 = vsel %vm1113_vm0, %v4305_v47, 0 }
 0xc56   : > { %7387 = vrcp.f32 %v3994_v7 }
 0xc57   : > { %v4043_v38 = vpack.c.bf16 %v4028_v14, %v4027_v46 }
 0xc59   : > { %6608 = vmatprep.mubr.bf16.mxu0 %v4043_v38  ;;  %v4000_v15 = vpop.xlane.xlu1 %3999 }
 0xc5a   : > { %6609 = vmatmul.mubr.bf16.vlgmr.msra.gmra.mrb[112].mxu0 %v4044_v29 }
 0xc5b   : > { %6625 = vmatpush3.bf16.xpose.msra.mxu0 %v4341_v61 }
 0xc5c   : > { %6865 = vmatprep.subr.msk.bf16.mxu0 %vm1113_vm0, %v9608_v63  ;;  %v4353_v63 = vsel %vm1113_vm0, %v4309_v17, 0  ;;  %v7386_v33 = vpop.eup %7385 }
 0xc5d   : > { %v3996_v24 = vpop.xlane.xlu1 %3995 }
 0xc60   : > { %v7388_v46 = vpop.eup %7387 }
 0xc61   : > { %v4002_v18 = vpop.xlane.xlu1 %4001 }
 0xc63   : > { %6627 = vmatpush3.bf16.xpose.msra.mxu0 %v4344_v44  ;;  %v4031_v44 = vmul.f32 %v7386_v33, %v9618_v51 }
 0xc64   : > { %6866 = vmatprep.subr.msk.bf16.mxu0 %vm1113_vm0, %v4305_v47 }
 0xc65   : > { %v3998_v39 = vpop.xlane.xlu1 %3997 }
 0xc69   : > { %v4006_v42 = vpop.xlane.xlu1 %4005 }
 0xc6b   : > { %6629 = vmatpush3.bf16.xpose.msra.mxu0 %v4347_v21 }
 0xc6c   : > { %6867 = vmatprep.subr.msk.bf16.mxu0 %vm1113_vm0, %v4307_v13 }
 0xc6d   : > { %v4311_v37 = vpop.permute.xlu1 %4310 }
 0xc6e   : > { %v4356_v47 = vsel %vm1113_vm0, %v4311_v37, 0 }
 0xc73   : > { %6631 = vmatpush3.bf16.xpose.msra.mxu0 %v4350_v57 }
 0xc74   : > { %6868 = vmatprep.subr.msk.bf16.mxu0 %vm1113_vm0, %v4309_v17 }
 0xc7b   : > { %6633 = vmatpush3.bf16.xpose.msra.mxu0 %v4353_v63 }
 0xc7c   : > { %6869 = vmatprep.subr.msk.bf16.mxu0 %vm1113_vm0, %v4311_v37 }
 0xc7e   : > { %v3992_v16 = vpop.xlane.xlu0 %3991 }
 0xc7f   : > { %7389 = vrcp.f32 %v3992_v16 }
 0xc80   : > { %7391 = vrcp.f32 %v3998_v39 }
 0xc81   : > { %7393 = vrcp.f32 %v3996_v24 }
 0xc82   : > { %v3990_v13 = vpop.xlane.xlu0 %3989 }
 0xc83   : > { %6635 = vmatpush3.bf16.xpose.msra.mxu0 %v4356_v47  ;;  %7395 = vrcp.f32 %v3990_v13 }
 0xc84   : > { %7397 = vrcp.f32 %v4002_v18  ;;  %v4034_v18 = vmul.f32 %v7388_v46, %v9622_v30 }
 0xc85   : > { %7399 = vrcp.f32 %v4000_v15 }
 0xc86   : > { %v4008_v35 = vpop.xlane.xlu0 %4007  ;;  %7401 = vrcp.f32 %v4006_v42 }
 0xc89   : > { %v7390_v14 = vpop.eup %7389 }
 0xc8a   : > { %v4004_v19 = vpop.xlane.xlu0 %4003  ;;  %v7392_v38 = vpop.eup %7391  ;;  %v4033_v29 = vmul.f32 %v7390_v14, %v9650_v0 }
 0xc8b   : > { %7403 = vrcp.f32 %v4004_v19  ;;  %v7394_v3 = vpop.eup %7393  ;;  %v4036_v21 = vmul.f32 %v7392_v38, %v9637_v22  ;;  %v4277_v22 = vpop.permute.xlu1 %4276 }
 0xc8c   : > { %v4035_v39 = vmul.f32 %v7394_v3, %v9629_v58  ;;  %v4046_v57 = vpack.c.bf16 %v4034_v18, %v4033_v29 }
 0xc8d   : > { %v7396_v7 = vpop.eup %7395 }
 0xc8e   : > { %v4010_v61 = vpop.xlane.xlu0 %4009  ;;  %v4032_v24 = vmul.f32 %v7396_v7, %v9655_v4  ;;  %v7398_v17 = vpop.eup %7397  ;;  %v4047_v63 = vpack.c.bf16 %v4036_v21, %v4035_v39 }
 0xc8f   : > { %7405 = vrcp.f32 %v4010_v61  ;;  %v7400_v0 = vpop.eup %7399  ;;  %v4038_v37 = vmul.f32 %v7398_v17, %v9634_v25  ;;  %v4281_v46 = vpop.permute.xlu1 %4280 }
 0xc90   : > { %v4045_v15 = vpack.c.bf16 %v4032_v24, %v4031_v44  ;;  %7407 = vrcp.f32 %v4008_v35  ;;  %v7402_v4 = vpop.eup %7401  ;;  %v4037_v47 = vmul.f32 %v7400_v0, %v9626_v62  ;;  %v4253_v0 = vld [vmem:[#allocation9 + $0x108] sm:$0xff] }
 0xc91   : > { %v4040_v13 = vmul.f32 %v7402_v4, %v9640_v10  ;;  %v4259_v4 = vld [vmem:[#allocation9 + $0x138] sm:$0xff] }
 0xc92   : > { %6612 = vmatprep.mubr.bf16.mxu0 %v4045_v15  ;;  %v4313_v42 = vpop.permute.xlu0 %4312  ;;  %v4048_v35 = vpack.c.bf16 %v4038_v37, %v4037_v47  ;;  %v4258_v47 = vld [vmem:[#allocation9 + $0x130] sm:$0xff] }
 0xc93   : > { %6613 = vmatmul.mubr.bf16.gmra.mrb[116].mxu0 %v4046_v57  ;;  %6870 = vmatprep.subr.msk.bf16.mxu0 %vm1113_vm0, %v4313_v42  ;;  %v4359_v51 = vsel %vm1113_vm0, %v4313_v42, 0  ;;  %v4285_v29 = vpop.permute.xlu1 %4284 }
 0xc94   : > { %6616 = vmatprep.mubr.bf16.mxu0 %v4047_v63  ;;  %6637 = vmatpush3.bf16.xpose.msra.mxu0 %v4359_v51 }
 0xc95   : > { %v7404_v30 = vpop.eup %7403 }
 0xc96   : > { %v4315_v58 = vpop.permute.xlu0 %4314  ;;  %v4039_v16 = vmul.f32 %v7404_v30, %v9665_v27 }
 0xc97   : > { %6871 = vmatprep.subr.msk.bf16.mxu0 %vm1113_vm0, %v4315_v58  ;;  %v4362_v38 = vsel %vm1113_vm0, %v4315_v58, 0  ;;  %v4289_v10 = vpop.permute.xlu1 %4288 }
 0xc98   : > { %v4049_v19 = vpack.c.bf16 %v4040_v13, %v4039_v16 }
 0xc99   : > { %v7406_v33 = vpop.eup %7405 }
 0xc9a   : > { %v4279_v14 = vpop.permute.xlu0 %4278  ;;  %v7408_v3 = vpop.eup %7407  ;;  %v4042_v25 = vmul.f32 %v7406_v33, %v9670_v43 }
 0xc9b   : > { %6617 = vmatmul.mubr.bf16.gmra.mrb[120].mxu0 %v4048_v35  ;;  %v4041_v7 = vmul.f32 %v7408_v3, %v9660_v41  ;;  %v4624_v21 = vpop.permute.xlu1 %4623 }
 0xc9c   : > { %6620 = vmatprep.mubr.bf16.mxu0 %v4049_v19  ;;  %6639 = vmatpush3.bf16.xpose.msra.mxu0 %v4362_v38 }
 0xc9d   : > { %v4050_v62 = vpack.c.bf16 %v4042_v25, %v4041_v7 }
 0xc9e   : > { %v4283_v27 = vpop.permute.xlu0 %4282 }
 0xc9f   : > { %v4628_v41 = vpop.permute.xlu1 %4627 }
 0xca2   : > { %v4287_v61 = vpop.permute.xlu0 %4286 }
 0xca3   : > { %6621 = vmatmul.mubr.bf16.gmra.mrb[124].mxu0 %v4050_v62  ;;  %v4634_v39 = vpop.permute.xlu1 %4633  ;;  %v4254_v62 = vld [vmem:[#allocation9 + $0x110] sm:$0xff] }
 0xca4   : > { %6640 = vmatprep.mubr.msk.bf16.mxu0 %vm1113_vm0, %v4277_v22 }
 0xca6   : > { %v4291_v44 = vpop.permute.xlu0 %4290 }
 0xcaa   : > { %v4622_v24 = vpop.permute.xlu0 %4621 }
 0xcab   : > { %6641 = vmatmul.mubr.msk.bf16.vlgmr.msra.gmra.mrb[128].mxu0 %vm1113_vm0, %v4279_v14  ;;  %6656 = vmatprep.subr.bf16.mxu1 %v4622_v24 }
 0xcac   : > { %6644 = vmatprep.mubr.msk.bf16.mxu0 %vm1113_vm0, %v4281_v46  ;;  %6657 = vmatpush3.bf16.msra.mxu1 %v4622_v24 }
 0xcad   : > { %6658 = vmatprep.subr.bf16.mxu1 %v4624_v21 }
 0xcae   : > { %v4626_v43 = vpop.permute.xlu0 %4625 }
 0xcb0   : > { %6659 = vmatpush3.bf16.msra.mxu1 %v4624_v21 }
 0xcb1   : > { %6660 = vmatprep.subr.bf16.mxu1 %v4626_v43 }
 0xcb2   : > { %v4630_v18 = vpop.permute.xlu0 %4629 }
 0xcb3   : > { %6645 = vmatmul.mubr.msk.bf16.gmra.mrb[132].mxu0 %vm1113_vm0, %v4283_v27 }
 0xcb4   : > { %6648 = vmatprep.mubr.msk.bf16.mxu0 %vm1113_vm0, %v4285_v29  ;;  %6661 = vmatpush3.bf16.msra.mxu1 %v4626_v43 }
 0xcb5   : > { %6662 = vmatprep.subr.bf16.mxu1 %v4628_v41 }
 0xcb6   : > { %v4632_v15 = vpop.permute.xlu0 %4631 }
 0xcb8   : > { %6663 = vmatpush3.bf16.msra.mxu1 %v4628_v41  ;;  %v4255_v41 = vld [vmem:[#allocation9 + $0x118] sm:$0xff] }
 0xcb9   : > { %6664 = vmatprep.subr.bf16.mxu1 %v4630_v18 }
 0xcba   : > { %v4636_v57 = vpop.permute.xlu0 %4635 }
 0xcbb   : > { %6649 = vmatmul.mubr.msk.bf16.gmra.mrb[136].mxu0 %vm1113_vm0, %v4287_v61  ;;  %v4252_v61 = vld [vmem:[#allocation9 + $0x100] sm:$0xff] }
 0xcbc   : > { %6652 = vmatprep.mubr.msk.bf16.mxu0 %vm1113_vm0, %v4289_v10  ;;  %6665 = vmatpush3.bf16.msra.mxu1 %v4630_v18 }
 0xcbd   : > { %6666 = vmatprep.subr.bf16.mxu1 %v4632_v15 }
 0xcc0   : > { %6667 = vmatpush3.bf16.msra.mxu1 %v4632_v15 }
 0xcc1   : > { %6668 = vmatprep.subr.bf16.mxu1 %v4634_v39 }
 0xcc3   : > { %6653 = vmatmul.mubr.msk.bf16.gmra.mrb[140].mxu0 %vm1113_vm0, %v4291_v44 }
 0xcc4   : > { %6669 = vmatpush3.bf16.msra.mxu1 %v4634_v39 }
 0xcc5   : > { %6670 = vmatprep.subr.bf16.mxu1 %v4636_v57 }
 0xcc8   : > { %6671 = vmatpush3.bf16.msra.mxu1 %v4636_v57 }
 0xd2d   : > { %v9743_v17 = vpop.f32.mrb[112].mxu0 }
 0xd2e   : > { %10834 = vst [vmem:[#allocation41_spill] sm:$0xff] %v9743_v17  ;;  %v9745_v42 = vpop.f32.mrb[113].mxu0 }
 0xd2f   : > { %v9747_v63 = vpop.f32.mrb[114].mxu0 }
 0xd30   : > { %v9751_v51 = vpop.f32.mrb[115].mxu0 }
 0xd66   : > { %v9755_v22 = vpop.f32.mrb[116].mxu0 }
 0xd67   : > { %10835 = vst [vmem:[#allocation35_spill] sm:$0xff] %v9755_v22  ;;  %v9757_v30 = vpop.f32.mrb[117].mxu0 }
 0xd68   : > { %v9759_v37 = vpop.f32.mrb[118].mxu0 }
 0xd69   : > { %10836 = vst [vmem:[#allocation39_spill] sm:$0xff] %v9759_v37  ;;  %v9763_v16 = vpop.f32.mrb[119].mxu0 }
 0xd6e   : > { %v9767_v13 = vpop.f32.mrb[120].mxu0 }
 0xd6f   : > { %10837 = vst [vmem:[#allocation45_spill] sm:$0xff] %v9767_v13  ;;  %v9769_v35 = vpop.f32.mrb[121].mxu0  ;;  %v4262_v13 = vld [vmem:[#allocation9 + $0x150] sm:$0xff] }
 0xd70   : > { %v9771_v33 = vpop.f32.mrb[122].mxu0 }
 0xd71   : > { %10838 = vst [vmem:[#allocation43_spill] sm:$0xff] %v9771_v33  ;;  %v9775_v14 = vpop.f32.mrb[123].mxu0 }
 0xd76   : > { %v9779_v38 = vpop.f32.mrb[124].mxu0 }
 0xd77   : > { %10839 = vst [vmem:[#allocation55_spill] sm:$0xff] %v9779_v38  ;;  %v9781_v3 = vpop.f32.mrb[125].mxu0 }
 0xd78   : > { %10840 = vst [vmem:[#allocation57_spill] sm:$0xff] %v9781_v3  ;;  %v9783_v25 = vpop.f32.mrb[126].mxu0 }
 0xd79   : > { %10841 = vst [vmem:[#allocation59_spill] sm:$0xff] %v9783_v25  ;;  %v9787_v7 = vpop.f32.mrb[127].mxu0  ;;  %v4257_v25 = vld [vmem:[#allocation9 + $0x128] sm:$0xff] }
 0xd7a   : > { %10842 = vst [vmem:[#allocation61_spill] sm:$0xff] %v9787_v7  ;;  %v4256_v7 = vld [vmem:[#allocation9 + $0x120] sm:$0xff] }
 0xd7e   : > { %v6642_v10 = vpop.f32.mrb[128].mxu0 }
 0xd7f   : > { %v9791_v44 = vadd.f32 %v6642_v10, %v4254_v62  ;;  %v4398_v24 = vpop.f32.mrb[129].mxu0 }
 0xd80   : > { %v9793_v21 = vadd.f32 %v4398_v24, %v4252_v61  ;;  %v6643_v43 = vpop.f32.mrb[130].mxu0 }
 0xd81   : > { %4465 = vmax.xlane.f32.xlu0 %v9791_v44  ;;  %v4401_v18 = vpop.f32.mrb[131].mxu0  ;;  %v9797_v15 = vadd.f32 %v6643_v43, %v4255_v41 }
 0xd82   : > { %4461 = vmax.xlane.f32.xlu1 %v9793_v21  ;;  %v9804_v19 = vadd.f32 %v4401_v18, %v4253_v0  ;;  %v4263_v0 = vld [vmem:[#allocation9 + $0x158] sm:$0xff] }
 0xd86   : > { %4467 = vmax.xlane.f32.xlu1 %v9797_v15  ;;  %v6646_v39 = vpop.f32.mrb[132].mxu0 }
 0xd87   : > { %v4414_v57 = vpop.f32.mrb[133].mxu0  ;;  %v9807_v3 = vadd.f32 %v6646_v39, %v4258_v47  ;;  %v4260_v47 = vld [vmem:[#allocation9 + $0x140] sm:$0xff] }
 0xd88   : > { %v6647_v29 = vpop.f32.mrb[134].mxu0 }
 0xd89   : > { %v4417_v27 = vpop.f32.mrb[135].mxu0  ;;  %v9809_v38 = vadd.f32 %v6647_v29, %v4259_v4  ;;  %v4261_v4 = vld [vmem:[#allocation9 + $0x148] sm:$0xff] }
 0xd8e   : > { %v6650_v62 = vpop.f32.mrb[136].mxu0 }
 0xd8f   : > { %v4430_v10 = vpop.f32.mrb[137].mxu0  ;;  %v9816_v18 = vadd.f32 %v6650_v62, %v4262_v13  ;;  %v4265_v62 = vld [vmem:[#allocation9 + $0x168] sm:$0xff] }
 0xd90   : > { %v6651_v46 = vpop.f32.mrb[138].mxu0  ;;  %v9822_v29 = vadd.f32 %v4430_v10, %v4260_v47 }
 0xd91   : > { %v4433_v61 = vpop.f32.mrb[139].mxu0  ;;  %v9818_v39 = vadd.f32 %v6651_v46, %v4263_v0 }
 0xd96   : > { %v6654_v24 = vpop.f32.mrb[140].mxu0 }
 0xd97   : > { %4864 = vrot.lane.b32.xlu0 %v10803_v60, %s7740_s7  ;;  %4862 = vrot.lane.b32.xlu1 %v10802_v59, %s7740_s7  ;;  %v4446_v58 = vpop.f32.mrb[141].mxu0  ;;  %v4415_v59 = vadd.f32 %v4414_v57, %v4256_v7  ;;  %v9813_v60 = vadd.f32 %v4417_v27, %v4257_v25  ;;  %v9824_v7 = vadd.f32 %v4433_v61, %v4261_v4  ;;  %v4266_v25 = vld [vmem:[#allocation9 + $0x170] sm:$0xff]  ;;  %v4267_v27 = vld [vmem:[#allocation9 + $0x178] sm:$0xff]  ;;  %v4264_v57 = vld [vmem:[#allocation9 + $0x160] sm:$0xff] }
 0xd98   : > { %v6655_v43 = vpop.f32.mrb[142].mxu0  ;;  %v9828_v13 = vadd.f32 %v6654_v24, %v4266_v25  ;;  %v9834_v10 = vadd.f32 %v4446_v58, %v4264_v57 }
 0xd99   : > { %v4449_v41 = vpop.f32.mrb[143].mxu0  ;;  %v9830_v46 = vadd.f32 %v6655_v43, %v4267_v27 }
 0xd9a   : > { %v9836_v61 = vadd.f32 %v4449_v41, %v4265_v62 }
 0xdb6   : > { %4463 = vmax.xlane.f32.xlu0 %v9804_v19 }
 0xdba   : > { %4473 = vmax.xlane.f32.xlu0 %v9807_v3 }
 0xdbb   : > { %4475 = vmax.xlane.f32.xlu1 %v9809_v38 }
 0xdbe   : > { %4469 = vmax.xlane.f32.xlu0 %v4415_v59 }
 0xdbf   : > { %4471 = vmax.xlane.f32.xlu1 %v9813_v60 }
 0xdc2   : > { %4481 = vmax.xlane.f32.xlu0 %v9816_v18 }
 0xdc3   : > { %4483 = vmax.xlane.f32.xlu1 %v9818_v39 }
 0xdc6   : > { %4477 = vmax.xlane.f32.xlu0 %v9822_v29 }
 0xdc7   : > { %4479 = vmax.xlane.f32.xlu1 %v9824_v7 }
 0xdca   : > { %4489 = vmax.xlane.f32.xlu0 %v9828_v13 }
 0xdcb   : > { %4491 = vmax.xlane.f32.xlu1 %v9830_v46 }
 0xdce   : > { %4485 = vmax.xlane.f32.xlu0 %v9834_v10 }
 0xdcf   : > { %4487 = vmax.xlane.f32.xlu1 %v9836_v61 }
 0xde4   : > { %4866 = vrot.lane.b32.xlu0 %v10804_v50, %s7740_s7 }
 0xe0e   : > { %v4466_v24 = vpop.xlane.xlu0 %4465 }
 0xe0f   : > { %v4495_v43 = vsub.f32 %v9791_v44, %v4466_v24  ;;  %v4462_v0 = vpop.xlane.xlu1 %4461 }
 0xe10   : > { %v4493_v47 = vsub.f32 %v9793_v21, %v4462_v0 }
 0xe11   : > { %v4513_v4 = vmul.f32 1.442695, %v4495_v43 }
 0xe12   : > { %v4509_v25 = vmul.f32 1.442695, %v4493_v47 }
 0xe13   : > { %7409 = vpow2.f32 %v4513_v4  ;;  %v4468_v58 = vpop.xlane.xlu1 %4467 }
 0xe14   : > { %v4496_v41 = vsub.f32 %v9797_v15, %v4468_v58  ;;  %7411 = vpow2.f32 %v4509_v25  ;;  %v9860_v15 = vpop.permute.xlu0 %4864 }
 0xe16   : > { %v4515_v27 = vmul.f32 1.442695, %v4496_v41 }
 0xe17   : > { %v9845_v57 = vpop.permute.xlu1 %4862 }
 0xe18   : > { %6872 = vmatprep.subr.msk.bf16.mxu1 %vm1113_vm0, %v9845_v57  ;;  %7413 = vpow2.f32 %v4515_v27 }
 0xe1d   : > { %v9849_v50 = vpop.eup %7409 }
 0xe1e   : > { %4545 = vadd.xlane.f32.xlu1 %v9849_v50  ;;  %v9852_v44 = vpop.eup %7411 }
 0xe22   : > { %4541 = vadd.xlane.f32.xlu1 %v9852_v44  ;;  %v9855_v21 = vpop.eup %7413 }
 0xe26   : > { %4547 = vadd.xlane.f32.xlu1 %v9855_v21 }
 0xe37   : > { %4868 = vrot.lane.b32.xlu1 %v10805_v56, %s7740_s7 }
 0xe43   : > { %v4464_v62 = vpop.xlane.xlu0 %4463 }
 0xe44   : > { %v4494_v24 = vsub.f32 %v9804_v19, %v4464_v62 }
 0xe46   : > { %v4511_v43 = vmul.f32 1.442695, %v4494_v24 }
 0xe47   : > { %v4474_v0 = vpop.xlane.xlu0 %4473 }
 0xe48   : > { %7415 = vpow2.f32 %v4511_v43  ;;  %v4476_v47 = vpop.xlane.xlu1 %4475 }
 0xe49   : > { %v4500_v25 = vsub.f32 %v9809_v38, %v4476_v47 }
 0xe4b   : > { %v4470_v4 = vpop.xlane.xlu0 %4469  ;;  %v4523_v22 = vmul.f32 1.442695, %v4500_v25 }
 0xe4c   : > { %v4497_v58 = vsub.f32 %v4415_v59, %v4470_v4  ;;  %v4472_v41 = vpop.xlane.xlu1 %4471 }
 0xe4e   : > { %v4517_v27 = vmul.f32 1.442695, %v4497_v58 }
 0xe4f   : > { %v4482_v33 = vpop.xlane.xlu0 %4481 }
 0xe50   : > { %7417 = vpow2.f32 %v4517_v27  ;;  %v4503_v56 = vsub.f32 %v9816_v18, %v4482_v33  ;;  %v4484_v37 = vpop.xlane.xlu1 %4483 }
 0xe51   : > { %7419 = vpow2.f32 %v4523_v22  ;;  %v4504_v38 = vsub.f32 %v9818_v39, %v4484_v37 }
 0xe52   : > { %v9865_v17 = vpop.eup %7415  ;;  %v4529_v62 = vmul.f32 1.442695, %v4503_v56 }
 0xe53   : > { %4543 = vadd.xlane.f32.xlu0 %v9865_v17  ;;  %v4478_v19 = vpop.xlane.xlu0 %4477  ;;  %v4531_v33 = vmul.f32 1.442695, %v4504_v38 }
 0xe54   : > { %v4501_v24 = vsub.f32 %v9822_v29, %v4478_v19  ;;  %v4480_v43 = vpop.xlane.xlu1 %4479  ;;  %7421 = vpow2.f32 %v4529_v62  ;;  %v4499_v19 = vsub.f32 %v9807_v3, %v4474_v0 }
 0xe55   : > { %v4502_v18 = vsub.f32 %v9824_v7, %v4480_v43  ;;  %v4498_v43 = vsub.f32 %v9813_v60, %v4472_v41 }
 0xe56   : > { %v4525_v59 = vmul.f32 1.442695, %v4501_v24  ;;  %v4521_v24 = vmul.f32 1.442695, %v4499_v19 }
 0xe57   : > { %v4527_v22 = vmul.f32 1.442695, %v4502_v18  ;;  %v4490_v62 = vpop.xlane.xlu0 %4489 }
 0xe58   : > { %v4492_v47 = vpop.xlane.xlu1 %4491  ;;  %7423 = vpow2.f32 %v4525_v59  ;;  %v4507_v38 = vsub.f32 %v9828_v13, %v4490_v62  ;;  %v4903_v62 = vsel %vm1113_vm0, %v9845_v57, 0 }
 0xe59   : > { %7425 = vpow2.f32 %v4531_v33 }
 0xe5a   : > { %v9870_v4 = vpop.eup %7417  ;;  %7427 = vpow2.f32 %v4527_v22  ;;  %v4537_v33 = vmul.f32 1.442695, %v4507_v38 }
 0xe5b   : > { %4549 = vadd.xlane.f32.xlu1 %v9870_v4  ;;  %v9874_v58 = vpop.eup %7419  ;;  %v4486_v59 = vpop.xlane.xlu0 %4485 }
 0xe5c   : > { %v4488_v25 = vpop.xlane.xlu1 %4487  ;;  %v4505_v18 = vsub.f32 %v9834_v10, %v4486_v59 }
 0xe5d   : > { %v4506_v29 = vsub.f32 %v9836_v61, %v4488_v25  ;;  %v4508_v25 = vsub.f32 %v9830_v46, %v4492_v47 }
 0xe5e   : > { %v9878_v37 = vpop.eup %7421  ;;  %v4533_v3 = vmul.f32 1.442695, %v4505_v18 }
 0xe5f   : > { %4555 = vadd.xlane.f32.xlu1 %v9874_v58  ;;  %v4535_v39 = vmul.f32 1.442695, %v4506_v29  ;;  %v4539_v60 = vmul.f32 1.442695, %v4508_v25 }
 0xe61   : > { %7429 = vpow2.f32 %v4535_v39 }
 0xe62   : > { %v9881_v27 = vpop.eup %7423  ;;  %7431 = vpow2.f32 %v4521_v24 }
 0xe63   : > { %4561 = vadd.xlane.f32.xlu1 %v9878_v37  ;;  %v9886_v7 = vpop.eup %7425 }
 0xe64   : > { %v9889_v56 = vpop.eup %7427 }
 0xe67   : > { %4557 = vadd.xlane.f32.xlu1 %v9881_v27 }
 0xe69   : > { %4870 = vrot.lane.b32.xlu0 %v10806_v45, %s7740_s7  ;;  %v4519_v45 = vmul.f32 1.442695, %v4498_v43 }
 0xe6b   : > { %4563 = vadd.xlane.f32.xlu1 %v9886_v7  ;;  %v9892_v61 = vpop.eup %7429  ;;  %7433 = vpow2.f32 %v4519_v45 }
 0xe6c   : > { %7435 = vpow2.f32 %v4537_v33  ;;  %v9902_v0 = vpop.eup %7431 }
 0xe6d   : > { %7437 = vpow2.f32 %v4533_v3 }
 0xe6e   : > { %7439 = vpow2.f32 %v4539_v60 }
 0xe6f   : > { %4559 = vadd.xlane.f32.xlu1 %v9889_v56 }
 0xe73   : > { %4567 = vadd.xlane.f32.xlu1 %v9892_v61 }
 0xe75   : > { %v9907_v13 = vpop.eup %7433 }
 0xe84   : > { %4872 = vrot.lane.b32.xlu1 %v10807_v52, %s7740_s7  ;;  %v9912_v52 = vpop.eup %7435 }
 0xe85   : > { %v9917_v46 = vpop.eup %7437 }
 0xe88   : > { %4553 = vadd.xlane.f32.xlu0 %v9902_v0  ;;  %4838 = vrot.lane.b32.xlu1 %v10810_v31, %s7740_s7  ;;  %v9922_v31 = vpop.eup %7439 }
 0xe8c   : > { %4551 = vadd.xlane.f32.xlu0 %v9907_v13  ;;  %4842 = vrot.lane.b32.xlu1 %v10812_v48, %s7740_s7 }
 0xe90   : > { %4846 = vrot.lane.b32.xlu1 %v10814_v12, %s7740_s7  ;;  %4569 = vadd.xlane.f32.xlu0 %v9912_v52  ;;  %v4867_v12 = vpop.permute.xlu0 %4866 }
 0xe94   : > { %4850 = vrot.lane.b32.xlu1 %v10816_v2, %s7740_s7  ;;  %4565 = vadd.xlane.f32.xlu0 %v9917_v46 }
 0xe98   : > { %5185 = vrot.lane.b32.xlu1 %v10762_v26, %s7740_s7  ;;  %4571 = vadd.xlane.f32.xlu0 %v9922_v31 }
 0xeab   : > { %v4546_v26 = vpop.xlane.xlu1 %4545 }
 0xeae   : > { %4874 = vrot.lane.b32.xlu0 %v10808_v5, %s7740_s7 }
 0xeaf   : > { %v4542_v5 = vpop.xlane.xlu1 %4541 }
 0xeb2   : > { %4876 = vrot.lane.b32.xlu0 %v10809_v6, %s7740_s7 }
 0xeb3   : > { %v4548_v48 = vpop.xlane.xlu1 %4547 }
 0xeb4   : > { %7441 = vrcp.f32 %v4548_v48 }
 0xeb5   : > { %7443 = vrcp.f32 %v4542_v5 }
 0xeb6   : > { %4840 = vrot.lane.b32.xlu0 %v10811_v1, %s7740_s7  ;;  %7445 = vrcp.f32 %v4546_v26 }
 0xeb7   : > { %v4869_v1 = vpop.permute.xlu1 %4868 }
 0xeb8   : > { %v4912_v57 = vsel %vm1113_vm0, %v4869_v1, 0 }
 0xeba   : > { %4844 = vrot.lane.b32.xlu0 %v10813_v23, %s7740_s7 }
 0xebe   : > { %4848 = vrot.lane.b32.xlu0 %v10815_v34, %s7740_s7  ;;  %v7442_v23 = vpop.eup %7441 }
 0xebf   : > { %v7444_v10 = vpop.eup %7443 }
 0xec0   : > { %v7446_v34 = vpop.eup %7445  ;;  %v4589_v47 = vmul.f32 %v7444_v10, %v9852_v44  ;;  %v4906_v44 = vsel %vm1113_vm0, %v9860_v15, 0 }
 0xec1   : > { %v4591_v22 = vmul.f32 %v7446_v34, %v9849_v50  ;;  %v4909_v50 = vsel %vm1113_vm0, %v4867_v12, 0 }
 0xec2   : > { %4852 = vrot.lane.b32.xlu0 %v10817_v28, %s7740_s7  ;;  %v4592_v28 = vmul.f32 %v7442_v23, %v9855_v21 }
 0xec4   : > { %v4606_v19 = vpack.c.bf16 %v4592_v28, %v4591_v22 }
 0xec6   : > { %5183 = vrot.lane.b32.xlu0 %v10761_v40, %s7740_s7 }
 0xee0   : > { %v4544_v6 = vpop.xlane.xlu0 %4543 }
 0xee1   : > { %7447 = vrcp.f32 %v4544_v6 }
 0xee4   : > { %v4871_v45 = vpop.permute.xlu0 %4870 }
 0xee8   : > { %v4550_v2 = vpop.xlane.xlu1 %4549 }
 0xee9   : > { %7449 = vrcp.f32 %v4550_v2 }
 0xeeb   : > { %v7448_v41 = vpop.eup %7447 }
 0xeec   : > { %v4590_v40 = vmul.f32 %v7448_v41, %v9865_v17  ;;  %v4556_v29 = vpop.xlane.xlu1 %4555 }
 0xeed   : > { %7451 = vrcp.f32 %v4556_v29 }
 0xeee   : > { %v4605_v39 = vpack.c.bf16 %v4590_v40, %v4589_v47 }
 0xef0   : > { %6672 = vmatprep.mubr.bf16.mxu1 %v4605_v39  ;;  %v4562_v24 = vpop.xlane.xlu1 %4561 }
 0xef1   : > { %6673 = vmatmul.mubr.bf16.vlgmr.msra.gmra.mrb[160].mxu1 %v4606_v19 }
 0xef2   : > { %6689 = vmatpush3.bf16.xpose.msra.mxu1 %v4903_v62 }
 0xef3   : > { %6873 = vmatprep.subr.msk.bf16.mxu1 %vm1113_vm0, %v9860_v15  ;;  %v4915_v15 = vsel %vm1113_vm0, %v4871_v45, 0  ;;  %v7450_v60 = vpop.eup %7449 }
 0xef4   : > { %v4558_v21 = vpop.xlane.xlu1 %4557  ;;  %v4593_v10 = vmul.f32 %v7450_v60, %v9870_v4 }
 0xef7   : > { %v7452_v26 = vpop.eup %7451 }
 0xef8   : > { %v4564_v17 = vpop.xlane.xlu1 %4563  ;;  %v4596_v28 = vmul.f32 %v7452_v26, %v9874_v58 }
 0xefa   : > { %6691 = vmatpush3.bf16.xpose.msra.mxu1 %v4906_v44 }
 0xefb   : > { %6874 = vmatprep.subr.msk.bf16.mxu1 %vm1113_vm0, %v4867_v12 }
 0xefc   : > { %v4560_v43 = vpop.xlane.xlu1 %4559 }
 0xf00   : > { %v4568_v38 = vpop.xlane.xlu1 %4567 }
 0xf02   : > { %6693 = vmatpush3.bf16.xpose.msra.mxu1 %v4909_v50 }
 0xf03   : > { %6875 = vmatprep.subr.msk.bf16.mxu1 %vm1113_vm0, %v4869_v1 }
 0xf04   : > { %v4873_v59 = vpop.permute.xlu1 %4872 }
 0xf05   : > { %v4918_v18 = vsel %vm1113_vm0, %v4873_v59, 0 }
 0xf0a   : > { %6695 = vmatpush3.bf16.xpose.msra.mxu1 %v4912_v57 }
 0xf0b   : > { %6876 = vmatprep.subr.msk.bf16.mxu1 %vm1113_vm0, %v4871_v45 }
 0xf12   : > { %6697 = vmatpush3.bf16.xpose.msra.mxu1 %v4915_v15 }
 0xf13   : > { %6877 = vmatprep.subr.msk.bf16.mxu1 %vm1113_vm0, %v4873_v59 }
 0xf15   : > { %v4554_v33 = vpop.xlane.xlu0 %4553 }
 0xf16   : > { %7453 = vrcp.f32 %v4554_v33 }
 0xf17   : > { %7455 = vrcp.f32 %v4560_v43 }
 0xf18   : > { %7457 = vrcp.f32 %v4558_v21 }
 0xf19   : > { %v4552_v25 = vpop.xlane.xlu0 %4551 }
 0xf1a   : > { %6699 = vmatpush3.bf16.xpose.msra.mxu1 %v4918_v18  ;;  %7459 = vrcp.f32 %v4552_v25 }
 0xf1b   : > { %7461 = vrcp.f32 %v4564_v17 }
 0xf1c   : > { %7463 = vrcp.f32 %v4562_v24 }
 0xf1d   : > { %v4570_v3 = vpop.xlane.xlu0 %4569  ;;  %7465 = vrcp.f32 %v4568_v38 }
 0xf20   : > { %v7454_v5 = vpop.eup %7453 }
 0xf21   : > { %v4566_v48 = vpop.xlane.xlu0 %4565  ;;  %v7456_v12 = vpop.eup %7455  ;;  %v4595_v23 = vmul.f32 %v7454_v5, %v9902_v0 }
 0xf22   : > { %7467 = vrcp.f32 %v4566_v48  ;;  %v7458_v6 = vpop.eup %7457  ;;  %v4598_v41 = vmul.f32 %v7456_v12, %v9889_v56  ;;  %v4839_v56 = vpop.permute.xlu1 %4838 }
 0xf23   : > { %v4597_v40 = vmul.f32 %v7458_v6, %v9881_v27  ;;  %v4608_v22 = vpack.c.bf16 %v4596_v28, %v4595_v23 }
 0xf24   : > { %v7460_v1 = vpop.eup %7459 }
 0xf25   : > { %v4572_v2 = vpop.xlane.xlu0 %4571  ;;  %v4594_v34 = vmul.f32 %v7460_v1, %v9907_v13  ;;  %v7462_v29 = vpop.eup %7461  ;;  %v4609_v19 = vpack.c.bf16 %v4598_v41, %v4597_v40 }
 0xf26   : > { %7469 = vrcp.f32 %v4572_v2  ;;  %v7464_v0 = vpop.eup %7463  ;;  %v4600_v62 = vmul.f32 %v7462_v29, %v9886_v7  ;;  %v4843_v43 = vpop.permute.xlu1 %4842 }
 0xf27   : > { %v4607_v47 = vpack.c.bf16 %v4594_v34, %v4593_v10  ;;  %7471 = vrcp.f32 %v4570_v3  ;;  %v7466_v13 = vpop.eup %7465  ;;  %v4599_v44 = vmul.f32 %v7464_v0, %v9878_v37 }
 0xf28   : > { %v4602_v21 = vmul.f32 %v7466_v13, %v9892_v61 }
 0xf29   : > { %6676 = vmatprep.mubr.bf16.mxu1 %v4607_v47  ;;  %v4875_v39 = vpop.permute.xlu0 %4874  ;;  %v4610_v17 = vpack.c.bf16 %v4600_v62, %v4599_v44  ;;  %v4814_v62 = vld [vmem:[#allocation9 + $0x180] sm:$0xff] }
 0xf2a   : > { %6677 = vmatmul.mubr.bf16.gmra.mrb[164].mxu1 %v4608_v22  ;;  %6878 = vmatprep.subr.msk.bf16.mxu1 %vm1113_vm0, %v4875_v39  ;;  %v4921_v4 = vsel %vm1113_vm0, %v4875_v39, 0  ;;  %v4847_v33 = vpop.permute.xlu1 %4846 }
 0xf2b   : > { %6680 = vmatprep.mubr.bf16.mxu1 %v4609_v19  ;;  %6701 = vmatpush3.bf16.xpose.msra.mxu1 %v4921_v4 }
 0xf2c   : > { %v7468_v58 = vpop.eup %7467 }
 0xf2d   : > { %v4877_v27 = vpop.permute.xlu0 %4876  ;;  %v4601_v24 = vmul.f32 %v7468_v58, %v9917_v46  ;;  %v4816_v58 = vld [vmem:[#allocation9 + $0x190] sm:$0xff] }
 0xf2e   : > { %6879 = vmatprep.subr.msk.bf16.mxu1 %vm1113_vm0, %v4877_v27  ;;  %v4924_v38 = vsel %vm1113_vm0, %v4877_v27, 0  ;;  %v4851_v61 = vpop.permute.xlu1 %4850 }
 0xf2f   : > { %v4611_v45 = vpack.c.bf16 %v4602_v21, %v4601_v24  ;;  %v4815_v21 = vld [vmem:[#allocation9 + $0x188] sm:$0xff] }
 0xf30   : > { %v7470_v50 = vpop.eup %7469 }
 0xf31   : > { %v4841_v57 = vpop.permute.xlu0 %4840  ;;  %v7472_v15 = vpop.eup %7471  ;;  %v4604_v7 = vmul.f32 %v7470_v50, %v9922_v31 }
 0xf32   : > { %6681 = vmatmul.mubr.bf16.gmra.mrb[168].mxu1 %v4610_v17  ;;  %v4603_v59 = vmul.f32 %v7472_v15, %v9912_v52  ;;  %v5186_v60 = vpop.permute.xlu1 %5185  ;;  %v4820_v15 = vld [vmem:[#allocation9 + $0x1b0] sm:$0xff] }
 0xf33   : > { %6684 = vmatprep.mubr.bf16.mxu1 %v4611_v45  ;;  %6703 = vmatpush3.bf16.xpose.msra.mxu1 %v4924_v38 }
 0xf34   : > { %v4612_v37 = vpack.c.bf16 %v4604_v7, %v4603_v59 }
 0xf35   : > { %v4845_v46 = vpop.permute.xlu0 %4844 }
 0xf39   : > { %v4849_v18 = vpop.permute.xlu0 %4848 }
 0xf3a   : > { %6685 = vmatmul.mubr.bf16.gmra.mrb[172].mxu1 %v4612_v37  ;;  %v4818_v37 = vld [vmem:[#allocation9 + $0x1a0] sm:$0xff] }
 0xf3b   : > { %6704 = vmatprep.mubr.msk.bf16.mxu1 %vm1113_vm0, %v4839_v56 }
 0xf3d   : > { %v4853_v25 = vpop.permute.xlu0 %4852 }
 0xf41   : > { %v5184_v3 = vpop.permute.xlu0 %5183 }
 0xf42   : > { %6705 = vmatmul.mubr.msk.bf16.vlgmr.msra.gmra.mrb[176].mxu1 %vm1113_vm0, %v4841_v57  ;;  %6720 = vmatprep.subr.bf16.mxu0 %v5184_v3 }
 0xf43   : > { %6708 = vmatprep.mubr.msk.bf16.mxu1 %vm1113_vm0, %v4843_v43  ;;  %6721 = vmatpush3.bf16.msra.mxu0 %v5184_v3  ;;  %v4817_v43 = vld [vmem:[#allocation9 + $0x198] sm:$0xff]  ;;  %v4819_v3 = vld [vmem:[#allocation9 + $0x1a8] sm:$0xff] }
 0xf44   : > { %6722 = vmatprep.subr.bf16.mxu0 %v5186_v60 }
 0xf47   : > { %6723 = vmatpush3.bf16.msra.mxu0 %v5186_v60 }
 0xf4a   : > { %6709 = vmatmul.mubr.msk.bf16.gmra.mrb[180].mxu1 %vm1113_vm0, %v4845_v46  ;;  %v4821_v46 = vld [vmem:[#allocation9 + $0x1b8] sm:$0xff] }
 0xf4b   : > { %6712 = vmatprep.mubr.msk.bf16.mxu1 %vm1113_vm0, %v4847_v33 }
 0xf52   : > { %6713 = vmatmul.mubr.msk.bf16.gmra.mrb[184].mxu1 %vm1113_vm0, %v4849_v18 }
 0xf53   : > { %6716 = vmatprep.mubr.msk.bf16.mxu1 %vm1113_vm0, %v4851_v61 }
 0xf5a   : > { %6717 = vmatmul.mubr.msk.bf16.gmra.mrb[188].mxu1 %vm1113_vm0, %v4853_v25 }
 0xfc4   : > { %v9983_v52 = vpop.f32.mrb[160].mxu1 }
 0xfc5   : > { %v9985_v31 = vpop.f32.mrb[161].mxu1 }
 0xfc6   : > { %v9987_v26 = vpop.f32.mrb[162].mxu1 }
 0xfc7   : > { %v4743_v5 = vpack.c.bf16 %v9987_v26, %v9983_v52  ;;  %v9991_v48 = vpop.f32.mrb[163].mxu1 }
 0xfc8   : > { %v4742_v12 = vpack.c.bf16 %v9991_v48, %v9985_v31  ;;  %v10884_v31 = vld [vmem:[#allocation30_spill] sm:$0xff] }
 0xffd   : > { %v9995_v6 = vpop.f32.mrb[164].mxu1 }
 0xffe   : > { %v9997_v1 = vpop.f32.mrb[165].mxu1 }
 0xfff   : > { %v9999_v23 = vpop.f32.mrb[166].mxu1 }
0x1000   : > { %v4745_v2 = vpack.c.bf16 %v9999_v23, %v9995_v6  ;;  %v10003_v10 = vpop.f32.mrb[167].mxu1 }
0x1001   : > { %v4744_v34 = vpack.c.bf16 %v10003_v10, %v9997_v1  ;;  %v10893_v10 = vld [vmem:[#allocation37_spill] sm:$0xff] }
0x1005   : > { %v10007_v41 = vpop.f32.mrb[168].mxu1 }
0x1006   : > { %v10009_v28 = vpop.f32.mrb[169].mxu1 }
0x1007   : > { %v10011_v47 = vpop.f32.mrb[170].mxu1 }
0x1008   : > { %v4747_v40 = vpack.c.bf16 %v10011_v47, %v10007_v41  ;;  %v10015_v22 = vpop.f32.mrb[171].mxu1 }
0x100d   : > { %v10019_v39 = vpop.f32.mrb[172].mxu1 }
0x100e   : > { %v10021_v19 = vpop.f32.mrb[173].mxu1 }
0x100f   : > { %v10023_v0 = vpop.f32.mrb[174].mxu1 }
0x1010   : > { %v10027_v13 = vpop.f32.mrb[175].mxu1 }
0x1015   : > { %v6706_v27 = vpop.f32.mrb[176].mxu1 }
0x1016   : > { %v10031_v24 = vadd.f32 %v6706_v27, %v4816_v58  ;;  %v4960_v44 = vpop.f32.mrb[177].mxu1  ;;  %v4824_v58 = vld [vmem:[#allocation9 + $0x1d0] sm:$0xff] }
0x1017   : > { %v10033_v17 = vadd.f32 %v4960_v44, %v4814_v62  ;;  %v6707_v50 = vpop.f32.mrb[178].mxu1  ;;  %v4825_v44 = vld [vmem:[#allocation9 + $0x1d8] sm:$0xff] }
0x1018   : > { %5027 = vmax.xlane.f32.xlu0 %v10031_v24  ;;  %v4963_v57 = vpop.f32.mrb[179].mxu1  ;;  %v10039_v38 = vadd.f32 %v6707_v50, %v4817_v43  ;;  %v4822_v43 = vld [vmem:[#allocation9 + $0x1c0] sm:$0xff] }
0x1019   : > { %v10036_v45 = vadd.f32 %v4963_v57, %v4815_v21  ;;  %5023 = vmax.xlane.f32.xlu1 %v10033_v17 }
0x101c   : > { %5025 = vmax.xlane.f32.xlu0 %v10036_v45 }
0x101d   : > { %5029 = vmax.xlane.f32.xlu1 %v10039_v38  ;;  %v6710_v7 = vpop.f32.mrb[180].mxu1 }
0x101e   : > { %v10043_v59 = vadd.f32 %v6710_v7, %v4820_v15  ;;  %v4976_v33 = vpop.f32.mrb[181].mxu1 }
0x101f   : > { %v6711_v18 = vpop.f32.mrb[182].mxu1  ;;  %v10048_v60 = vadd.f32 %v4976_v33, %v4818_v37  ;;  %v4828_v37 = vld [vmem:[#allocation9 + $0x1f0] sm:$0xff] }
0x1020   : > { %v10045_v61 = vadd.f32 %v6711_v18, %v4821_v46  ;;  %5035 = vmax.xlane.f32.xlu0 %v10043_v59  ;;  %v4979_v25 = vpop.f32.mrb[183].mxu1  ;;  %v4823_v46 = vld [vmem:[#allocation9 + $0x1c8] sm:$0xff] }
0x1021   : > { %v10051_v62 = vadd.f32 %v4979_v25, %v4819_v3 }
0x1022   : > { %5037 = vmax.xlane.f32.xlu1 %v10045_v61 }
0x1024   : > { %5031 = vmax.xlane.f32.xlu0 %v10048_v60 }
0x1025   : > { %v6714_v27 = vpop.f32.mrb[184].mxu1 }
0x1026   : > { %v10054_v21 = vadd.f32 %v6714_v27, %v4824_v58  ;;  %5033 = vmax.xlane.f32.xlu1 %v10051_v62  ;;  %v4992_v50 = vpop.f32.mrb[185].mxu1  ;;  %v4826_v27 = vld [vmem:[#allocation9 + $0x1e0] sm:$0xff] }
0x1027   : > { %v6715_v57 = vpop.f32.mrb[186].mxu1  ;;  %v10060_v33 = vadd.f32 %v4992_v50, %v4822_v43  ;;  %v4829_v43 = vld [vmem:[#allocation9 + $0x1f8] sm:$0xff] }
0x1028   : > { %v10057_v15 = vadd.f32 %v6715_v57, %v4825_v44  ;;  %5043 = vmax.xlane.f32.xlu0 %v10054_v21  ;;  %v4995_v7 = vpop.f32.mrb[187].mxu1 }
0x1029   : > { %v10063_v18 = vadd.f32 %v4995_v7, %v4823_v46  ;;  %v4827_v46 = vld [vmem:[#allocation9 + $0x1e8] sm:$0xff] }
0x102a   : > { %5045 = vmax.xlane.f32.xlu1 %v10057_v15 }
0x102c   : > { %5039 = vmax.xlane.f32.xlu0 %v10060_v33 }
0x102d   : > { %v6718_v25 = vpop.f32.mrb[188].mxu1 }
0x102e   : > { %v10066_v3 = vadd.f32 %v6718_v25, %v4828_v37  ;;  %5041 = vmax.xlane.f32.xlu1 %v10063_v18  ;;  %v5008_v58 = vpop.f32.mrb[189].mxu1 }
0x102f   : > { %v6719_v44 = vpop.f32.mrb[190].mxu1  ;;  %v10070_v50 = vadd.f32 %v5008_v58, %v4826_v27 }
0x1030   : > { %5051 = vmax.xlane.f32.xlu0 %v10066_v3  ;;  %v5011_v57 = vpop.f32.mrb[191].mxu1  ;;  %v10081_v7 = vadd.f32 %v6719_v44, %v4829_v43 }
0x1031   : > { %v10084_v37 = vadd.f32 %v5011_v57, %v4827_v46 }
0x1034   : > { %5047 = vmax.xlane.f32.xlu0 %v10070_v50 }
0x103f   : > { %5191 = vrot.lane.b32.xlu1 %v10765_v9, %s7740_s7 }
0x104a   : > { %5187 = vrot.lane.b32.xlu0 %v10763_v54, %s7740_s7 }
0x104e   : > { %5189 = vrot.lane.b32.xlu0 %v10764_v53, %s7740_s7 }
0x1052   : > { %5195 = vrot.lane.b32.xlu0 %v10767_v20, %s7740_s7 }
0x1063   : > { %5053 = vmax.xlane.f32.xlu1 %v10081_v7 }
0x1067   : > { %5049 = vmax.xlane.f32.xlu1 %v10084_v37 }
0x1078   : > { %5193 = vrot.lane.b32.xlu1 %v10766_v32, %s7740_s7 }
0x10a5   : > { %v5028_v54 = vpop.xlane.xlu0 %5027 }
0x10a6   : > { %v5057_v9 = vsub.f32 %v10031_v24, %v5028_v54  ;;  %v5024_v53 = vpop.xlane.xlu1 %5023 }
0x10a7   : > { %v5055_v25 = vsub.f32 %v10033_v17, %v5024_v53 }
0x10a8   : > { %v5075_v20 = vmul.f32 1.442695, %v5057_v9 }
0x10a9   : > { %v5026_v58 = vpop.xlane.xlu0 %5025  ;;  %v5071_v27 = vmul.f32 1.442695, %v5055_v25 }
0x10aa   : > { %7473 = vpow2.f32 %v5075_v20  ;;  %v5030_v44 = vpop.xlane.xlu1 %5029  ;;  %v5056_v57 = vsub.f32 %v10036_v45, %v5026_v58 }
0x10ab   : > { %v5058_v43 = vsub.f32 %v10039_v38, %v5030_v44  ;;  %7475 = vpow2.f32 %v5071_v27 }
0x10ac   : > { %v5073_v24 = vmul.f32 1.442695, %v5056_v57 }
0x10ad   : > { %v5077_v46 = vmul.f32 1.442695, %v5058_v43  ;;  %v5036_v56 = vpop.xlane.xlu0 %5035 }
0x10ae   : > { %v5061_v32 = vsub.f32 %v10043_v59, %v5036_v56 }
0x10af   : > { %v5038_v4 = vpop.xlane.xlu1 %5037  ;;  %7477 = vpow2.f32 %v5077_v46 }
0x10b0   : > { %v5083_v29 = vmul.f32 1.442695, %v5061_v32  ;;  %v5062_v17 = vsub.f32 %v10045_v61, %v5038_v4 }
0x10b1   : > { %v5032_v54 = vpop.xlane.xlu0 %5031 }
0x10b2   : > { %7479 = vpow2.f32 %v5083_v29  ;;  %v5059_v9 = vsub.f32 %v10048_v60, %v5032_v54  ;;  %v5085_v20 = vmul.f32 1.442695, %v5062_v17 }
0x10b3   : > { %v5034_v53 = vpop.xlane.xlu1 %5033  ;;  %7481 = vpow2.f32 %v5073_v24 }
0x10b4   : > { %v10096_v25 = vpop.eup %7473  ;;  %v5079_v38 = vmul.f32 1.442695, %v5059_v9  ;;  %v5060_v45 = vsub.f32 %v10051_v62, %v5034_v53 }
0x10b5   : > { %5107 = vadd.xlane.f32.xlu1 %v10096_v25  ;;  %v5044_v56 = vpop.xlane.xlu0 %5043  ;;  %v10101_v61 = vpop.eup %7475 }
0x10b6   : > { %7483 = vpow2.f32 %v5079_v38  ;;  %v5081_v59 = vmul.f32 1.442695, %v5060_v45  ;;  %v5065_v58 = vsub.f32 %v10054_v21, %v5044_v56 }
0x10b7   : > { %v5046_v4 = vpop.xlane.xlu1 %5045  ;;  %7485 = vpow2.f32 %v5085_v20 }
0x10b8   : > { %7487 = vpow2.f32 %v5081_v59  ;;  %v5091_v60 = vmul.f32 1.442695, %v5065_v58  ;;  %v5066_v21 = vsub.f32 %v10057_v15, %v5046_v4 }
0x10b9   : > { %5103 = vadd.xlane.f32.xlu1 %v10101_v61  ;;  %v5040_v29 = vpop.xlane.xlu0 %5039  ;;  %v10105_v27 = vpop.eup %7477 }
0x10ba   : > { %v5063_v62 = vsub.f32 %v10060_v33, %v5040_v29  ;;  %7489 = vpow2.f32 %v5091_v60 }
0x10bb   : > { %v5042_v44 = vpop.xlane.xlu1 %5041 }
0x10bc   : > { %v10107_v43 = vpop.eup %7479  ;;  %v5064_v57 = vsub.f32 %v10063_v18, %v5042_v44  ;;  %v5087_v32 = vmul.f32 1.442695, %v5063_v62  ;;  %v5093_v18 = vmul.f32 1.442695, %v5066_v21  ;;  %v10843_v44 = vpack.c.bf16 %v9003_v49, %v8997_v8 }
0x10bd   : > { %5109 = vadd.xlane.f32.xlu1 %v10105_v27  ;;  %5115 = vadd.xlane.f32.xlu0 %v10107_v43  ;;  %v5052_v46 = vpop.xlane.xlu0 %5051  ;;  %v10114_v33 = vpop.eup %7481 }
0x10be   : > { %v5089_v24 = vmul.f32 1.442695, %v5064_v57  ;;  %v5069_v17 = vsub.f32 %v10066_v3, %v5052_v46  ;;  %v10844_v57 = vpack.c.bf16 %v9057_v36, %v9051_v55  ;;  %v10845_v46 = vld [vmem:[#allocation42_spill] sm:$0xff] }
0x10bf   : > { %v5192_v58 = vpop.permute.xlu1 %5191  ;;  %v10851_v55 = vld [vmem:[#allocation70_spill] sm:$0xff] }
0x10c0   : > { %v10116_v54 = vpop.eup %7483  ;;  %7491 = vpow2.f32 %v5089_v24  ;;  %v5099_v9 = vmul.f32 1.442695, %v5069_v17  ;;  %v10852_v36 = vld [vmem:[#allocation78_spill] sm:$0xff] }
0x10c1   : > { %5105 = vadd.xlane.f32.xlu1 %v10114_v33  ;;  %5111 = vadd.xlane.f32.xlu0 %v10116_v54  ;;  %v5048_v15 = vpop.xlane.xlu0 %5047  ;;  %7493 = vpow2.f32 %v5087_v32  ;;  %v10121_v38 = vpop.eup %7485  ;;  %v10846_v32 = vld [vmem:[#allocation34_spill] sm:$0xff] }
0x10c2   : > { %v5067_v53 = vsub.f32 %v10070_v50, %v5048_v15  ;;  %v10123_v45 = vpop.eup %7487  ;;  %7495 = vpow2.f32 %v5099_v9  ;;  %v10847_v24 = vpack.c.bf16 %v10845_v46, %v10846_v32  ;;  %v10848_v9 = vld [vmem:[#allocation73_spill] sm:$0xff] }
0x10c3   : > { %7497 = vpow2.f32 %v5093_v18  ;;  %v10860_v32 = vld [vmem:[#allocation69_spill] sm:$0xff] }
0x10c4   : > { %v5095_v3 = vmul.f32 1.442695, %v5067_v53  ;;  %v10127_v56 = vpop.eup %7489 }
0x10c5   : > { %5113 = vadd.xlane.f32.xlu1 %v10123_v45  ;;  %5117 = vadd.xlane.f32.xlu0 %v10121_v38  ;;  %v5188_v20 = vpop.permute.xlu0 %5187 }
0x10c6   : > { %6724 = vmatprep.subr.bf16.mxu0 %v5188_v20  ;;  %7499 = vpow2.f32 %v5095_v3  ;;  %v10853_v3 = vpack.c.bf16 %v10851_v55, %v10852_v36  ;;  %v10869_v55 = vld [vmem:[#allocation26_spill] sm:$0xff]  ;;  %v10870_v36 = vld [vmem:[#allocation23_spill] sm:$0xff] }
0x10c7   : > { %6725 = vmatpush3.bf16.msra.mxu0 %v5188_v20 }
0x10c9   : > { %5123 = vadd.xlane.f32.xlu0 %v10127_v56  ;;  %v5190_v50 = vpop.permute.xlu0 %5189 }
0x10ca   : > { %v10130_v59 = vpop.eup %7491  ;;  %6726 = vmatprep.subr.bf16.mxu0 %v5190_v50 }
0x10cb   : > { %5121 = vadd.xlane.f32.xlu1 %v10130_v59  ;;  %6727 = vmatpush3.bf16.msra.mxu0 %v5190_v50  ;;  %v10133_v4 = vpop.eup %7493 }
0x10cc   : > { %6728 = vmatprep.subr.bf16.mxu0 %v5192_v58  ;;  %v10136_v29 = vpop.eup %7495 }
0x10cd   : > { %5119 = vadd.xlane.f32.xlu0 %v10133_v4  ;;  %v10139_v60 = vpop.eup %7497  ;;  %v5196_v50 = vpop.permute.xlu0 %5195 }
0x10cf   : > { %5131 = vadd.xlane.f32.xlu1 %v10136_v29  ;;  %6729 = vmatpush3.bf16.msra.mxu0 %v5192_v58  ;;  %v10854_v58 = vld [vmem:[#allocation71_spill] sm:$0xff] }
0x10d0   : > { %v10142_v62 = vpop.eup %7499 }
0x10d1   : > { %5125 = vadd.xlane.f32.xlu0 %v10139_v60 }
0x10d3   : > { %5127 = vadd.xlane.f32.xlu1 %v10142_v62 }
0x10e4   : > { %5197 = vrot.lane.b32.xlu1 %v10769_v11, %s7740_s7  ;;  %v10849_v11 = vld [vmem:[#allocation74_spill] sm:$0xff] }
0x10e5   : > { %v10850_v15 = vpack.c.bf16 %v10848_v9, %v10849_v11  ;;  %v10863_v11 = vld [vmem:[#allocation48_spill] sm:$0xff] }
0x10e8   : > { %2057 = vrot.lane.b32.xlu1 %v10843_v44, %s7740_s7  ;;  %v10855_v44 = vld [vmem:[#allocation33_spill] sm:$0xff] }
0x10ec   : > { %2619 = vrot.lane.b32.xlu1 %v10844_v57, %s7739_s16  ;;  %v10856_v57 = vpack.c.bf16 %v10854_v58, %v10855_v44  ;;  %v10875_v44 = vpack.c.bf16 %v9751_v51, %v9745_v42  ;;  %v10883_v51 = vld [vmem:[#allocation38_spill] sm:$0xff] }
0x10ed   : > { %v10885_v48 = vpack.c.bf16 %v10883_v51, %v10884_v31  ;;  %v10912_v51 = vld [vmem:[#allocation51_spill] sm:$0xff] }
0x10f0   : > { %v5054_v21 = vpop.xlane.xlu1 %5053  ;;  %3183 = vrot.lane.b32.xlu1 %v10847_v24, %s7738_s19  ;;  %v10861_v24 = vld [vmem:[#allocation68_spill] sm:$0xff] }
0x10f1   : > { %v5070_v8 = vsub.f32 %v10081_v7, %v5054_v21  ;;  %v10857_v7 = vld [vmem:[#allocation76_spill] sm:$0xff] }
0x10f3   : > { %v5101_v20 = vmul.f32 1.442695, %v5070_v8 }
0x10f4   : > { %v5050_v17 = vpop.xlane.xlu1 %5049  ;;  %2059 = vrot.lane.b32.xlu1 %v10850_v15, %s7740_s7  ;;  %v10864_v15 = vld [vmem:[#allocation46_spill] sm:$0xff] }
0x10f5   : > { %v5068_v49 = vsub.f32 %v10084_v37, %v5050_v17  ;;  %v10858_v37 = vld [vmem:[#allocation28_spill] sm:$0xff]  ;;  %v10862_v17 = vpack.c.bf16 %v10860_v32, %v10861_v24  ;;  %v10865_v8 = vpack.c.bf16 %v10863_v11, %v10864_v15  ;;  %v10880_v32 = vld [vmem:[#allocation79_spill] sm:$0xff]  ;;  %v10881_v24 = vld [vmem:[#allocation65_spill] sm:$0xff] }
0x10f6   : > { %v10859_v21 = vpack.c.bf16 %v10857_v7, %v10858_v37  ;;  %v10877_v7 = vld [vmem:[#allocation66_spill] sm:$0xff]  ;;  %v10882_v42 = vpack.c.bf16 %v10880_v32, %v10881_v24  ;;  %v10890_v11 = vld [vmem:[#allocation81_spill] sm:$0xff]  ;;  %v10891_v15 = vld [vmem:[#allocation80_spill] sm:$0xff] }
0x10f7   : > { %v5097_v18 = vmul.f32 1.442695, %v5068_v49  ;;  %v10866_v49 = vld [vmem:[#allocation64_spill] sm:$0xff]  ;;  %v10892_v1 = vpack.c.bf16 %v10890_v11, %v10891_v15 }
0x10f8   : > { %v5194_v53 = vpop.permute.xlu1 %5193  ;;  %2623 = vrot.lane.b32.xlu1 %v10853_v3, %s7739_s16  ;;  %v10871_v3 = vpack.c.bf16 %v10869_v55, %v10870_v36  ;;  %v10902_v36 = vld [vmem:[#allocation49_spill] sm:$0xff] }
0x10f9   : > { %7501 = vpow2.f32 %v5097_v18  ;;  %6730 = vmatprep.subr.bf16.mxu0 %v5194_v53  ;;  %v10867_v18 = vld [vmem:[#allocation63_spill] sm:$0xff] }
0x10fa   : > { %6731 = vmatpush3.bf16.msra.mxu0 %v5194_v53  ;;  %7503 = vpow2.f32 %v5101_v20  ;;  %v10868_v53 = vpack.c.bf16 %v10866_v49, %v10867_v18  ;;  %v10872_v20 = vld [vmem:[#allocation52_spill] sm:$0xff]  ;;  %v10896_v49 = vld [vmem:[#allocation62_spill] sm:$0xff] }
0x10fb   : > { %6732 = vmatprep.subr.bf16.mxu0 %v5196_v50  ;;  %v10897_v18 = vld [vmem:[#allocation72_spill] sm:$0xff] }
0x10fc   : > { %3187 = vrot.lane.b32.xlu1 %v10856_v57, %s7738_s19  ;;  %v10876_v57 = vld [vmem:[#allocation32_spill] sm:$0xff] }
0x10fd   : > { %v10878_v37 = vpack.c.bf16 %v10876_v57, %v10877_v7 }
0x10fe   : > { %6733 = vmatpush3.bf16.msra.mxu0 %v5196_v50  ;;  %v10873_v50 = vld [vmem:[#allocation50_spill] sm:$0xff] }
0x10ff   : > { %v10874_v58 = vpack.c.bf16 %v10872_v20, %v10873_v50 }
0x1100   : > { %2063 = vrot.lane.b32.xlu1 %v10859_v21, %s7740_s7  ;;  %v10879_v21 = vpack.c.bf16 %v9763_v16, %v9757_v30  ;;  %v10886_v30 = vpack.c.bf16 %v9775_v14, %v9769_v35  ;;  %v10887_v16 = vld [vmem:[#allocation75_spill] sm:$0xff]  ;;  %v10898_v35 = vpack.c.bf16 %v10896_v49, %v10897_v18  ;;  %v10899_v14 = vld [vmem:[#allocation17_spill] sm:$0xff] }
0x1103   : > { %v10177_v46 = vpop.eup %7501 }
0x1104   : > { %5129 = vadd.xlane.f32.xlu0 %v10177_v46  ;;  %2627 = vrot.lane.b32.xlu1 %v10862_v17, %s7739_s16  ;;  %v10184_v9 = vpop.eup %7503 }
0x1108   : > { %5133 = vadd.xlane.f32.xlu0 %v10184_v9  ;;  %3191 = vrot.lane.b32.xlu1 %v10865_v8, %s7738_s19 }
0x110c   : > { %2067 = vrot.lane.b32.xlu1 %v10868_v53, %s7740_s7  ;;  %v10900_v53 = vld [vmem:[#allocation40_spill] sm:$0xff] }
0x110d   : > { %v10901_v55 = vpack.c.bf16 %v10899_v14, %v10900_v53  ;;  %v10919_v53 = vld [vmem:[#allocation43_spill] sm:$0xff] }
0x1110   : > { %2631 = vrot.lane.b32.xlu1 %v10871_v3, %s7739_s16  ;;  %v10903_v3 = vld [vmem:[#allocation47_spill] sm:$0xff] }
0x1111   : > { %v10904_v20 = vpack.c.bf16 %v10902_v36, %v10903_v3 }
0x1114   : > { %3195 = vrot.lane.b32.xlu1 %v10874_v58, %s7738_s19  ;;  %v10905_v58 = vld [vmem:[#allocation77_spill] sm:$0xff] }
0x1118   : > { %4196 = vrot.lane.b32.xlu1 %v10875_v44, %s7740_s7  ;;  %v10906_v44 = vld [vmem:[#allocation67_spill] sm:$0xff] }
0x1119   : > { %v10907_v57 = vpack.c.bf16 %v10905_v58, %v10906_v44 }
0x111c   : > { %4758 = vrot.lane.b32.xlu1 %v4742_v12, %s7739_s16  ;;  %v10888_v12 = vld [vmem:[#allocation36_spill] sm:$0xff] }
0x111d   : > { %v10889_v17 = vpack.c.bf16 %v10887_v16, %v10888_v12  ;;  %v10914_v16 = vld [vmem:[#allocation41_spill] sm:$0xff] }
0x111e   : > { %2055 = vrot.lane.b32.xlu0 %v10878_v37, %s7740_s7  ;;  %v10908_v37 = vld [vmem:[#allocation44_spill] sm:$0xff]  ;;  %v10915_v12 = vpack.c.bf16 %v9747_v63, %v10914_v16 }
0x1120   : > { %4200 = vrot.lane.b32.xlu1 %v10879_v21, %s7740_s7  ;;  %v10909_v21 = vld [vmem:[#allocation20_spill] sm:$0xff] }
0x1121   : > { %v10910_v32 = vpack.c.bf16 %v10908_v37, %v10909_v21  ;;  %v7018_v21 = vld [vmem:[#allocation10 + $0x8] sm:$0xff]  }
0x1122   : > { %2621 = vrot.lane.b32.xlu0 %v10882_v42, %s7739_s16  ;;  %v10911_v42 = vld [vmem:[#allocation53_spill] sm:$0xff] }
0x1123   : > { %v10913_v31 = vpack.c.bf16 %v10911_v42, %v10912_v51 }
0x1124   : > { %4762 = vrot.lane.b32.xlu1 %v4744_v34, %s7739_s16  ;;  %v10894_v34 = vld [vmem:[#allocation31_spill] sm:$0xff] }
0x1125   : > { %v10895_v8 = vpack.c.bf16 %v10893_v10, %v10894_v34  ;;  %v10917_v10 = vld [vmem:[#allocation35_spill] sm:$0xff] }
0x1126   : > { %3185 = vrot.lane.b32.xlu0 %v10885_v48, %s7738_s19 }
0x1128   : > { %4204 = vrot.lane.b32.xlu1 %v10886_v30, %s7740_s7 }
0x112a   : > { %2061 = vrot.lane.b32.xlu0 %v10889_v17, %s7740_s7 }
0x112e   : > { %2625 = vrot.lane.b32.xlu0 %v10892_v1, %s7739_s16  ;;  %v10916_v1 = vld [vmem:[#allocation39_spill] sm:$0xff] }
0x112f   : > { %v10918_v34 = vpack.c.bf16 %v10916_v1, %v10917_v10 }
0x1132   : > { %3189 = vrot.lane.b32.xlu0 %v10895_v8, %s7738_s19 }
0x1136   : > { %2065 = vrot.lane.b32.xlu0 %v10898_v35, %s7740_s7 }
0x113a   : > { %2629 = vrot.lane.b32.xlu0 %v10901_v55, %s7739_s16  ;;  %v10920_v55 = vld [vmem:[#allocation45_spill] sm:$0xff] }
0x113b   : > { %v10921_v36 = vpack.c.bf16 %v10919_v53, %v10920_v55 }
0x113e   : > { %3193 = vrot.lane.b32.xlu0 %v10904_v20, %s7738_s19 }
0x1142   : > { %v5108_v50 = vpop.xlane.xlu1 %5107  ;;  %2069 = vrot.lane.b32.xlu0 %v10907_v57, %s7740_s7 }
0x1146   : > { %v5104_v7 = vpop.xlane.xlu1 %5103  ;;  %2633 = vrot.lane.b32.xlu0 %v10910_v32, %s7739_s16 }
0x1147   : > { %7505 = vrcp.f32 %v5104_v7 }
0x114a   : > { %v5110_v24 = vpop.xlane.xlu1 %5109  ;;  %3197 = vrot.lane.b32.xlu0 %v10913_v31, %s7738_s19  ;;  %v5116_v48 = vpop.xlane.xlu0 %5115  ;;  %v7019_v31 = vld [vmem:[#allocation10 + $0x10] sm:$0xff]  }
0x114e   : > { %v5106_v30 = vpop.xlane.xlu1 %5105  ;;  %4198 = vrot.lane.b32.xlu0 %v10915_v12, %s7740_s7  ;;  %v5112_v17 = vpop.xlane.xlu0 %5111 }
0x114f   : > { %7507 = vrcp.f32 %v5106_v30 }
0x1150   : > { %7509 = vrcp.f32 %v5110_v24 }
0x1151   : > { %v7506_v49 = vpop.eup %7505 }
0x1152   : > { %4760 = vrot.lane.b32.xlu0 %v4743_v5, %s7739_s16  ;;  %v5118_v11 = vpop.xlane.xlu0 %5117  ;;  %v5114_v15 = vpop.xlane.xlu1 %5113  ;;  %v5151_v52 = vmul.f32 %v7506_v49, %v10101_v61 }
0x1153   : > { %7511 = vrcp.f32 %v5114_v15 }
0x1154   : > { %7513 = vrcp.f32 %v5108_v50  ;;  %v7017_v50 = vld [vmem:[#allocation10] sm:$0xff]  }
0x1155   : > { %7515 = vrcp.f32 %v5112_v17  ;;  %v7020_v17 = vld [vmem:[#allocation10 + $0x18] sm:$0xff]  }
0x1156   : > { %4202 = vrot.lane.b32.xlu0 %v10918_v34, %s7740_s7  ;;  %v5124_v8 = vpop.xlane.xlu0 %5123  ;;  %7517 = vrcp.f32 %v5118_v11  ;;  %v7021_v34 = vld [vmem:[#allocation10 + $0x20] sm:$0xff]  }
0x1158   : > { %v5122_v63 = vpop.xlane.xlu1 %5121 }
0x1159   : > { %v7508_v18 = vpop.eup %7507 }
0x115a   : > { %4764 = vrot.lane.b32.xlu0 %v4745_v2, %s7739_s16  ;;  %v5152_v26 = vmul.f32 %v7508_v18, %v10114_v33  ;;  %v5120_v5 = vpop.xlane.xlu0 %5119  ;;  %v7510_v3 = vpop.eup %7509  ;;  %v7024_v18 = vld [vmem:[#allocation10 + $0x38] sm:$0xff]  }
0x115b   : > { %7519 = vrcp.f32 %v5120_v5  ;;  %v5154_v33 = vmul.f32 %v7510_v3, %v10105_v27 }
0x115c   : > { %v10289_v35 = vpop.xlane.xlu1 %5131  ;;  %v5167_v14 = vpack.c.bf16 %v5152_v26, %v5151_v52  ;;  %7521 = vrcp.f32 %v5116_v48 }
0x115d   : > { %v7512_v23 = vpop.eup %7511  ;;  %7523 = vrcp.f32 %v5122_v63 }
0x115e   : > { %6736 = vmatprep.mubr.bf16.mxu0 %v5167_v14  ;;  %4206 = vrot.lane.b32.xlu0 %v10921_v36, %s7740_s7  ;;  %v7514_v2 = vpop.eup %7513  ;;  %v5126_v20 = vpop.xlane.xlu0 %5125  ;;  %v5156_v44 = vmul.f32 %v7512_v23, %v10123_v45 }
0x115f   : > { %v7516_v61 = vpop.eup %7515  ;;  %v5153_v57 = vmul.f32 %v7514_v2, %v10096_v25  ;;  %7525 = vrcp.f32 %v5126_v20 }
0x1160   : > { %v10295_v6 = vpop.xlane.xlu1 %5127  ;;  %v5155_v7 = vmul.f32 %v7516_v61, %v10116_v54  ;;  %v7518_v32 = vpop.eup %7517  ;;  %7527 = vrcp.f32 %v5124_v8  ;;  %v7022_v8 = vld [vmem:[#allocation10 + $0x28] sm:$0xff]  }
0x1161   : > { %v5168_v37 = vpack.c.bf16 %v5154_v33, %v5153_v57  ;;  %v5158_v51 = vmul.f32 %v7518_v32, %v10121_v38  ;;  %7529 = vrcp.f32 %v10295_v6 }
0x1162   : > { %v5169_v27 = vpack.c.bf16 %v5156_v44, %v5155_v7 }
0x1164   : > { %v5198_v58 = vpop.permute.xlu1 %5197 }
0x1165   : > { %6734 = vmatprep.subr.bf16.mxu0 %v5198_v58  ;;  %v7520_v42 = vpop.eup %7519 }
0x1166   : > { %6735 = vmatpush3.bf16.msra.mxu0 %v5198_v58  ;;  %v7522_v45 = vpop.eup %7521  ;;  %v5159_v48 = vmul.f32 %v7520_v42, %v10133_v4 }
0x1167   : > { %6752 = vmatprep.subr.bf16.mxu0 %v7017_v50  ;;  %v7524_v25 = vpop.eup %7523  ;;  %v5157_v30 = vmul.f32 %v7522_v45, %v10107_v43 }
0x1168   : > { %v2058_v24 = vpop.permute.xlu1 %2057  ;;  %v5160_v16 = vmul.f32 %v7524_v25, %v10130_v59 }
0x1169   : > { %2081 = vst.msk [vmem:[#allocation3 + $0x8] sm:$0xff] %vm2079_vm1, %v2058_v24  ;;  %6737 = vmatmul.mubr.bf16.vlgmr.msra.gmra.mrb[144].mxu0 %v5168_v37  ;;  %v5170_v12 = vpack.c.bf16 %v5158_v51, %v5157_v30  ;;  %v7526_v11 = vpop.eup %7525 }
0x116a   : > { %6740 = vmatprep.mubr.bf16.mxu0 %v5169_v27  ;;  %6753 = vmatpush3.bf16.msra.mxu0 %v7017_v50  ;;  %v5171_v1 = vpack.c.bf16 %v5160_v16, %v5159_v48  ;;  %v7528_v10 = vpop.eup %7527  ;;  %v5162_v38 = vmul.f32 %v7526_v11, %v10139_v60  ;;  %v7023_v60 = vld [vmem:[#allocation10 + $0x30] sm:$0xff]  }
0x116b   : > { %6754 = vmatprep.subr.bf16.mxu0 %v7018_v21  ;;  %v5161_v43 = vmul.f32 %v7528_v10, %v10127_v56  ;;  %v7530_v2 = vpop.eup %7529 }
0x116c   : > { %v10303_v54 = vpop.permute.xlu1 %2619  ;;  %v5163_v33 = vmul.f32 %v7530_v2, %v10142_v62 }
0x116d   : > { %v5172_v59 = vpack.c.bf16 %v5162_v38, %v5161_v43 }
0x116e   : > { %6755 = vmatpush3.bf16.msra.mxu0 %v7018_v21 }
0x116f   : > { %6756 = vmatprep.subr.bf16.mxu0 %v7019_v31 }
0x1170   : > { %v3184_v15 = vpop.permute.xlu1 %3183 }
0x1171   : > { %6741 = vmatmul.mubr.bf16.gmra.mrb[148].mxu0 %v5170_v12 }
0x1172   : > { %6744 = vmatprep.mubr.bf16.mxu0 %v5171_v1  ;;  %6757 = vmatpush3.bf16.msra.mxu0 %v7019_v31 }
0x1173   : > { %6758 = vmatprep.subr.bf16.mxu0 %v7020_v17 }
0x1174   : > { %v2060_v4 = vpop.permute.xlu1 %2059 }
0x1175   : > { %2082 = vst.msk [vmem:[#allocation3 + $0x10] sm:$0xff] %vm2079_vm1, %v2060_v4 }
0x1176   : > { %6759 = vmatpush3.bf16.msra.mxu0 %v7020_v17 }
0x1177   : > { %6760 = vmatprep.subr.bf16.mxu0 %v7021_v34 }
0x1178   : > { %v2624_v49 = vpop.permute.xlu1 %2623 }
0x1179   : > { %2646 = vst.msk [vmem:[#allocation3 + $0x10] sm:$0xff] %vm2643_vm2, %v2624_v49  ;;  %6745 = vmatmul.mubr.bf16.gmra.mrb[152].mxu0 %v5172_v59 }
0x117a   : > { %6761 = vmatpush3.bf16.msra.mxu0 %v7021_v34 }
0x117b   : > { %6762 = vmatprep.subr.bf16.mxu0 %v7022_v8 }
0x117c   : > { %v3188_v63 = vpop.permute.xlu1 %3187 }
0x117d   : > { %3210 = vst.msk [vmem:[#allocation3 + $0x10] sm:$0xff] %vm3207_vm3, %v3188_v63 }
0x117e   : > { %6763 = vmatpush3.bf16.msra.mxu0 %v7022_v8 }
0x117f   : > { %6764 = vmatprep.subr.bf16.mxu0 %v7023_v60 }
0x1180   : > { %v2064_v56 = vpop.permute.xlu1 %2063 }
0x1181   : > { %2084 = vst.msk [vmem:[#allocation3 + $0x20] sm:$0xff] %vm2079_vm1, %v2064_v56 }
0x1182   : > { %6765 = vmatpush3.bf16.msra.mxu0 %v7023_v60 }
0x1183   : > { %6766 = vmatprep.subr.bf16.mxu0 %v7024_v18 }
0x1184   : > { %v2628_v52 = vpop.permute.xlu1 %2627  ;;  %v5354_v45 = vld [vmem:[#allocation3 + $0x10] sm:$0xff] }
0x1185   : > { %2648 = vst.msk [vmem:[#allocation3 + $0x20] sm:$0xff] %vm2643_vm2, %v2628_v52  ;;  %v10922_v52 = vpack.c.bf16 %v10015_v22, %v10009_v28 }
0x1186   : > { %6767 = vmatpush3.bf16.msra.mxu0 %v7024_v18 }
0x1188   : > { %v3192_v26 = vpop.permute.xlu1 %3191 }
0x1189   : > { %3212 = vst.msk [vmem:[#allocation3 + $0x20] sm:$0xff] %vm3207_vm3, %v3192_v26 }
0x118c   : > { %v2068_v5 = vpop.permute.xlu1 %2067 }
0x118d   : > { %2086 = vst.msk [vmem:[#allocation3 + $0x30] sm:$0xff] %vm2079_vm1, %v2068_v5 }
0x1190   : > { %v2632_v14 = vpop.permute.xlu1 %2631 }
0x1191   : > { %2650 = vst.msk [vmem:[#allocation3 + $0x30] sm:$0xff] %vm2643_vm2, %v2632_v14  ;;  %v5130_v53 = vpop.xlane.xlu0 %5129 }
0x1192   : > { %7531 = vrcp.f32 %v5130_v53 }
0x1193   : > { %7533 = vrcp.f32 %v10289_v35 }
0x1194   : > { %v3196_v55 = vpop.permute.xlu1 %3195 }
0x1195   : > { %3214 = vst.msk [vmem:[#allocation3 + $0x30] sm:$0xff] %vm3207_vm3, %v3196_v55  ;;  %v5134_v36 = vpop.xlane.xlu0 %5133 }
0x1196   : > { %7535 = vrcp.f32 %v5134_v36  ;;  %v10923_v36 = vld [vmem:[#allocation59_spill] sm:$0xff] }
0x1198   : > { %v4197_v3 = vpop.permute.xlu1 %4196 }
0x1199   : > { %4220 = vst.msk [vmem:[#allocation3 + $0x40] sm:$0xff] %vm2079_vm1, %v4197_v3  ;;  %v2056_v23 = vpop.permute.xlu0 %2055  ;;  %v10924_v3 = vld [vmem:[#allocation55_spill] sm:$0xff] }
0x119a   : > { %2080 = vst.msk [vmem:[#allocation3] sm:$0xff] %vm2079_vm1, %v2056_v23  ;;  %v10925_v41 = vpack.c.bf16 %v10923_v36, %v10924_v3  ;;  %v10927_v23 = vld [vmem:[#allocation57_spill] sm:$0xff] }
0x119b   : > { %2644 = vst.msk [vmem:[#allocation3] sm:$0xff] %vm2643_vm2, %v10303_v54  ;;  %v5356_v54 = vld [vmem:[#allocation3 + $0x20] sm:$0xff] }
0x119c   : > { %v7532_v6 = vpop.eup %7531  ;;  %3208 = vst.msk [vmem:[#allocation3] sm:$0xff] %vm3207_vm3, %v3184_v15  ;;  %v4759_v61 = vpop.permute.xlu1 %4758  ;;  %v5358_v17 = vld [vmem:[#allocation3 + $0x30] sm:$0xff] }
0x119d   : > { %4782 = vst.msk [vmem:[#allocation3 + $0x40] sm:$0xff] %vm2643_vm2, %v4759_v61  ;;  %v2622_v35 = vpop.permute.xlu0 %2621  ;;  %v5164_v20 = vmul.f32 %v7532_v6, %v10177_v46  ;;  %v7534_v50 = vpop.eup %7533 }
0x119e   : > { %2645 = vst.msk [vmem:[#allocation3 + $0x8] sm:$0xff] %vm2643_vm2, %v2622_v35  ;;  %v5165_v37 = vmul.f32 %v7534_v50, %v10136_v29  ;;  %v10929_v35 = vpack.c.bf16 %v10023_v0, %v10019_v39  ;;  %v10386_v39 = vld [vmem:[%s10523_s5] ss:$0 sm:$0xff] }
0x119f   : > { %v5173_v58 = vpack.c.bf16 %v5164_v20, %v5163_v33  ;;  %v10930_v33 = vpack.c.bf16 %v10027_v13, %v10021_v19 }
0x11a0   : > { %v7536_v44 = vpop.eup %7535  ;;  %v4201_v57 = vpop.permute.xlu1 %4200 }
0x11a1   : > { %4222 = vst.msk [vmem:[#allocation3 + $0x50] sm:$0xff] %vm2079_vm1, %v4201_v57  ;;  %6748 = vmatprep.mubr.bf16.mxu0 %v5173_v58  ;;  %v3186_v7 = vpop.permute.xlu0 %3185  ;;  %v5166_v21 = vmul.f32 %v7536_v44, %v10184_v9 }
0x11a2   : > { %3209 = vst.msk [vmem:[#allocation3 + $0x8] sm:$0xff] %vm3207_vm3, %v3186_v7 }
0x11a3   : > { %v5174_v32 = vpack.c.bf16 %v5166_v21, %v5165_v37  ;;  %v5352_v24 = vld [vmem:[#allocation3] sm:$0xff] }
0x11a4   : > { %v4763_v62 = vpop.permute.xlu1 %4762 }
0x11a5   : > { %4784 = vst.msk [vmem:[#allocation3 + $0x50] sm:$0xff] %vm2643_vm2, %v4763_v62  ;;  %6749 = vmatmul.mubr.bf16.gmra.mrb[156].mxu0 %v5174_v32  ;;  %v2062_v46 = vpop.permute.xlu0 %2061 }
0x11a6   : > { %2083 = vst.msk [vmem:[#allocation3 + $0x18] sm:$0xff] %vm2079_vm1, %v2062_v46  ;;  %6768 = vmatprep.mubr.bf16.mxu0 %v5352_v24 }
0x11a8   : > { %v4205_v27 = vpop.permute.xlu1 %4204 }
0x11a9   : > { %4224 = vst.msk [vmem:[#allocation3 + $0x60] sm:$0xff] %vm2079_vm1, %v4205_v27  ;;  %v2626_v42 = vpop.permute.xlu0 %2625  ;;  %v5353_v29 = vld [vmem:[#allocation3 + $0x8] sm:$0xff] }
0x11aa   : > { %2647 = vst.msk [vmem:[#allocation3 + $0x18] sm:$0xff] %vm2643_vm2, %v2626_v42 }
0x11ad   : > { %6769 = vmatmul.mubr.bf16.vlgmr.msra.gmra.mrb[160].mxu0 %v5353_v29  ;;  %v3190_v9 = vpop.permute.xlu0 %3189 }
0x11ae   : > { %3211 = vst.msk [vmem:[#allocation3 + $0x18] sm:$0xff] %vm3207_vm3, %v3190_v9  ;;  %6772 = vmatprep.mubr.bf16.mxu0 %v5354_v45 }
0x11b1   : > { %v2066_v25 = vpop.permute.xlu0 %2065 }
0x11b2   : > { %2085 = vst.msk [vmem:[#allocation3 + $0x28] sm:$0xff] %vm2079_vm1, %v2066_v25 }
0x11b5   : > { %v2630_v51 = vpop.permute.xlu0 %2629  ;;  %v5355_v31 = vld [vmem:[#allocation3 + $0x18] sm:$0xff] }
0x11b6   : > { %2649 = vst.msk [vmem:[#allocation3 + $0x28] sm:$0xff] %vm2643_vm2, %v2630_v51  ;;  %6773 = vmatmul.mubr.bf16.gmra.mrb[164].mxu0 %v5355_v31 }
0x11b7   : > { %6776 = vmatprep.mubr.bf16.mxu0 %v5356_v54 }
0x11b9   : > { %v3194_v48 = vpop.permute.xlu0 %3193 }
0x11ba   : > { %3213 = vst.msk [vmem:[#allocation3 + $0x28] sm:$0xff] %vm3207_vm3, %v3194_v48 }
0x11bd   : > { %v2070_v30 = vpop.permute.xlu0 %2069 }
0x11be   : > { %2087 = vst.msk [vmem:[#allocation3 + $0x38] sm:$0xff] %vm2079_vm1, %v2070_v30 }
0x11c1   : > { %v2634_v16 = vpop.permute.xlu0 %2633  ;;  %v5357_v12 = vld [vmem:[#allocation3 + $0x28] sm:$0xff] }
0x11c2   : > { %2651 = vst.msk [vmem:[#allocation3 + $0x38] sm:$0xff] %vm2643_vm2, %v2634_v16  ;;  %6777 = vmatmul.mubr.bf16.gmra.mrb[168].mxu0 %v5357_v12 }
0x11c3   : > { %6780 = vmatprep.mubr.bf16.mxu0 %v5358_v17 }
0x11c5   : > { %v3198_v11 = vpop.permute.xlu0 %3197 }
0x11c6   : > { %3215 = vst.msk [vmem:[#allocation3 + $0x38] sm:$0xff] %vm3207_vm3, %v3198_v11 }
0x11c9   : > { %v4199_v15 = vpop.permute.xlu0 %4198 }
0x11ca   : > { %4221 = vst.msk [vmem:[#allocation3 + $0x48] sm:$0xff] %vm2079_vm1, %v4199_v15 }
0x11cd   : > { %v4761_v1 = vpop.permute.xlu0 %4760  ;;  %v5359_v10 = vld [vmem:[#allocation3 + $0x38] sm:$0xff] }
0x11ce   : > { %4783 = vst.msk [vmem:[#allocation3 + $0x48] sm:$0xff] %vm2643_vm2, %v4761_v1  ;;  %6781 = vmatmul.mubr.bf16.gmra.mrb[172].mxu0 %v5359_v10 }
0x11d1   : > { %v4203_v38 = vpop.permute.xlu0 %4202 }
0x11d2   : > { %4223 = vst.msk [vmem:[#allocation3 + $0x58] sm:$0xff] %vm2079_vm1, %v4203_v38 }
0x11d5   : > { %v4765_v34 = vpop.permute.xlu0 %4764 }
0x11d6   : > { %4785 = vst.msk [vmem:[#allocation3 + $0x58] sm:$0xff] %vm2643_vm2, %v4765_v34 }
0x11d9   : > { %v4207_v4 = vpop.permute.xlu0 %4206 }
0x11da   : > { %4225 = vst.msk [vmem:[#allocation3 + $0x68] sm:$0xff] %vm2079_vm1, %v4207_v4 }
0x123c   : > { %v6738_v43 = vpop.f32.mrb[144].mxu0 }
0x123d   : > { %v5241_v59 = vpop.f32.mrb[145].mxu0 }
0x123e   : > { %v6739_v8 = vpop.f32.mrb[146].mxu0 }
0x123f   : > { %v5305_v49 = vpack.c.bf16 %v6739_v8, %v6738_v43  ;;  %v5244_v60 = vpop.f32.mrb[147].mxu0 }
0x1240   : > { %v5304_v63 = vpack.c.bf16 %v5244_v60, %v5241_v59 }
0x1241   : > { %5322 = vrot.lane.b32.xlu0 %v5305_v49, %s7738_s19 }
0x1242   : > { %5320 = vrot.lane.b32.xlu1 %v5304_v63, %s7738_s19 }
0x1244   : > { %v6742_v18 = vpop.f32.mrb[148].mxu0 }
0x1245   : > { %4768 = vrot.lane.b32.xlu0 %v4747_v40, %s7739_s16  ;;  %v5257_v56 = vpop.f32.mrb[149].mxu0  ;;  %v10926_v40 = vld [vmem:[#allocation61_spill] sm:$0xff] }
0x1246   : > { %4766 = vrot.lane.b32.xlu1 %v10922_v52, %s7739_s16  ;;  %v6743_v26 = vpop.f32.mrb[150].mxu0  ;;  %v10928_v28 = vpack.c.bf16 %v10926_v40, %v10927_v23 }
0x1247   : > { %v5307_v5 = vpack.c.bf16 %v6743_v26, %v6742_v18  ;;  %v5260_v14 = vpop.f32.mrb[151].mxu0 }
0x1248   : > { %v5306_v53 = vpack.c.bf16 %v5260_v14, %v5257_v56 }
0x1249   : > { %5326 = vrot.lane.b32.xlu0 %v5307_v5, %s7738_s19 }
0x124a   : > { %5324 = vrot.lane.b32.xlu1 %v5306_v53, %s7738_s19 }
0x124c   : > { %v6746_v55 = vpop.f32.mrb[152].mxu0 }
0x124d   : > { %4210 = vrot.lane.b32.xlu0 %v10925_v41, %s7740_s7  ;;  %v5273_v47 = vpop.f32.mrb[153].mxu0 }
0x124e   : > { %4208 = vrot.lane.b32.xlu1 %v10928_v28, %s7740_s7  ;;  %v6747_v22 = vpop.f32.mrb[154].mxu0 }
0x124f   : > { %v5309_v2 = vpack.c.bf16 %v6747_v22, %v6746_v55  ;;  %v5276_v6 = vpop.f32.mrb[155].mxu0 }
0x1250   : > { %v5308_v61 = vpack.c.bf16 %v5276_v6, %v5273_v47 }
0x1251   : > { %5330 = vrot.lane.b32.xlu0 %v5309_v2, %s7738_s19 }
0x1252   : > { %5328 = vrot.lane.b32.xlu1 %v5308_v61, %s7738_s19 }
0x1255   : > { %4772 = vrot.lane.b32.xlu0 %v10929_v35, %s7739_s16 }
0x1256   : > { %4770 = vrot.lane.b32.xlu1 %v10930_v33, %s7739_s16 }
0x1278   : > { %v6750_v20 = vpop.f32.mrb[156].mxu0 }
0x1279   : > { %v5289_v50 = vpop.f32.mrb[157].mxu0 }
0x127a   : > { %v6751_v58 = vpop.f32.mrb[158].mxu0 }
0x127b   : > { %v5311_v44 = vpack.c.bf16 %v6751_v58, %v6750_v20  ;;  %v5292_v57 = vpop.f32.mrb[159].mxu0 }
0x127c   : > { %v5310_v7 = vpack.c.bf16 %v5292_v57, %v5289_v50 }
0x127d   : > { %5334 = vrot.lane.b32.xlu0 %v5311_v44, %s7738_s19 }
0x127e   : > { %5332 = vrot.lane.b32.xlu1 %v5310_v7, %s7738_s19  ;;  %s7655_s19 = sshll.u32 %s7741_s29, 4  ;;  %s7656_s19 = int_to_ptr.vmem [resolvable:$false] %s7655_s19 }
0x127f   : > { %s7657_s16 = scalar_lea.vmem %s7656_s19, 8192  ;;  %p7658_p3 = scmp.lt.s32.totalorder %s10471_s18, %s7656_s19 }
0x1280   : > { %v6770_v0 = vpop.f32.mrb[160].mxu0  ;;  %p7659_p7 = scmp.lt.s32.totalorder %s7657_s16, %s7651_s27 }
0x1281   : > { %v5482_v19 = vadd.f32 %v6770_v0, %v10386_v39  ;;  %v5473_v13 = vpop.f32.mrb[161].mxu0 }
0x1282   : > { %v5474_v37 = vadd.f32 %v10386_v39, %v5473_v13  ;;  %v6771_v21 = vpop.f32.mrb[162].mxu0  ;;  %p7660_p9 = por %p7659_p7, %p7658_p3 }
0x1283   : > { %5602 = vst [vmem:[%s10390_s15 + $0x10] sm:$0xff] %v5482_v19  ;;  %v5485_v32 = vadd.f32 %v6771_v21, %v10386_v39  ;;  %v5476_v62 = vpop.f32.mrb[163].mxu0 }
0x1284   : > { %5600 = vst [vmem:[%s10390_s15] sm:$0xff] %v5474_v37  ;;  %v5477_v46 = vadd.f32 %v10386_v39, %v5476_v62  ;;  %p7661_p12 = pnand %p7660_p9, %p7654_p13 }
0x1285   : > { %5603 = vst [vmem:[%s10390_s15 + $0x18] sm:$0xff] %v5485_v32 }
0x1286   : > { %5601 = vst [vmem:[%s10390_s15 + $0x8] sm:$0xff] %v5477_v46 }
0x1289   : > { %v6774_v24 = vpop.f32.mrb[164].mxu0 }
0x128a   : > { %v5498_v27 = vadd.f32 %v6774_v24, %v10386_v39  ;;  %v5489_v42 = vpop.f32.mrb[165].mxu0 }
0x128b   : > { %v5490_v29 = vadd.f32 %v10386_v39, %v5489_v42  ;;  %v6775_v9 = vpop.f32.mrb[166].mxu0 }
0x128c   : > { %5606 = vst [vmem:[%s10390_s15 + $0x30] sm:$0xff] %v5498_v27  ;;  %v5501_v45 = vadd.f32 %v6775_v9, %v10386_v39  ;;  %v5492_v25 = vpop.f32.mrb[167].mxu0 }
0x128d   : > { %5604 = vst [vmem:[%s10390_s15 + $0x20] sm:$0xff] %v5490_v29  ;;  %v5493_v51 = vadd.f32 %v10386_v39, %v5492_v25 }
0x128e   : > { %5607 = vst [vmem:[%s10390_s15 + $0x38] sm:$0xff] %v5501_v45 }
0x128f   : > { %5605 = vst [vmem:[%s10390_s15 + $0x28] sm:$0xff] %v5493_v51 }
0x1295   : > { %v6778_v31 = vpop.f32.mrb[168].mxu0 }
0x1296   : > { %v5514_v54 = vadd.f32 %v6778_v31, %v10386_v39  ;;  %v5505_v48 = vpop.f32.mrb[169].mxu0 }
0x1297   : > { %v5506_v30 = vadd.f32 %v10386_v39, %v5505_v48  ;;  %v6779_v16 = vpop.f32.mrb[170].mxu0 }
0x1298   : > { %5610 = vst [vmem:[%s10390_s15 + $0x50] sm:$0xff] %v5514_v54  ;;  %v5517_v12 = vadd.f32 %v6779_v16, %v10386_v39  ;;  %v5508_v17 = vpop.f32.mrb[171].mxu0 }
0x1299   : > { %5608 = vst [vmem:[%s10390_s15 + $0x40] sm:$0xff] %v5506_v30  ;;  %v5509_v11 = vadd.f32 %v10386_v39, %v5508_v17 }
0x129a   : > { %5611 = vst [vmem:[%s10390_s15 + $0x58] sm:$0xff] %v5517_v12 }
0x129b   : > { %5609 = vst [vmem:[%s10390_s15 + $0x48] sm:$0xff] %v5509_v11 }
0x12a1   : > { %v6782_v15 = vpop.f32.mrb[172].mxu0 }
0x12a2   : > { %v5530_v1 = vadd.f32 %v6782_v15, %v10386_v39  ;;  %v5521_v10 = vpop.f32.mrb[173].mxu0 }
0x12a3   : > { %v5522_v38 = vadd.f32 %v10386_v39, %v5521_v10  ;;  %v6783_v34 = vpop.f32.mrb[174].mxu0 }
0x12a4   : > { %5614 = vst [vmem:[%s10390_s15 + $0x70] sm:$0xff] %v5530_v1  ;;  %v5533_v4 = vadd.f32 %v6783_v34, %v10386_v39  ;;  %v5524_v43 = vpop.f32.mrb[175].mxu0 }
0x12a5   : > { %5612 = vst [vmem:[%s10390_s15 + $0x60] sm:$0xff] %v5522_v38  ;;  %v5525_v59 = vadd.f32 %v10386_v39, %v5524_v43 }
0x12a6   : > { %5615 = vst [vmem:[%s10390_s15 + $0x78] sm:$0xff] %v5533_v4 }
0x12a7   : > { %5613 = vst [vmem:[%s10390_s15 + $0x68] sm:$0xff] %v5525_v59 }
0x12b3   : > { %v5323_v8 = vpop.permute.xlu0 %5322 }
0x12b4   : > { %5345 = vst.msk [vmem:[#allocation3 + $0x48] sm:$0xff] %vm3207_vm3, %v5323_v8  ;;  %v5321_v49 = vpop.permute.xlu1 %5320 }
0x12b5   : > { %5344 = vst.msk [vmem:[#allocation3 + $0x40] sm:$0xff] %vm3207_vm3, %v5321_v49 }
0x12b7   : > { %v4769_v60 = vpop.permute.xlu0 %4768 }
0x12b8   : > { %4787 = vst.msk [vmem:[#allocation3 + $0x68] sm:$0xff] %vm2643_vm2, %v4769_v60  ;;  %v4767_v63 = vpop.permute.xlu1 %4766 }
0x12b9   : > { %4786 = vst.msk [vmem:[#allocation3 + $0x60] sm:$0xff] %vm2643_vm2, %v4767_v63 }
0x12bb   : > { %v5327_v18 = vpop.permute.xlu0 %5326  ;;  %v5361_v26 = vld [vmem:[#allocation3 + $0x48] sm:$0xff] }
0x12bc   : > { %5347 = vst.msk [vmem:[#allocation3 + $0x58] sm:$0xff] %vm3207_vm3, %v5327_v18  ;;  %v5325_v56 = vpop.permute.xlu1 %5324  ;;  %v5360_v52 = vld [vmem:[#allocation3 + $0x40] sm:$0xff] }
0x12bd   : > { %5346 = vst.msk [vmem:[#allocation3 + $0x50] sm:$0xff] %vm3207_vm3, %v5325_v56  ;;  %6784 = vmatprep.mubr.bf16.mxu0 %v5360_v52 }
0x12be   : > { %6785 = vmatmul.mubr.bf16.gmra.mrb[176].mxu0 %v5361_v26 }
0x12bf   : > { %v4211_v5 = vpop.permute.xlu0 %4210 }
0x12c0   : > { %4227 = vst.msk [vmem:[#allocation3 + $0x78] sm:$0xff] %vm2079_vm1, %v4211_v5  ;;  %v4209_v14 = vpop.permute.xlu1 %4208 }
0x12c1   : > { %4226 = vst.msk [vmem:[#allocation3 + $0x70] sm:$0xff] %vm2079_vm1, %v4209_v14 }
0x12c3   : > { %v5331_v53 = vpop.permute.xlu0 %5330  ;;  %v5363_v3 = vld [vmem:[#allocation3 + $0x58] sm:$0xff] }
0x12c4   : > { %5349 = vst.msk [vmem:[#allocation3 + $0x68] sm:$0xff] %vm3207_vm3, %v5331_v53  ;;  %v5329_v55 = vpop.permute.xlu1 %5328  ;;  %v5362_v36 = vld [vmem:[#allocation3 + $0x50] sm:$0xff] }
0x12c5   : > { %5348 = vst.msk [vmem:[#allocation3 + $0x60] sm:$0xff] %vm3207_vm3, %v5329_v55  ;;  %6788 = vmatprep.mubr.bf16.mxu0 %v5362_v36 }
0x12c6   : > { %6789 = vmatmul.mubr.bf16.gmra.mrb[180].mxu0 %v5363_v3 }
0x12c7   : > { %v4773_v41 = vpop.permute.xlu0 %4772 }
0x12c8   : > { %4789 = vst.msk [vmem:[#allocation3 + $0x78] sm:$0xff] %vm2643_vm2, %v4773_v41  ;;  %v4771_v47 = vpop.permute.xlu1 %4770 }
0x12c9   : > { %4788 = vst.msk [vmem:[#allocation3 + $0x70] sm:$0xff] %vm2643_vm2, %v4771_v47 }
0x12cb   : > { %v5365_v23 = vld [vmem:[#allocation3 + $0x68] sm:$0xff] }
0x12cc   : > { %v5364_v40 = vld [vmem:[#allocation3 + $0x60] sm:$0xff] }
0x12cd   : > { %6792 = vmatprep.mubr.bf16.mxu0 %v5364_v40 }
0x12ce   : > { %6793 = vmatmul.mubr.bf16.gmra.mrb[184].mxu0 %v5365_v23 }
0x12ef   : > { %v5335_v28 = vpop.permute.xlu0 %5334 }
0x12f0   : > { %5351 = vst.msk [vmem:[#allocation3 + $0x78] sm:$0xff] %vm3207_vm3, %v5335_v28  ;;  %v5333_v22 = vpop.permute.xlu1 %5332 }
0x12f1   : > { %5350 = vst.msk [vmem:[#allocation3 + $0x70] sm:$0xff] %vm3207_vm3, %v5333_v22 }
0x12f7   : > { %v5367_v6 = vld [vmem:[#allocation3 + $0x78] sm:$0xff] }
0x12f8   : > { %v5366_v2 = vld [vmem:[#allocation3 + $0x70] sm:$0xff] }
0x12f9   : > { %6796 = vmatprep.mubr.bf16.mxu0 %v5366_v2 }
0x12fa   : > { %6797 = vmatmul.mubr.bf16.gmra.mrb[188].mxu0 %v5367_v6 }
0x1391   : > { %v6786_v61 = vpop.f32.mrb[176].mxu0 }
0x1392   : > { %v5546_v35 = vadd.f32 %v6786_v61, %v10386_v39  ;;  %v5537_v33 = vpop.f32.mrb[177].mxu0 }
0x1393   : > { %v5538_v20 = vadd.f32 %v10386_v39, %v5537_v33  ;;  %v6787_v50 = vpop.f32.mrb[178].mxu0 }
0x1394   : > { %5618 = vst [vmem:[%s10390_s15 + $0x90] sm:$0xff] %v5546_v35  ;;  %v5549_v58 = vadd.f32 %v6787_v50, %v10386_v39  ;;  %v5540_v44 = vpop.f32.mrb[179].mxu0 }
0x1395   : > { %5616 = vst [vmem:[%s10390_s15 + $0x80] sm:$0xff] %v5538_v20  ;;  %v5541_v57 = vadd.f32 %v10386_v39, %v5540_v44 }
0x1396   : > { %5619 = vst [vmem:[%s10390_s15 + $0x98] sm:$0xff] %v5549_v58 }
0x1397   : > { %5617 = vst [vmem:[%s10390_s15 + $0x88] sm:$0xff] %v5541_v57 }
0x1399   : > { %v6790_v7 = vpop.f32.mrb[180].mxu0 }
0x139a   : > { %v5562_v0 = vadd.f32 %v6790_v7, %v10386_v39  ;;  %v5553_v19 = vpop.f32.mrb[181].mxu0 }
0x139b   : > { %v5554_v13 = vadd.f32 %v10386_v39, %v5553_v19  ;;  %v6791_v37 = vpop.f32.mrb[182].mxu0 }
0x139c   : > { %5622 = vst [vmem:[%s10390_s15 + $0xb0] sm:$0xff] %v5562_v0  ;;  %v5565_v21 = vadd.f32 %v6791_v37, %v10386_v39  ;;  %v5556_v32 = vpop.f32.mrb[183].mxu0 }
0x139d   : > { %5620 = vst [vmem:[%s10390_s15 + $0xa0] sm:$0xff] %v5554_v13  ;;  %v5557_v62 = vadd.f32 %v10386_v39, %v5556_v32 }
0x139e   : > { %5623 = vst [vmem:[%s10390_s15 + $0xb8] sm:$0xff] %v5565_v21 }
0x139f   : > { %5621 = vst [vmem:[%s10390_s15 + $0xa8] sm:$0xff] %v5557_v62 }
0x13a1   : > { %v6794_v46 = vpop.f32.mrb[184].mxu0 }
0x13a2   : > { %v5578_v24 = vadd.f32 %v6794_v46, %v10386_v39  ;;  %v5569_v27 = vpop.f32.mrb[185].mxu0 }
0x13a3   : > { %v5570_v42 = vadd.f32 %v10386_v39, %v5569_v27  ;;  %v6795_v29 = vpop.f32.mrb[186].mxu0 }
0x13a4   : > { %5626 = vst [vmem:[%s10390_s15 + $0xd0] sm:$0xff] %v5578_v24  ;;  %v5581_v9 = vadd.f32 %v6795_v29, %v10386_v39  ;;  %v5572_v45 = vpop.f32.mrb[187].mxu0 }
0x13a5   : > { %5624 = vst [vmem:[%s10390_s15 + $0xc0] sm:$0xff] %v5570_v42  ;;  %v5573_v25 = vadd.f32 %v10386_v39, %v5572_v45 }
0x13a6   : > { %5627 = vst [vmem:[%s10390_s15 + $0xd8] sm:$0xff] %v5581_v9 }
0x13a7   : > { %5625 = vst [vmem:[%s10390_s15 + $0xc8] sm:$0xff] %v5573_v25 }
0x13cd   : > { %v6798_v51 = vpop.f32.mrb[188].mxu0 }
0x13ce   : > { %v5594_v31 = vadd.f32 %v6798_v51, %v10386_v39  ;;  %v5585_v54 = vpop.f32.mrb[189].mxu0 }
0x13cf   : > { %v5586_v48 = vadd.f32 %v10386_v39, %v5585_v54  ;;  %v6799_v30 = vpop.f32.mrb[190].mxu0 }
0x13d0   : > { %5630 = vst [vmem:[%s10390_s15 + $0xf0] sm:$0xff] %v5594_v31  ;;  %v5597_v16 = vadd.f32 %v6799_v30, %v10386_v39  ;;  %v5588_v12 = vpop.f32.mrb[191].mxu0 }
0x13d1   : > { %5628 = vst [vmem:[%s10390_s15 + $0xe0] sm:$0xff] %v5586_v48  ;;  %v5589_v17 = vadd.f32 %v10386_v39, %v5588_v12 }
0x13d2   : > { %5631 = vst [vmem:[%s10390_s15 + $0xf8] sm:$0xff] %v5597_v16 }
0x13d3   : > { %5629 = vst [vmem:[%s10390_s15 + $0xe8] sm:$0xff] %v5589_v17 }
0x13d4   : > { %7664 = shalt.err (!%p7661_p12)
}
0x13d5   : > { %s7665_s7 = scalar_lea.hbm %s10469_s14, 4096  ;;  %s7669_s9 = scalar_lea.hbm %s10524_s6, 16384 }
0x13d6   : > { %p7666_p0 = scmp.ne.s32.totalorder %s10469_s14, %s7665_s7  ;;  %p7670_p11 = scmp.lt.u32.totalorder %s10469_s14, %s10524_s6 }
0x13d7   : > { %p7671_p1 = scmp.lt.u32.totalorder %s7669_s9, %s7665_s7  ;;  %p7673_p4 = scmp.lt.u32.totalorder %s7665_s7, %s10469_s14 }
0x13d8   : > { %p7667_p5 = pnand %p7666_p0, %p7916_p8 }
0x13d9   : > { %p7672_p2 = por %p7671_p1, %p7670_p11 }
0x13da   : > { %p7668_p10 = pneg %p7667_p5 }
0x13db   : > { %p7674_p6 = por %p7673_p4, %p7672_p2 }
0x13dd   : > { %p7675_p13 = pnand %p7674_p6, %p7668_p10 }
0x13df   : > { %7678 = shalt.err (!%p7675_p13)
}
0x13e0   : > { %s7742_s17 = smov 128   ;;  %s7743_s10 = smov 8  }
0x13e1   : > { %6894 = dma.vmem_to_hbm [thread:$0]  (%p7916_p8), %s10471_s18, 4096, %s10469_s14, %s5633_s25, %s7742_s17, %s7742_s17, %s7743_s10  }
0x13e2 PF: > { %p6921_p3 = scmp.ge.s32.totalorder %s7725_s24, 2  ;;  %s5662_s27 = sand.u32 1, %s7713_s21  }
0x13e3   : > { %p10931_p7 = scmp.ne.s32.totalorder %s10647_s28, 0  ;;  %s5663_s29 = scalar_lea.sflag [#allocation6], %s5662_s27 }
0x13e5   : > { %p6911_p9 = pnand %p6921_p3, %p10931_p7 }
0x13e7   : > { %7708 = dma.done.wait (!%p6911_p9), %s5663_s29, 4096  }
0x13e8   : > { %7710 = vsyncadd (!%p6911_p9), %s5663_s29, 4294963200  ;;  %p21_p12 = scmp.ge.s32.totalorder %s7902_s30, 6   ;;  %s10932_s21 = smov %s7717_s22 }
0x13e9   : > { %s10933_s22 = smov %s7721_s23  ;;  %s10934_s23 = smov %s7912_s13 }
0x13ea   : > { %s10935_s24 = smov %s7902_s30  ;;  %23 = sbr.rel (!%p21_p12) target bundleno = 7 (0x7), region = 104 }
0x13f1   :  { %5668 = vsyncpa [#allocation5], 1 }
0x13f2   :  { %5670 = vsyncpa [#allocation5 + $0x1], 1 }
0x13f3   :  { %5671 = vsyncpa [#allocation8], 1 }
0x13f4   :  { %5672 = vsyncpa [#allocation11], 1 }
0x13f5   :  { %5673 = vsyncpa [#allocation6], 1 }
0x13f6   :  { %5675 = vsyncpa [#allocation6 + $0x1], 1 }

</bundles_post_ra>
